<compile_context>
chip_gen: v7x
topology: tpu7x:2x2x1
jax: 0.10.0
libtpu: 0.0.40
codegen_flags: <defaults>
</compile_context>

<pallas_src>
import jax
import jax.numpy as jnp
from jax.experimental import pallas as pl
from jax.experimental.pallas import tpu as pltpu

BN_EPS = 1e-5
_VMEM_LIMIT = 32 * 1024 * 1024     # safe on v5e/v6e/v7x; tiles below use only a few MB
_TM_DEFAULT = 512                  # matmul row tile (rows = N*OH*OW)
_TN_TAIL = 256                     # batch-row tile for the fused tail kernel


def _round_up(x, m):
    return ((x + m - 1) // m) * m


def _compiler_params():
    return pltpu.CompilerParams(
        dimension_semantics=("parallel",),   # shard M tiles across TensorCores (v7x)
        vmem_limit_bytes=_VMEM_LIMIT,
    )


def _smem_scalar_spec():
    # scalar PReLU slope lives in SMEM as a (1,1) f32
    return pl.BlockSpec((1, 1), lambda i: (0, 0),
                        memory_space=pltpu.MemorySpace.SMEM)


# ---------------------------------------------------------------------------
# Pallas kernels
# ---------------------------------------------------------------------------
def _conv_mm_kernel(p_ref, w_ref, o_ref):
    # p: (TM, K) bf16 im2col patches, w: (K, Cout) bf16 (resident) -> o: (TM, Cout)
    o_ref[...] = jnp.dot(p_ref[...], w_ref[...],
                         preferred_element_type=jnp.float32).astype(o_ref.dtype)


def _bnprelu_conv_mm_kernel(p_ref, w_ref, s_ref, t_ref, a_ref, o_ref):
    # Fused prologue: previous stage's eval-BatchNorm (per-column affine, f32) +
    # scalar PReLU, then bf16 MXU matmul against this conv's weights.
    x = p_ref[...].astype(jnp.float32)
    y = x * s_ref[...] + t_ref[...]
    alpha = a_ref[0, 0]
    y = jnp.where(y >= 0.0, y, alpha * y)
    o_ref[...] = jnp.dot(y.astype(jnp.bfloat16), w_ref[...],
                         preferred_element_type=jnp.float32).astype(o_ref.dtype)


def _tail_kernel(x_ref, s3_ref, t3_ref, a3_ref,
                 w4_ref, b4_ref, a4_ref,
                 wfc_ref, bfc_ref, afc_ref,
                 wh_ref, bh_ref, o_ref):
    # x: (NB, 1024) NHWC-flattened pool3 activation (bf16).
    x = x_ref[...].astype(jnp.float32)
    y = x * s3_ref[...] + t3_ref[...]                         # BN3 (eval)
    y = jnp.where(y >= 0.0, y, a3_ref[0, 0] * y)              # PReLU3
    # conv4 (2x2 valid on 4x4) as a dense (1024,1152) matmul; bias + BN4 folded.
    h = jnp.dot(y.astype(jnp.bfloat16), w4_ref[...],
                preferred_element_type=jnp.float32) + b4_ref[...]
    h = jnp.where(h >= 0.0, h, a4_ref[0, 0] * h)              # PReLU4
    f = jnp.dot(h.astype(jnp.bfloat16), wfc_ref[...],
                preferred_element_type=jnp.float32) + bfc_ref[...]
    f = jnp.where(f >= 0.0, f, afc_ref[0, 0] * f)             # PReLU (fc)
    o = jnp.dot(f.astype(jnp.bfloat16), wh_ref[...],
                preferred_element_type=jnp.float32) + bh_ref[...]
    col = jax.lax.broadcasted_iota(jnp.int32, o.shape, 1)
    o_ref[...] = jnp.where(col == 0, jax.nn.sigmoid(o), o)    # sigmoid on conf column


# ---------------------------------------------------------------------------
# Glue: im2col, pooling (no k*k window materialization), pallas_call wrappers
# ---------------------------------------------------------------------------
def _im2col(x, k, pad):
    """x: (N,H,W,C) -> bf16 patches (N*OH*OW, k*k*C), column order (kh, kw, c)."""
    if pad:
        x = jnp.pad(x, ((0, 0), (pad, pad), (pad, pad), (0, 0)))
    x = x.astype(jnp.bfloat16)
    N, H, W, C = x.shape
    OH, OW = H - k + 1, W - k + 1
    cols = [x[:, di:di + OH, dj:dj + OW, :] for di in range(k) for dj in range(k)]
    p = jnp.stack(cols, axis=3).reshape(N * OH * OW, k * k * C)
    return p, (N, OH, OW)


def _maxpool(x, k, stride):
    """MaxPool2d(k, stride), floor mode — fused tree of strided-slice maxima."""
    N, H, W, C = x.shape
    OH = (H - k) // stride + 1
    OW = (W - k) // stride + 1
    out = None
    for di in range(k):
        for dj in range(k):
            s = x[:, di:di + stride * (OH - 1) + 1:stride,
                     dj:dj + stride * (OW - 1) + 1:stride, :]
            out = s if out is None else jnp.maximum(out, s)
    return out


def _conv_matmul(patches, w_mat, prologue=None):
    """Tiled (M, K) x (K, Cout) matmul; optional fused BN+PReLU prologue on patches."""
    M, K = patches.shape
    Cout = w_mat.shape[1]
    tm = min(_TM_DEFAULT, _round_up(M, 8))
    Mp = _round_up(M, tm)
    if Mp != M:
        patches = jnp.pad(patches, ((0, Mp - M), (0, 0)))
    grid = (Mp // tm,)
    patch_spec = pl.BlockSpec((tm, K), lambda i: (i, 0))
    w_spec = pl.BlockSpec((K, Cout), lambda i: (0, 0))          # resident
    out_spec = pl.BlockSpec((tm, Cout), lambda i: (i, 0))
    out_shape = jax.ShapeDtypeStruct((Mp, Cout), jnp.bfloat16)
    if prologue is None:
        out = pl.pallas_call(
            _conv_mm_kernel, out_shape=out_shape, grid=grid,
            in_specs=[patch_spec, w_spec], out_specs=out_spec,
            compiler_params=_compiler_params(),
        )(patches, w_mat)
    else:
        scale_cols, shift_cols, alpha = prologue
        out = pl.pallas_call(
            _bnprelu_conv_mm_kernel, out_shape=out_shape, grid=grid,
            in_specs=[patch_spec, w_spec,
                      pl.BlockSpec((1, K), lambda i: (0, 0)),
                      pl.BlockSpec((1, K), lambda i: (0, 0)),
                      _smem_scalar_spec()],
            out_specs=out_spec,
            compiler_params=_compiler_params(),
        )(patches, w_mat, scale_cols, shift_cols, alpha)
    return out[:M]


def _tail(x_flat, s3, t3, a3, w4b, b4b, a4, wfc, bfc, afc, wh, bh):
    """Fused BN3+PReLU3 -> conv4(+BN4) -> PReLU4 -> FC+PReLU -> heads, batch-tiled."""
    N, K = x_flat.shape
    nb = min(_TN_TAIL, _round_up(N, 8))
    Np = _round_up(N, nb)
    if Np != N:
        x_flat = jnp.pad(x_flat, ((0, Np - N), (0, 0)))

    def full(shape):
        return pl.BlockSpec(shape, lambda i: (0,) * len(shape))

    out = pl.pallas_call(
        _tail_kernel,
        out_shape=jax.ShapeDtypeStruct((Np, wh.shape[1]), jnp.float32),
        grid=(Np // nb,),
        in_specs=[pl.BlockSpec((nb, K), lambda i: (i, 0)),
                  full((1, K)), full((1, K)), _smem_scalar_spec(),
                  full(w4b.shape), full((1, w4b.shape[1])), _smem_scalar_spec(),
                  full(wfc.shape), full((1, wfc.shape[1])), _smem_scalar_spec(),
                  full(wh.shape), full((1, wh.shape[1]))],
        out_specs=pl.BlockSpec((nb, wh.shape[1]), lambda i: (i, 0)),
        compiler_params=_compiler_params(),
    )(x_flat, s3, t3, a3, w4b, b4b, a4, wfc, bfc, afc, wh, bh)
    return out[:N]


# ---------------------------------------------------------------------------
# Full ONet forward
# ---------------------------------------------------------------------------
def _bn_scale_shift(bn):
    gamma, beta, mean, var = bn
    scale = gamma * jax.lax.rsqrt(var + BN_EPS)
    shift = beta - mean * scale
    return scale, shift


@jax.jit
def onet_forward(x_nchw, params):
    f32, bf16 = jnp.float32, jnp.bfloat16

    # ---- fold / repack parameters (tiny tensors; traced under jit) ----
    w1m = params["w1"].reshape(27, 32).astype(bf16)
    w2m = params["w2"].reshape(288, 64).astype(bf16)
    w3m = params["w3"].reshape(576, 64).astype(bf16)

    s1, t1 = _bn_scale_shift(params["bn1"])
    s2, t2 = _bn_scale_shift(params["bn2"])
    s3, t3 = _bn_scale_shift(params["bn3"])
    s4, _ = _bn_scale_shift(params["bn4"])

    # conv4 (2x2, 64->128, valid on 4x4) + bias + BN4 folded into one dense
    # (4*4*64, 3*3*128) matrix acting on the NHWC-flattened pool3 activation.
    w4 = params["w4"]                                          # (2,2,64,128) HWIO
    wbig = jnp.zeros((4, 4, 64, 3, 3, 128), f32)
    for oh in range(3):
        for ow in range(3):
            wbig = wbig.at[oh:oh + 2, ow:ow + 2, :, oh, ow, :].set(w4)
    wbig = wbig * s4                                           # fold BN4 scale (per cout)
    w4big = wbig.reshape(4 * 4 * 64, 3 * 3 * 128).astype(bf16)
    gamma4, beta4, mean4, _ = params["bn4"]
    b4fold = (params["b4"] - mean4) * s4 + beta4
    b4big = jnp.tile(b4fold, 9).reshape(1, 1152).astype(f32)

    # FC weight rows permuted from PyTorch (c,h,w) flatten order to the (h,w,c)
    # order produced by the tail kernel (removes the runtime activation transpose).
    idx = jnp.arange(1152)
    h_i, w_i, c_i = idx // 384, (idx // 128) % 3, idx % 128
    wfc = params["wfc"][c_i * 9 + h_i * 3 + w_i, :].astype(bf16)   # (1152, 256)
    bfc = params["bfc"].reshape(1, 256).astype(f32)

    # fused heads: conf | offset | landmark -> one (256, 16) matmul (lane-padded).
    wh = jnp.concatenate([params["wc"], params["wo"], params["wlm"]], axis=1)
    wh = jnp.pad(wh, ((0, 0), (0, 1))).astype(bf16)                # (256, 16)
    bh = jnp.pad(jnp.concatenate([params["bc"], params["bo"], params["blm"]]),
                 (0, 1)).reshape(1, 16).astype(f32)

    a1 = params["a1"].reshape(1, 1).astype(f32)
    a2 = params["a2"].reshape(1, 1).astype(f32)
    a3 = params["a3"].reshape(1, 1).astype(f32)
    a4 = params["a4"].reshape(1, 1).astype(f32)
    afc = params["afc"].reshape(1, 1).astype(f32)

    # ---- forward ----
    x = jnp.transpose(x_nchw, (0, 2, 3, 1)).astype(f32)            # NCHW -> NHWC

    # stage 1: conv1 (3x3, pad 1, no bias) -> maxpool 3/2
    p, (n, oh, ow) = _im2col(x, k=3, pad=1)                        # (N*48*48, 27)
    y = _conv_matmul(p, w1m).reshape(n, oh, ow, 32)                # (N,48,48,32)
    y = _maxpool(y, 3, 2)                                          # (N,23,23,32)

    # stage 2: [BN1+PReLU1 fused] conv2 (3x3, no bias) -> maxpool 3/2
    p, (n, oh, ow) = _im2col(y, k=3, pad=0)                        # (N*21*21, 288)
    pro = (jnp.tile(s1, 9).reshape(1, 288), jnp.tile(t1, 9).reshape(1, 288), a1)
    y = _conv_matmul(p, w2m, prologue=pro).reshape(n, oh, ow, 64)  # (N,21,21,64)
    y = _maxpool(y, 3, 2)                                          # (N,10,10,64)

    # stage 3: [BN2+PReLU2 fused] conv3 (3x3, no bias) -> maxpool 2/2
    p, (n, oh, ow) = _im2col(y, k=3, pad=0)                        # (N*8*8, 576)
    pro = (jnp.tile(s2, 9).reshape(1, 576), jnp.tile(t2, 9).reshape(1, 576), a2)
    y = _conv_matmul(p, w3m, prologue=pro).reshape(n, oh, ow, 64)  # (N,8,8,64)
    y = _maxpool(y, 2, 2)                                          # (N,4,4,64)

    # tail: BN3+PReLU3 -> conv4(+bias, BN4) -> PReLU4 -> FC+PReLU -> heads
    x_flat = y.reshape(y.shape[0], 4 * 4 * 64)                     # NHWC flatten
    out = _tail(x_flat,
                jnp.tile(s3, 16).reshape(1, 1024),
                jnp.tile(t3, 16).reshape(1, 1024), a3,
                w4big, b4big, a4, wfc, bfc, afc, wh, bh)
    conf = out[:, 0:1]
    offset = out[:, 1:5]
    landmark = out[:, 5:15]
    return conf, offset, landmark


# ---------------------------------------------------------------------------
# Deterministic parameter init (synthetic; shapes match the PyTorch module)
# ---------------------------------------------------------------------------
def init_params(key):
    keys = jax.random.split(key, 24)
    ki = iter(range(24))

    def nrm(k, shape, scale):
        return jax.random.normal(k, shape, jnp.float32) * scale

    def bn_params(k, c):
        k1, k2, k3 = jax.random.split(k, 3)
        gamma = 1.0 + 0.1 * jax.random.normal(k1, (c,), jnp.float32)
        beta = 0.1 * jax.random.normal(k2, (c,), jnp.float32)
        mean = 0.1 * jax.random.normal(k3, (c,), jnp.float32)
        var = jnp.ones((c,), jnp.float32)
        return (gamma, beta, mean, var)

    prelu = jnp.full((1,), 0.25, jnp.float32)   # nn.PReLU() default single alpha

    p = {}
    # conv weights stored HWIO (kh, kw, cin, cout)
    p["w1"] = nrm(keys[next(ki)], (3, 3, 3, 32), 0.10)
    p["bn1"] = bn_params(keys[next(ki)], 32); p["a1"] = prelu
    p["w2"] = nrm(keys[next(ki)], (3, 3, 32, 64), 0.05)
    p["bn2"] = bn_params(keys[next(ki)], 64); p["a2"] = prelu
    p["w3"] = nrm(keys[next(ki)], (3, 3, 64, 64), 0.05)
    p["bn3"] = bn_params(keys[next(ki)], 64); p["a3"] = prelu
    p["w4"] = nrm(keys[next(ki)], (2, 2, 64, 128), 0.05)
    p["b4"] = nrm(keys[next(ki)], (128,), 0.05)
    p["bn4"] = bn_params(keys[next(ki)], 128); p["a4"] = prelu
    # linear layers stored (in, out); wfc rows in PyTorch (c,h,w) flatten order
    p["wfc"] = nrm(keys[next(ki)], (128 * 3 * 3, 256), 0.02)
    p["bfc"] = nrm(keys[next(ki)], (256,), 0.02)
    p["afc"] = prelu
    p["wc"] = nrm(keys[next(ki)], (256, 1), 0.05)
    p["bc"] = nrm(keys[next(ki)], (1,), 0.05)
    p["wo"] = nrm(keys[next(ki)], (256, 4), 0.05)
    p["bo"] = nrm(keys[next(ki)], (4,), 0.05)
    p["wlm"] = nrm(keys[next(ki)], (256, 10), 0.05)
    p["blm"] = nrm(keys[next(ki)], (10,), 0.05)
    return p


if __name__ == "__main__":
    root = jax.random.PRNGKey(0)
    k_in, k_par = jax.random.split(root)

    # ONet requires 48x48 input so the conv stack yields 128*3*3 features.
    x = jax.random.normal(k_in, (2, 3, 48, 48), jnp.float32)   # NCHW, like PyTorch
    params = init_params(k_par)

    conf, offset, landmark = onet_forward(x, params)
    jax.block_until_ready((conf, offset, landmark))

    assert conf.shape == (2, 1)
    assert offset.shape == (2, 4)
    assert landmark.shape == (2, 10)
    assert bool(jnp.all(jnp.isfinite(conf)))
    assert bool(jnp.all((conf >= 0.0) & (conf <= 1.0)))
    print("KERNEL_OK")
</pallas_src>

<mosaic_0001>
module attributes {stable_mosaic.version = 11 : i64} {
  func.func @_conv_mm_kernel(%arg0: i32, %arg1: memref<512x27xbf16, #tpu.memory_space<vmem>>, %arg2: memref<27x32xbf16, #tpu.memory_space<vmem>>, %arg3: memref<512x32xbf16, #tpu.memory_space<vmem>>) attributes {dimension_semantics = [#tpu.dimension_semantics<parallel>], iteration_bounds = array<i64: 9>, scalar_prefetch = 0 : i64, scratch_operands = 0 : i64, tpu.core_type = #tpu.core_type<tc>, window_params = [{transform_indices = @transform_0, window_bounds = array<i64: 512, 27>}, {pipeline_mode = #tpu.pipeline_mode<synchronous>, transform_indices = @transform_1, window_bounds = array<i64: 27, 32>}, {transform_indices = @transform_2, window_bounds = array<i64: 512, 32>}]} {
    %c0 = arith.constant 0 : index
    %c0_0 = arith.constant 0 : index
    %0 = vector.load %arg1[%c0, %c0_0] : memref<512x27xbf16, #tpu.memory_space<vmem>>, vector<512x27xbf16>
    %c0_1 = arith.constant 0 : index
    %c0_2 = arith.constant 0 : index
    %1 = vector.load %arg2[%c0_1, %c0_2] : memref<27x32xbf16, #tpu.memory_space<vmem>>, vector<27x32xbf16>
    %cst = arith.constant dense<0.000000e+00> : vector<512x32xf32>
    %2 = tpu.matmul %0, %1, %cst {dimension_numbers = #tpu.dot_dimension_numbers<[1], [0], [0], [1], [0, 0, 1, 1], [], []>} : vector<512x27xbf16>, vector<27x32xbf16>, vector<512x32xf32> -> vector<512x32xf32>
    %3 = arith.truncf %2 : vector<512x32xf32> to vector<512x32xbf16>
    %c0_3 = arith.constant 0 : index
    %c0_4 = arith.constant 0 : index
    %4 = vector.load %arg3[%c0_3, %c0_4] : memref<512x32xbf16, #tpu.memory_space<vmem>>, vector<512x32xbf16>
    tpu.vector_store %arg3[%c0_3, %c0_4], %3 {strides = array<i32>} : memref<512x32xbf16, #tpu.memory_space<vmem>>, vector<512x32xbf16>,
    return
  }
  func.func @transform_0(%arg0: i32) -> (i32, i32) {
    %c0_i32 = arith.constant 0 : i32
    %c0_i32_0 = arith.constant 0 : i32
    return %arg0, %c0_i32 : i32, i32
  }
  func.func @transform_1(%arg0: i32) -> (i32, i32) {
    %c0_i32 = arith.constant 0 : i32
    %c0_i32_0 = arith.constant 0 : i32
    %c0_i32_1 = arith.constant 0 : i32
    return %c0_i32, %c0_i32_0 : i32, i32
  }
  func.func @transform_2(%arg0: i32) -> (i32, i32) {
    %c0_i32 = arith.constant 0 : i32
    %c0_i32_0 = arith.constant 0 : i32
    return %arg0, %c0_i32 : i32, i32
  }
}

module attributes {stable_mosaic.version = 11 : i64} {
  func.func @_bnprelu_conv_mm_kernel(%arg0: i32, %arg1: memref<512x288xbf16, #tpu.memory_space<vmem>>, %arg2: memref<288x64xbf16, #tpu.memory_space<vmem>>, %arg3: memref<1x288xf32, #tpu.memory_space<vmem>>, %arg4: memref<1x288xf32, #tpu.memory_space<vmem>>, %arg5: memref<1x1xf32, #tpu.memory_space<smem>>, %arg6: memref<512x64xbf16, #tpu.memory_space<vmem>>) attributes {dimension_semantics = [#tpu.dimension_semantics<parallel>], iteration_bounds = array<i64: 2>, scalar_prefetch = 0 : i64, scratch_operands = 0 : i64, tpu.core_type = #tpu.core_type<tc>, window_params = [{transform_indices = @transform_0, window_bounds = array<i64: 512, 288>}, {pipeline_mode = #tpu.pipeline_mode<synchronous>, transform_indices = @transform_1, window_bounds = array<i64: 288, 64>}, {pipeline_mode = #tpu.pipeline_mode<synchronous>, transform_indices = @transform_2, window_bounds = array<i64: 1, 288>}, {pipeline_mode = #tpu.pipeline_mode<synchronous>, transform_indices = @transform_3, window_bounds = array<i64: 1, 288>}, {transform_indices = @transform_4, window_bounds = array<i64: 1, 1>}, {transform_indices = @transform_5, window_bounds = array<i64: 512, 64>}]} {
    %c0 = arith.constant 0 : index
    %c0_0 = arith.constant 0 : index
    %0 = vector.load %arg1[%c0, %c0_0] : memref<512x288xbf16, #tpu.memory_space<vmem>>, vector<512x288xbf16>
    %1 = arith.extf %0 : vector<512x288xbf16> to vector<512x288xf32>
    %c0_1 = arith.constant 0 : index
    %c0_2 = arith.constant 0 : index
    %2 = vector.load %arg3[%c0_1, %c0_2] : memref<1x288xf32, #tpu.memory_space<vmem>>, vector<1x288xf32>
    %3 = vector.broadcast %2 : vector<1x288xf32> to vector<512x288xf32>
    %4 = arith.mulf %1, %3 : vector<512x288xf32>
    %c0_3 = arith.constant 0 : index
    %c0_4 = arith.constant 0 : index
    %5 = vector.load %arg4[%c0_3, %c0_4] : memref<1x288xf32, #tpu.memory_space<vmem>>, vector<1x288xf32>
    %6 = vector.broadcast %5 : vector<1x288xf32> to vector<512x288xf32>
    %7 = arith.addf %4, %6 : vector<512x288xf32>
    %c0_5 = arith.constant 0 : index
    %c0_6 = arith.constant 0 : index
    %8 = memref.load %arg5[%c0_5, %c0_6] : memref<1x1xf32, #tpu.memory_space<smem>>
    %cst = arith.constant 0.000000e+00 : f32
    %9 = vector.broadcast %cst : f32 to vector<512x288xf32>
    %10 = arith.cmpf oge, %7, %9 : vector<512x288xf32>
    %11 = vector.broadcast %8 : f32 to vector<512x288xf32>
    %12 = arith.mulf %11, %7 : vector<512x288xf32>
    %13 = arith.select %10, %7, %12 : vector<512x288xi1>, vector<512x288xf32>
    %14 = arith.truncf %13 : vector<512x288xf32> to vector<512x288xbf16>
    %c0_7 = arith.constant 0 : index
    %c0_8 = arith.constant 0 : index
    %15 = vector.load %arg2[%c0_7, %c0_8] : memref<288x64xbf16, #tpu.memory_space<vmem>>, vector<288x64xbf16>
    %cst_9 = arith.constant dense<0.000000e+00> : vector<512x64xf32>
    %16 = tpu.matmul %14, %15, %cst_9 {dimension_numbers = #tpu.dot_dimension_numbers<[1], [0], [0], [1], [0, 0, 1, 1], [], []>} : vector<512x288xbf16>, vector<288x64xbf16>, vector<512x64xf32> -> vector<512x64xf32>
    %17 = arith.truncf %16 : vector<512x64xf32> to vector<512x64xbf16>
    %c0_10 = arith.constant 0 : index
    %c0_11 = arith.constant 0 : index
    %18 = vector.load %arg6[%c0_10, %c0_11] : memref<512x64xbf16, #tpu.memory_space<vmem>>, vector<512x64xbf16>
    tpu.vector_store %arg6[%c0_10, %c0_11], %17 {strides = array<i32>} : memref<512x64xbf16, #tpu.memory_space<vmem>>, vector<512x64xbf16>,
    return
  }
  func.func @transform_0(%arg0: i32) -> (i32, i32) {
    %c0_i32 = arith.constant 0 : i32
    %c0_i32_0 = arith.constant 0 : i32
    return %arg0, %c0_i32 : i32, i32
  }
  func.func @transform_1(%arg0: i32) -> (i32, i32) {
    %c0_i32 = arith.constant 0 : i32
    %c0_i32_0 = arith.constant 0 : i32
    %c0_i32_1 = arith.constant 0 : i32
    return %c0_i32, %c0_i32_0 : i32, i32
  }
  func.func @transform_2(%arg0: i32) -> (i32, i32) {
    %c0_i32 = arith.constant 0 : i32
    %c0_i32_0 = arith.constant 0 : i32
    %c0_i32_1 = arith.constant 0 : i32
    return %c0_i32, %c0_i32_0 : i32, i32
  }
  func.func @transform_3(%arg0: i32) -> (i32, i32) {
    %c0_i32 = arith.constant 0 : i32
    %c0_i32_0 = arith.constant 0 : i32
    %c0_i32_1 = arith.constant 0 : i32
    return %c0_i32, %c0_i32_0 : i32, i32
  }
  func.func @transform_4(%arg0: i32) -> (i32, i32) {
    %c0_i32 = arith.constant 0 : i32
    %c0_i32_0 = arith.constant 0 : i32
    %c0_i32_1 = arith.constant 0 : i32
    return %c0_i32, %c0_i32_0 : i32, i32
  }
  func.func @transform_5(%arg0: i32) -> (i32, i32) {
    %c0_i32 = arith.constant 0 : i32
    %c0_i32_0 = arith.constant 0 : i32
    return %arg0, %c0_i32 : i32, i32
  }
}

module attributes {stable_mosaic.version = 11 : i64} {
  func.func @_bnprelu_conv_mm_kernel(%arg0: i32, %arg1: memref<128x576xbf16, #tpu.memory_space<vmem>>, %arg2: memref<576x64xbf16, #tpu.memory_space<vmem>>, %arg3: memref<1x576xf32, #tpu.memory_space<vmem>>, %arg4: memref<1x576xf32, #tpu.memory_space<vmem>>, %arg5: memref<1x1xf32, #tpu.memory_space<smem>>, %arg6: memref<128x64xbf16, #tpu.memory_space<vmem>>) attributes {dimension_semantics = [#tpu.dimension_semantics<parallel>], iteration_bounds = array<i64: 1>, scalar_prefetch = 0 : i64, scratch_operands = 0 : i64, tpu.core_type = #tpu.core_type<tc>, window_params = [{transform_indices = @transform_0, window_bounds = array<i64: 128, 576>}, {pipeline_mode = #tpu.pipeline_mode<synchronous>, transform_indices = @transform_1, window_bounds = array<i64: 576, 64>}, {pipeline_mode = #tpu.pipeline_mode<synchronous>, transform_indices = @transform_2, window_bounds = array<i64: 1, 576>}, {pipeline_mode = #tpu.pipeline_mode<synchronous>, transform_indices = @transform_3, window_bounds = array<i64: 1, 576>}, {transform_indices = @transform_4, window_bounds = array<i64: 1, 1>}, {transform_indices = @transform_5, window_bounds = array<i64: 128, 64>}]} {
    %c0 = arith.constant 0 : index
    %c0_0 = arith.constant 0 : index
    %0 = vector.load %arg1[%c0, %c0_0] : memref<128x576xbf16, #tpu.memory_space<vmem>>, vector<128x576xbf16>
    %1 = arith.extf %0 : vector<128x576xbf16> to vector<128x576xf32>
    %c0_1 = arith.constant 0 : index
    %c0_2 = arith.constant 0 : index
    %2 = vector.load %arg3[%c0_1, %c0_2] : memref<1x576xf32, #tpu.memory_space<vmem>>, vector<1x576xf32>
    %3 = vector.broadcast %2 : vector<1x576xf32> to vector<128x576xf32>
    %4 = arith.mulf %1, %3 : vector<128x576xf32>
    %c0_3 = arith.constant 0 : index
    %c0_4 = arith.constant 0 : index
    %5 = vector.load %arg4[%c0_3, %c0_4] : memref<1x576xf32, #tpu.memory_space<vmem>>, vector<1x576xf32>
    %6 = vector.broadcast %5 : vector<1x576xf32> to vector<128x576xf32>
    %7 = arith.addf %4, %6 : vector<128x576xf32>
    %c0_5 = arith.constant 0 : index
    %c0_6 = arith.constant 0 : index
    %8 = memref.load %arg5[%c0_5, %c0_6] : memref<1x1xf32, #tpu.memory_space<smem>>
    %cst = arith.constant 0.000000e+00 : f32
    %9 = vector.broadcast %cst : f32 to vector<128x576xf32>
    %10 = arith.cmpf oge, %7, %9 : vector<128x576xf32>
    %11 = vector.broadcast %8 : f32 to vector<128x576xf32>
    %12 = arith.mulf %11, %7 : vector<128x576xf32>
    %13 = arith.select %10, %7, %12 : vector<128x576xi1>, vector<128x576xf32>
    %14 = arith.truncf %13 : vector<128x576xf32> to vector<128x576xbf16>
    %c0_7 = arith.constant 0 : index
    %c0_8 = arith.constant 0 : index
    %15 = vector.load %arg2[%c0_7, %c0_8] : memref<576x64xbf16, #tpu.memory_space<vmem>>, vector<576x64xbf16>
    %cst_9 = arith.constant dense<0.000000e+00> : vector<128x64xf32>
    %16 = tpu.matmul %14, %15, %cst_9 {dimension_numbers = #tpu.dot_dimension_numbers<[1], [0], [0], [1], [0, 0, 1, 1], [], []>} : vector<128x576xbf16>, vector<576x64xbf16>, vector<128x64xf32> -> vector<128x64xf32>
    %17 = arith.truncf %16 : vector<128x64xf32> to vector<128x64xbf16>
    %c0_10 = arith.constant 0 : index
    %c0_11 = arith.constant 0 : index
    %18 = vector.load %arg6[%c0_10, %c0_11] : memref<128x64xbf16, #tpu.memory_space<vmem>>, vector<128x64xbf16>
    tpu.vector_store %arg6[%c0_10, %c0_11], %17 {strides = array<i32>} : memref<128x64xbf16, #tpu.memory_space<vmem>>, vector<128x64xbf16>,
    return
  }
  func.func @transform_0(%arg0: i32) -> (i32, i32) {
    %c0_i32 = arith.constant 0 : i32
    %c0_i32_0 = arith.constant 0 : i32
    return %arg0, %c0_i32 : i32, i32
  }
  func.func @transform_1(%arg0: i32) -> (i32, i32) {
    %c0_i32 = arith.constant 0 : i32
    %c0_i32_0 = arith.constant 0 : i32
    %c0_i32_1 = arith.constant 0 : i32
    return %c0_i32, %c0_i32_0 : i32, i32
  }
  func.func @transform_2(%arg0: i32) -> (i32, i32) {
    %c0_i32 = arith.constant 0 : i32
    %c0_i32_0 = arith.constant 0 : i32
    %c0_i32_1 = arith.constant 0 : i32
    return %c0_i32, %c0_i32_0 : i32, i32
  }
  func.func @transform_3(%arg0: i32) -> (i32, i32) {
    %c0_i32 = arith.constant 0 : i32
    %c0_i32_0 = arith.constant 0 : i32
    %c0_i32_1 = arith.constant 0 : i32
    return %c0_i32, %c0_i32_0 : i32, i32
  }
  func.func @transform_4(%arg0: i32) -> (i32, i32) {
    %c0_i32 = arith.constant 0 : i32
    %c0_i32_0 = arith.constant 0 : i32
    %c0_i32_1 = arith.constant 0 : i32
    return %c0_i32, %c0_i32_0 : i32, i32
  }
  func.func @transform_5(%arg0: i32) -> (i32, i32) {
    %c0_i32 = arith.constant 0 : i32
    %c0_i32_0 = arith.constant 0 : i32
    return %arg0, %c0_i32 : i32, i32
  }
}

module attributes {stable_mosaic.version = 11 : i64} {
  func.func @_tail_kernel(%arg0: i32, %arg1: memref<8x1024xbf16, #tpu.memory_space<vmem>>, %arg2: memref<1x1024xf32, #tpu.memory_space<vmem>>, %arg3: memref<1x1024xf32, #tpu.memory_space<vmem>>, %arg4: memref<1x1xf32, #tpu.memory_space<smem>>, %arg5: memref<1024x1152xbf16, #tpu.memory_space<vmem>>, %arg6: memref<1x1152xf32, #tpu.memory_space<vmem>>, %arg7: memref<1x1xf32, #tpu.memory_space<smem>>, %arg8: memref<1152x256xbf16, #tpu.memory_space<vmem>>, %arg9: memref<1x256xf32, #tpu.memory_space<vmem>>, %arg10: memref<1x1xf32, #tpu.memory_space<smem>>, %arg11: memref<256x16xbf16, #tpu.memory_space<vmem>>, %arg12: memref<1x16xf32, #tpu.memory_space<vmem>>, %arg13: memref<8x16xf32, #tpu.memory_space<vmem>>) attributes {dimension_semantics = [#tpu.dimension_semantics<parallel>], iteration_bounds = array<i64: 1>, scalar_prefetch = 0 : i64, scratch_operands = 0 : i64, tpu.core_type = #tpu.core_type<tc>, window_params = [{transform_indices = @transform_0, window_bounds = array<i64: 8, 1024>}, {pipeline_mode = #tpu.pipeline_mode<synchronous>, transform_indices = @transform_1, window_bounds = array<i64: 1, 1024>}, {pipeline_mode = #tpu.pipeline_mode<synchronous>, transform_indices = @transform_2, window_bounds = array<i64: 1, 1024>}, {transform_indices = @transform_3, window_bounds = array<i64: 1, 1>}, {pipeline_mode = #tpu.pipeline_mode<synchronous>, transform_indices = @transform_4, window_bounds = array<i64: 1024, 1152>}, {pipeline_mode = #tpu.pipeline_mode<synchronous>, transform_indices = @transform_5, window_bounds = array<i64: 1, 1152>}, {transform_indices = @transform_6, window_bounds = array<i64: 1, 1>}, {pipeline_mode = #tpu.pipeline_mode<synchronous>, transform_indices = @transform_7, window_bounds = array<i64: 1152, 256>}, {pipeline_mode = #tpu.pipeline_mode<synchronous>, transform_indices = @transform_8, window_bounds = array<i64: 1, 256>}, {transform_indices = @transform_9, window_bounds = array<i64: 1, 1>}, {pipeline_mode = #tpu.pipeline_mode<synchronous>, transform_indices = @transform_10, window_bounds = array<i64: 256, 16>}, {pipeline_mode = #tpu.pipeline_mode<synchronous>, transform_indices = @transform_11, window_bounds = array<i64: 1, 16>}, {transform_indices = @transform_12, window_bounds = array<i64: 8, 16>}]} {
    %c0 = arith.constant 0 : index
    %c0_0 = arith.constant 0 : index
    %0 = vector.load %arg1[%c0, %c0_0] : memref<8x1024xbf16, #tpu.memory_space<vmem>>, vector<8x1024xbf16>
    %1 = arith.extf %0 : vector<8x1024xbf16> to vector<8x1024xf32>
    %c0_1 = arith.constant 0 : index
    %c0_2 = arith.constant 0 : index
    %2 = vector.load %arg2[%c0_1, %c0_2] : memref<1x1024xf32, #tpu.memory_space<vmem>>, vector<1x1024xf32>
    %3 = vector.broadcast %2 : vector<1x1024xf32> to vector<8x1024xf32>
    %4 = arith.mulf %1, %3 : vector<8x1024xf32>
    %c0_3 = arith.constant 0 : index
    %c0_4 = arith.constant 0 : index
    %5 = vector.load %arg3[%c0_3, %c0_4] : memref<1x1024xf32, #tpu.memory_space<vmem>>, vector<1x1024xf32>
    %6 = vector.broadcast %5 : vector<1x1024xf32> to vector<8x1024xf32>
    %7 = arith.addf %4, %6 : vector<8x1024xf32>
    %cst = arith.constant 0.000000e+00 : f32
    %8 = vector.broadcast %cst : f32 to vector<8x1024xf32>
    %9 = arith.cmpf oge, %7, %8 : vector<8x1024xf32>
    %c0_5 = arith.constant 0 : index
    %c0_6 = arith.constant 0 : index
    %10 = memref.load %arg4[%c0_5, %c0_6] : memref<1x1xf32, #tpu.memory_space<smem>>
    %11 = vector.broadcast %10 : f32 to vector<8x1024xf32>
    %12 = arith.mulf %11, %7 : vector<8x1024xf32>
    %13 = arith.select %9, %7, %12 : vector<8x1024xi1>, vector<8x1024xf32>
    %14 = arith.truncf %13 : vector<8x1024xf32> to vector<8x1024xbf16>
    %c0_7 = arith.constant 0 : index
    %c0_8 = arith.constant 0 : index
    %15 = vector.load %arg5[%c0_7, %c0_8] : memref<1024x1152xbf16, #tpu.memory_space<vmem>>, vector<1024x1152xbf16>
    %cst_9 = arith.constant dense<0.000000e+00> : vector<8x1152xf32>
    %16 = tpu.matmul %14, %15, %cst_9 {dimension_numbers = #tpu.dot_dimension_numbers<[1], [0], [0], [1], [0, 0, 1, 1], [], []>} : vector<8x1024xbf16>, vector<1024x1152xbf16>, vector<8x1152xf32> -> vector<8x1152xf32>
    %c0_10 = arith.constant 0 : index
    %c0_11 = arith.constant 0 : index
    %17 = vector.load %arg6[%c0_10, %c0_11] : memref<1x1152xf32, #tpu.memory_space<vmem>>, vector<1x1152xf32>
    %18 = vector.broadcast %17 : vector<1x1152xf32> to vector<8x1152xf32>
    %19 = arith.addf %16, %18 : vector<8x1152xf32>
    %cst_12 = arith.constant 0.000000e+00 : f32
    %20 = vector.broadcast %cst_12 : f32 to vector<8x1152xf32>
    %21 = arith.cmpf oge, %19, %20 : vector<8x1152xf32>
    %c0_13 = arith.constant 0 : index
    %c0_14 = arith.constant 0 : index
    %22 = memref.load %arg7[%c0_13, %c0_14] : memref<1x1xf32, #tpu.memory_space<smem>>
    %23 = vector.broadcast %22 : f32 to vector<8x1152xf32>
    %24 = arith.mulf %23, %19 : vector<8x1152xf32>
    %25 = arith.select %21, %19, %24 : vector<8x1152xi1>, vector<8x1152xf32>
    %26 = arith.truncf %25 : vector<8x1152xf32> to vector<8x1152xbf16>
    %c0_15 = arith.constant 0 : index
    %c0_16 = arith.constant 0 : index
    %27 = vector.load %arg8[%c0_15, %c0_16] : memref<1152x256xbf16, #tpu.memory_space<vmem>>, vector<1152x256xbf16>
    %cst_17 = arith.constant dense<0.000000e+00> : vector<8x256xf32>
    %28 = tpu.matmul %26, %27, %cst_17 {dimension_numbers = #tpu.dot_dimension_numbers<[1], [0], [0], [1], [0, 0, 1, 1], [], []>} : vector<8x1152xbf16>, vector<1152x256xbf16>, vector<8x256xf32> -> vector<8x256xf32>
    %c0_18 = arith.constant 0 : index
    %c0_19 = arith.constant 0 : index
    %29 = vector.load %arg9[%c0_18, %c0_19] : memref<1x256xf32, #tpu.memory_space<vmem>>, vector<1x256xf32>
    %30 = vector.broadcast %29 : vector<1x256xf32> to vector<8x256xf32>
    %31 = arith.addf %28, %30 : vector<8x256xf32>
    %cst_20 = arith.constant 0.000000e+00 : f32
    %32 = vector.broadcast %cst_20 : f32 to vector<8x256xf32>
    %33 = arith.cmpf oge, %31, %32 : vector<8x256xf32>
    %c0_21 = arith.constant 0 : index
    %c0_22 = arith.constant 0 : index
    %34 = memref.load %arg10[%c0_21, %c0_22] : memref<1x1xf32, #tpu.memory_space<smem>>
    %35 = vector.broadcast %34 : f32 to vector<8x256xf32>
    %36 = arith.mulf %35, %31 : vector<8x256xf32>
    %37 = arith.select %33, %31, %36 : vector<8x256xi1>, vector<8x256xf32>
    %38 = arith.truncf %37 : vector<8x256xf32> to vector<8x256xbf16>
    %c0_23 = arith.constant 0 : index
    %c0_24 = arith.constant 0 : index
    %39 = vector.load %arg11[%c0_23, %c0_24] : memref<256x16xbf16, #tpu.memory_space<vmem>>, vector<256x16xbf16>
    %cst_25 = arith.constant dense<0.000000e+00> : vector<8x16xf32>
    %40 = tpu.matmul %38, %39, %cst_25 {dimension_numbers = #tpu.dot_dimension_numbers<[1], [0], [0], [1], [0, 0, 1, 1], [], []>} : vector<8x256xbf16>, vector<256x16xbf16>, vector<8x16xf32> -> vector<8x16xf32>
    %c0_26 = arith.constant 0 : index
    %c0_27 = arith.constant 0 : index
    %41 = vector.load %arg12[%c0_26, %c0_27] : memref<1x16xf32, #tpu.memory_space<vmem>>, vector<1x16xf32>
    %42 = vector.broadcast %41 : vector<1x16xf32> to vector<8x16xf32>
    %43 = arith.addf %40, %42 : vector<8x16xf32>
    %44 = tpu.iota {dimensions = array<i32: 1>} : vector<8x16xi32>
    %c0_i32 = arith.constant 0 : i32
    %45 = vector.broadcast %c0_i32 : i32 to vector<8x16xi32>
    %46 = arith.cmpi eq, %44, %45 : vector<8x16xi32>
    %47 = arith.negf %43 : vector<8x16xf32>
    %48 = math.exp %47 : vector<8x16xf32>
    %cst_28 = arith.constant 1.000000e+00 : f32
    %49 = vector.broadcast %cst_28 : f32 to vector<8x16xf32>
    %50 = arith.addf %49, %48 : vector<8x16xf32>
    %51 = arith.divf %49, %50 : vector<8x16xf32>
    %52 = arith.select %46, %51, %43 : vector<8x16xi1>, vector<8x16xf32>
    %c0_29 = arith.constant 0 : index
    %c0_30 = arith.constant 0 : index
    %53 = vector.load %arg13[%c0_29, %c0_30] : memref<8x16xf32, #tpu.memory_space<vmem>>, vector<8x16xf32>
    tpu.vector_store %arg13[%c0_29, %c0_30], %52 {strides = array<i32>} : memref<8x16xf32, #tpu.memory_space<vmem>>, vector<8x16xf32>,
    return
  }
  func.func @transform_0(%arg0: i32) -> (i32, i32) {
    %c0_i32 = arith.constant 0 : i32
    %c0_i32_0 = arith.constant 0 : i32
    return %arg0, %c0_i32 : i32, i32
  }
  func.func @transform_1(%arg0: i32) -> (i32, i32) {
    %c0_i32 = arith.constant 0 : i32
    %c0_i32_0 = arith.constant 0 : i32
    %c0_i32_1 = arith.constant 0 : i32
    return %c0_i32, %c0_i32_0 : i32, i32
  }
  func.func @transform_2(%arg0: i32) -> (i32, i32) {
    %c0_i32 = arith.constant 0 : i32
    %c0_i32_0 = arith.constant 0 : i32
    %c0_i32_1 = arith.constant 0 : i32
    return %c0_i32, %c0_i32_0 : i32, i32
  }
  func.func @transform_3(%arg0: i32) -> (i32, i32) {
    %c0_i32 = arith.constant 0 : i32
    %c0_i32_0 = arith.constant 0 : i32
    %c0_i32_1 = arith.constant 0 : i32
    return %c0_i32, %c0_i32_0 : i32, i32
  }
  func.func @transform_4(%arg0: i32) -> (i32, i32) {
    %c0_i32 = arith.constant 0 : i32
    %c0_i32_0 = arith.constant 0 : i32
    %c0_i32_1 = arith.constant 0 : i32
    return %c0_i32, %c0_i32_0 : i32, i32
  }
  func.func @transform_5(%arg0: i32) -> (i32, i32) {
    %c0_i32 = arith.constant 0 : i32
    %c0_i32_0 = arith.constant 0 : i32
    %c0_i32_1 = arith.constant 0 : i32
    return %c0_i32, %c0_i32_0 : i32, i32
  }
  func.func @transform_6(%arg0: i32) -> (i32, i32) {
    %c0_i32 = arith.constant 0 : i32
    %c0_i32_0 = arith.constant 0 : i32
    %c0_i32_1 = arith.constant 0 : i32
    return %c0_i32, %c0_i32_0 : i32, i32
  }
  func.func @transform_7(%arg0: i32) -> (i32, i32) {
    %c0_i32 = arith.constant 0 : i32
    %c0_i32_0 = arith.constant 0 : i32
    %c0_i32_1 = arith.constant 0 : i32
    return %c0_i32, %c0_i32_0 : i32, i32
  }
  func.func @transform_8(%arg0: i32) -> (i32, i32) {
    %c0_i32 = arith.constant 0 : i32
    %c0_i32_0 = arith.constant 0 : i32
    %c0_i32_1 = arith.constant 0 : i32
    return %c0_i32, %c0_i32_0 : i32, i32
  }
  func.func @transform_9(%arg0: i32) -> (i32, i32) {
    %c0_i32 = arith.constant 0 : i32
    %c0_i32_0 = arith.constant 0 : i32
    %c0_i32_1 = arith.constant 0 : i32
    return %c0_i32, %c0_i32_0 : i32, i32
  }
  func.func @transform_10(%arg0: i32) -> (i32, i32) {
    %c0_i32 = arith.constant 0 : i32
    %c0_i32_0 = arith.constant 0 : i32
    %c0_i32_1 = arith.constant 0 : i32
    return %c0_i32, %c0_i32_0 : i32, i32
  }
  func.func @transform_11(%arg0: i32) -> (i32, i32) {
    %c0_i32 = arith.constant 0 : i32
    %c0_i32_0 = arith.constant 0 : i32
    %c0_i32_1 = arith.constant 0 : i32
    return %c0_i32, %c0_i32_0 : i32, i32
  }
  func.func @transform_12(%arg0: i32) -> (i32, i32) {
    %c0_i32 = arith.constant 0 : i32
    %c0_i32_0 = arith.constant 0 : i32
    return %arg0, %c0_i32 : i32, i32
  }
}

</mosaic_0001>

<bundles_post_ra>
// kernel: onet_forward.4
= control target key start
LH: loop header
LB: loop body
LE: loop exit
PB: predicated region body
PF: predicated region fallthrough
CT: control target
= control target key end

     0   :  { %s1535_s9 = smov 0   ;;  %s1761_s0 = inlined_call_operand.vmem [shape: bf16[4608,27], index: 0, kind: input, shape index: {}]   ;;  %s1762_s1 = inlined_call_operand.vmem [shape: bf16[27,32], index: 1, kind: input, shape index: {}]   ;;  %s1763_s2 = inlined_call_operand.vmem [shape: bf16[4608,32], index: 2, kind: output, shape index: {}]  }
   0x1 LB: > { %s1157_s10 = sadd.s32 4294967295, %s1517_s9   ;;  %p1161_p0 = scmp.ge.s32.totalorder %s1517_s9, 1  ;;  %s1517_s9 = sphi %s1535_s9, %s12_s9  }
   0x2   : > { %p113_p1 = scmp.lt.s32.totalorder %s1517_s9, 10 }
   0x4   : > { %p114_p2 = pnand %p1161_p0, %p113_p1 }
   0x5   : > { %v1477_v0 = vld [vmem:[%s1762_s1] sm:$0xff] (!%p114_p2)   ;;  %vm484_vm0 = vcmask (!%p114_p2), 1044480   ;;  %v1478_v1 = vld [vmem:[%s1762_s1 + $0x8] sm:$0x3f] (!%p114_p2)   ;;  %vm485_vm1 = vcmask (!%p114_p2), 1045504   ;;  %s1162_s15 = sshll.u32 (!%p114_p2), %s1157_s10, 6 }
   0x6   : > { %117 = sbr.rel (%p114_p2) target bundleno = 293 (0x125), region = 28  ;;  %1396 = vmatprep.subr.bf16.mxu0 (!%p114_p2), %v1477_v0  ;;  %1464 = vmatprep.subr.bf16.mxu1 (!%p114_p2), %v1477_v0  ;;  %v1519_v2 = vmov (!%p114_p2), 65535   ;;  %p136_p3 = scmp.lt.s32.totalorder (!%p114_p2), %s1162_s15, 575  ;;  %vm387_vm2 = vcmask (!%p114_p2), 220160   ;;  %vm1036_vm3 = vcmask (!%p114_p2), 257024  }
   0x7   : > { %1397 = vmatpush3.bf16.msra.mxu0 (!%p114_p2), %v1477_v0  ;;  %1466 = vmatpush3.bf16.msra.mxu1 (!%p114_p2), %v1477_v0  ;;  %v486_v3 = vsel (!%p114_p2), %vm484_vm0, 4294967295, %v1519_v2 }
   0x8   : > { %v487_v4 = vsel (!%p114_p2), %vm485_vm1, %v486_v3, 0 }
   0x9   : > { %v489_v5 = vand.u32 (!%p114_p2), %v1478_v1, %v487_v4 }
   0xb   : > { %1398 = vmatprep.subr.bf16.mxu0 (!%p114_p2), %v489_v5  ;;  %1465 = vmatprep.subr.bf16.mxu1 (!%p114_p2), %v489_v5 }
   0xc   : > { %1399 = vmatpush3.bf16.msra.mxu0 (!%p114_p2), %v489_v5  ;;  %1467 = vmatpush3.bf16.msra.mxu1 (!%p114_p2), %v489_v5 }
   0xd   : > { %s1765_s15 = smov (!%p136_p3, %s1162_s15), 575 }
   0xe   : > { %s1163_s16 = sshll.u32 %s1765_s15, 2 }
   0xf   : > { %s1557_s19 = scalar_lea.vmem %s1761_s0, %s1163_s16  ;;  %s1628_s22 = scalar_lea.vmem %s1763_s2, %s1163_s16 }
  0x10   : > { %v1479_v6 = vld [vmem:[%s1557_s19] sm:$0xff]   ;;  %v1481_v8 = vld [vmem:[%s1557_s19 + $0x8] sm:$0xff]   ;;  %v1483_v10 = vld [vmem:[%s1557_s19 + $0x10] sm:$0xff]  }
  0x11   : > { %v1480_v7 = vld [vmem:[%s1557_s19 + $0x80] sm:$0xff]   ;;  %1400 = vmatprep.mubr.msk.bf16.mxu0 %vm387_vm2, %v1479_v6  ;;  %v1482_v9 = vld [vmem:[%s1557_s19 + $0x88] sm:$0xff]   ;;  %v1484_v11 = vld [vmem:[%s1557_s19 + $0x90] sm:$0xff]  }
  0x12   : > { %1432 = vmatprep.mubr.msk.bf16.mxu1 %vm387_vm2, %v1480_v7  ;;  %1401 = vmatmul.mubr.msk.bf16.vlgmr.msra.gmra.mrb[0].mxu0 %vm387_vm2, %v1481_v8  ;;  %v1485_v12 = vld [vmem:[%s1557_s19 + $0x18] sm:$0xff]   ;;  %v1487_v14 = vld [vmem:[%s1557_s19 + $0x20] sm:$0xff]   ;;  %v1489_v16 = vld [vmem:[%s1557_s19 + $0x28] sm:$0xff]  }
  0x13   : > { %1433 = vmatmul.mubr.msk.bf16.vlgmr.msra.gmra.mrb[0].mxu1 %vm387_vm2, %v1482_v9  ;;  %1404 = vmatprep.mubr.msk.bf16.mxu0 %vm387_vm2, %v1483_v10  ;;  %v1486_v13 = vld [vmem:[%s1557_s19 + $0x98] sm:$0xff]   ;;  %v1488_v15 = vld [vmem:[%s1557_s19 + $0xa0] sm:$0xff]   ;;  %v1490_v17 = vld [vmem:[%s1557_s19 + $0xa8] sm:$0xff]  }
  0x14   : > { %1436 = vmatprep.mubr.msk.bf16.mxu1 %vm387_vm2, %v1484_v11  ;;  %v1491_v18 = vld [vmem:[%s1557_s19 + $0x30] sm:$0xff]   ;;  %v1493_v20 = vld [vmem:[%s1557_s19 + $0x38] sm:$0xff]   ;;  %v1495_v22 = vld [vmem:[%s1557_s19 + $0x40] sm:$0xff]  }
  0x15   : > { %v1492_v19 = vld [vmem:[%s1557_s19 + $0xb0] sm:$0xff]   ;;  %v1494_v21 = vld [vmem:[%s1557_s19 + $0xb8] sm:$0xff]   ;;  %v1496_v23 = vld [vmem:[%s1557_s19 + $0xc0] sm:$0xff]  }
  0x16   : > { %v1497_v24 = vld [vmem:[%s1557_s19 + $0x48] sm:$0xff]   ;;  %v1499_v26 = vld [vmem:[%s1557_s19 + $0x50] sm:$0xff]   ;;  %v1501_v28 = vld [vmem:[%s1557_s19 + $0x58] sm:$0xff]  }
  0x17   : > { %v1498_v25 = vld [vmem:[%s1557_s19 + $0xc8] sm:$0xff]   ;;  %v1500_v27 = vld [vmem:[%s1557_s19 + $0xd0] sm:$0xff]   ;;  %v1502_v29 = vld [vmem:[%s1557_s19 + $0xd8] sm:$0xff]  }
  0x18   : > { %v1503_v30 = vld [vmem:[%s1557_s19 + $0x60] sm:$0xff]   ;;  %v1505_v32 = vld [vmem:[%s1557_s19 + $0x68] sm:$0xff]   ;;  %v1507_v34 = vld [vmem:[%s1557_s19 + $0x70] sm:$0xff]  }
  0x19   : > { %v1504_v31 = vld [vmem:[%s1557_s19 + $0xe0] sm:$0xff]   ;;  %v1506_v33 = vld [vmem:[%s1557_s19 + $0xe8] sm:$0xff]   ;;  %v1508_v35 = vld [vmem:[%s1557_s19 + $0xf0] sm:$0xff]  }
  0x1a   : > { %1405 = vmatmul.mubr.msk.bf16.gmra.mrb[4].mxu0 %vm387_vm2, %v1485_v12  ;;  %v1509_v36 = vld [vmem:[%s1557_s19 + $0x78] sm:$0xff]  }
  0x1b   : > { %1437 = vmatmul.mubr.msk.bf16.gmra.mrb[4].mxu1 %vm387_vm2, %v1486_v13  ;;  %1408 = vmatprep.mubr.msk.bf16.mxu0 %vm387_vm2, %v1487_v14  ;;  %v1510_v37 = vld [vmem:[%s1557_s19 + $0xf8] sm:$0xff]  }
  0x1c   : > { %1440 = vmatprep.mubr.msk.bf16.mxu1 %vm387_vm2, %v1488_v15 }
  0x22   : > { %1409 = vmatmul.mubr.msk.bf16.gmra.mrb[8].mxu0 %vm387_vm2, %v1489_v16 }
  0x23   : > { %1441 = vmatmul.mubr.msk.bf16.gmra.mrb[8].mxu1 %vm387_vm2, %v1490_v17  ;;  %1412 = vmatprep.mubr.msk.bf16.mxu0 %vm387_vm2, %v1491_v18 }
  0x24   : > { %1444 = vmatprep.mubr.msk.bf16.mxu1 %vm387_vm2, %v1492_v19 }
  0x2a   : > { %1413 = vmatmul.mubr.msk.bf16.gmra.mrb[12].mxu0 %vm387_vm2, %v1493_v20 }
  0x2b   : > { %1445 = vmatmul.mubr.msk.bf16.gmra.mrb[12].mxu1 %vm387_vm2, %v1494_v21  ;;  %1416 = vmatprep.mubr.msk.bf16.mxu0 %vm387_vm2, %v1495_v22 }
  0x2c   : > { %1448 = vmatprep.mubr.msk.bf16.mxu1 %vm387_vm2, %v1496_v23 }
  0x32   : > { %1417 = vmatmul.mubr.msk.bf16.gmra.mrb[16].mxu0 %vm387_vm2, %v1497_v24 }
  0x33   : > { %1449 = vmatmul.mubr.msk.bf16.gmra.mrb[16].mxu1 %vm387_vm2, %v1498_v25  ;;  %1420 = vmatprep.mubr.msk.bf16.mxu0 %vm387_vm2, %v1499_v26 }
  0x34   : > { %1452 = vmatprep.mubr.msk.bf16.mxu1 %vm387_vm2, %v1500_v27 }
  0x3a   : > { %1421 = vmatmul.mubr.msk.bf16.gmra.mrb[20].mxu0 %vm387_vm2, %v1501_v28 }
  0x3b   : > { %1453 = vmatmul.mubr.msk.bf16.gmra.mrb[20].mxu1 %vm387_vm2, %v1502_v29  ;;  %1424 = vmatprep.mubr.msk.bf16.mxu0 %vm387_vm2, %v1503_v30 }
  0x3c   : > { %1456 = vmatprep.mubr.msk.bf16.mxu1 %vm387_vm2, %v1504_v31 }
  0x42   : > { %1425 = vmatmul.mubr.msk.bf16.gmra.mrb[24].mxu0 %vm387_vm2, %v1505_v32 }
  0x43   : > { %1457 = vmatmul.mubr.msk.bf16.gmra.mrb[24].mxu1 %vm387_vm2, %v1506_v33  ;;  %1428 = vmatprep.mubr.msk.bf16.mxu0 %vm387_vm2, %v1507_v34 }
  0x44   : > { %1460 = vmatprep.mubr.msk.bf16.mxu1 %vm387_vm2, %v1508_v35 }
  0x4a   : > { %1429 = vmatmul.mubr.msk.bf16.gmra.mrb[28].mxu0 %vm387_vm2, %v1509_v36 }
  0x4b   : > { %1461 = vmatmul.mubr.msk.bf16.gmra.mrb[28].mxu1 %vm387_vm2, %v1510_v37 }
  0xe5   : > { %v1402_v38 = vpop.f32.mrb[0].mxu0 }
  0xe6   : > { %v1300_v39 = vpack.c.bf16 %v1402_v38, %v1402_v38  ;;  %v1434_v40 = vpop.f32.mrb[0].mxu1  ;;  %v525_v41 = vpop.f32.mrb[1].mxu0 }
  0xe7   : > { %v1332_v42 = vpack.c.bf16 %v1434_v40, %v1434_v40  ;;  %v1298_v43 = vpack.c.bf16 %v525_v41, %v525_v41  ;;  %v653_v44 = vpop.f32.mrb[1].mxu1  ;;  %v1403_v45 = vpop.f32.mrb[2].mxu0 }
  0xe8   : > { %1039 = vst.msk [vmem:[%s1628_s22 + $0x8] sm:$0xf] %vm1036_vm3, %v1300_v39  ;;  %v1330_v46 = vpack.c.bf16 %v653_v44, %v653_v44  ;;  %v1301_v47 = vpack.c.bf16 %v1403_v45, %v1403_v45  ;;  %v1435_v48 = vpop.f32.mrb[2].mxu1  ;;  %v528_v49 = vpop.f32.mrb[3].mxu0 }
  0xe9   : > { %1071 = vst.msk [vmem:[%s1628_s22 + $0x88] sm:$0xf] %vm1036_vm3, %v1332_v42  ;;  %1037 = vst.msk [vmem:[%s1628_s22] sm:$0xf] %vm1036_vm3, %v1298_v43  ;;  %v1333_v50 = vpack.c.bf16 %v1435_v48, %v1435_v48  ;;  %v1299_v51 = vpack.c.bf16 %v528_v49, %v528_v49  ;;  %v656_v52 = vpop.f32.mrb[3].mxu1 }
  0xea   : > { %1069 = vst.msk [vmem:[%s1628_s22 + $0x80] sm:$0xf] %vm1036_vm3, %v1330_v46  ;;  %1040 = vst.msk [vmem:[%s1628_s22 + $0xc] sm:$0xf] %vm1036_vm3, %v1301_v47  ;;  %v1331_v53 = vpack.c.bf16 %v656_v52, %v656_v52 }
  0xeb   : > { %1072 = vst.msk [vmem:[%s1628_s22 + $0x8c] sm:$0xf] %vm1036_vm3, %v1333_v50  ;;  %1038 = vst.msk [vmem:[%s1628_s22 + $0x4] sm:$0xf] %vm1036_vm3, %v1299_v51 }
  0xec   : > { %1070 = vst.msk [vmem:[%s1628_s22 + $0x84] sm:$0xf] %vm1036_vm3, %v1331_v53 }
  0xed   : > { %v1406_v54 = vpop.f32.mrb[4].mxu0 }
  0xee   : > { %v1304_v55 = vpack.c.bf16 %v1406_v54, %v1406_v54  ;;  %v1438_v56 = vpop.f32.mrb[4].mxu1  ;;  %v541_v57 = vpop.f32.mrb[5].mxu0 }
  0xef   : > { %v1336_v58 = vpack.c.bf16 %v1438_v56, %v1438_v56  ;;  %v1302_v59 = vpack.c.bf16 %v541_v57, %v541_v57  ;;  %v669_v60 = vpop.f32.mrb[5].mxu1  ;;  %v1407_v61 = vpop.f32.mrb[6].mxu0 }
  0xf0   : > { %1043 = vst.msk [vmem:[%s1628_s22 + $0x18] sm:$0xf] %vm1036_vm3, %v1304_v55  ;;  %v1334_v62 = vpack.c.bf16 %v669_v60, %v669_v60  ;;  %v1305_v63 = vpack.c.bf16 %v1407_v61, %v1407_v61  ;;  %v1439_v0 = vpop.f32.mrb[6].mxu1  ;;  %v544_v1 = vpop.f32.mrb[7].mxu0 }
  0xf1   : > { %1075 = vst.msk [vmem:[%s1628_s22 + $0x98] sm:$0xf] %vm1036_vm3, %v1336_v58  ;;  %1041 = vst.msk [vmem:[%s1628_s22 + $0x10] sm:$0xf] %vm1036_vm3, %v1302_v59  ;;  %v1337_v2 = vpack.c.bf16 %v1439_v0, %v1439_v0  ;;  %v1303_v3 = vpack.c.bf16 %v544_v1, %v544_v1  ;;  %v672_v4 = vpop.f32.mrb[7].mxu1 }
  0xf2   : > { %1073 = vst.msk [vmem:[%s1628_s22 + $0x90] sm:$0xf] %vm1036_vm3, %v1334_v62  ;;  %1044 = vst.msk [vmem:[%s1628_s22 + $0x1c] sm:$0xf] %vm1036_vm3, %v1305_v63  ;;  %v1335_v5 = vpack.c.bf16 %v672_v4, %v672_v4 }
  0xf3   : > { %1076 = vst.msk [vmem:[%s1628_s22 + $0x9c] sm:$0xf] %vm1036_vm3, %v1337_v2  ;;  %1042 = vst.msk [vmem:[%s1628_s22 + $0x14] sm:$0xf] %vm1036_vm3, %v1303_v3 }
  0xf4   : > { %1074 = vst.msk [vmem:[%s1628_s22 + $0x94] sm:$0xf] %vm1036_vm3, %v1335_v5 }
  0xf5   : > { %v1410_v6 = vpop.f32.mrb[8].mxu0 }
  0xf6   : > { %v1308_v7 = vpack.c.bf16 %v1410_v6, %v1410_v6  ;;  %v1442_v8 = vpop.f32.mrb[8].mxu1  ;;  %v557_v9 = vpop.f32.mrb[9].mxu0 }
  0xf7   : > { %v1340_v10 = vpack.c.bf16 %v1442_v8, %v1442_v8  ;;  %v1306_v11 = vpack.c.bf16 %v557_v9, %v557_v9  ;;  %v685_v12 = vpop.f32.mrb[9].mxu1  ;;  %v1411_v13 = vpop.f32.mrb[10].mxu0 }
  0xf8   : > { %1047 = vst.msk [vmem:[%s1628_s22 + $0x28] sm:$0xf] %vm1036_vm3, %v1308_v7  ;;  %v1338_v14 = vpack.c.bf16 %v685_v12, %v685_v12  ;;  %v1309_v15 = vpack.c.bf16 %v1411_v13, %v1411_v13  ;;  %v1443_v16 = vpop.f32.mrb[10].mxu1  ;;  %v560_v17 = vpop.f32.mrb[11].mxu0 }
  0xf9   : > { %1079 = vst.msk [vmem:[%s1628_s22 + $0xa8] sm:$0xf] %vm1036_vm3, %v1340_v10  ;;  %1045 = vst.msk [vmem:[%s1628_s22 + $0x20] sm:$0xf] %vm1036_vm3, %v1306_v11  ;;  %v1341_v18 = vpack.c.bf16 %v1443_v16, %v1443_v16  ;;  %v1307_v19 = vpack.c.bf16 %v560_v17, %v560_v17  ;;  %v688_v20 = vpop.f32.mrb[11].mxu1 }
  0xfa   : > { %1077 = vst.msk [vmem:[%s1628_s22 + $0xa0] sm:$0xf] %vm1036_vm3, %v1338_v14  ;;  %1048 = vst.msk [vmem:[%s1628_s22 + $0x2c] sm:$0xf] %vm1036_vm3, %v1309_v15  ;;  %v1339_v21 = vpack.c.bf16 %v688_v20, %v688_v20 }
  0xfb   : > { %1080 = vst.msk [vmem:[%s1628_s22 + $0xac] sm:$0xf] %vm1036_vm3, %v1341_v18  ;;  %1046 = vst.msk [vmem:[%s1628_s22 + $0x24] sm:$0xf] %vm1036_vm3, %v1307_v19 }
  0xfc   : > { %1078 = vst.msk [vmem:[%s1628_s22 + $0xa4] sm:$0xf] %vm1036_vm3, %v1339_v21 }
  0xfd   : > { %v1414_v22 = vpop.f32.mrb[12].mxu0 }
  0xfe   : > { %v1312_v23 = vpack.c.bf16 %v1414_v22, %v1414_v22  ;;  %v1446_v24 = vpop.f32.mrb[12].mxu1  ;;  %v573_v25 = vpop.f32.mrb[13].mxu0 }
  0xff   : > { %v1344_v26 = vpack.c.bf16 %v1446_v24, %v1446_v24  ;;  %v1310_v27 = vpack.c.bf16 %v573_v25, %v573_v25  ;;  %v701_v28 = vpop.f32.mrb[13].mxu1  ;;  %v1415_v29 = vpop.f32.mrb[14].mxu0 }
 0x100   : > { %1051 = vst.msk [vmem:[%s1628_s22 + $0x38] sm:$0xf] %vm1036_vm3, %v1312_v23  ;;  %v1342_v30 = vpack.c.bf16 %v701_v28, %v701_v28  ;;  %v1313_v31 = vpack.c.bf16 %v1415_v29, %v1415_v29  ;;  %v1447_v32 = vpop.f32.mrb[14].mxu1  ;;  %v576_v33 = vpop.f32.mrb[15].mxu0 }
 0x101   : > { %1083 = vst.msk [vmem:[%s1628_s22 + $0xb8] sm:$0xf] %vm1036_vm3, %v1344_v26  ;;  %1049 = vst.msk [vmem:[%s1628_s22 + $0x30] sm:$0xf] %vm1036_vm3, %v1310_v27  ;;  %v1345_v34 = vpack.c.bf16 %v1447_v32, %v1447_v32  ;;  %v1311_v35 = vpack.c.bf16 %v576_v33, %v576_v33  ;;  %v704_v36 = vpop.f32.mrb[15].mxu1 }
 0x102   : > { %1081 = vst.msk [vmem:[%s1628_s22 + $0xb0] sm:$0xf] %vm1036_vm3, %v1342_v30  ;;  %1052 = vst.msk [vmem:[%s1628_s22 + $0x3c] sm:$0xf] %vm1036_vm3, %v1313_v31  ;;  %v1343_v37 = vpack.c.bf16 %v704_v36, %v704_v36 }
 0x103   : > { %1084 = vst.msk [vmem:[%s1628_s22 + $0xbc] sm:$0xf] %vm1036_vm3, %v1345_v34  ;;  %1050 = vst.msk [vmem:[%s1628_s22 + $0x34] sm:$0xf] %vm1036_vm3, %v1311_v35 }
 0x104   : > { %1082 = vst.msk [vmem:[%s1628_s22 + $0xb4] sm:$0xf] %vm1036_vm3, %v1343_v37 }
 0x105   : > { %v1418_v38 = vpop.f32.mrb[16].mxu0 }
 0x106   : > { %v1316_v39 = vpack.c.bf16 %v1418_v38, %v1418_v38  ;;  %v1450_v40 = vpop.f32.mrb[16].mxu1  ;;  %v589_v41 = vpop.f32.mrb[17].mxu0 }
 0x107   : > { %v1348_v42 = vpack.c.bf16 %v1450_v40, %v1450_v40  ;;  %v1314_v43 = vpack.c.bf16 %v589_v41, %v589_v41  ;;  %v717_v44 = vpop.f32.mrb[17].mxu1  ;;  %v1419_v45 = vpop.f32.mrb[18].mxu0 }
 0x108   : > { %1055 = vst.msk [vmem:[%s1628_s22 + $0x48] sm:$0xf] %vm1036_vm3, %v1316_v39  ;;  %v1346_v46 = vpack.c.bf16 %v717_v44, %v717_v44  ;;  %v1317_v47 = vpack.c.bf16 %v1419_v45, %v1419_v45  ;;  %v1451_v48 = vpop.f32.mrb[18].mxu1  ;;  %v592_v49 = vpop.f32.mrb[19].mxu0 }
 0x109   : > { %1087 = vst.msk [vmem:[%s1628_s22 + $0xc8] sm:$0xf] %vm1036_vm3, %v1348_v42  ;;  %1053 = vst.msk [vmem:[%s1628_s22 + $0x40] sm:$0xf] %vm1036_vm3, %v1314_v43  ;;  %v1349_v50 = vpack.c.bf16 %v1451_v48, %v1451_v48  ;;  %v1315_v51 = vpack.c.bf16 %v592_v49, %v592_v49  ;;  %v720_v52 = vpop.f32.mrb[19].mxu1 }
 0x10a   : > { %1085 = vst.msk [vmem:[%s1628_s22 + $0xc0] sm:$0xf] %vm1036_vm3, %v1346_v46  ;;  %1056 = vst.msk [vmem:[%s1628_s22 + $0x4c] sm:$0xf] %vm1036_vm3, %v1317_v47  ;;  %v1347_v53 = vpack.c.bf16 %v720_v52, %v720_v52 }
 0x10b   : > { %1088 = vst.msk [vmem:[%s1628_s22 + $0xcc] sm:$0xf] %vm1036_vm3, %v1349_v50  ;;  %1054 = vst.msk [vmem:[%s1628_s22 + $0x44] sm:$0xf] %vm1036_vm3, %v1315_v51 }
 0x10c   : > { %1086 = vst.msk [vmem:[%s1628_s22 + $0xc4] sm:$0xf] %vm1036_vm3, %v1347_v53 }
 0x10d   : > { %v1422_v54 = vpop.f32.mrb[20].mxu0 }
 0x10e   : > { %v1320_v55 = vpack.c.bf16 %v1422_v54, %v1422_v54  ;;  %v1454_v56 = vpop.f32.mrb[20].mxu1  ;;  %v605_v57 = vpop.f32.mrb[21].mxu0 }
 0x10f   : > { %v1352_v58 = vpack.c.bf16 %v1454_v56, %v1454_v56  ;;  %v1318_v59 = vpack.c.bf16 %v605_v57, %v605_v57  ;;  %v733_v60 = vpop.f32.mrb[21].mxu1  ;;  %v1423_v61 = vpop.f32.mrb[22].mxu0 }
 0x110   : > { %1059 = vst.msk [vmem:[%s1628_s22 + $0x58] sm:$0xf] %vm1036_vm3, %v1320_v55  ;;  %v1350_v62 = vpack.c.bf16 %v733_v60, %v733_v60  ;;  %v1321_v63 = vpack.c.bf16 %v1423_v61, %v1423_v61  ;;  %v1455_v0 = vpop.f32.mrb[22].mxu1  ;;  %v608_v1 = vpop.f32.mrb[23].mxu0 }
 0x111   : > { %1091 = vst.msk [vmem:[%s1628_s22 + $0xd8] sm:$0xf] %vm1036_vm3, %v1352_v58  ;;  %1057 = vst.msk [vmem:[%s1628_s22 + $0x50] sm:$0xf] %vm1036_vm3, %v1318_v59  ;;  %v1353_v2 = vpack.c.bf16 %v1455_v0, %v1455_v0  ;;  %v1319_v3 = vpack.c.bf16 %v608_v1, %v608_v1  ;;  %v736_v4 = vpop.f32.mrb[23].mxu1 }
 0x112   : > { %1089 = vst.msk [vmem:[%s1628_s22 + $0xd0] sm:$0xf] %vm1036_vm3, %v1350_v62  ;;  %1060 = vst.msk [vmem:[%s1628_s22 + $0x5c] sm:$0xf] %vm1036_vm3, %v1321_v63  ;;  %v1351_v5 = vpack.c.bf16 %v736_v4, %v736_v4 }
 0x113   : > { %1092 = vst.msk [vmem:[%s1628_s22 + $0xdc] sm:$0xf] %vm1036_vm3, %v1353_v2  ;;  %1058 = vst.msk [vmem:[%s1628_s22 + $0x54] sm:$0xf] %vm1036_vm3, %v1319_v3 }
 0x114   : > { %1090 = vst.msk [vmem:[%s1628_s22 + $0xd4] sm:$0xf] %vm1036_vm3, %v1351_v5 }
 0x115   : > { %v1426_v6 = vpop.f32.mrb[24].mxu0 }
 0x116   : > { %v1324_v7 = vpack.c.bf16 %v1426_v6, %v1426_v6  ;;  %v1458_v8 = vpop.f32.mrb[24].mxu1  ;;  %v621_v9 = vpop.f32.mrb[25].mxu0 }
 0x117   : > { %v1356_v10 = vpack.c.bf16 %v1458_v8, %v1458_v8  ;;  %v1322_v11 = vpack.c.bf16 %v621_v9, %v621_v9  ;;  %v749_v12 = vpop.f32.mrb[25].mxu1  ;;  %v1427_v13 = vpop.f32.mrb[26].mxu0 }
 0x118   : > { %1063 = vst.msk [vmem:[%s1628_s22 + $0x68] sm:$0xf] %vm1036_vm3, %v1324_v7  ;;  %v1354_v14 = vpack.c.bf16 %v749_v12, %v749_v12  ;;  %v1325_v15 = vpack.c.bf16 %v1427_v13, %v1427_v13  ;;  %v1459_v16 = vpop.f32.mrb[26].mxu1  ;;  %v624_v17 = vpop.f32.mrb[27].mxu0 }
 0x119   : > { %1095 = vst.msk [vmem:[%s1628_s22 + $0xe8] sm:$0xf] %vm1036_vm3, %v1356_v10  ;;  %1061 = vst.msk [vmem:[%s1628_s22 + $0x60] sm:$0xf] %vm1036_vm3, %v1322_v11  ;;  %v1357_v18 = vpack.c.bf16 %v1459_v16, %v1459_v16  ;;  %v1323_v19 = vpack.c.bf16 %v624_v17, %v624_v17  ;;  %v752_v20 = vpop.f32.mrb[27].mxu1 }
 0x11a   : > { %1093 = vst.msk [vmem:[%s1628_s22 + $0xe0] sm:$0xf] %vm1036_vm3, %v1354_v14  ;;  %1064 = vst.msk [vmem:[%s1628_s22 + $0x6c] sm:$0xf] %vm1036_vm3, %v1325_v15  ;;  %v1355_v21 = vpack.c.bf16 %v752_v20, %v752_v20 }
 0x11b   : > { %1096 = vst.msk [vmem:[%s1628_s22 + $0xec] sm:$0xf] %vm1036_vm3, %v1357_v18  ;;  %1062 = vst.msk [vmem:[%s1628_s22 + $0x64] sm:$0xf] %vm1036_vm3, %v1323_v19 }
 0x11c   : > { %1094 = vst.msk [vmem:[%s1628_s22 + $0xe4] sm:$0xf] %vm1036_vm3, %v1355_v21 }
 0x11d   : > { %v1430_v22 = vpop.f32.mrb[28].mxu0 }
 0x11e   : > { %v1328_v23 = vpack.c.bf16 %v1430_v22, %v1430_v22  ;;  %v1462_v24 = vpop.f32.mrb[28].mxu1  ;;  %v637_v25 = vpop.f32.mrb[29].mxu0 }
 0x11f   : > { %v1360_v26 = vpack.c.bf16 %v1462_v24, %v1462_v24  ;;  %v1326_v27 = vpack.c.bf16 %v637_v25, %v637_v25  ;;  %v765_v28 = vpop.f32.mrb[29].mxu1  ;;  %v1431_v29 = vpop.f32.mrb[30].mxu0 }
 0x120   : > { %1067 = vst.msk [vmem:[%s1628_s22 + $0x78] sm:$0xf] %vm1036_vm3, %v1328_v23  ;;  %v1358_v30 = vpack.c.bf16 %v765_v28, %v765_v28  ;;  %v1329_v31 = vpack.c.bf16 %v1431_v29, %v1431_v29  ;;  %v1463_v32 = vpop.f32.mrb[30].mxu1  ;;  %v640_v33 = vpop.f32.mrb[31].mxu0 }
 0x121   : > { %1099 = vst.msk [vmem:[%s1628_s22 + $0xf8] sm:$0xf] %vm1036_vm3, %v1360_v26  ;;  %1065 = vst.msk [vmem:[%s1628_s22 + $0x70] sm:$0xf] %vm1036_vm3, %v1326_v27  ;;  %v1361_v34 = vpack.c.bf16 %v1463_v32, %v1463_v32  ;;  %v1327_v35 = vpack.c.bf16 %v640_v33, %v640_v33  ;;  %v768_v36 = vpop.f32.mrb[31].mxu1 }
 0x122   : > { %1097 = vst.msk [vmem:[%s1628_s22 + $0xf0] sm:$0xf] %vm1036_vm3, %v1358_v30  ;;  %1068 = vst.msk [vmem:[%s1628_s22 + $0x7c] sm:$0xf] %vm1036_vm3, %v1329_v31  ;;  %v1359_v37 = vpack.c.bf16 %v768_v36, %v768_v36 }
 0x123   : > { %1100 = vst.msk [vmem:[%s1628_s22 + $0xfc] sm:$0xf] %vm1036_vm3, %v1361_v34  ;;  %1066 = vst.msk [vmem:[%s1628_s22 + $0x74] sm:$0xf] %vm1036_vm3, %v1327_v35 }
 0x124   : > { %1098 = vst.msk [vmem:[%s1628_s22 + $0xf4] sm:$0xf] %vm1036_vm3, %v1359_v37 }
 0x125 PF: > { %s12_s9 = sadd.s32 1, %s1517_s9  }
 0x126   : > { %p9_p4 = scmp.ge.s32.totalorder %s12_s9, 11  }
 0x128   :  { %11 = sbr.rel (!%p9_p4) target bundleno = 1 (0x1), region = 58 }

// kernel: tile.43
= control target key start
LH: loop header
LB: loop body
LE: loop exit
PB: predicated region body
PF: predicated region fallthrough
CT: control target
= control target key end

     0   :  { %s28_s0 = inlined_call_operand.vmem [shape: f32[32], index: 0, kind: input, shape index: {}]   ;;  %s29_s1 = inlined_call_operand.vmem [shape: f32[9,32], index: 1, kind: output, shape index: {}]  }
   0x1   :  { %v4_v0 = vld [vmem:[%s28_s0] ss:$0 sm:$0xff] }
   0x2   :  { %5 = vst [vmem:[%s29_s1] sm:$0xff] %v4_v0  ;;  %8 = vst [vmem:[%s29_s1 + $0x8] sm:$0xff] %v4_v0 }

// kernel: tile.44
= control target key start
LH: loop header
LB: loop body
LE: loop exit
PB: predicated region body
PF: predicated region fallthrough
CT: control target
= control target key end

     0   :  { %s6_s6 = smov 3  ;;  %s13_s11 = smov 3  ;;  %vm3_vm0 = vcmask 261120   ;;  %vm10_vm1 = vcmask 1048320   ;;  %vm17_vm2 = vcmask 785920   ;;  %vm24_vm3 = vcmask 523520   ;;  %s86_s0 = inlined_call_operand.vmem [shape: f32[9,32], index: 0, kind: input, shape index: {}]   ;;  %s87_s1 = inlined_call_operand.vmem [shape: f32[1,288], index: 1, kind: output, shape index: {}]  }
   0x1   :  { %v2_v0 = vld [vmem:[%s86_s0] ss:$4 sm:$0x7]   ;;  %v44_v1 = vld [vmem:[%s86_s0 + $0x3] ss:$4 sm:%s6_s6]   ;;  %s52_s12 = smov 96  }
   0x2   :  { %8 = vrot.lane.b32.xlu0 %v44_v1, %s52_s12  ;;  %s20_s13 = smov 3  ;;  %4 = vst.msk [vmem:[#allocation0] ss:$8 sm:$0x7] %vm3_vm0, %v2_v0   ;;  %v45_v2 = vld [vmem:[%s86_s0 + $0x2] ss:$4 sm:%s13_s11]  }
   0x3   :  { %v46_v3 = vld [vmem:[%s86_s0 + $0x1] ss:$4 sm:%s20_s13]   ;;  %s53_s0 = smov 32   ;;  %s54_s18 = smov 64  }
   0x4   :  { %22 = vrot.lane.b32.xlu1 %v46_v3, %s53_s0 }
   0x6   :  { %15 = vrot.lane.b32.xlu0 %v45_v2, %s54_s18 }
   0x9   :  { %v38_v4 = vld [vmem:[#allocation0 + $0x10] sm:$0x1] }
   0xa   :  { %48 = vst [vmem:[%s87_s1 + $0x2] sm:$0x1] %v38_v4 }
  0x74   :  { %v9_v5 = vpop.permute.xlu0 %8  }
  0x75   :  { %11 = vst.msk [vmem:[#allocation0] ss:$8 sm:$0x3] %vm10_vm1, %v9_v5  }
  0x76   :  { %v23_v6 = vpop.permute.xlu1 %22  }
  0x78   :  { %v16_v7 = vpop.permute.xlu0 %15  }
  0x79   :  { %18 = vst.msk [vmem:[#allocation0] ss:$8 sm:$0x3] %vm17_vm2, %v16_v7  }
  0x7a   :  { %25 = vst.msk [vmem:[#allocation0] ss:$8 sm:$0x3] %vm24_vm3, %v23_v6  }
  0x81   :  { %v29_v8 = vld [vmem:[#allocation0] sm:$0x1]  ;;  %v33_v9 = vld [vmem:[#allocation0 + $0x8] sm:$0x1] }
  0x82   :  { %31 = vst [vmem:[%s87_s1] sm:$0x1] %v29_v8  ;;  %47 = vst [vmem:[%s87_s1 + $0x1] sm:$0x1] %v33_v9 }

// kernel: onet_forward.5
= control target key start
LH: loop header
LB: loop body
LE: loop exit
PB: predicated region body
PF: predicated region fallthrough
CT: control target
= control target key end

     0   :  { %s3234_s20 = smov 0   ;;  %s4536_s0 = inlined_call_operand.vmem [shape: bf16[1024,288], index: 0, kind: input, shape index: {}]   ;;  %s4537_s1 = inlined_call_operand.vmem [shape: bf16[288,64], index: 1, kind: input, shape index: {}]   ;;  %s4538_s2 = inlined_call_operand.vmem [shape: f32[1,288], index: 2, kind: input, shape index: {}]   ;;  %s4539_s3 = inlined_call_operand.vmem [shape: f32[1,288], index: 3, kind: input, shape index: {}]   ;;  %s4540_s4 = inlined_call_operand.<no memory space> [shape: f32[1,1], index: 4, kind: input, shape index: {}]   ;;  %s4541_s5 = inlined_call_operand.vmem [shape: bf16[1024,64], index: 5, kind: output, shape index: {}]  }
   0x1   :  { %10 = sst [smem:[#allocation2]] %s4540_s4 }
   0x2 LB: > { %s2841_s21 = sadd.s32 4294967295, %s3198_s20   ;;  %p2845_p0 = scmp.ge.s32.totalorder %s3198_s20, 1  ;;  %s3198_s20 = sphi %s3234_s20, %s16_s20  }
   0x3   : > { %p190_p1 = scmp.lt.s32.totalorder %s3198_s20, 3 }
   0x5   : > { %p191_p2 = pnand %p2845_p0, %p190_p1 }
   0x6   : > { %v3174_v0 = vld [vmem:[%s4537_s1] sm:$0xff] (!%p191_p2)   ;;  %v3200_v1 = vmov (!%p191_p2), 0   ;;  %s2846_s4 = sshll.u32 (!%p191_p2), %s2841_s21, 6  ;;  %v3175_v2 = vld [vmem:[%s4537_s1 + $0x8] sm:$0xff] (!%p191_p2)   ;;  %v3176_v3 = vld [vmem:[%s4537_s1 + $0x10] sm:$0xff] (!%p191_p2)   ;;  %v555_v4 = vlaneseq (!%p191_p2)  ;;  %s3280_s13 = sld [smem:[#allocation2]] (!%p191_p2) }
   0x7   : > { %194 = sbr.rel (%p191_p2) target bundleno = 557 (0x22d), region = 40  ;;  %1886 = vmatprep.subr.bf16.mxu0 (!%p191_p2), %v3200_v1  ;;  %3132 = vmatprep.subr.bf16.mxu1 (!%p191_p2), %v3200_v1  ;;  %p220_p3 = scmp.lt.s32.totalorder (!%p191_p2), %s2846_s4, 127  ;;  %v3177_v5 = vld [vmem:[%s4537_s1 + $0x18] sm:$0xff] (!%p191_p2)   ;;  %v3178_v7 = vld [vmem:[%s4537_s1 + $0x20] sm:$0xff] (!%p191_p2)   ;;  %v3179_v21 = vld [vmem:[%s4537_s1 + $0x28] sm:$0xff] (!%p191_p2)  }
   0x8   : > { %1887 = vmatpush1.bf16.msra.mxu0 (!%p191_p2), %v3174_v0  ;;  %3148 = vmatpush1.bf16.msra.mxu1 (!%p191_p2), %v3174_v0  ;;  %v556_v6 = vshrl.u32 (!%p191_p2), %v555_v4, 7  ;;  %v553_v13 = vld [vmem:[%s4538_s2] sm:$0x7] (!%p191_p2)  ;;  %v3180_v41 = vld [vmem:[%s4537_s1 + $0x30] sm:$0xff] (!%p191_p2)   ;;  %v3181_v55 = vld [vmem:[%s4537_s1 + $0x38] sm:$0xff] (!%p191_p2)  }
   0x9   : > { %1888 = vmatprep.subr.bf16.mxu0 (!%p191_p2), %v3200_v1  ;;  %3133 = vmatprep.subr.bf16.mxu1 (!%p191_p2), %v3200_v1  ;;  %v762_v18 = vld [vmem:[%s4539_s3] sm:$0x7] (!%p191_p2) }
   0xa   : > { %v561_v8 = vsub.s32 (!%p191_p2), 1, %v556_v6  ;;  %v565_v9 = vsub.s32 (!%p191_p2), 2, %v556_v6  ;;  %v557_v10 = vsub.s32 (!%p191_p2), 0, %v556_v6 }
   0xc   : > { %1889 = vmatpush1.bf16.msra.mxu0 (!%p191_p2), %v3175_v2  ;;  %3149 = vmatpush1.bf16.msra.mxu1 (!%p191_p2), %v3175_v2  ;;  %v3294_v22 = vrot.slane (!%p191_p2), %v553_v13, %v561_v8  ;;  %v3296_v23 = vrot.slane (!%p191_p2), %v553_v13, %v565_v9  ;;  %v3298_v24 = vrot.slane (!%p191_p2), %v762_v18, %v561_v8  ;;  %v3333_v44 = vstv (!%p191_p2), %s3280_s13  ;;  %v3182_v8 = vld [vmem:[%s4537_s1 + $0x40] sm:$0xff] (!%p191_p2)  }
   0xd   : > { %1890 = vmatprep.subr.bf16.mxu0 (!%p191_p2), %v3200_v1  ;;  %3134 = vmatprep.subr.bf16.mxu1 (!%p191_p2), %v3200_v1  ;;  %v3303_v26 = vrot.slane (!%p191_p2), %v762_v18, %v565_v9  ;;  %v3316_v34 = vrot.slane (!%p191_p2), %v553_v13, %v557_v10  ;;  %v3318_v35 = vrot.slane (!%p191_p2), %v762_v18, %v557_v10 }
   0xe   : > { %s4543_s4 = smov (!%p220_p3, %s2846_s4), 127 }
   0xf   : > { %s3164_s28 = smul.u32 12, %s4543_s4 }
  0x10   : > { %1891 = vmatpush1.bf16.msra.mxu0 %v3176_v3  ;;  %3150 = vmatpush1.bf16.msra.mxu1 %v3176_v3 }
  0x11   : > { %1892 = vmatprep.subr.bf16.mxu0 %v3200_v1  ;;  %3135 = vmatprep.subr.bf16.mxu1 %v3200_v1  ;;  %s3271_s10 = scalar_lea.vmem %s4536_s0, %s3164_s28 }
  0x12   : > { %v233_v11 = vld [vmem:[%s3271_s10] sm:$0xff]  ;;  %v235_v12 = vld [vmem:[%s3271_s10 + $0xc] sm:$0xff]  ;;  %v3309_v30 = vld [vmem:[%s3271_s10 + $0x18] sm:$0xff] }
  0x13   : > { %v361_v14 = vunpack.c.l.bf16 %v233_v11  ;;  %v362_v15 = vunpack.c.h.bf16 %v233_v11  ;;  %v364_v16 = vunpack.c.l.bf16 %v235_v12  ;;  %v365_v17 = vunpack.c.h.bf16 %v235_v12  ;;  %v3286_v19 = vld [vmem:[%s3271_s10 + $0x240] sm:$0xff]  ;;  %v3289_v20 = vld [vmem:[%s3271_s10 + $0x24c] sm:$0xff]  ;;  %v3321_v36 = vld [vmem:[%s3271_s10 + $0x258] sm:$0xff] }
  0x14   : > { %1893 = vmatpush1.bf16.msra.mxu0 %v3177_v5  ;;  %3151 = vmatpush1.bf16.msra.mxu1 %v3177_v5  ;;  %v505_v25 = vunpack.c.l.bf16 %v3286_v19  ;;  %v506_v27 = vunpack.c.h.bf16 %v3286_v19  ;;  %v508_v28 = vunpack.c.l.bf16 %v3289_v20  ;;  %v509_v29 = vunpack.c.h.bf16 %v3289_v20  ;;  %v3312_v31 = vld [vmem:[%s3271_s10 + $0x24] sm:$0xff] }
  0x15   : > { %1894 = vmatprep.subr.bf16.mxu0 %v3200_v1  ;;  %3136 = vmatprep.subr.bf16.mxu1 %v3200_v1  ;;  %v571_v32 = vmul.f32 %v3294_v22, %v362_v15  ;;  %v574_v33 = vmul.f32 %v3294_v22, %v365_v17  ;;  %v368_v39 = vunpack.c.h.bf16 %v3309_v30  ;;  %v371_v40 = vunpack.c.h.bf16 %v3312_v31  ;;  %v3342_v49 = vld [vmem:[%s3271_s10 + $0x264] sm:$0xff] }
  0x16   : > { %v715_v37 = vmul.f32 %v3294_v22, %v506_v27  ;;  %v718_v38 = vmul.f32 %v3294_v22, %v509_v29  ;;  %v570_v45 = vmul.f32 %v3316_v34, %v361_v14  ;;  %v573_v48 = vmul.f32 %v3316_v34, %v364_v16 }
  0x17   : > { %v780_v42 = vadd.f32 %v3298_v24, %v571_v32  ;;  %v783_v43 = vadd.f32 %v3298_v24, %v574_v33  ;;  %v512_v50 = vunpack.c.h.bf16 %v3321_v36  ;;  %v515_v59 = vunpack.c.h.bf16 %v3342_v49 }
  0x18   : > { %1895 = vmatpush1.bf16.msra.mxu0 %v3178_v7  ;;  %3152 = vmatpush1.bf16.msra.mxu1 %v3178_v7  ;;  %v924_v46 = vadd.f32 %v3298_v24, %v715_v37  ;;  %v927_v47 = vadd.f32 %v3298_v24, %v718_v38  ;;  %v779_v58 = vadd.f32 %v3318_v35, %v570_v45  ;;  %v367_v63 = vunpack.c.l.bf16 %v3309_v30  ;;  %v3184_v45 = vld [vmem:[%s4537_s1 + $0x50] sm:$0xff]  }
  0x19   : > { %1896 = vmatprep.subr.bf16.mxu0 %v3200_v1  ;;  %3137 = vmatprep.subr.bf16.mxu1 %v3200_v1  ;;  %vm973_vm0 = vcmp.ge.f32.partialorder %v780_v42, 0.0  ;;  %vm976_vm1 = vcmp.ge.f32.partialorder %v783_v43, 0.0  ;;  %v1166_v51 = vmul.f32 %v3333_v44, %v780_v42  ;;  %v1169_v52 = vmul.f32 %v3333_v44, %v783_v43 }
  0x1a   : > { %vm1117_vm2 = vcmp.ge.f32.partialorder %v924_v46, 0.0  ;;  %vm1120_vm3 = vcmp.ge.f32.partialorder %v927_v47, 0.0  ;;  %v1310_v53 = vmul.f32 %v3333_v44, %v924_v46  ;;  %v1313_v54 = vmul.f32 %v3333_v44, %v927_v47 }
  0x1b   : > { %v1358_v56 = vsel %vm973_vm0, %v780_v42, %v1166_v51  ;;  %v1361_v57 = vsel %vm976_vm1, %v783_v43, %v1169_v52  ;;  %v782_v2 = vadd.f32 %v3318_v35, %v573_v48  ;;  %vm972_vm4 = vcmp.ge.f32.partialorder %v779_v58, 0.0  ;;  %v3410_v43 = vld [vmem:[%s3271_s10 + $0x3c] sm:$0xff] }
  0x1c   : > { %1897 = vmatpush1.bf16.msra.mxu0 %v3179_v21  ;;  %3153 = vmatpush1.bf16.msra.mxu1 %v3179_v21  ;;  %v1550_v60 = vpack.c.bf16 %v1361_v57, %v1358_v56  ;;  %v1502_v61 = vsel %vm1117_vm2, %v924_v46, %v1310_v53  ;;  %v1505_v62 = vsel %vm1120_vm3, %v927_v47, %v1313_v54  ;;  %v370_v15 = vunpack.c.l.bf16 %v3312_v31 }
  0x1d   : > { %1898 = vmatprep.subr.bf16.mxu0 %v3200_v1  ;;  %3138 = vmatprep.subr.bf16.mxu1 %v3200_v1  ;;  %v1622_v0 = vpack.c.bf16 %v1505_v62, %v1502_v61  ;;  %v1165_v3 = vmul.f32 %v3333_v44, %v779_v58  ;;  %v714_v4 = vmul.f32 %v3316_v34, %v505_v25  ;;  %vm975_vm5 = vcmp.ge.f32.partialorder %v782_v2, 0.0  ;;  %v3183_v25 = vld [vmem:[%s4537_s1 + $0x48] sm:$0xff]   ;;  %v3185_v61 = vld [vmem:[%s4537_s1 + $0x58] sm:$0xff]  }
  0x1e   : > { %1918 = vmatprep.mubr.bf16.mxu0 %v1550_v60  ;;  %v717_v5 = vmul.f32 %v3316_v34, %v508_v28  ;;  %v577_v6 = vmul.f32 %v3294_v22, %v368_v39  ;;  %v580_v7 = vmul.f32 %v3294_v22, %v371_v40  ;;  %v1168_v9 = vmul.f32 %v3333_v44, %v782_v2  ;;  %v3402_v39 = vld [vmem:[%s3271_s10 + $0x30] sm:$0xff] }
  0x1f   : > { %v3367_v10 = vsel %vm972_vm4, %v779_v58, %v1165_v3  ;;  %v721_v11 = vmul.f32 %v3294_v22, %v512_v50  ;;  %v923_v12 = vadd.f32 %v3318_v35, %v714_v4  ;;  %2110 = vmatprep.mubr.bf16.mxu1 %v1622_v0  ;;  %v724_v18 = vmul.f32 %v3294_v22, %v515_v59  ;;  %v3434_v58 = vld [vmem:[%s3271_s10 + $0x270] sm:$0xff] }
  0x20   : > { %1899 = vmatpush1.bf16.msra.mxu0 %v3180_v41  ;;  %3154 = vmatpush1.bf16.msra.mxu1 %v3180_v41  ;;  %v926_v13 = vadd.f32 %v3318_v35, %v717_v5  ;;  %v786_v14 = vadd.f32 %v3298_v24, %v577_v6  ;;  %v3376_v16 = vsel %vm975_vm5, %v782_v2, %v1168_v9  ;;  %v511_v50 = vunpack.c.l.bf16 %v3321_v36  ;;  %v339_v9 = vld [vmem:[%s3271_s10 + $0x27c] sm:$0xff] }
  0x21   : > { %1900 = vmatprep.subr.bf16.mxu0 %v3200_v1  ;;  %3139 = vmatprep.subr.bf16.mxu1 %v3200_v1  ;;  %v789_v17 = vadd.f32 %v3298_v24, %v580_v7  ;;  %v930_v19 = vadd.f32 %v3298_v24, %v721_v11  ;;  %v1549_v20 = vpack.c.bf16 %v3376_v16, %v3367_v10  ;;  %vm1116_vm6 = vcmp.ge.f32.partialorder %v923_v12, 0.0 }
  0x22   : > { %vm1119_vm7 = vcmp.ge.f32.partialorder %v926_v13, 0.0  ;;  %v1309_v21 = vmul.f32 %v3333_v44, %v923_v12  ;;  %v1312_v27 = vmul.f32 %v3333_v44, %v926_v13  ;;  %vm979_vm8 = vcmp.ge.f32.partialorder %v786_v14, 0.0 }
  0x23   : > { %vm982_vm9 = vcmp.ge.f32.partialorder %v789_v17, 0.0  ;;  %v1172_v28 = vmul.f32 %v3333_v44, %v786_v14  ;;  %v1175_v30 = vmul.f32 %v3333_v44, %v789_v17  ;;  %v933_v31 = vadd.f32 %v3298_v24, %v724_v18 }
  0x24   : > { %1901 = vmatpush1.bf16.msra.mxu0 %v3181_v55  ;;  %3155 = vmatpush1.bf16.msra.mxu1 %v3181_v55  ;;  %v3391_v29 = vsel %vm1116_vm6, %v923_v12, %v1309_v21  ;;  %vm1123_vm10 = vcmp.ge.f32.partialorder %v930_v19, 0.0  ;;  %v3395_v32 = vsel %vm1119_vm7, %v926_v13, %v1312_v27  ;;  %v1316_v37 = vmul.f32 %v3333_v44, %v930_v19  ;;  %v3186_v13 = vld [vmem:[%s4537_s1 + $0x60] sm:$0xff]   ;;  %v3474_v27 = vld [vmem:[%s3271_s10 + $0x48] sm:$0xff] }
  0x25   : > { %1902 = vmatprep.subr.bf16.mxu0 %v3200_v1  ;;  %3140 = vmatprep.subr.bf16.mxu1 %v3200_v1  ;;  %v3397_v33 = vsel %vm979_vm8, %v786_v14, %v1172_v28  ;;  %v576_v38 = vmul.f32 %v3316_v34, %v367_v63  ;;  %v1621_v40 = vpack.c.bf16 %v3395_v32, %v3391_v29  ;;  %vm1126_vm11 = vcmp.ge.f32.partialorder %v933_v31, 0.0 }
  0x26   : > { %v3406_v41 = vsel %vm982_vm9, %v789_v17, %v1175_v30  ;;  %v1319_v42 = vmul.f32 %v3333_v44, %v933_v31  ;;  %v3417_v47 = vsel %vm1123_vm10, %v930_v19, %v1316_v37  ;;  %v579_v48 = vmul.f32 %v3316_v34, %v370_v15 }
  0x27   : > { %v1553_v46 = vpack.c.bf16 %v3406_v41, %v3397_v33  ;;  %v785_v52 = vadd.f32 %v3318_v35, %v576_v38  ;;  %v514_v53 = vunpack.c.l.bf16 %v3342_v49  ;;  %v374_v54 = vunpack.c.h.bf16 %v3402_v39  ;;  %v347_v33 = vld [vmem:[%s3271_s10 + $0x2ac] sm:$0xff] }
  0x28   : > { %1903 = vmatpush1.bf16.msra.mxu0 %v3182_v8  ;;  %3156 = vmatpush1.bf16.msra.mxu1 %v3182_v8  ;;  %v3423_v51 = vsel %vm1126_vm11, %v933_v31, %v1319_v42  ;;  %v788_v56 = vadd.f32 %v3318_v35, %v579_v48  ;;  %v720_v57 = vmul.f32 %v3316_v34, %v511_v50  ;;  %v377_v36 = vunpack.c.h.bf16 %v3410_v43  ;;  %v3490_v48 = vld [vmem:[%s3271_s10 + $0x54] sm:$0xff]  ;;  %v3187_v50 = vld [vmem:[%s4537_s1 + $0x68] sm:$0xff]  }
  0x29   : > { %1904 = vmatprep.subr.bf16.mxu0 %v3200_v1  ;;  %3141 = vmatprep.subr.bf16.mxu1 %v3200_v1  ;;  %v1625_v55 = vpack.c.bf16 %v3423_v51, %v3417_v47  ;;  %vm978_vm12 = vcmp.ge.f32.partialorder %v785_v52, 0.0  ;;  %v1171_v59 = vmul.f32 %v3333_v44, %v785_v52  ;;  %v723_v60 = vmul.f32 %v3316_v34, %v514_v53 }
  0x2a   : > { %v583_v49 = vmul.f32 %v3294_v22, %v374_v54  ;;  %vm981_vm13 = vcmp.ge.f32.partialorder %v788_v56, 0.0  ;;  %v1174_v62 = vmul.f32 %v3333_v44, %v788_v56  ;;  %v929_v63 = vadd.f32 %v3318_v35, %v720_v57 }
  0x2b   : > { %v586_v0 = vmul.f32 %v3294_v22, %v377_v36  ;;  %v3447_v2 = vsel %vm978_vm12, %v785_v52, %v1171_v59  ;;  %v932_v3 = vadd.f32 %v3318_v35, %v723_v60  ;;  %v518_v5 = vunpack.c.h.bf16 %v3434_v58 }
  0x2c   : > { %1905 = vmatpush1.bf16.msra.mxu0 %v3183_v25  ;;  %3157 = vmatpush1.bf16.msra.mxu1 %v3183_v25  ;;  %v792_v4 = vadd.f32 %v3298_v24, %v583_v49  ;;  %v3452_v6 = vsel %vm981_vm13, %v788_v56, %v1174_v62  ;;  %vm1122_vm14 = vcmp.ge.f32.partialorder %v929_v63, 0.0  ;;  %v1315_v7 = vmul.f32 %v3333_v44, %v929_v63 }
  0x2d   : > { %1906 = vmatprep.subr.bf16.mxu0 %v3200_v1  ;;  %3142 = vmatprep.subr.bf16.mxu1 %v3200_v1  ;;  %v795_v8 = vadd.f32 %v3298_v24, %v586_v0  ;;  %v1552_v11 = vpack.c.bf16 %v3452_v6, %v3447_v2  ;;  %vm1125_vm15 = vcmp.ge.f32.partialorder %v932_v3, 0.0  ;;  %v1318_v12 = vmul.f32 %v3333_v44, %v932_v3  ;;  %v3188_v0 = vld [vmem:[%s4537_s1 + $0x70] sm:$0xff]  }
  0x2e   : > { %vm985_vm0 = vcmp.ge.f32.partialorder %v792_v4, 0.0  ;;  %v3463_v14 = vsel %vm1122_vm14, %v929_v63, %v1315_v7  ;;  %v1178_v15 = vmul.f32 %v3333_v44, %v792_v4  ;;  %v521_v19 = vunpack.c.h.bf16 %v339_v9 }
  0x2f   : > { %vm988_vm1 = vcmp.ge.f32.partialorder %v795_v8, 0.0  ;;  %v1181_v17 = vmul.f32 %v3333_v44, %v795_v8  ;;  %v3469_v18 = vsel %vm1125_vm15, %v932_v3, %v1318_v12  ;;  %v727_v21 = vmul.f32 %v3294_v22, %v518_v5  ;;  %v3526_v12 = vld [vmem:[%s3271_s10 + $0x294] sm:$0xff] }
  0x30   : > { %1907 = vmatpush1.bf16.msra.mxu0 %v3184_v45  ;;  %3158 = vmatpush1.bf16.msra.mxu1 %v3184_v45  ;;  %v373_v25 = vunpack.c.l.bf16 %v3402_v39  ;;  %v1624_v28 = vpack.c.bf16 %v3469_v18, %v3463_v14  ;;  %v3479_v30 = vsel %vm985_vm0, %v792_v4, %v1178_v15  ;;  %v376_v37 = vunpack.c.l.bf16 %v3410_v43 }
  0x31   : > { %1908 = vmatprep.subr.bf16.mxu0 %v3200_v1  ;;  %3143 = vmatprep.subr.bf16.mxu1 %v3200_v1  ;;  %v3481_v31 = vsel %vm988_vm1, %v795_v8, %v1181_v17  ;;  %v730_v42 = vmul.f32 %v3294_v22, %v521_v19  ;;  %v936_v45 = vadd.f32 %v3298_v24, %v727_v21  ;;  %v517_v52 = vunpack.c.l.bf16 %v3434_v58 }
  0x32   : > { %v1556_v38 = vpack.c.bf16 %v3481_v31, %v3479_v30  ;;  %v582_v39 = vmul.f32 %v3316_v34, %v373_v25  ;;  %v585_v43 = vmul.f32 %v3316_v34, %v376_v37  ;;  %v520_v53 = vunpack.c.l.bf16 %v339_v9 }
  0x33   : > { %v380_v54 = vunpack.c.h.bf16 %v3474_v27  ;;  %v939_v56 = vadd.f32 %v3298_v24, %v730_v42  ;;  %vm1129_vm2 = vcmp.ge.f32.partialorder %v936_v45, 0.0  ;;  %v1322_v57 = vmul.f32 %v3333_v44, %v936_v45  ;;  %v3189_v42 = vld [vmem:[%s4537_s1 + $0x78] sm:$0xff]  }
  0x34   : > { %1909 = vmatpush1.bf16.msra.mxu0 %v3185_v61  ;;  %3159 = vmatpush1.bf16.msra.mxu1 %v3185_v61  ;;  %v791_v36 = vadd.f32 %v3318_v35, %v582_v39  ;;  %v794_v59 = vadd.f32 %v3318_v35, %v585_v43  ;;  %v726_v60 = vmul.f32 %v3316_v34, %v517_v52  ;;  %v383_v49 = vunpack.c.h.bf16 %v3490_v48  ;;  %v3508_v61 = vld [vmem:[%s3271_s10 + $0x288] sm:$0xff]  ;;  %v3190_v52 = vld [vmem:[%s4537_s1 + $0x80] sm:$0xff]  }
  0x35   : > { %1910 = vmatprep.subr.bf16.mxu0 %v3200_v1  ;;  %3144 = vmatprep.subr.bf16.mxu1 %v3200_v1  ;;  %v729_v58 = vmul.f32 %v3316_v34, %v520_v53  ;;  %vm1132_vm3 = vcmp.ge.f32.partialorder %v939_v56, 0.0  ;;  %v1325_v62 = vmul.f32 %v3333_v44, %v939_v56  ;;  %v3511_v63 = vsel %vm1129_vm2, %v936_v45, %v1322_v57 }
  0x36   : > { %vm984_vm4 = vcmp.ge.f32.partialorder %v791_v36, 0.0  ;;  %vm987_vm5 = vcmp.ge.f32.partialorder %v794_v59, 0.0  ;;  %v1177_v3 = vmul.f32 %v3333_v44, %v791_v36  ;;  %v1180_v4 = vmul.f32 %v3333_v44, %v794_v59 }
  0x37   : > { %v935_v5 = vadd.f32 %v3318_v35, %v726_v60  ;;  %v3521_v7 = vsel %vm1132_vm3, %v939_v56, %v1325_v62  ;;  %v938_v8 = vadd.f32 %v3318_v35, %v729_v58  ;;  %v589_v9 = vmul.f32 %v3294_v22, %v380_v54 }
  0x38   : > { %1911 = vmatpush1.bf16.msra.mxu0 %v3186_v13  ;;  %3160 = vmatpush1.bf16.msra.mxu1 %v3186_v13  ;;  %v524_v13 = vunpack.c.h.bf16 %v3508_v61  ;;  %v1628_v15 = vpack.c.bf16 %v3521_v7, %v3511_v63  ;;  %v3532_v17 = vsel %vm984_vm4, %v791_v36, %v1177_v3  ;;  %v3534_v19 = vsel %vm987_vm5, %v794_v59, %v1180_v4 }
  0x39   : > { %1912 = vmatprep.subr.bf16.mxu0 %v3200_v1  ;;  %3145 = vmatprep.subr.bf16.mxu1 %v3200_v1  ;;  %vm1128_vm6 = vcmp.ge.f32.partialorder %v935_v5, 0.0  ;;  %v1555_v21 = vpack.c.bf16 %v3534_v19, %v3532_v17  ;;  %vm1131_vm7 = vcmp.ge.f32.partialorder %v938_v8, 0.0  ;;  %v1321_v25 = vmul.f32 %v3333_v44, %v935_v5 }
  0x3a   : > { %v1324_v37 = vmul.f32 %v3333_v44, %v938_v8  ;;  %v592_v45 = vmul.f32 %v3294_v22, %v383_v49  ;;  %v798_v39 = vadd.f32 %v3298_v24, %v589_v9  ;;  %v733_v43 = vmul.f32 %v3294_v22, %v524_v13 }
  0x3b   : > { %v3552_v53 = vsel %vm1128_vm6, %v935_v5, %v1321_v25  ;;  %v379_v56 = vunpack.c.l.bf16 %v3474_v27  ;;  %v382_v57 = vunpack.c.l.bf16 %v3490_v48  ;;  %v526_v25 = vunpack.c.l.bf16 %v3526_v12 }
  0x3c   : > { %1913 = vmatpush1.bf16.msra.mxu0 %v3187_v50  ;;  %3161 = vmatpush1.bf16.msra.mxu1 %v3187_v50  ;;  %v527_v50 = vunpack.c.h.bf16 %v3526_v12  ;;  %v3554_v54 = vsel %vm1131_vm7, %v938_v8, %v1324_v37  ;;  %v801_v59 = vadd.f32 %v3298_v24, %v592_v45  ;;  %vm991_vm8 = vcmp.ge.f32.partialorder %v798_v39, 0.0  ;;  %v3191_v8 = vld [vmem:[%s4537_s1 + $0x88] sm:$0xff]   ;;  %v249_v37 = vld [vmem:[%s3271_s10 + $0x60] sm:$0xff] }
  0x3d   : > { %1914 = vmatprep.subr.bf16.mxu0 %v3200_v1  ;;  %3146 = vmatprep.subr.bf16.mxu1 %v3200_v1  ;;  %v1627_v36 = vpack.c.bf16 %v3554_v54, %v3552_v53  ;;  %v942_v58 = vadd.f32 %v3298_v24, %v733_v43  ;;  %v588_v49 = vmul.f32 %v3316_v34, %v379_v56 }
  0x3e   : > { %v736_v60 = vmul.f32 %v3294_v22, %v527_v50  ;;  %v591_v62 = vmul.f32 %v3316_v34, %v382_v57  ;;  %vm994_vm9 = vcmp.ge.f32.partialorder %v801_v59, 0.0  ;;  %v1187_v27 = vmul.f32 %v3333_v44, %v801_v59  ;;  %v345_v50 = vld [vmem:[%s3271_s10 + $0x2a0] sm:$0xff] }
  0x3f   : > { %vm1135_vm10 = vcmp.ge.f32.partialorder %v942_v58, 0.0  ;;  %v1328_v4 = vmul.f32 %v3333_v44, %v942_v58  ;;  %v797_v5 = vadd.f32 %v3318_v35, %v588_v49  ;;  %v735_v29 = vmul.f32 %v3316_v34, %v526_v25  ;;  %v253_v25 = vld [vmem:[%s3271_s10 + $0x78] sm:$0xff] }
  0x40   : > { %1915 = vmatpush1.bf16.msra.mxu0 %v3188_v0  ;;  %3162 = vmatpush1.bf16.msra.mxu1 %v3188_v0  ;;  %v523_v0 = vunpack.c.l.bf16 %v3508_v61  ;;  %v945_v3 = vadd.f32 %v3298_v24, %v736_v60  ;;  %v3576_v9 = vsel %vm994_vm9, %v801_v59, %v1187_v27  ;;  %v800_v13 = vadd.f32 %v3318_v35, %v591_v62 }
  0x41   : > { %1916 = vmatprep.subr.bf16.mxu0 %v3200_v1  ;;  %3147 = vmatprep.subr.bf16.mxu1 %v3200_v1  ;;  %v1184_v1 = vmul.f32 %v3333_v44, %v798_v39  ;;  %v3591_v12 = vsel %vm1135_vm10, %v942_v58, %v1328_v4  ;;  %vm990_vm12 = vcmp.ge.f32.partialorder %v797_v5, 0.0  ;;  %v1183_v10 = vmul.f32 %v3333_v44, %v797_v5 }
  0x42   : > { %v732_v61 = vmul.f32 %v3316_v34, %v523_v0  ;;  %vm1138_vm11 = vcmp.ge.f32.partialorder %v945_v3, 0.0  ;;  %v1331_v45 = vmul.f32 %v3333_v44, %v945_v3  ;;  %vm993_vm13 = vcmp.ge.f32.partialorder %v800_v13, 0.0 }
  0x43   : > { %v3567_v48 = vsel %vm991_vm8, %v798_v39, %v1184_v1  ;;  %v251_v39 = vld [vmem:[%s3271_s10 + $0x6c] sm:$0xff]  ;;  %v1186_v16 = vmul.f32 %v3333_v44, %v800_v13  ;;  %v944_v51 = vadd.f32 %v3318_v35, %v735_v29  ;;  %v530_v59 = vunpack.c.h.bf16 %v345_v50 }
  0x44   : > { %1917 = vmatpush1.bf16.msra.mxu0 %v3189_v42  ;;  %3163 = vmatpush1.bf16.msra.mxu1 %v3189_v42  ;;  %v1559_v42 = vpack.c.bf16 %v3576_v9, %v3567_v48  ;;  %v941_v32 = vadd.f32 %v3318_v35, %v732_v61  ;;  %v533_v1 = vunpack.c.h.bf16 %v347_v33  ;;  %v385_v49 = vunpack.c.l.bf16 %v249_v37 }
  0x45   : > { %3064 = vmatprep.subr.bf16.mxu1 %v3190_v52  ;;  %v3612_v43 = vsel %vm993_vm13, %v800_v13, %v1186_v16  ;;  %vm1137_vm15 = vcmp.ge.f32.partialorder %v944_v51, 0.0  ;;  %v1330_v60 = vmul.f32 %v3333_v44, %v944_v51  ;;  %v739_v0 = vmul.f32 %v3294_v22, %v530_v59 }
  0x46   : > { %vm1134_vm14 = vcmp.ge.f32.partialorder %v941_v32, 0.0  ;;  %v529_v13 = vunpack.c.l.bf16 %v345_v50 }
  0x47   : > { %1919 = vmatmul.mubr.bf16.vlgmr.msra.gmra.mrb[0].mxu0 %v1549_v20  ;;  %2111 = vmatmul.mubr.bf16.vlgmr.msra.gmra.mrb[0].mxu1 %v1621_v40  ;;  %v3602_v20 = vsel %vm1138_vm11, %v945_v3, %v1331_v45  ;;  %v386_v40 = vunpack.c.h.bf16 %v249_v37  ;;  %v742_v3 = vmul.f32 %v3294_v22, %v533_v1  ;;  %v3633_v4 = vsel %vm1137_vm15, %v944_v51, %v1330_v60 }
  0x48   : > { %3065 = vmatpush3.bf16.msra.mxu1 %v3190_v52  ;;  %1926 = vmatprep.mubr.bf16.mxu0 %v1553_v46  ;;  %v1631_v41 = vpack.c.bf16 %v3602_v20, %v3591_v12  ;;  %v3610_v46 = vsel %vm990_vm12, %v797_v5, %v1183_v10  ;;  %v389_v52 = vunpack.c.h.bf16 %v251_v39  ;;  %v388_v5 = vunpack.c.l.bf16 %v251_v39 }
  0x49   : > { %2118 = vmatprep.mubr.bf16.mxu1 %v1625_v55  ;;  %3066 = vmatprep.subr.bf16.mxu1 %v3191_v8  ;;  %v1558_v47 = vpack.c.bf16 %v3612_v43, %v3610_v46  ;;  %v1327_v55 = vmul.f32 %v3333_v44, %v941_v32  ;;  %v595_v56 = vmul.f32 %v3294_v22, %v386_v40  ;;  %v391_v1 = vunpack.c.l.bf16 %v253_v25  ;;  %v257_v43 = vld [vmem:[%s3271_s10 + $0x90] sm:$0xff] }
  0x4a   : > { %v598_v57 = vmul.f32 %v3294_v22, %v389_v52  ;;  %v948_v14 = vadd.f32 %v3298_v24, %v739_v0  ;;  %v951_v18 = vadd.f32 %v3298_v24, %v742_v3  ;;  %v738_v63 = vmul.f32 %v3316_v34, %v529_v13  ;;  %v349_v52 = vld [vmem:[%s3271_s10 + $0x2b8] sm:$0xff] }
  0x4b   : > { %v3621_v58 = vsel %vm1134_vm14, %v941_v32, %v1327_v55  ;;  %v804_v62 = vadd.f32 %v3298_v24, %v595_v56  ;;  %v255_v32 = vld [vmem:[%s3271_s10 + $0x84] sm:$0xff]  ;;  %v536_v59 = vunpack.c.h.bf16 %v349_v52 }
  0x4c   : > { %3067 = vmatpush3.bf16.msra.mxu1 %v3191_v8  ;;  %v807_v27 = vadd.f32 %v3298_v24, %v598_v57  ;;  %v594_v8 = vmul.f32 %v3316_v34, %v385_v49  ;;  %v1630_v2 = vpack.c.bf16 %v3633_v4, %v3621_v58  ;;  %vm1141_vm2 = vcmp.ge.f32.partialorder %v948_v14, 0.0  ;;  %v351_v57 = vld [vmem:[%s3271_s10 + $0x2c4] sm:$0xff] }
  0x4d   : > { %vm997_vm0 = vcmp.ge.f32.partialorder %v804_v62, 0.0  ;;  %v1190_v6 = vmul.f32 %v3333_v44, %v804_v62  ;;  %vm1144_vm3 = vcmp.ge.f32.partialorder %v951_v18, 0.0  ;;  %v1337_v37 = vmul.f32 %v3333_v44, %v951_v18 }
  0x4e   : > { %vm1000_vm1 = vcmp.ge.f32.partialorder %v807_v27, 0.0  ;;  %v803_v31 = vadd.f32 %v3318_v35, %v594_v8  ;;  %v947_v29 = vadd.f32 %v3318_v35, %v738_v63  ;;  %v539_v12 = vunpack.c.h.bf16 %v351_v57 }
  0x4f   : > { %1927 = vmatmul.mubr.bf16.gmra.mrb[4].mxu0 %v1552_v11  ;;  %2119 = vmatmul.mubr.bf16.gmra.mrb[4].mxu1 %v1624_v28  ;;  %v1193_v11 = vmul.f32 %v3333_v44, %v807_v27  ;;  %v597_v28 = vmul.f32 %v3316_v34, %v388_v5  ;;  %v3649_v30 = vsel %vm997_vm0, %v804_v62, %v1190_v6  ;;  %v394_v60 = vunpack.c.l.bf16 %v255_v32 }
  0x50   : > { %1934 = vmatprep.mubr.bf16.mxu0 %v1556_v38  ;;  %2126 = vmatprep.mubr.bf16.mxu1 %v1628_v15  ;;  %v532_v38 = vunpack.c.l.bf16 %v347_v33  ;;  %v1334_v15 = vmul.f32 %v3333_v44, %v948_v14  ;;  %vm996_vm4 = vcmp.ge.f32.partialorder %v803_v31, 0.0  ;;  %v1189_v10 = vmul.f32 %v3333_v44, %v803_v31 }
  0x51   : > { %v1385_v7 = vsel %vm1000_vm1, %v807_v27, %v1193_v11  ;;  %v806_v45 = vadd.f32 %v3318_v35, %v597_v28  ;;  %v1529_v40 = vsel %vm1144_vm3, %v951_v18, %v1337_v37  ;;  %v392_v33 = vunpack.c.h.bf16 %v253_v25 }
  0x52   : > { %v1562_v61 = vpack.c.bf16 %v1385_v7, %v3649_v30  ;;  %v1526_v39 = vsel %vm1141_vm2, %v948_v14, %v1334_v15  ;;  %v741_v16 = vmul.f32 %v3316_v34, %v532_v38  ;;  %v3670_v55 = vsel %vm996_vm4, %v803_v31, %v1189_v10 }
  0x53   : > { %vm999_vm5 = vcmp.ge.f32.partialorder %v806_v45, 0.0  ;;  %v1192_v50 = vmul.f32 %v3333_v44, %v806_v45  ;;  %v1634_v51 = vpack.c.bf16 %v1529_v40, %v1526_v39  ;;  %vm1140_vm6 = vcmp.ge.f32.partialorder %v947_v29, 0.0  ;;  %v355_v39 = vld [vmem:[%s3271_s10 + $0x2dc] sm:$0xff] }
  0x54   : > { %v950_v56 = vadd.f32 %v3318_v35, %v741_v16  ;;  %v1333_v19 = vmul.f32 %v3333_v44, %v947_v29  ;;  %v601_v53 = vmul.f32 %v3294_v22, %v392_v33  ;;  %v748_v0 = vmul.f32 %v3294_v22, %v539_v12 }
  0x55   : > { %v3680_v17 = vsel %vm999_vm5, %v806_v45, %v1192_v50  ;;  %v600_v5 = vmul.f32 %v3316_v34, %v391_v1  ;;  %v603_v8 = vmul.f32 %v3316_v34, %v394_v60  ;;  %v535_v11 = vunpack.c.l.bf16 %v349_v52  ;;  %v353_v45 = vld [vmem:[%s3271_s10 + $0x2d0] sm:$0xff] }
  0x56   : > { %v1561_v54 = vpack.c.bf16 %v3680_v17, %v3670_v55  ;;  %vm1143_vm7 = vcmp.ge.f32.partialorder %v950_v56, 0.0  ;;  %v1525_v48 = vsel %vm1140_vm6, %v947_v29, %v1333_v19  ;;  %v957_v14 = vadd.f32 %v3298_v24, %v748_v0 }
  0x57   : > { %1935 = vmatmul.mubr.bf16.gmra.mrb[8].mxu0 %v1555_v21  ;;  %2127 = vmatmul.mubr.bf16.gmra.mrb[8].mxu1 %v1627_v36  ;;  %v395_v21 = vunpack.c.h.bf16 %v255_v32  ;;  %v1336_v36 = vmul.f32 %v3333_v44, %v950_v56  ;;  %v809_v28 = vadd.f32 %v3318_v35, %v600_v5  ;;  %v812_v31 = vadd.f32 %v3318_v35, %v603_v8  ;;  %v261_v5 = vld [vmem:[%s3271_s10 + $0xa8] sm:$0xff] }
  0x58   : > { %1942 = vmatprep.mubr.bf16.mxu0 %v1559_v42  ;;  %2134 = vmatprep.mubr.bf16.mxu1 %v1631_v41  ;;  %v810_v42 = vadd.f32 %v3298_v24, %v601_v53  ;;  %v745_v41 = vmul.f32 %v3294_v22, %v536_v59  ;;  %v538_v38 = vunpack.c.l.bf16 %v351_v57  ;;  %v744_v46 = vmul.f32 %v3316_v34, %v535_v11 }
  0x59   : > { %v604_v9 = vmul.f32 %v3294_v22, %v395_v21  ;;  %v1528_v20 = vsel %vm1143_vm7, %v950_v56, %v1336_v36  ;;  %vm1150_vm11 = vcmp.ge.f32.partialorder %v957_v14, 0.0  ;;  %v1343_v58 = vmul.f32 %v3333_v44, %v957_v14 }
  0x5a   : > { %v1633_v49 = vpack.c.bf16 %v1528_v20, %v1525_v48  ;;  %vm1003_vm8 = vcmp.ge.f32.partialorder %v810_v42, 0.0  ;;  %v1196_v27 = vmul.f32 %v3333_v44, %v810_v42  ;;  %v954_v3 = vadd.f32 %v3298_v24, %v745_v41 }
  0x5b   : > { %v813_v62 = vadd.f32 %v3298_v24, %v604_v9  ;;  %vm1002_vm12 = vcmp.ge.f32.partialorder %v809_v28, 0.0  ;;  %vm1005_vm13 = vcmp.ge.f32.partialorder %v812_v31, 0.0  ;;  %v1195_v63 = vmul.f32 %v3333_v44, %v809_v28 }
  0x5c   : > { %v1388_v6 = vsel %vm1003_vm8, %v810_v42, %v1196_v27  ;;  %vm1147_vm10 = vcmp.ge.f32.partialorder %v954_v3, 0.0  ;;  %v1340_v18 = vmul.f32 %v3333_v44, %v954_v3  ;;  %v1198_v7 = vmul.f32 %v3333_v44, %v812_v31 }
  0x5d   : > { %vm1006_vm9 = vcmp.ge.f32.partialorder %v813_v62, 0.0  ;;  %v1199_v13 = vmul.f32 %v3333_v44, %v813_v62  ;;  %v1535_v15 = vsel %vm1150_vm11, %v957_v14, %v1343_v58  ;;  %v747_v25 = vmul.f32 %v3316_v34, %v538_v38 }
  0x5e   : > { %v1532_v4 = vsel %vm1147_vm10, %v954_v3, %v1340_v18  ;;  %v398_v37 = vunpack.c.h.bf16 %v257_v43  ;;  %v1387_v16 = vsel %vm1002_vm12, %v809_v28, %v1195_v63  ;;  %v1390_v29 = vsel %vm1005_vm13, %v812_v31, %v1198_v7  ;;  %v263_v18 = vld [vmem:[%s3271_s10 + $0xb4] sm:$0xff]  ;;  %v357_v7 = vld [vmem:[%s3271_s10 + $0x2e8] sm:$0xff] }
  0x5f   : > { %1943 = vmatmul.mubr.bf16.gmra.mrb[12].mxu0 %v1558_v47  ;;  %2135 = vmatmul.mubr.bf16.gmra.mrb[12].mxu1 %v1630_v2  ;;  %v1391_v30 = vsel %vm1006_vm9, %v813_v62, %v1199_v13  ;;  %v259_v2 = vld [vmem:[%s3271_s10 + $0x9c] sm:$0xff]  ;;  %v1637_v10 = vpack.c.bf16 %v1535_v15, %v1532_v4  ;;  %v1564_v40 = vpack.c.bf16 %v1390_v29, %v1387_v16  ;;  %v542_v56 = vunpack.c.h.bf16 %v353_v45  ;;  %v359_v15 = vld [vmem:[%s3271_s10 + $0x2f4] sm:$0xff] }
  0x60   : > { %1950 = vmatprep.mubr.bf16.mxu0 %v1562_v61  ;;  %2142 = vmatprep.mubr.bf16.mxu1 %v1634_v51  ;;  %v1565_v47 = vpack.c.bf16 %v1391_v30, %v1388_v6  ;;  %v953_v61 = vadd.f32 %v3318_v35, %v744_v46  ;;  %v401_v32 = vunpack.c.h.bf16 %v259_v2  ;;  %v956_v50 = vadd.f32 %v3318_v35, %v747_v25 }
  0x61   : > { %v607_v52 = vmul.f32 %v3294_v22, %v398_v37  ;;  %v545_v57 = vunpack.c.h.bf16 %v355_v39  ;;  %v397_v53 = vunpack.c.l.bf16 %v257_v43  ;;  %v751_v48 = vmul.f32 %v3294_v22, %v542_v56 }
  0x62   : > { %vm1146_vm14 = vcmp.ge.f32.partialorder %v953_v61, 0.0  ;;  %v1339_v33 = vmul.f32 %v3333_v44, %v953_v61  ;;  %v610_v51 = vmul.f32 %v3294_v22, %v401_v32  ;;  %vm1149_vm15 = vcmp.ge.f32.partialorder %v956_v50, 0.0 }
  0x63   : > { %v1342_v19 = vmul.f32 %v3333_v44, %v956_v50  ;;  %v816_v36 = vadd.f32 %v3298_v24, %v607_v52  ;;  %v400_v9 = vunpack.c.l.bf16 %v259_v2  ;;  %v754_v55 = vmul.f32 %v3294_v22, %v545_v57 }
  0x64   : > { %v1531_v21 = vsel %vm1146_vm14, %v953_v61, %v1339_v33  ;;  %v819_v59 = vadd.f32 %v3298_v24, %v610_v51  ;;  %v606_v17 = vmul.f32 %v3316_v34, %v397_v53  ;;  %v960_v1 = vadd.f32 %v3298_v24, %v751_v48 }
  0x65   : > { %v1534_v42 = vsel %vm1149_vm15, %v956_v50, %v1342_v19  ;;  %vm1009_vm0 = vcmp.ge.f32.partialorder %v816_v36, 0.0  ;;  %v1202_v20 = vmul.f32 %v3333_v44, %v816_v36  ;;  %v963_v60 = vadd.f32 %v3298_v24, %v754_v55 }
  0x66   : > { %v1636_v12 = vpack.c.bf16 %v1534_v42, %v1531_v21  ;;  %vm1012_vm1 = vcmp.ge.f32.partialorder %v819_v59, 0.0  ;;  %v1205_v41 = vmul.f32 %v3333_v44, %v819_v59  ;;  %v815_v27 = vadd.f32 %v3318_v35, %v606_v17 }
  0x67   : > { %1951 = vmatmul.mubr.bf16.gmra.mrb[16].mxu0 %v1561_v54  ;;  %2143 = vmatmul.mubr.bf16.gmra.mrb[16].mxu1 %v1633_v49  ;;  %v541_v54 = vunpack.c.l.bf16 %v353_v45  ;;  %v609_v49 = vmul.f32 %v3316_v34, %v400_v9  ;;  %v1394_v62 = vsel %vm1009_vm0, %v816_v36, %v1202_v20  ;;  %v544_v0 = vunpack.c.l.bf16 %v355_v39 }
  0x68   : > { %1958 = vmatprep.mubr.bf16.mxu0 %v1565_v47  ;;  %2150 = vmatprep.mubr.bf16.mxu1 %v1637_v10  ;;  %v1397_v8 = vsel %vm1012_vm1, %v819_v59, %v1205_v41  ;;  %vm1153_vm2 = vcmp.ge.f32.partialorder %v960_v1, 0.0  ;;  %vm1156_vm3 = vcmp.ge.f32.partialorder %v963_v60, 0.0  ;;  %v1346_v13 = vmul.f32 %v3333_v44, %v960_v1 }
  0x69   : > { %v750_v3 = vmul.f32 %v3316_v34, %v541_v54  ;;  %v1568_v6 = vpack.c.bf16 %v1397_v8, %v1394_v62  ;;  %v1349_v11 = vmul.f32 %v3333_v44, %v963_v60  ;;  %v818_v14 = vadd.f32 %v3318_v35, %v609_v49  ;;  %v234_v8 = vld [vmem:[%s3271_s10 + $0x8] ss:$12 sps:$4 sm:$0xff]  }
  0x6a   : > { %vm1008_vm4 = vcmp.ge.f32.partialorder %v815_v27, 0.0  ;;  %v1538_v28 = vsel %vm1153_vm2, %v960_v1, %v1346_v13  ;;  %v1201_v30 = vmul.f32 %v3333_v44, %v815_v27  ;;  %v753_v31 = vmul.f32 %v3316_v34, %v544_v0 }
  0x6b   : > { %v404_v38 = vunpack.c.h.bf16 %v261_v5  ;;  %v1541_v46 = vsel %vm1156_vm3, %v963_v60, %v1349_v11  ;;  %vm1011_vm5 = vcmp.ge.f32.partialorder %v818_v14, 0.0  ;;  %v1204_v43 = vmul.f32 %v3333_v44, %v818_v14  ;;  %v265_v60 = vld [vmem:[%s3271_s10 + $0xc0] sm:$0xff] }
  0x6c   : > { %v959_v47 = vadd.f32 %v3318_v35, %v750_v3  ;;  %v1640_v58 = vpack.c.bf16 %v1541_v46, %v1538_v28  ;;  %v1393_v4 = vsel %vm1008_vm4, %v815_v27, %v1201_v30  ;;  %v962_v2 = vadd.f32 %v3318_v35, %v753_v31  ;;  %v267_v27 = vld [vmem:[%s3271_s10 + $0xcc] sm:$0xff] }
  0x6d   : > { %v407_v63 = vunpack.c.h.bf16 %v263_v18  ;;  %v1396_v25 = vsel %vm1011_vm5, %v818_v14, %v1204_v43  ;;  %v613_v37 = vmul.f32 %v3294_v22, %v404_v38  ;;  %v548_v32 = vunpack.c.h.bf16 %v357_v7 }
  0x6e   : > { %vm1152_vm6 = vcmp.ge.f32.partialorder %v959_v47, 0.0  ;;  %v1345_v61 = vmul.f32 %v3333_v44, %v959_v47  ;;  %v1567_v45 = vpack.c.bf16 %v1396_v25, %v1393_v4  ;;  %vm1155_vm7 = vcmp.ge.f32.partialorder %v962_v2, 0.0 }
  0x6f   : > { %1959 = vmatmul.mubr.bf16.gmra.mrb[20].mxu0 %v1564_v40  ;;  %2151 = vmatmul.mubr.bf16.gmra.mrb[20].mxu1 %v1636_v12  ;;  %v1348_v39 = vmul.f32 %v3333_v44, %v962_v2  ;;  %v616_v10 = vmul.f32 %v3294_v22, %v407_v63  ;;  %v822_v29 = vadd.f32 %v3298_v24, %v613_v37  ;;  %v551_v40 = vunpack.c.h.bf16 %v359_v15 }
  0x70   : > { %1966 = vmatprep.mubr.bf16.mxu0 %v1568_v6  ;;  %2158 = vmatprep.mubr.bf16.mxu1 %v1640_v58  ;;  %v1537_v16 = vsel %vm1152_vm6, %v959_v47, %v1345_v61  ;;  %v403_v52 = vunpack.c.l.bf16 %v261_v5  ;;  %v406_v51 = vunpack.c.l.bf16 %v263_v18  ;;  %v757_v19 = vmul.f32 %v3294_v22, %v548_v32 }
  0x71   : > { %v1540_v50 = vsel %vm1155_vm7, %v962_v2, %v1348_v39  ;;  %v825_v33 = vadd.f32 %v3298_v24, %v616_v10  ;;  %vm1015_vm8 = vcmp.ge.f32.partialorder %v822_v29, 0.0  ;;  %v1208_v57 = vmul.f32 %v3333_v44, %v822_v29 }
  0x72   : > { %v1639_v56 = vpack.c.bf16 %v1540_v50, %v1537_v16  ;;  %v760_v53 = vmul.f32 %v3294_v22, %v551_v40  ;;  %v612_v36 = vmul.f32 %v3316_v34, %v403_v52  ;;  %v966_v48 = vadd.f32 %v3298_v24, %v757_v19  ;;  %v238_v50 = vld [vmem:[%s3271_s10 + $0x20] ss:$12 sps:$4 sm:$0xff]  }
  0x73   : > { %vm1018_vm9 = vcmp.ge.f32.partialorder %v825_v33, 0.0  ;;  %v1211_v21 = vmul.f32 %v3333_v44, %v825_v33  ;;  %v1400_v59 = vsel %vm1015_vm8, %v822_v29, %v1208_v57  ;;  %v615_v9 = vmul.f32 %v3316_v34, %v406_v51 }
  0x74   : > { %v547_v42 = vunpack.c.l.bf16 %v357_v7  ;;  %v969_v17 = vadd.f32 %v3298_v24, %v760_v53  ;;  %v821_v54 = vadd.f32 %v3318_v35, %v612_v36  ;;  %v550_v12 = vunpack.c.l.bf16 %v359_v15  ;;  %v271_v53 = vld [vmem:[%s3271_s10 + $0xe4] sm:$0xff] }
  0x75   : > { %v1403_v55 = vsel %vm1018_vm9, %v825_v33, %v1211_v21  ;;  %vm1159_vm10 = vcmp.ge.f32.partialorder %v966_v48, 0.0  ;;  %v1352_v41 = vmul.f32 %v3333_v44, %v966_v48  ;;  %v824_v1 = vadd.f32 %v3318_v35, %v615_v9 }
  0x76   : > { %v1571_v20 = vpack.c.bf16 %v1403_v55, %v1400_v59  ;;  %vm1162_vm11 = vcmp.ge.f32.partialorder %v969_v17, 0.0  ;;  %v1355_v49 = vmul.f32 %v3333_v44, %v969_v17  ;;  %vm1014_vm12 = vcmp.ge.f32.partialorder %v821_v54, 0.0 }
  0x77   : > { %1967 = vmatmul.mubr.bf16.gmra.mrb[24].mxu0 %v1567_v45  ;;  %2159 = vmatmul.mubr.bf16.gmra.mrb[24].mxu1 %v1639_v56  ;;  %v1207_v62 = vmul.f32 %v3333_v44, %v821_v54  ;;  %v1544_v0 = vsel %vm1159_vm10, %v966_v48, %v1352_v41  ;;  %vm1017_vm13 = vcmp.ge.f32.partialorder %v824_v1, 0.0  ;;  %v1210_v3 = vmul.f32 %v3333_v44, %v824_v1  ;;  %v269_v56 = vld [vmem:[%s3271_s10 + $0xd8] sm:$0xff] }
  0x78   : > { %1974 = vmatprep.mubr.bf16.mxu0 %v1571_v20  ;;  %v756_v5 = vmul.f32 %v3316_v34, %v547_v42  ;;  %v1547_v13 = vsel %vm1162_vm11, %v969_v17, %v1355_v49  ;;  %v759_v11 = vmul.f32 %v3316_v34, %v550_v12  ;;  %v410_v14 = vunpack.c.h.bf16 %v265_v60 }
  0x79   : > { %v1399_v6 = vsel %vm1014_vm12, %v821_v54, %v1207_v62  ;;  %v1643_v18 = vpack.c.bf16 %v1547_v13, %v1544_v0  ;;  %v1402_v28 = vsel %vm1017_vm13, %v824_v1, %v1210_v3  ;;  %v413_v31 = vunpack.c.h.bf16 %v267_v27 }
  0x7a   : > { %v965_v30 = vadd.f32 %v3318_v35, %v756_v5  ;;  %v1570_v38 = vpack.c.bf16 %v1402_v28, %v1399_v6  ;;  %v968_v46 = vadd.f32 %v3318_v35, %v759_v11  ;;  %v619_v43 = vmul.f32 %v3294_v22, %v410_v14 }
  0x7b   : > { %v363_v47 = vunpack.c.l.bf16 %v234_v8  ;;  %2166 = vmatprep.mubr.bf16.mxu1 %v1643_v18  ;;  %v622_v4 = vmul.f32 %v3294_v22, %v413_v31  ;;  %v366_v2 = vunpack.c.h.bf16 %v234_v8  ;;  %vm1789_vm15 = vcmask 261120  }
  0x7c   : > { %vm1158_vm14 = vcmp.ge.f32.partialorder %v965_v30, 0.0  ;;  %v1351_v58 = vmul.f32 %v3333_v44, %v965_v30  ;;  %vm1161_vm0 = vcmp.ge.f32.partialorder %v968_v46, 0.0  ;;  %v1354_v63 = vmul.f32 %v3333_v44, %v968_v46 }
  0x7d   : > { %v828_v7 = vadd.f32 %v3298_v24, %v619_v43  ;;  %v572_v15 = vmul.f32 %v3296_v23, %v363_v47  ;;  %v831_v61 = vadd.f32 %v3298_v24, %v622_v4  ;;  %v575_v37 = vmul.f32 %v3296_v23, %v366_v2 }
  0x7e   : > { %v1543_v25 = vsel %vm1158_vm14, %v965_v30, %v1351_v58  ;;  %v409_v45 = vunpack.c.l.bf16 %v265_v60  ;;  %v1546_v39 = vsel %vm1161_vm0, %v968_v46, %v1354_v63  ;;  %v412_v51 = vunpack.c.l.bf16 %v267_v27  ;;  %v242_v60 = vld [vmem:[%s3271_s10 + $0x38] ss:$12 sps:$4 sm:$0xff]   ;;  %v246_v63 = vld [vmem:[%s3271_s10 + $0x50] ss:$12 sps:$4 sm:$0xff]  }
  0x7f   : > { %1975 = vmatmul.mubr.bf16.gmra.mrb[28].mxu0 %v1570_v38  ;;  %vm1021_vm1 = vcmp.ge.f32.partialorder %v828_v7, 0.0  ;;  %v1214_v10 = vmul.f32 %v3333_v44, %v828_v7  ;;  %v781_v16 = vadd.f32 %v3303_v26, %v572_v15  ;;  %v1642_v29 = vpack.c.bf16 %v1546_v39, %v1543_v25 }
  0x80   : > { %vm1024_vm2 = vcmp.ge.f32.partialorder %v831_v61, 0.0  ;;  %v1217_v32 = vmul.f32 %v3333_v44, %v831_v61  ;;  %v784_v40 = vadd.f32 %v3303_v26, %v575_v37  ;;  %v618_v21 = vmul.f32 %v3316_v34, %v409_v45 }
  0x81   : > { %v1406_v33 = vsel %vm1021_vm1, %v828_v7, %v1214_v10  ;;  %vm974_vm3 = vcmp.ge.f32.partialorder %v781_v16, 0.0  ;;  %v1167_v52 = vmul.f32 %v3333_v44, %v781_v16  ;;  %2167 = vmatmul.mubr.bf16.gmra.mrb[28].mxu1 %v1642_v29  ;;  %v621_v48 = vmul.f32 %v3316_v34, %v412_v51  ;;  %v3816_v7 = vld [vmem:[%s3271_s10 + $0xf0] sm:$0xff]  ;;  %v275_v29 = vld [vmem:[%s3271_s10 + $0xfc] sm:$0xff] }
  0x82   : > { %v1409_v57 = vsel %vm1024_vm2, %v831_v61, %v1217_v32  ;;  %vm977_vm4 = vcmp.ge.f32.partialorder %v784_v40, 0.0  ;;  %v1170_v19 = vmul.f32 %v3333_v44, %v784_v40  ;;  %v369_v9 = vunpack.c.l.bf16 %v238_v50 }
  0x83   : > { %v1574_v36 = vpack.c.bf16 %v1409_v57, %v1406_v33  ;;  %v1359_v59 = vsel %vm974_vm3, %v781_v16, %v1167_v52  ;;  %v827_v55 = vadd.f32 %v3318_v35, %v618_v21  ;;  %v372_v17 = vunpack.c.h.bf16 %v238_v50 }
  0x84   : > { %v1362_v42 = vsel %vm977_vm4, %v784_v40, %v1170_v19  ;;  %v416_v54 = vunpack.c.h.bf16 %v269_v56  ;;  %v830_v20 = vadd.f32 %v3318_v35, %v621_v48  ;;  %v578_v41 = vmul.f32 %v3296_v23, %v369_v9 }
  0x85   : > { %1982 = vmatprep.mubr.bf16.mxu0 %v1574_v36  ;;  %v1551_v12 = vpack.c.bf16 %v1362_v42, %v1359_v59  ;;  %v419_v1 = vunpack.c.h.bf16 %v271_v53  ;;  %vm1020_vm5 = vcmp.ge.f32.partialorder %v827_v55, 0.0  ;;  %v1213_v49 = vmul.f32 %v3333_v44, %v827_v55 }
  0x86   : > { %v581_v62 = vmul.f32 %v3296_v23, %v372_v17  ;;  %v625_v27 = vmul.f32 %v3294_v22, %v416_v54  ;;  %vm1023_vm6 = vcmp.ge.f32.partialorder %v830_v20, 0.0  ;;  %v1216_v0 = vmul.f32 %v3333_v44, %v830_v20 }
  0x87   : > { %3068 = vmatprep.mubr.msk.bf16.mxu1 %vm1789_vm15, %v1551_v12  ;;  %v787_v3 = vadd.f32 %v3303_v26, %v578_v41  ;;  %v628_v5 = vmul.f32 %v3294_v22, %v419_v1  ;;  %v1405_v8 = vsel %vm1020_vm5, %v827_v55, %v1213_v49  ;;  %v375_v11 = vunpack.c.l.bf16 %v242_v60 }
  0x88   : > { %v790_v13 = vadd.f32 %v3303_v26, %v581_v62  ;;  %v834_v6 = vadd.f32 %v3298_v24, %v625_v27  ;;  %v1408_v14 = vsel %vm1023_vm6, %v830_v20, %v1216_v0  ;;  %v378_v58 = vunpack.c.h.bf16 %v242_v60  ;;  %v250_v20 = vld [vmem:[%s3271_s10 + $0x68] ss:$12 sps:$4 sm:$0xff]  }
  0x89   : > { %vm980_vm7 = vcmp.ge.f32.partialorder %v787_v3, 0.0  ;;  %v1173_v18 = vmul.f32 %v3333_v44, %v787_v3  ;;  %v837_v28 = vadd.f32 %v3298_v24, %v628_v5  ;;  %v1573_v30 = vpack.c.bf16 %v1408_v14, %v1405_v8 }
  0x8a   : > { %vm983_vm8 = vcmp.ge.f32.partialorder %v790_v13, 0.0  ;;  %v1176_v31 = vmul.f32 %v3333_v44, %v790_v13  ;;  %vm1027_vm9 = vcmp.ge.f32.partialorder %v834_v6, 0.0  ;;  %v1220_v46 = vmul.f32 %v3333_v44, %v834_v6 }
  0x8b   : > { %v1365_v38 = vsel %vm980_vm7, %v787_v3, %v1173_v18  ;;  %vm1030_vm10 = vcmp.ge.f32.partialorder %v837_v28, 0.0  ;;  %v1223_v43 = vmul.f32 %v3333_v44, %v837_v28  ;;  %1983 = vmatmul.mubr.bf16.gmra.mrb[32].mxu0 %v1573_v30  ;;  %v584_v4 = vmul.f32 %v3296_v23, %v375_v11  ;;  %v254_v18 = vld [vmem:[%s3271_s10 + $0x80] ss:$12 sps:$4 sm:$0xff]  }
  0x8c   : > { %v1368_v47 = vsel %vm983_vm8, %v790_v13, %v1176_v31  ;;  %v415_v2 = vunpack.c.l.bf16 %v269_v56  ;;  %v1412_v25 = vsel %vm1027_vm9, %v834_v6, %v1220_v46  ;;  %v418_v37 = vunpack.c.l.bf16 %v271_v53 }
  0x8d   : > { %v1554_v15 = vpack.c.bf16 %v1368_v47, %v1365_v38  ;;  %v1415_v61 = vsel %vm1030_vm10, %v837_v28, %v1223_v43  ;;  %v587_v39 = vmul.f32 %v3296_v23, %v378_v58  ;;  %v793_v10 = vadd.f32 %v3303_v26, %v584_v4 }
  0x8e   : > { %v1577_v45 = vpack.c.bf16 %v1415_v61, %v1412_v25  ;;  %v624_v16 = vmul.f32 %v3316_v34, %v415_v2  ;;  %v627_v32 = vmul.f32 %v3316_v34, %v418_v37  ;;  %v381_v40 = vunpack.c.l.bf16 %v246_v63 }
  0x8f   : > { %3069 = vmatmul.mubr.msk.bf16.vlgmr.msra.gmra.mrb[32].mxu1 %vm1789_vm15, %v1554_v15  ;;  %v384_v50 = vunpack.c.h.bf16 %v246_v63  ;;  %v422_v33 = vunpack.c.h.bf16 %v3816_v7  ;;  %v796_v52 = vadd.f32 %v3303_v26, %v587_v39  ;;  %vm986_vm11 = vcmp.ge.f32.partialorder %v793_v10, 0.0 }
  0x90   : > { %1990 = vmatprep.mubr.bf16.mxu0 %v1577_v45  ;;  %v1179_v51 = vmul.f32 %v3333_v44, %v793_v10  ;;  %v833_v56 = vadd.f32 %v3318_v35, %v624_v16  ;;  %v836_v57 = vadd.f32 %v3318_v35, %v627_v32  ;;  %v590_v19 = vmul.f32 %v3296_v23, %v381_v40 }
  0x91   : > { %v593_v21 = vmul.f32 %v3296_v23, %v384_v50  ;;  %v425_v53 = vunpack.c.h.bf16 %v275_v29  ;;  %vm989_vm12 = vcmp.ge.f32.partialorder %v796_v52, 0.0  ;;  %v1182_v36 = vmul.f32 %v3333_v44, %v796_v52 }
  0x92   : > { %v1371_v59 = vsel %vm986_vm11, %v793_v10, %v1179_v51  ;;  %vm1026_vm13 = vcmp.ge.f32.partialorder %v833_v56, 0.0  ;;  %vm1029_vm14 = vcmp.ge.f32.partialorder %v836_v57, 0.0  ;;  %v1219_v48 = vmul.f32 %v3333_v44, %v833_v56 }
  0x93   : > { %v1222_v9 = vmul.f32 %v3333_v44, %v836_v57  ;;  %v799_v42 = vadd.f32 %v3303_v26, %v590_v19  ;;  %v1374_v55 = vsel %vm989_vm12, %v796_v52, %v1182_v36  ;;  %v802_v17 = vadd.f32 %v3303_v26, %v593_v21 }
  0x94   : > { %v631_v54 = vmul.f32 %v3294_v22, %v422_v33  ;;  %v634_v12 = vmul.f32 %v3294_v22, %v425_v53  ;;  %v1557_v41 = vpack.c.bf16 %v1374_v55, %v1371_v59  ;;  %v1411_v1 = vsel %vm1026_vm13, %v833_v56, %v1219_v48  ;;  %v279_v56 = vld [vmem:[%s3271_s10 + $0x114] sm:$0xff] }
  0x95   : > { %v1414_v60 = vsel %vm1029_vm14, %v836_v57, %v1222_v9  ;;  %vm992_vm0 = vcmp.ge.f32.partialorder %v799_v42, 0.0  ;;  %vm995_vm1 = vcmp.ge.f32.partialorder %v802_v17, 0.0  ;;  %v1185_v62 = vmul.f32 %v3333_v44, %v799_v42  ;;  %v258_v57 = vld [vmem:[%s3271_s10 + $0x98] ss:$12 sps:$4 sm:$0xff]  }
  0x96   : > { %v1576_v49 = vpack.c.bf16 %v1414_v60, %v1411_v1  ;;  %v1188_v27 = vmul.f32 %v3333_v44, %v802_v17  ;;  %3072 = vmatprep.mubr.msk.bf16.mxu1 %vm1789_vm15, %v1557_v41  ;;  %v840_v0 = vadd.f32 %v3298_v24, %v631_v54  ;;  %v843_v3 = vadd.f32 %v3298_v24, %v634_v12 }
  0x97   : > { %v387_v5 = vunpack.c.l.bf16 %v250_v20  ;;  %v390_v8 = vunpack.c.h.bf16 %v250_v20  ;;  %v1377_v13 = vsel %vm992_vm0, %v799_v42, %v1185_v62  ;;  %v421_v11 = vunpack.c.l.bf16 %v3816_v7 }
  0x98   : > { %1991 = vmatmul.mubr.bf16.gmra.mrb[36].mxu0 %v1576_v49  ;;  %v1380_v6 = vsel %vm995_vm1, %v802_v17, %v1188_v27  ;;  %v424_v14 = vunpack.c.l.bf16 %v275_v29  ;;  %vm1033_vm2 = vcmp.ge.f32.partialorder %v840_v0, 0.0  ;;  %vm1036_vm3 = vcmp.ge.f32.partialorder %v843_v3, 0.0  ;;  %v277_v29 = vld [vmem:[%s3271_s10 + $0x108] sm:$0xff]  ;;  %v262_v27 = vld [vmem:[%s3271_s10 + $0xb0] ss:$12 sps:$4 sm:$0xff]  }
  0x99   : > { %v1560_v28 = vpack.c.bf16 %v1380_v6, %v1377_v13  ;;  %v1226_v30 = vmul.f32 %v3333_v44, %v840_v0  ;;  %v1229_v31 = vmul.f32 %v3333_v44, %v843_v3  ;;  %v596_v38 = vmul.f32 %v3296_v23, %v387_v5 }
  0x9a   : > { %v599_v46 = vmul.f32 %v3296_v23, %v390_v8  ;;  %v630_v43 = vmul.f32 %v3316_v34, %v421_v11  ;;  %v633_v58 = vmul.f32 %v3316_v34, %v424_v14  ;;  %v393_v4 = vunpack.c.l.bf16 %v254_v18 }
  0x9b   : > { %3073 = vmatmul.mubr.msk.bf16.gmra.mrb[36].mxu1 %vm1789_vm15, %v1560_v28  ;;  %v1418_v47 = vsel %vm1033_vm2, %v840_v0, %v1226_v30  ;;  %v396_v2 = vunpack.c.h.bf16 %v254_v18  ;;  %v1421_v63 = vsel %vm1036_vm3, %v843_v3, %v1229_v31  ;;  %v805_v7 = vadd.f32 %v3303_v26, %v596_v38 }
  0x9c   : > { %v808_v15 = vadd.f32 %v3303_v26, %v599_v46  ;;  %v839_v25 = vadd.f32 %v3318_v35, %v630_v43  ;;  %v1580_v61 = vpack.c.bf16 %v1421_v63, %v1418_v47  ;;  %v842_v37 = vadd.f32 %v3318_v35, %v633_v58  ;;  %v283_v63 = vld [vmem:[%s3271_s10 + $0x12c] sm:$0xff] }
  0x9d   : > { %v602_v45 = vmul.f32 %v3296_v23, %v393_v4  ;;  %v605_v39 = vmul.f32 %v3296_v23, %v396_v2  ;;  %vm998_vm4 = vcmp.ge.f32.partialorder %v805_v7, 0.0  ;;  %v1191_v10 = vmul.f32 %v3333_v44, %v805_v7  ;;  %v281_v2 = vld [vmem:[%s3271_s10 + $0x120] sm:$0xff] }
  0x9e   : > { %vm1001_vm5 = vcmp.ge.f32.partialorder %v808_v15, 0.0  ;;  %v1194_v16 = vmul.f32 %v3333_v44, %v808_v15  ;;  %1998 = vmatprep.mubr.bf16.mxu0 %v1580_v61  ;;  %vm1032_vm6 = vcmp.ge.f32.partialorder %v839_v25, 0.0  ;;  %vm1035_vm7 = vcmp.ge.f32.partialorder %v842_v37, 0.0 }
  0x9f   : > { %v1225_v32 = vmul.f32 %v3333_v44, %v839_v25  ;;  %v1228_v40 = vmul.f32 %v3333_v44, %v842_v37  ;;  %v1383_v50 = vsel %vm998_vm4, %v805_v7, %v1191_v10  ;;  %v811_v52 = vadd.f32 %v3303_v26, %v602_v45 }
  0xa0   : > { %v1386_v33 = vsel %vm1001_vm5, %v808_v15, %v1194_v16  ;;  %v814_v51 = vadd.f32 %v3303_v26, %v605_v39  ;;  %v428_v36 = vunpack.c.h.bf16 %v277_v29  ;;  %v431_v42 = vunpack.c.h.bf16 %v279_v56 }
  0xa1   : > { %v1563_v19 = vpack.c.bf16 %v1386_v33, %v1383_v50  ;;  %v1417_v21 = vsel %vm1032_vm6, %v839_v25, %v1225_v32  ;;  %v1420_v53 = vsel %vm1035_vm7, %v842_v37, %v1228_v40  ;;  %vm1004_vm8 = vcmp.ge.f32.partialorder %v811_v52, 0.0  ;;  %v266_v37 = vld [vmem:[%s3271_s10 + $0xc8] ss:$12 sps:$4 sm:$0xff]  }
  0xa2   : > { %v1579_v59 = vpack.c.bf16 %v1420_v53, %v1417_v21  ;;  %vm1007_vm9 = vcmp.ge.f32.partialorder %v814_v51, 0.0  ;;  %v1197_v48 = vmul.f32 %v3333_v44, %v811_v52  ;;  %v1200_v9 = vmul.f32 %v3333_v44, %v814_v51 }
  0xa3   : > { %3076 = vmatprep.mubr.msk.bf16.mxu1 %vm1789_vm15, %v1563_v19  ;;  %v637_v55 = vmul.f32 %v3294_v22, %v428_v36  ;;  %v399_v17 = vunpack.c.l.bf16 %v258_v57  ;;  %v402_v12 = vunpack.c.h.bf16 %v258_v57  ;;  %v427_v20 = vunpack.c.l.bf16 %v277_v29 }
  0xa4   : > { %1999 = vmatmul.mubr.bf16.gmra.mrb[40].mxu0 %v1579_v59  ;;  %v1389_v54 = vsel %vm1004_vm8, %v811_v52, %v1197_v48  ;;  %v430_v41 = vunpack.c.l.bf16 %v279_v56  ;;  %v1392_v1 = vsel %vm1007_vm9, %v814_v51, %v1200_v9  ;;  %v640_v60 = vmul.f32 %v3294_v22, %v431_v42 }
  0xa5   : > { %v846_v49 = vadd.f32 %v3298_v24, %v637_v55  ;;  %v608_v62 = vmul.f32 %v3296_v23, %v399_v17  ;;  %v1566_v0 = vpack.c.bf16 %v1392_v1, %v1389_v54  ;;  %v611_v3 = vmul.f32 %v3296_v23, %v402_v12 }
  0xa6   : > { %v636_v5 = vmul.f32 %v3316_v34, %v427_v20  ;;  %v639_v8 = vmul.f32 %v3316_v34, %v430_v41  ;;  %v849_v13 = vadd.f32 %v3298_v24, %v640_v60  ;;  %v405_v30 = vunpack.c.l.bf16 %v262_v27  ;;  %v270_v60 = vld [vmem:[%s3271_s10 + $0xe0] ss:$12 sps:$4 sm:$0xff]  }
  0xa7   : > { %vm1039_vm10 = vcmp.ge.f32.partialorder %v846_v49, 0.0  ;;  %v1232_v6 = vmul.f32 %v3333_v44, %v846_v49  ;;  %v817_v11 = vadd.f32 %v3303_v26, %v608_v62  ;;  %3077 = vmatmul.mubr.msk.bf16.gmra.mrb[40].mxu1 %vm1789_vm15, %v1566_v0  ;;  %v820_v14 = vadd.f32 %v3303_v26, %v611_v3 }
  0xa8   : > { %v845_v18 = vadd.f32 %v3318_v35, %v636_v5  ;;  %v848_v28 = vadd.f32 %v3318_v35, %v639_v8  ;;  %vm1042_vm11 = vcmp.ge.f32.partialorder %v849_v13, 0.0  ;;  %v1235_v31 = vmul.f32 %v3333_v44, %v849_v13 }
  0xa9   : > { %v1424_v38 = vsel %vm1039_vm10, %v846_v49, %v1232_v6  ;;  %vm1010_vm12 = vcmp.ge.f32.partialorder %v817_v11, 0.0  ;;  %vm1013_vm13 = vcmp.ge.f32.partialorder %v820_v14, 0.0  ;;  %v1203_v46 = vmul.f32 %v3333_v44, %v817_v11 }
  0xaa   : > { %v1206_v43 = vmul.f32 %v3333_v44, %v820_v14  ;;  %vm1038_vm14 = vcmp.ge.f32.partialorder %v845_v18, 0.0  ;;  %v1427_v47 = vsel %vm1042_vm11, %v849_v13, %v1235_v31  ;;  %vm1041_vm0 = vcmp.ge.f32.partialorder %v848_v28, 0.0 }
  0xab   : > { %v1231_v58 = vmul.f32 %v3333_v44, %v845_v18  ;;  %v1234_v4 = vmul.f32 %v3333_v44, %v848_v28  ;;  %v1583_v7 = vpack.c.bf16 %v1427_v47, %v1424_v38  ;;  %v1395_v15 = vsel %vm1010_vm12, %v817_v11, %v1203_v46  ;;  %v287_v38 = vld [vmem:[%s3271_s10 + $0x144] sm:$0xff] }
  0xac   : > { %v1398_v25 = vsel %vm1013_vm13, %v820_v14, %v1206_v43  ;;  %v408_v61 = vunpack.c.h.bf16 %v262_v27  ;;  %v614_v16 = vmul.f32 %v3296_v23, %v405_v30  ;;  %v434_v40 = vunpack.c.h.bf16 %v281_v2  ;;  %v285_v14 = vld [vmem:[%s3271_s10 + $0x138] sm:$0xff] }
  0xad   : > { %v1569_v45 = vpack.c.bf16 %v1398_v25, %v1395_v15  ;;  %v1423_v39 = vsel %vm1038_vm14, %v845_v18, %v1231_v58  ;;  %v1426_v10 = vsel %vm1041_vm0, %v848_v28, %v1234_v4  ;;  %2006 = vmatprep.mubr.bf16.mxu0 %v1583_v7  ;;  %v437_v50 = vunpack.c.h.bf16 %v283_v63  ;;  %v274_v46 = vld [vmem:[%s3271_s10 + $0xf8] ss:$12 sps:$4 sm:$0xff]  }
  0xae   : > { %v1582_v29 = vpack.c.bf16 %v1426_v10, %v1423_v39  ;;  %v617_v32 = vmul.f32 %v3296_v23, %v408_v61  ;;  %v823_v33 = vadd.f32 %v3303_v26, %v614_v16  ;;  %v411_v52 = vunpack.c.l.bf16 %v266_v37 }
  0xaf   : > { %3080 = vmatprep.mubr.msk.bf16.mxu1 %vm1789_vm15, %v1569_v45  ;;  %v414_v51 = vunpack.c.h.bf16 %v266_v37  ;;  %v433_v56 = vunpack.c.l.bf16 %v281_v2  ;;  %v643_v19 = vmul.f32 %v3294_v22, %v434_v40  ;;  %v646_v21 = vmul.f32 %v3294_v22, %v437_v50 }
  0xb0   : > { %2007 = vmatmul.mubr.bf16.gmra.mrb[44].mxu0 %v1582_v29  ;;  %v826_v57 = vadd.f32 %v3303_v26, %v617_v32  ;;  %v436_v53 = vunpack.c.l.bf16 %v283_v63  ;;  %vm1016_vm1 = vcmp.ge.f32.partialorder %v823_v33, 0.0  ;;  %v1209_v36 = vmul.f32 %v3333_v44, %v823_v33 }
  0xb1   : > { %v620_v59 = vmul.f32 %v3296_v23, %v411_v52  ;;  %v623_v48 = vmul.f32 %v3296_v23, %v414_v51  ;;  %v852_v42 = vadd.f32 %v3298_v24, %v643_v19  ;;  %v855_v55 = vadd.f32 %v3298_v24, %v646_v21 }
  0xb2   : > { %vm1019_vm2 = vcmp.ge.f32.partialorder %v826_v57, 0.0  ;;  %v1212_v9 = vmul.f32 %v3333_v44, %v826_v57  ;;  %v1401_v17 = vsel %vm1016_vm1, %v823_v33, %v1209_v36  ;;  %v642_v20 = vmul.f32 %v3316_v34, %v433_v56 }
  0xb3   : > { %v829_v54 = vadd.f32 %v3303_v26, %v620_v59  ;;  %v832_v12 = vadd.f32 %v3303_v26, %v623_v48  ;;  %vm1045_vm3 = vcmp.ge.f32.partialorder %v852_v42, 0.0  ;;  %vm1048_vm4 = vcmp.ge.f32.partialorder %v855_v55, 0.0 }
  0xb4   : > { %v1404_v41 = vsel %vm1019_vm2, %v826_v57, %v1212_v9  ;;  %v1238_v1 = vmul.f32 %v3333_v44, %v852_v42  ;;  %v1241_v62 = vmul.f32 %v3333_v44, %v855_v55  ;;  %v645_v5 = vmul.f32 %v3316_v34, %v436_v53  ;;  %v278_v9 = vld [vmem:[%s3271_s10 + $0x110] ss:$12 sps:$4 sm:$0xff]  }
  0xb5   : > { %v1572_v49 = vpack.c.bf16 %v1404_v41, %v1401_v17  ;;  %vm1022_vm5 = vcmp.ge.f32.partialorder %v829_v54, 0.0  ;;  %vm1025_vm6 = vcmp.ge.f32.partialorder %v832_v12, 0.0  ;;  %v1215_v0 = vmul.f32 %v3333_v44, %v829_v54 }
  0xb6   : > { %v1430_v27 = vsel %vm1045_vm3, %v852_v42, %v1238_v1  ;;  %v1218_v3 = vmul.f32 %v3333_v44, %v832_v12  ;;  %v1433_v8 = vsel %vm1048_vm4, %v855_v55, %v1241_v62  ;;  %v851_v13 = vadd.f32 %v3318_v35, %v642_v20  ;;  %v291_v1 = vld [vmem:[%s3271_s10 + $0x15c] sm:$0xff] }
  0xb7   : > { %3081 = vmatmul.mubr.msk.bf16.gmra.mrb[44].mxu1 %vm1789_vm15, %v1572_v49  ;;  %v417_v6 = vunpack.c.l.bf16 %v270_v60  ;;  %v420_v11 = vunpack.c.h.bf16 %v270_v60  ;;  %v1586_v18 = vpack.c.bf16 %v1433_v8, %v1430_v27  ;;  %v1407_v28 = vsel %vm1022_vm5, %v829_v54, %v1215_v0  ;;  %v289_v54 = vld [vmem:[%s3271_s10 + $0x150] sm:$0xff] }
  0xb8   : > { %v1410_v30 = vsel %vm1025_vm6, %v832_v12, %v1218_v3  ;;  %v854_v31 = vadd.f32 %v3318_v35, %v645_v5  ;;  %vm1044_vm7 = vcmp.ge.f32.partialorder %v851_v13, 0.0  ;;  %v1237_v47 = vmul.f32 %v3333_v44, %v851_v13 }
  0xb9   : > { %v1575_v43 = vpack.c.bf16 %v1410_v30, %v1407_v28  ;;  %v626_v58 = vmul.f32 %v3296_v23, %v417_v6  ;;  %2014 = vmatprep.mubr.bf16.mxu0 %v1586_v18  ;;  %v629_v2 = vmul.f32 %v3296_v23, %v420_v11  ;;  %v440_v63 = vunpack.c.h.bf16 %v285_v14  ;;  %v282_v18 = vld [vmem:[%s3271_s10 + $0x128] ss:$12 sps:$4 sm:$0xff]  }
  0xba   : > { %vm1047_vm8 = vcmp.ge.f32.partialorder %v854_v31, 0.0  ;;  %v1240_v4 = vmul.f32 %v3333_v44, %v854_v31  ;;  %v1429_v7 = vsel %vm1044_vm7, %v851_v13, %v1237_v47  ;;  %v443_v25 = vunpack.c.h.bf16 %v287_v38 }
  0xbb   : > { %3084 = vmatprep.mubr.msk.bf16.mxu1 %vm1789_vm15, %v1575_v43  ;;  %v835_v15 = vadd.f32 %v3303_v26, %v626_v58  ;;  %v423_v61 = vunpack.c.l.bf16 %v274_v46  ;;  %v838_v45 = vadd.f32 %v3303_v26, %v629_v2  ;;  %v649_v39 = vmul.f32 %v3294_v22, %v440_v63 }
  0xbc   : > { %v1432_v37 = vsel %vm1047_vm8, %v854_v31, %v1240_v4  ;;  %v426_v10 = vunpack.c.h.bf16 %v274_v46  ;;  %v652_v32 = vmul.f32 %v3294_v22, %v443_v25  ;;  %v439_v57 = vunpack.c.l.bf16 %v285_v14 }
  0xbd   : > { %v1585_v16 = vpack.c.bf16 %v1432_v37, %v1429_v7  ;;  %vm1028_vm9 = vcmp.ge.f32.partialorder %v835_v15, 0.0  ;;  %v1221_v29 = vmul.f32 %v3333_v44, %v835_v15  ;;  %vm1031_vm10 = vcmp.ge.f32.partialorder %v838_v45, 0.0 }
  0xbe   : > { %v1224_v40 = vmul.f32 %v3333_v44, %v838_v45  ;;  %v858_v50 = vadd.f32 %v3298_v24, %v649_v39  ;;  %v632_v33 = vmul.f32 %v3296_v23, %v423_v61  ;;  %v861_v51 = vadd.f32 %v3298_v24, %v652_v32 }
  0xbf   : > { %2015 = vmatmul.mubr.bf16.gmra.mrb[48].mxu0 %v1585_v16  ;;  %v1413_v52 = vsel %vm1028_vm9, %v835_v15, %v1221_v29  ;;  %v635_v56 = vmul.f32 %v3296_v23, %v426_v10  ;;  %v442_v17 = vunpack.c.l.bf16 %v287_v38  ;;  %v648_v41 = vmul.f32 %v3316_v34, %v439_v57 }
  0xc0   : > { %v1416_v19 = vsel %vm1031_vm10, %v838_v45, %v1224_v40  ;;  %vm1051_vm11 = vcmp.ge.f32.partialorder %v858_v50, 0.0  ;;  %v1244_v21 = vmul.f32 %v3333_v44, %v858_v50  ;;  %v841_v53 = vadd.f32 %v3303_v26, %v632_v33  ;;  %v286_v40 = vld [vmem:[%s3271_s10 + $0x140] ss:$12 sps:$4 sm:$0xff]  }
  0xc1   : > { %v1578_v36 = vpack.c.bf16 %v1416_v19, %v1413_v52  ;;  %vm1054_vm12 = vcmp.ge.f32.partialorder %v861_v51, 0.0  ;;  %v1247_v59 = vmul.f32 %v3333_v44, %v861_v51  ;;  %v844_v48 = vadd.f32 %v3303_v26, %v635_v56 }
  0xc2   : > { %v1436_v42 = vsel %vm1051_vm11, %v858_v50, %v1244_v21  ;;  %vm1034_vm13 = vcmp.ge.f32.partialorder %v841_v53, 0.0  ;;  %v1227_v55 = vmul.f32 %v3333_v44, %v841_v53  ;;  %v651_v62 = vmul.f32 %v3316_v34, %v442_v17  ;;  %v3970_v50 = vld [vmem:[%s3271_s10 + $0x168] sm:$0xff] }
  0xc3   : > { %3085 = vmatmul.mubr.msk.bf16.gmra.mrb[48].mxu1 %vm1789_vm15, %v1578_v36  ;;  %v1439_v12 = vsel %vm1054_vm12, %v861_v51, %v1247_v59  ;;  %vm1037_vm14 = vcmp.ge.f32.partialorder %v844_v48, 0.0  ;;  %v1230_v20 = vmul.f32 %v3333_v44, %v844_v48  ;;  %v429_v27 = vunpack.c.l.bf16 %v278_v9  ;;  %v295_v36 = vld [vmem:[%s3271_s10 + $0x174] sm:$0xff] }
  0xc4   : > { %v1589_v60 = vpack.c.bf16 %v1439_v12, %v1436_v42  ;;  %v1419_v49 = vsel %vm1034_vm13, %v841_v53, %v1227_v55  ;;  %v857_v3 = vadd.f32 %v3318_v35, %v648_v41  ;;  %v432_v5 = vunpack.c.h.bf16 %v278_v9 }
  0xc5   : > { %v1422_v0 = vsel %vm1037_vm14, %v844_v48, %v1230_v20  ;;  %v446_v8 = vunpack.c.h.bf16 %v289_v54  ;;  %v860_v6 = vadd.f32 %v3318_v35, %v651_v62  ;;  %v638_v11 = vmul.f32 %v3296_v23, %v429_v27 }
  0xc6   : > { %2022 = vmatprep.mubr.bf16.mxu0 %v1589_v60  ;;  %v1581_v13 = vpack.c.bf16 %v1422_v0, %v1419_v49  ;;  %v449_v14 = vunpack.c.h.bf16 %v291_v1  ;;  %vm1050_vm0 = vcmp.ge.f32.partialorder %v857_v3, 0.0  ;;  %v1243_v28 = vmul.f32 %v3333_v44, %v857_v3 }
  0xc7   : > { %v641_v30 = vmul.f32 %v3296_v23, %v432_v5  ;;  %v655_v31 = vmul.f32 %v3294_v22, %v446_v8  ;;  %vm1053_vm1 = vcmp.ge.f32.partialorder %v860_v6, 0.0  ;;  %v1246_v38 = vmul.f32 %v3333_v44, %v860_v6 }
  0xc8   : > { %3088 = vmatprep.mubr.msk.bf16.mxu1 %vm1789_vm15, %v1581_v13  ;;  %v847_v46 = vadd.f32 %v3303_v26, %v638_v11  ;;  %v658_v43 = vmul.f32 %v3294_v22, %v449_v14  ;;  %v1435_v47 = vsel %vm1050_vm0, %v857_v3, %v1243_v28  ;;  %v435_v2 = vunpack.c.l.bf16 %v282_v18 }
  0xc9   : > { %v850_v58 = vadd.f32 %v3303_v26, %v641_v30  ;;  %v864_v4 = vadd.f32 %v3298_v24, %v655_v31  ;;  %v1438_v63 = vsel %vm1053_vm1, %v860_v6, %v1246_v38  ;;  %v438_v16 = vunpack.c.h.bf16 %v282_v18  ;;  %v290_v6 = vld [vmem:[%s3271_s10 + $0x158] ss:$12 sps:$4 sm:$0xff]  }
  0xca   : > { %vm1040_vm2 = vcmp.ge.f32.partialorder %v847_v46, 0.0  ;;  %v1233_v7 = vmul.f32 %v3333_v44, %v847_v46  ;;  %v867_v15 = vadd.f32 %v3298_v24, %v658_v43  ;;  %v1588_v25 = vpack.c.bf16 %v1438_v63, %v1435_v47 }
  0xcb   : > { %vm1043_vm3 = vcmp.ge.f32.partialorder %v850_v58, 0.0  ;;  %v1236_v61 = vmul.f32 %v3333_v44, %v850_v58  ;;  %vm1057_vm4 = vcmp.ge.f32.partialorder %v864_v4, 0.0  ;;  %v1250_v45 = vmul.f32 %v3333_v44, %v864_v4 }
  0xcc   : > { %v1425_v37 = vsel %vm1040_vm2, %v847_v46, %v1233_v7  ;;  %vm1060_vm5 = vcmp.ge.f32.partialorder %v867_v15, 0.0  ;;  %v1253_v39 = vmul.f32 %v3333_v44, %v867_v15  ;;  %2023 = vmatmul.mubr.bf16.gmra.mrb[52].mxu0 %v1588_v25  ;;  %v644_v29 = vmul.f32 %v3296_v23, %v435_v2  ;;  %v294_v7 = vld [vmem:[%s3271_s10 + $0x170] ss:$12 sps:$4 sm:$0xff]  }
  0xcd   : > { %v1428_v10 = vsel %vm1043_vm3, %v850_v58, %v1236_v61  ;;  %v445_v32 = vunpack.c.l.bf16 %v289_v54  ;;  %v1442_v52 = vsel %vm1057_vm4, %v864_v4, %v1250_v45  ;;  %v448_v56 = vunpack.c.l.bf16 %v291_v1 }
  0xce   : > { %v1584_v33 = vpack.c.bf16 %v1428_v10, %v1425_v37  ;;  %v1445_v51 = vsel %vm1060_vm5, %v867_v15, %v1253_v39  ;;  %v647_v19 = vmul.f32 %v3296_v23, %v438_v16  ;;  %v853_v21 = vadd.f32 %v3303_v26, %v644_v29 }
  0xcf   : > { %v1592_v57 = vpack.c.bf16 %v1445_v51, %v1442_v52  ;;  %v654_v53 = vmul.f32 %v3316_v34, %v445_v32  ;;  %v657_v59 = vmul.f32 %v3316_v34, %v448_v56  ;;  %v441_v48 = vunpack.c.l.bf16 %v286_v40 }
  0xd0   : > { %3089 = vmatmul.mubr.msk.bf16.gmra.mrb[52].mxu1 %vm1789_vm15, %v1584_v33  ;;  %v444_v9 = vunpack.c.h.bf16 %v286_v40  ;;  %v452_v42 = vunpack.c.h.bf16 %v3970_v50  ;;  %v856_v55 = vadd.f32 %v3303_v26, %v647_v19  ;;  %vm1046_vm6 = vcmp.ge.f32.partialorder %v853_v21, 0.0 }
  0xd1   : > { %2030 = vmatprep.mubr.bf16.mxu0 %v1592_v57  ;;  %v1239_v17 = vmul.f32 %v3333_v44, %v853_v21  ;;  %v863_v54 = vadd.f32 %v3318_v35, %v654_v53  ;;  %v866_v12 = vadd.f32 %v3318_v35, %v657_v59  ;;  %v650_v20 = vmul.f32 %v3296_v23, %v441_v48 }
  0xd2   : > { %v653_v41 = vmul.f32 %v3296_v23, %v444_v9  ;;  %v455_v1 = vunpack.c.h.bf16 %v295_v36  ;;  %vm1049_vm7 = vcmp.ge.f32.partialorder %v856_v55, 0.0  ;;  %v1242_v60 = vmul.f32 %v3333_v44, %v856_v55 }
  0xd3   : > { %v1431_v49 = vsel %vm1046_vm6, %v853_v21, %v1239_v17  ;;  %vm1056_vm8 = vcmp.ge.f32.partialorder %v863_v54, 0.0  ;;  %vm1059_vm9 = vcmp.ge.f32.partialorder %v866_v12, 0.0  ;;  %v1249_v62 = vmul.f32 %v3333_v44, %v863_v54 }
  0xd4   : > { %v1252_v27 = vmul.f32 %v3333_v44, %v866_v12  ;;  %v859_v0 = vadd.f32 %v3303_v26, %v650_v20  ;;  %v1434_v3 = vsel %vm1049_vm7, %v856_v55, %v1242_v60  ;;  %v862_v5 = vadd.f32 %v3303_v26, %v653_v41 }
  0xd5   : > { %v661_v8 = vmul.f32 %v3294_v22, %v452_v42  ;;  %v664_v13 = vmul.f32 %v3294_v22, %v455_v1  ;;  %v1587_v11 = vpack.c.bf16 %v1434_v3, %v1431_v49  ;;  %v1441_v14 = vsel %vm1056_vm8, %v863_v54, %v1249_v62  ;;  %v299_v54 = vld [vmem:[%s3271_s10 + $0x18c] sm:$0xff] }
  0xd6   : > { %v1444_v18 = vsel %vm1059_vm9, %v866_v12, %v1252_v27  ;;  %vm1052_vm10 = vcmp.ge.f32.partialorder %v859_v0, 0.0  ;;  %vm1055_vm11 = vcmp.ge.f32.partialorder %v862_v5, 0.0  ;;  %v1245_v30 = vmul.f32 %v3333_v44, %v859_v0  ;;  %v298_v12 = vld [vmem:[%s3271_s10 + $0x188] ss:$12 sps:$4 sm:$0xff]  }
  0xd7   : > { %v1591_v28 = vpack.c.bf16 %v1444_v18, %v1441_v14  ;;  %v1248_v31 = vmul.f32 %v3333_v44, %v862_v5  ;;  %3092 = vmatprep.mubr.msk.bf16.mxu1 %vm1789_vm15, %v1587_v11  ;;  %v870_v38 = vadd.f32 %v3298_v24, %v661_v8  ;;  %v873_v46 = vadd.f32 %v3298_v24, %v664_v13 }
  0xd8   : > { %v447_v43 = vunpack.c.l.bf16 %v290_v6  ;;  %v450_v47 = vunpack.c.h.bf16 %v290_v6  ;;  %v1437_v58 = vsel %vm1052_vm10, %v859_v0, %v1245_v30  ;;  %v451_v2 = vunpack.c.l.bf16 %v3970_v50 }
  0xd9   : > { %2031 = vmatmul.mubr.bf16.gmra.mrb[56].mxu0 %v1591_v28  ;;  %v1440_v4 = vsel %vm1055_vm11, %v862_v5, %v1248_v31  ;;  %v454_v63 = vunpack.c.l.bf16 %v295_v36  ;;  %vm1063_vm12 = vcmp.ge.f32.partialorder %v870_v38, 0.0  ;;  %vm1066_vm13 = vcmp.ge.f32.partialorder %v873_v46, 0.0  ;;  %v297_v36 = vld [vmem:[%s3271_s10 + $0x180] sm:$0xff] }
  0xda   : > { %v1590_v15 = vpack.c.bf16 %v1440_v4, %v1437_v58  ;;  %v1256_v25 = vmul.f32 %v3333_v44, %v870_v38  ;;  %v1259_v61 = vmul.f32 %v3333_v44, %v873_v46  ;;  %v656_v37 = vmul.f32 %v3296_v23, %v447_v43  ;;  %v302_v31 = vld [vmem:[%s3271_s10 + $0x1a0] ss:$12 sps:$4 sm:$0xff]  }
  0xdb   : > { %v659_v45 = vmul.f32 %v3296_v23, %v450_v47  ;;  %v660_v39 = vmul.f32 %v3316_v34, %v451_v2  ;;  %v663_v16 = vmul.f32 %v3316_v34, %v454_v63  ;;  %v453_v29 = vunpack.c.l.bf16 %v294_v7 }
  0xdc   : > { %3093 = vmatmul.mubr.msk.bf16.gmra.mrb[56].mxu1 %vm1789_vm15, %v1590_v15  ;;  %v1448_v10 = vsel %vm1063_vm12, %v870_v38, %v1256_v25  ;;  %v456_v32 = vunpack.c.h.bf16 %v294_v7  ;;  %v1451_v40 = vsel %vm1066_vm13, %v873_v46, %v1259_v61  ;;  %v865_v50 = vadd.f32 %v3303_v26, %v656_v37 }
  0xdd   : > { %v868_v33 = vadd.f32 %v3303_v26, %v659_v45  ;;  %v869_v52 = vadd.f32 %v3318_v35, %v660_v39  ;;  %v1595_v51 = vpack.c.bf16 %v1451_v40, %v1448_v10  ;;  %v872_v56 = vadd.f32 %v3318_v35, %v663_v16  ;;  %v303_v40 = vld [vmem:[%s3271_s10 + $0x1a4] sm:$0xff] }
  0xde   : > { %v662_v57 = vmul.f32 %v3296_v23, %v453_v29  ;;  %v665_v19 = vmul.f32 %v3296_v23, %v456_v32  ;;  %vm1058_vm14 = vcmp.ge.f32.partialorder %v865_v50, 0.0  ;;  %v1251_v21 = vmul.f32 %v3333_v44, %v865_v50  ;;  %v301_v32 = vld [vmem:[%s3271_s10 + $0x198] sm:$0xff] }
  0xdf   : > { %vm1061_vm0 = vcmp.ge.f32.partialorder %v868_v33, 0.0  ;;  %v1254_v53 = vmul.f32 %v3333_v44, %v868_v33  ;;  %2038 = vmatprep.mubr.bf16.mxu0 %v1595_v51  ;;  %vm1062_vm1 = vcmp.ge.f32.partialorder %v869_v52, 0.0  ;;  %vm1065_vm2 = vcmp.ge.f32.partialorder %v872_v56, 0.0 }
  0xe0   : > { %v1255_v59 = vmul.f32 %v3333_v44, %v869_v52  ;;  %v1258_v48 = vmul.f32 %v3333_v44, %v872_v56  ;;  %v1443_v9 = vsel %vm1058_vm14, %v865_v50, %v1251_v21  ;;  %v871_v55 = vadd.f32 %v3303_v26, %v662_v57 }
  0xe1   : > { %v1446_v42 = vsel %vm1061_vm0, %v868_v33, %v1254_v53  ;;  %v874_v17 = vadd.f32 %v3303_v26, %v665_v19  ;;  %v458_v60 = vunpack.c.h.bf16 %v297_v36  ;;  %v461_v0 = vunpack.c.h.bf16 %v299_v54 }
  0xe2   : > { %v1593_v20 = vpack.c.bf16 %v1446_v42, %v1443_v9  ;;  %v1447_v41 = vsel %vm1062_vm1, %v869_v52, %v1255_v59  ;;  %v1450_v1 = vsel %vm1065_vm2, %v872_v56, %v1258_v48  ;;  %vm1064_vm3 = vcmp.ge.f32.partialorder %v871_v55, 0.0  ;;  %v306_v56 = vld [vmem:[%s3271_s10 + $0x1b8] ss:$12 sps:$4 sm:$0xff]  }
  0xe3   : > { %v1594_v49 = vpack.c.bf16 %v1450_v1, %v1447_v41  ;;  %vm1067_vm4 = vcmp.ge.f32.partialorder %v874_v17, 0.0  ;;  %v1257_v62 = vmul.f32 %v3333_v44, %v871_v55  ;;  %v1260_v27 = vmul.f32 %v3333_v44, %v874_v17 }
  0xe4   : > { %3096 = vmatprep.mubr.msk.bf16.mxu1 %vm1789_vm15, %v1593_v20  ;;  %v667_v3 = vmul.f32 %v3294_v22, %v458_v60  ;;  %v459_v5 = vunpack.c.l.bf16 %v298_v12  ;;  %v462_v13 = vunpack.c.h.bf16 %v298_v12  ;;  %v457_v6 = vunpack.c.l.bf16 %v297_v36 }
  0xe5   : > { %2039 = vmatmul.mubr.bf16.gmra.mrb[60].mxu0 %v1594_v49  ;;  %v1449_v8 = vsel %vm1064_vm3, %v871_v55, %v1257_v62  ;;  %v460_v11 = vunpack.c.l.bf16 %v299_v54  ;;  %v1452_v14 = vsel %vm1067_vm4, %v874_v17, %v1260_v27  ;;  %v670_v18 = vmul.f32 %v3294_v22, %v461_v0 }
  0xe6   : > { %v876_v28 = vadd.f32 %v3298_v24, %v667_v3  ;;  %v668_v30 = vmul.f32 %v3296_v23, %v459_v5  ;;  %v1596_v38 = vpack.c.bf16 %v1452_v14, %v1449_v8  ;;  %v671_v46 = vmul.f32 %v3296_v23, %v462_v13 }
  0xe7   : > { %v666_v43 = vmul.f32 %v3316_v34, %v457_v6  ;;  %v669_v47 = vmul.f32 %v3316_v34, %v460_v11  ;;  %v879_v58 = vadd.f32 %v3298_v24, %v670_v18  ;;  %v465_v25 = vunpack.c.l.bf16 %v302_v31  ;;  %v310_v18 = vld [vmem:[%s3271_s10 + $0x1d0] ss:$12 sps:$4 sm:$0xff]  }
  0xe8   : > { %vm1069_vm5 = vcmp.ge.f32.partialorder %v876_v28, 0.0  ;;  %v1262_v4 = vmul.f32 %v3333_v44, %v876_v28  ;;  %v877_v2 = vadd.f32 %v3303_v26, %v668_v30  ;;  %3097 = vmatmul.mubr.msk.bf16.gmra.mrb[60].mxu1 %vm1789_vm15, %v1596_v38  ;;  %v880_v63 = vadd.f32 %v3303_v26, %v671_v46 }
  0xe9   : > { %v875_v7 = vadd.f32 %v3318_v35, %v666_v43  ;;  %v878_v15 = vadd.f32 %v3318_v35, %v669_v47  ;;  %vm1072_vm6 = vcmp.ge.f32.partialorder %v879_v58, 0.0  ;;  %v1265_v61 = vmul.f32 %v3333_v44, %v879_v58 }
  0xea   : > { %v1454_v37 = vsel %vm1069_vm5, %v876_v28, %v1262_v4  ;;  %vm1070_vm7 = vcmp.ge.f32.partialorder %v877_v2, 0.0  ;;  %vm1073_vm8 = vcmp.ge.f32.partialorder %v880_v63, 0.0  ;;  %v1263_v45 = vmul.f32 %v3333_v44, %v877_v2 }
  0xeb   : > { %v1266_v39 = vmul.f32 %v3333_v44, %v880_v63  ;;  %vm1068_vm9 = vcmp.ge.f32.partialorder %v875_v7, 0.0  ;;  %v1457_v10 = vsel %vm1072_vm6, %v879_v58, %v1265_v61  ;;  %vm1071_vm10 = vcmp.ge.f32.partialorder %v878_v15, 0.0 }
  0xec   : > { %v1261_v16 = vmul.f32 %v3333_v44, %v875_v7  ;;  %v1264_v29 = vmul.f32 %v3333_v44, %v878_v15  ;;  %v1598_v50 = vpack.c.bf16 %v1457_v10, %v1454_v37  ;;  %v1455_v33 = vsel %vm1070_vm7, %v877_v2, %v1263_v45  ;;  %v307_v37 = vld [vmem:[%s3271_s10 + $0x1bc] sm:$0xff]  ;;  %v314_v45 = vld [vmem:[%s3271_s10 + $0x1e8] ss:$12 sps:$4 sm:$0xff]  }
  0xed   : > { %v1458_v52 = vsel %vm1073_vm8, %v880_v63, %v1266_v39  ;;  %v468_v51 = vunpack.c.h.bf16 %v302_v31  ;;  %v674_v53 = vmul.f32 %v3296_v23, %v465_v25  ;;  %v464_v48 = vunpack.c.h.bf16 %v301_v32  ;;  %v305_v63 = vld [vmem:[%s3271_s10 + $0x1b0] sm:$0xff] }
  0xee   : > { %v1599_v57 = vpack.c.bf16 %v1458_v52, %v1455_v33  ;;  %v1453_v19 = vsel %vm1068_vm9, %v875_v7, %v1261_v16  ;;  %v1456_v21 = vsel %vm1071_vm10, %v878_v15, %v1264_v29  ;;  %2046 = vmatprep.mubr.bf16.mxu0 %v1598_v50  ;;  %v467_v9 = vunpack.c.h.bf16 %v303_v40 }
  0xef   : > { %v1597_v36 = vpack.c.bf16 %v1456_v21, %v1453_v19  ;;  %v677_v59 = vmul.f32 %v3296_v23, %v468_v51  ;;  %v883_v42 = vadd.f32 %v3303_v26, %v674_v53  ;;  %v471_v55 = vunpack.c.l.bf16 %v306_v56 }
  0xf0   : > { %3100 = vmatprep.mubr.msk.bf16.mxu1 %vm1789_vm15, %v1599_v57  ;;  %v474_v17 = vunpack.c.h.bf16 %v306_v56  ;;  %v463_v54 = vunpack.c.l.bf16 %v301_v32  ;;  %v673_v20 = vmul.f32 %v3294_v22, %v464_v48  ;;  %v676_v41 = vmul.f32 %v3294_v22, %v467_v9 }
  0xf1   : > { %2047 = vmatmul.mubr.bf16.gmra.mrb[64].mxu0 %v1597_v36  ;;  %v886_v12 = vadd.f32 %v3303_v26, %v677_v59  ;;  %v466_v1 = vunpack.c.l.bf16 %v303_v40  ;;  %vm1076_vm11 = vcmp.ge.f32.partialorder %v883_v42, 0.0  ;;  %v1269_v60 = vmul.f32 %v3333_v44, %v883_v42 }
  0xf2   : > { %v680_v49 = vmul.f32 %v3296_v23, %v471_v55  ;;  %v683_v62 = vmul.f32 %v3296_v23, %v474_v17  ;;  %v882_v0 = vadd.f32 %v3298_v24, %v673_v20  ;;  %v885_v3 = vadd.f32 %v3298_v24, %v676_v41 }
  0xf3   : > { %vm1079_vm12 = vcmp.ge.f32.partialorder %v886_v12, 0.0  ;;  %v1272_v27 = vmul.f32 %v3333_v44, %v886_v12  ;;  %v1461_v5 = vsel %vm1076_vm11, %v883_v42, %v1269_v60  ;;  %v672_v6 = vmul.f32 %v3316_v34, %v463_v54 }
  0xf4   : > { %v889_v8 = vadd.f32 %v3303_v26, %v680_v49  ;;  %v892_v13 = vadd.f32 %v3303_v26, %v683_v62  ;;  %vm1075_vm13 = vcmp.ge.f32.partialorder %v882_v0, 0.0  ;;  %vm1078_vm14 = vcmp.ge.f32.partialorder %v885_v3, 0.0 }
  0xf5   : > { %v1464_v11 = vsel %vm1079_vm12, %v886_v12, %v1272_v27  ;;  %v1268_v14 = vmul.f32 %v3333_v44, %v882_v0  ;;  %v1271_v30 = vmul.f32 %v3333_v44, %v885_v3  ;;  %v675_v43 = vmul.f32 %v3316_v34, %v466_v1  ;;  %v318_v27 = vld [vmem:[%s3271_s10 + $0x200] ss:$12 sps:$4 sm:$0xff]  }
  0xf6   : > { %v1602_v28 = vpack.c.bf16 %v1464_v11, %v1461_v5  ;;  %vm1082_vm0 = vcmp.ge.f32.partialorder %v889_v8, 0.0  ;;  %vm1085_vm1 = vcmp.ge.f32.partialorder %v892_v13, 0.0  ;;  %v1275_v38 = vmul.f32 %v3333_v44, %v889_v8 }
  0xf7   : > { %v1460_v31 = vsel %vm1075_vm13, %v882_v0, %v1268_v14  ;;  %v1278_v46 = vmul.f32 %v3333_v44, %v892_v13  ;;  %v1463_v47 = vsel %vm1078_vm14, %v885_v3, %v1271_v30  ;;  %v881_v58 = vadd.f32 %v3318_v35, %v672_v6  ;;  %v311_v14 = vld [vmem:[%s3271_s10 + $0x1d4] sm:$0xff] }
  0xf8   : > { %3101 = vmatmul.mubr.msk.bf16.gmra.mrb[64].mxu1 %vm1789_vm15, %v1602_v28  ;;  %v477_v4 = vunpack.c.l.bf16 %v310_v18  ;;  %v480_v2 = vunpack.c.h.bf16 %v310_v18  ;;  %v1601_v7 = vpack.c.bf16 %v1463_v47, %v1460_v31  ;;  %v1467_v15 = vsel %vm1082_vm0, %v889_v8, %v1275_v38  ;;  %v309_v8 = vld [vmem:[%s3271_s10 + $0x1c8] sm:$0xff] }
  0xf9   : > { %v1470_v25 = vsel %vm1085_vm1, %v892_v13, %v1278_v46  ;;  %v884_v61 = vadd.f32 %v3318_v35, %v675_v43  ;;  %vm1074_vm2 = vcmp.ge.f32.partialorder %v881_v58, 0.0  ;;  %v1267_v10 = vmul.f32 %v3333_v44, %v881_v58 }
  0xfa   : > { %v1605_v39 = vpack.c.bf16 %v1470_v25, %v1467_v15  ;;  %v686_v16 = vmul.f32 %v3296_v23, %v477_v4  ;;  %2054 = vmatprep.mubr.bf16.mxu0 %v1601_v7  ;;  %v689_v32 = vmul.f32 %v3296_v23, %v480_v2  ;;  %v470_v40 = vunpack.c.h.bf16 %v305_v63  ;;  %v322_v7 = vld [vmem:[%s3271_s10 + $0x218] ss:$12 sps:$4 sm:$0xff]  }
  0xfb   : > { %vm1077_vm3 = vcmp.ge.f32.partialorder %v884_v61, 0.0  ;;  %v1270_v29 = vmul.f32 %v3333_v44, %v884_v61  ;;  %v1459_v50 = vsel %vm1074_vm2, %v881_v58, %v1267_v10  ;;  %v473_v52 = vunpack.c.h.bf16 %v307_v37 }
  0xfc   : > { %3104 = vmatprep.mubr.msk.bf16.mxu1 %vm1789_vm15, %v1605_v39  ;;  %v895_v33 = vadd.f32 %v3303_v26, %v686_v16  ;;  %v483_v51 = vunpack.c.l.bf16 %v314_v45  ;;  %v898_v57 = vadd.f32 %v3303_v26, %v689_v32  ;;  %v679_v19 = vmul.f32 %v3294_v22, %v470_v40 }
  0xfd   : > { %v1462_v56 = vsel %vm1077_vm3, %v884_v61, %v1270_v29  ;;  %v486_v21 = vunpack.c.h.bf16 %v314_v45  ;;  %v682_v59 = vmul.f32 %v3294_v22, %v473_v52  ;;  %v469_v12 = vunpack.c.l.bf16 %v305_v63 }
  0xfe   : > { %v1600_v53 = vpack.c.bf16 %v1462_v56, %v1459_v50  ;;  %vm1088_vm4 = vcmp.ge.f32.partialorder %v895_v33, 0.0  ;;  %v1281_v36 = vmul.f32 %v3333_v44, %v895_v33  ;;  %vm1091_vm5 = vcmp.ge.f32.partialorder %v898_v57, 0.0 }
  0xff   : > { %v1284_v48 = vmul.f32 %v3333_v44, %v898_v57  ;;  %v888_v9 = vadd.f32 %v3298_v24, %v679_v19  ;;  %v692_v42 = vmul.f32 %v3296_v23, %v483_v51  ;;  %v891_v17 = vadd.f32 %v3298_v24, %v682_v59 }
 0x100   : > { %2055 = vmatmul.mubr.bf16.gmra.mrb[68].mxu0 %v1600_v53  ;;  %v1473_v55 = vsel %vm1088_vm4, %v895_v33, %v1281_v36  ;;  %v695_v54 = vmul.f32 %v3296_v23, %v486_v21  ;;  %v472_v5 = vunpack.c.l.bf16 %v307_v37  ;;  %v678_v11 = vmul.f32 %v3316_v34, %v469_v12 }
 0x101   : > { %v1476_v20 = vsel %vm1091_vm5, %v898_v57, %v1284_v48  ;;  %vm1081_vm6 = vcmp.ge.f32.partialorder %v888_v9, 0.0  ;;  %v1274_v41 = vmul.f32 %v3333_v44, %v888_v9  ;;  %v901_v1 = vadd.f32 %v3303_v26, %v692_v42  ;;  %v326_v48 = vld [vmem:[%s3271_s10 + $0x230] ss:$12 sps:$4 sm:$0xff]  }
 0x102   : > { %v1608_v60 = vpack.c.bf16 %v1476_v20, %v1473_v55  ;;  %vm1084_vm7 = vcmp.ge.f32.partialorder %v891_v17, 0.0  ;;  %v1277_v49 = vmul.f32 %v3333_v44, %v891_v17  ;;  %v904_v62 = vadd.f32 %v3303_v26, %v695_v54 }
 0x103   : > { %v1466_v0 = vsel %vm1081_vm6, %v888_v9, %v1274_v41  ;;  %vm1094_vm8 = vcmp.ge.f32.partialorder %v901_v1, 0.0  ;;  %v1287_v3 = vmul.f32 %v3333_v44, %v901_v1  ;;  %v681_v30 = vmul.f32 %v3316_v34, %v472_v5  ;;  %v4124_v9 = vld [vmem:[%s3271_s10 + $0x1e0] sm:$0xff] }
 0x104   : > { %3105 = vmatmul.mubr.msk.bf16.gmra.mrb[68].mxu1 %vm1789_vm15, %v1608_v60  ;;  %v1469_v13 = vsel %vm1084_vm7, %v891_v17, %v1277_v49  ;;  %vm1097_vm9 = vcmp.ge.f32.partialorder %v904_v62, 0.0  ;;  %v1290_v6 = vmul.f32 %v3333_v44, %v904_v62  ;;  %v489_v31 = vunpack.c.l.bf16 %v318_v27  ;;  %v4130_v60 = vld [vmem:[%s3271_s10 + $0x1ec] sm:$0xff] }
 0x105   : > { %v1604_v18 = vpack.c.bf16 %v1469_v13, %v1466_v0  ;;  %v1479_v28 = vsel %vm1094_vm8, %v901_v1, %v1287_v3  ;;  %v887_v46 = vadd.f32 %v3318_v35, %v678_v11  ;;  %v492_v43 = vunpack.c.h.bf16 %v318_v27 }
 0x106   : > { %v1482_v38 = vsel %vm1097_vm9, %v904_v62, %v1290_v6  ;;  %v476_v47 = vunpack.c.h.bf16 %v309_v8  ;;  %v890_v4 = vadd.f32 %v3318_v35, %v681_v30  ;;  %v698_v2 = vmul.f32 %v3296_v23, %v489_v31 }
 0x107   : > { %2062 = vmatprep.mubr.bf16.mxu0 %v1604_v18  ;;  %v1611_v58 = vpack.c.bf16 %v1482_v38, %v1479_v28  ;;  %v479_v63 = vunpack.c.h.bf16 %v311_v14  ;;  %vm1080_vm10 = vcmp.ge.f32.partialorder %v887_v46, 0.0  ;;  %v1273_v15 = vmul.f32 %v3333_v44, %v887_v46 }
 0x108   : > { %v701_v25 = vmul.f32 %v3296_v23, %v492_v43  ;;  %v685_v61 = vmul.f32 %v3294_v22, %v476_v47  ;;  %vm1083_vm11 = vcmp.ge.f32.partialorder %v890_v4, 0.0  ;;  %v1276_v37 = vmul.f32 %v3333_v44, %v890_v4 }
 0x109   : > { %3108 = vmatprep.mubr.msk.bf16.mxu1 %vm1789_vm15, %v1611_v58  ;;  %v907_v45 = vadd.f32 %v3303_v26, %v698_v2  ;;  %v688_v39 = vmul.f32 %v3294_v22, %v479_v63  ;;  %v1465_v10 = vsel %vm1080_vm10, %v887_v46, %v1273_v15  ;;  %v495_v32 = vunpack.c.l.bf16 %v322_v7 }
 0x10a   : > { %v910_v16 = vadd.f32 %v3303_v26, %v701_v25  ;;  %v894_v29 = vadd.f32 %v3298_v24, %v685_v61  ;;  %v1468_v40 = vsel %vm1083_vm11, %v890_v4, %v1276_v37  ;;  %v498_v53 = vunpack.c.h.bf16 %v322_v7  ;;  %v330_v4 = vld [vmem:[%s3271_s10 + $0x248] ss:$12 sps:$4 sm:$0xff]  }
 0x10b   : > { %vm1100_vm12 = vcmp.ge.f32.partialorder %v907_v45, 0.0  ;;  %v1293_v50 = vmul.f32 %v3333_v44, %v907_v45  ;;  %v897_v33 = vadd.f32 %v3298_v24, %v688_v39  ;;  %v1603_v52 = vpack.c.bf16 %v1468_v40, %v1465_v10 }
 0x10c   : > { %vm1103_vm13 = vcmp.ge.f32.partialorder %v910_v16, 0.0  ;;  %v1296_v51 = vmul.f32 %v3333_v44, %v910_v16  ;;  %vm1087_vm14 = vcmp.ge.f32.partialorder %v894_v29, 0.0  ;;  %v1280_v57 = vmul.f32 %v3333_v44, %v894_v29 }
 0x10d   : > { %v1485_v56 = vsel %vm1100_vm12, %v907_v45, %v1293_v50  ;;  %vm1090_vm0 = vcmp.ge.f32.partialorder %v897_v33, 0.0  ;;  %v1283_v19 = vmul.f32 %v3333_v44, %v897_v33  ;;  %2063 = vmatmul.mubr.bf16.gmra.mrb[72].mxu0 %v1603_v52  ;;  %v704_v36 = vmul.f32 %v3296_v23, %v495_v32 }
 0x10e   : > { %v1488_v21 = vsel %vm1103_vm13, %v910_v16, %v1296_v51  ;;  %v475_v59 = vunpack.c.l.bf16 %v309_v8  ;;  %v1472_v55 = vsel %vm1087_vm14, %v894_v29, %v1280_v57  ;;  %v478_v54 = vunpack.c.l.bf16 %v311_v14 }
 0x10f   : > { %v1614_v42 = vpack.c.bf16 %v1488_v21, %v1485_v56  ;;  %v1475_v17 = vsel %vm1090_vm0, %v897_v33, %v1283_v19  ;;  %v707_v20 = vmul.f32 %v3296_v23, %v498_v53  ;;  %v913_v41 = vadd.f32 %v3303_v26, %v704_v36  ;;  %v334_v53 = vld [vmem:[%s3271_s10 + $0x260] ss:$12 sps:$4 sm:$0xff]  }
 0x110   : > { %v1607_v12 = vpack.c.bf16 %v1475_v17, %v1472_v55  ;;  %v684_v1 = vmul.f32 %v3316_v34, %v475_v59  ;;  %v687_v49 = vmul.f32 %v3316_v34, %v478_v54  ;;  %v501_v62 = vunpack.c.l.bf16 %v326_v48 }
 0x111   : > { %3109 = vmatmul.mubr.msk.bf16.gmra.mrb[72].mxu1 %vm1789_vm15, %v1614_v42  ;;  %v504_v27 = vunpack.c.h.bf16 %v326_v48  ;;  %v482_v0 = vunpack.c.h.bf16 %v4124_v9  ;;  %v916_v3 = vadd.f32 %v3303_v26, %v707_v20  ;;  %vm1106_vm1 = vcmp.ge.f32.partialorder %v913_v41, 0.0 }
 0x112   : > { %2070 = vmatprep.mubr.bf16.mxu0 %v1607_v12  ;;  %v1299_v5 = vmul.f32 %v3333_v44, %v913_v41  ;;  %v893_v8 = vadd.f32 %v3318_v35, %v684_v1  ;;  %v896_v13 = vadd.f32 %v3318_v35, %v687_v49  ;;  %v710_v6 = vmul.f32 %v3296_v23, %v501_v62 }
 0x113   : > { %v713_v11 = vmul.f32 %v3296_v23, %v504_v27  ;;  %v485_v14 = vunpack.c.h.bf16 %v4130_v60  ;;  %vm1109_vm2 = vcmp.ge.f32.partialorder %v916_v3, 0.0  ;;  %v1302_v18 = vmul.f32 %v3333_v44, %v916_v3 }
 0x114   : > { %v1491_v28 = vsel %vm1106_vm1, %v913_v41, %v1299_v5  ;;  %vm1086_vm3 = vcmp.ge.f32.partialorder %v893_v8, 0.0  ;;  %vm1089_vm4 = vcmp.ge.f32.partialorder %v896_v13, 0.0  ;;  %v1279_v30 = vmul.f32 %v3333_v44, %v893_v8 }
 0x115   : > { %v1282_v31 = vmul.f32 %v3333_v44, %v896_v13  ;;  %v919_v38 = vadd.f32 %v3303_v26, %v710_v6  ;;  %v1494_v46 = vsel %vm1109_vm2, %v916_v3, %v1302_v18  ;;  %v922_v43 = vadd.f32 %v3303_v26, %v713_v11  ;;  %v317_v18 = vld [vmem:[%s3271_s10 + $0x1f8] sm:$0xff] }
 0x116   : > { %v691_v47 = vmul.f32 %v3294_v22, %v482_v0  ;;  %v694_v58 = vmul.f32 %v3294_v22, %v485_v14  ;;  %v1617_v7 = vpack.c.bf16 %v1494_v46, %v1491_v28  ;;  %v1471_v15 = vsel %vm1086_vm3, %v893_v8, %v1279_v30 }
 0x117   : > { %v1474_v25 = vsel %vm1089_vm4, %v896_v13, %v1282_v31  ;;  %vm1112_vm5 = vcmp.ge.f32.partialorder %v919_v38, 0.0  ;;  %vm1115_vm6 = vcmp.ge.f32.partialorder %v922_v43, 0.0  ;;  %v1305_v39 = vmul.f32 %v3333_v44, %v919_v38 }
 0x118   : > { %v1606_v45 = vpack.c.bf16 %v1474_v25, %v1471_v15  ;;  %v1308_v10 = vmul.f32 %v3333_v44, %v922_v43  ;;  %3112 = vmatprep.mubr.msk.bf16.mxu1 %vm1789_vm15, %v1617_v7  ;;  %v900_v32 = vadd.f32 %v3298_v24, %v691_v47  ;;  %v903_v40 = vadd.f32 %v3298_v24, %v694_v58  ;;  %v319_v15 = vld [vmem:[%s3271_s10 + $0x204] sm:$0xff] }
 0x119   : > { %v507_v50 = vunpack.c.l.bf16 %v330_v4  ;;  %v510_v33 = vunpack.c.h.bf16 %v330_v4  ;;  %v1497_v56 = vsel %vm1112_vm5, %v919_v38, %v1305_v39  ;;  %v481_v19 = vunpack.c.l.bf16 %v4124_v9  ;;  %v338_v25 = vld [vmem:[%s3271_s10 + $0x278] ss:$12 sps:$4 sm:$0xff]  }
 0x11a   : > { %v4150_v2 = vpop.f32.mrb[0].mxu0  ;;  %v4152_v63 = vpop.f32.mrb[0].mxu1  ;;  %2071 = vmatmul.mubr.bf16.gmra.mrb[76].mxu0 %v1606_v45  ;;  %v1500_v57 = vsel %vm1115_vm6, %v922_v43, %v1308_v10  ;;  %v484_v21 = vunpack.c.l.bf16 %v4130_v60  ;;  %vm1093_vm7 = vcmp.ge.f32.partialorder %v900_v32, 0.0  ;;  %vm1096_vm8 = vcmp.ge.f32.partialorder %v903_v40, 0.0 }
 0x11b   : > { %v1922_v61 = vpop.f32.mrb[1].mxu0  ;;  %v2114_v37 = vpop.f32.mrb[1].mxu1  ;;  %v1620_v36 = vpack.c.bf16 %v1500_v57, %v1497_v56  ;;  %v1286_v59 = vmul.f32 %v3333_v44, %v900_v32  ;;  %v1289_v48 = vmul.f32 %v3333_v44, %v903_v40  ;;  %v716_v42 = vmul.f32 %v3296_v23, %v507_v50 }
 0x11c   : > { %v4156_v16 = vpop.f32.mrb[2].mxu0  ;;  %v4158_v29 = vpop.f32.mrb[2].mxu1  ;;  %v719_v55 = vmul.f32 %v3296_v23, %v510_v33  ;;  %v690_v17 = vmul.f32 %v3316_v34, %v481_v19  ;;  %v693_v9 = vmul.f32 %v3316_v34, %v484_v21  ;;  %v513_v12 = vunpack.c.l.bf16 %v334_v53 }
 0x11d   : > { %v1925_v52 = vpop.f32.mrb[3].mxu0  ;;  %v2117_v51 = vpop.f32.mrb[3].mxu1  ;;  %3113 = vmatmul.mubr.msk.bf16.gmra.mrb[76].mxu1 %vm1789_vm15, %v1620_v36  ;;  %v1478_v54 = vsel %vm1093_vm7, %v900_v32, %v1286_v59  ;;  %v516_v20 = vunpack.c.h.bf16 %v334_v53  ;;  %v1481_v41 = vsel %vm1096_vm8, %v903_v40, %v1289_v48  ;;  %v925_v1 = vadd.f32 %v3303_v26, %v716_v42 }
 0x11e   : > { %v928_v60 = vadd.f32 %v3303_v26, %v719_v55  ;;  %v899_v49 = vadd.f32 %v3318_v35, %v690_v17  ;;  %v1610_v0 = vpack.c.bf16 %v1481_v41, %v1478_v54  ;;  %v902_v3 = vadd.f32 %v3318_v35, %v693_v9  ;;  %v342_v55 = vld [vmem:[%s3271_s10 + $0x290] ss:$12 sps:$4 sm:$0xff]  }
 0x11f   : > { %v722_v5 = vmul.f32 %v3296_v23, %v513_v12  ;;  %v725_v8 = vmul.f32 %v3296_v23, %v516_v20  ;;  %vm1118_vm9 = vcmp.ge.f32.partialorder %v925_v1, 0.0  ;;  %v1311_v11 = vmul.f32 %v3333_v44, %v925_v1 }
 0x120   : > { %vm1121_vm10 = vcmp.ge.f32.partialorder %v928_v60, 0.0  ;;  %v1314_v14 = vmul.f32 %v3333_v44, %v928_v60  ;;  %2078 = vmatprep.mubr.bf16.mxu0 %v1610_v0  ;;  %vm1092_vm11 = vcmp.ge.f32.partialorder %v899_v49, 0.0  ;;  %vm1095_vm12 = vcmp.ge.f32.partialorder %v902_v3, 0.0 }
 0x121   : > { %v1285_v31 = vmul.f32 %v3333_v44, %v899_v49  ;;  %v1288_v38 = vmul.f32 %v3333_v44, %v902_v3  ;;  %v1503_v47 = vsel %vm1118_vm9, %v925_v1, %v1311_v11  ;;  %v931_v4 = vadd.f32 %v3303_v26, %v722_v5 }
 0x122   : > { %v4177_v62 = vpop.f32.mrb[4].mxu0  ;;  %v4179_v27 = vpop.f32.mrb[4].mxu1  ;;  %v1506_v58 = vsel %vm1121_vm10, %v928_v60, %v1314_v14  ;;  %v934_v7 = vadd.f32 %v3303_v26, %v725_v8  ;;  %v488_v39 = vunpack.c.h.bf16 %v317_v18  ;;  %v491_v50 = vunpack.c.h.bf16 %v319_v15 }
 0x123   : > { %v1930_v13 = vpop.f32.mrb[5].mxu0  ;;  %v2122_v6 = vpop.f32.mrb[5].mxu1  ;;  %v1623_v61 = vpack.c.bf16 %v1506_v58, %v1503_v47  ;;  %v1477_v37 = vsel %vm1092_vm11, %v899_v49, %v1285_v31  ;;  %v1480_v45 = vsel %vm1095_vm12, %v902_v3, %v1288_v38  ;;  %vm1124_vm13 = vcmp.ge.f32.partialorder %v931_v4, 0.0 }
 0x124   : > { %v4187_v28 = vpop.f32.mrb[6].mxu0  ;;  %v4189_v30 = vpop.f32.mrb[6].mxu1  ;;  %v1609_v10 = vpack.c.bf16 %v1480_v45, %v1477_v37  ;;  %vm1127_vm14 = vcmp.ge.f32.partialorder %v934_v7, 0.0  ;;  %v1317_v32 = vmul.f32 %v3333_v44, %v931_v4  ;;  %v1320_v40 = vmul.f32 %v3333_v44, %v934_v7  ;;  %v346_v45 = vld [vmem:[%s3271_s10 + $0x2a8] ss:$12 sps:$4 sm:$0xff]  }
 0x125   : > { %v1933_v46 = vpop.f32.mrb[7].mxu0  ;;  %v2125_v43 = vpop.f32.mrb[7].mxu1  ;;  %3116 = vmatprep.mubr.msk.bf16.mxu1 %vm1789_vm15, %v1623_v61  ;;  %v697_v33 = vmul.f32 %v3294_v22, %v488_v39  ;;  %v519_v52 = vunpack.c.l.bf16 %v338_v25  ;;  %v522_v56 = vunpack.c.h.bf16 %v338_v25  ;;  %v487_v57 = vunpack.c.l.bf16 %v317_v18 }
 0x126   : > { %2079 = vmatmul.mubr.bf16.gmra.mrb[80].mxu0 %v1609_v10  ;;  %v1509_v51 = vsel %vm1124_vm13, %v931_v4, %v1317_v32  ;;  %v490_v19 = vunpack.c.l.bf16 %v319_v15  ;;  %v1512_v36 = vsel %vm1127_vm14, %v934_v7, %v1320_v40  ;;  %v700_v59 = vmul.f32 %v3294_v22, %v491_v50  ;;  %v321_v4 = vld [vmem:[%s3271_s10 + $0x210] sm:$0xff]  ;;  %v323_v7 = vld [vmem:[%s3271_s10 + $0x21c] sm:$0xff] }
 0x127   : > { %v906_v48 = vadd.f32 %v3298_v24, %v697_v33  ;;  %v728_v42 = vmul.f32 %v3296_v23, %v519_v52  ;;  %v1626_v9 = vpack.c.bf16 %v1512_v36, %v1509_v51  ;;  %v731_v12 = vmul.f32 %v3296_v23, %v522_v56 }
 0x128   : > { %v696_v20 = vmul.f32 %v3316_v34, %v487_v57  ;;  %v699_v41 = vmul.f32 %v3316_v34, %v490_v19  ;;  %v909_v49 = vadd.f32 %v3298_v24, %v700_v59  ;;  %v525_v14 = vunpack.c.l.bf16 %v342_v55 }
 0x129   : > { %vm1099_vm0 = vcmp.ge.f32.partialorder %v906_v48, 0.0  ;;  %v1292_v0 = vmul.f32 %v3333_v44, %v906_v48  ;;  %v937_v3 = vadd.f32 %v3303_v26, %v728_v42  ;;  %3117 = vmatmul.mubr.msk.bf16.gmra.mrb[80].mxu1 %vm1789_vm15, %v1626_v9  ;;  %v940_v13 = vadd.f32 %v3303_v26, %v731_v12 }
 0x12a   : > { %v4201_v21 = vpop.f32.mrb[8].mxu0  ;;  %v4203_v53 = vpop.f32.mrb[8].mxu1  ;;  %v905_v6 = vadd.f32 %v3318_v35, %v696_v20  ;;  %v908_v11 = vadd.f32 %v3318_v35, %v699_v41  ;;  %vm1102_vm1 = vcmp.ge.f32.partialorder %v909_v49, 0.0  ;;  %v1295_v18 = vmul.f32 %v3333_v44, %v909_v49 }
 0x12b   : > { %v1938_v17 = vpop.f32.mrb[9].mxu0  ;;  %v2130_v54 = vpop.f32.mrb[9].mxu1  ;;  %v1484_v31 = vsel %vm1099_vm0, %v906_v48, %v1292_v0  ;;  %vm1130_vm2 = vcmp.ge.f32.partialorder %v937_v3, 0.0  ;;  %vm1133_vm3 = vcmp.ge.f32.partialorder %v940_v13, 0.0  ;;  %v1323_v38 = vmul.f32 %v3333_v44, %v937_v3 }
 0x12c   : > { %v4212_v1 = vpop.f32.mrb[10].mxu0  ;;  %v4214_v60 = vpop.f32.mrb[10].mxu1  ;;  %v1326_v46 = vmul.f32 %v3333_v44, %v940_v13  ;;  %vm1098_vm4 = vcmp.ge.f32.partialorder %v905_v6, 0.0  ;;  %v1487_v43 = vsel %vm1102_vm1, %v909_v49, %v1295_v18  ;;  %vm1101_vm5 = vcmp.ge.f32.partialorder %v908_v11, 0.0 }
 0x12d   : > { %v1941_v5 = vpop.f32.mrb[11].mxu0  ;;  %v2133_v8 = vpop.f32.mrb[11].mxu1  ;;  %v1291_v47 = vmul.f32 %v3333_v44, %v905_v6  ;;  %v1294_v58 = vmul.f32 %v3333_v44, %v908_v11  ;;  %v1613_v15 = vpack.c.bf16 %v1487_v43, %v1484_v31  ;;  %v1515_v25 = vsel %vm1130_vm2, %v937_v3, %v1323_v38 }
 0x12e   : > { %v1518_v61 = vsel %vm1133_vm3, %v940_v13, %v1326_v46  ;;  %v528_v37 = vunpack.c.h.bf16 %v342_v55  ;;  %v734_v33 = vmul.f32 %v3296_v23, %v525_v14  ;;  %v494_v19 = vunpack.c.h.bf16 %v321_v4 }
 0x12f   : > { %v1629_v32 = vpack.c.bf16 %v1518_v61, %v1515_v25  ;;  %v1483_v40 = vsel %vm1098_vm4, %v905_v6, %v1291_v47  ;;  %v1486_v50 = vsel %vm1101_vm5, %v908_v11, %v1294_v58  ;;  %2086 = vmatprep.mubr.bf16.mxu0 %v1613_v15  ;;  %v497_v36 = vunpack.c.h.bf16 %v323_v7  ;;  %v350_v47 = vld [vmem:[%s3271_s10 + $0x2c0] ss:$12 sps:$4 sm:$0xff]  }
 0x130   : > { %v1612_v56 = vpack.c.bf16 %v1486_v50, %v1483_v40  ;;  %v737_v57 = vmul.f32 %v3296_v23, %v528_v37  ;;  %v943_v42 = vadd.f32 %v3303_v26, %v734_v33  ;;  %v531_v55 = vunpack.c.l.bf16 %v346_v45 }
 0x131   : > { %3120 = vmatprep.mubr.msk.bf16.mxu1 %vm1789_vm15, %v1629_v32  ;;  %v534_v17 = vunpack.c.h.bf16 %v346_v45  ;;  %v493_v54 = vunpack.c.l.bf16 %v321_v4  ;;  %v703_v41 = vmul.f32 %v3294_v22, %v494_v19  ;;  %v706_v49 = vmul.f32 %v3294_v22, %v497_v36  ;;  %v4273_v19 = vld [vmem:[%s3271_s10 + $0x228] sm:$0xff] }
 0x132   : > { %v4231_v39 = vpop.f32.mrb[12].mxu0  ;;  %v4233_v10 = vpop.f32.mrb[12].mxu1  ;;  %2087 = vmatmul.mubr.bf16.gmra.mrb[84].mxu0 %v1612_v56  ;;  %v946_v20 = vadd.f32 %v3303_v26, %v737_v57  ;;  %v496_v0 = vunpack.c.l.bf16 %v323_v7  ;;  %vm1136_vm6 = vcmp.ge.f32.partialorder %v943_v42, 0.0  ;;  %v1329_v3 = vmul.f32 %v3333_v44, %v943_v42 }
 0x133   : > { %v1946_v52 = vpop.f32.mrb[13].mxu0  ;;  %v2138_v51 = vpop.f32.mrb[13].mxu1  ;;  %v740_v5 = vmul.f32 %v3296_v23, %v531_v55  ;;  %v743_v8 = vmul.f32 %v3296_v23, %v534_v17  ;;  %v912_v6 = vadd.f32 %v3298_v24, %v703_v41  ;;  %v915_v11 = vadd.f32 %v3298_v24, %v706_v49 }
 0x134   : > { %v4237_v59 = vpop.f32.mrb[14].mxu0  ;;  %v4239_v48 = vpop.f32.mrb[14].mxu1  ;;  %vm1139_vm7 = vcmp.ge.f32.partialorder %v946_v20, 0.0  ;;  %v1332_v13 = vmul.f32 %v3333_v44, %v946_v20  ;;  %v1521_v14 = vsel %vm1136_vm6, %v943_v42, %v1329_v3  ;;  %v702_v38 = vmul.f32 %v3316_v34, %v493_v54 }
 0x135   : > { %v1949_v9 = vpop.f32.mrb[15].mxu0  ;;  %v2141_v12 = vpop.f32.mrb[15].mxu1  ;;  %v949_v18 = vadd.f32 %v3303_v26, %v740_v5  ;;  %v952_v31 = vadd.f32 %v3303_v26, %v743_v8  ;;  %vm1105_vm8 = vcmp.ge.f32.partialorder %v912_v6, 0.0  ;;  %vm1108_vm9 = vcmp.ge.f32.partialorder %v915_v11, 0.0 }
 0x136   : > { %v1524_v46 = vsel %vm1139_vm7, %v946_v20, %v1332_v13  ;;  %v1298_v43 = vmul.f32 %v3333_v44, %v912_v6  ;;  %v1301_v15 = vmul.f32 %v3333_v44, %v915_v11  ;;  %v705_v40 = vmul.f32 %v3316_v34, %v496_v0  ;;  %v327_v12 = vld [vmem:[%s3271_s10 + $0x234] sm:$0xff] }
 0x137   : > { %v1632_v7 = vpack.c.bf16 %v1524_v46, %v1521_v14  ;;  %vm1142_vm10 = vcmp.ge.f32.partialorder %v949_v18, 0.0  ;;  %vm1145_vm11 = vcmp.ge.f32.partialorder %v952_v31, 0.0  ;;  %v1335_v45 = vmul.f32 %v3333_v44, %v949_v18  ;;  %v354_v20 = vld [vmem:[%s3271_s10 + $0x2d8] ss:$12 sps:$4 sm:$0xff]  }
 0x138   : > { %v1490_v37 = vsel %vm1105_vm8, %v912_v6, %v1298_v43  ;;  %v1338_v32 = vmul.f32 %v3333_v44, %v952_v31  ;;  %v1493_v52 = vsel %vm1108_vm9, %v915_v11, %v1301_v15  ;;  %v911_v51 = vadd.f32 %v3318_v35, %v702_v38 }
 0x139   : > { %3121 = vmatmul.mubr.msk.bf16.gmra.mrb[84].mxu1 %vm1789_vm15, %v1632_v7  ;;  %v537_v56 = vunpack.c.l.bf16 %v350_v47  ;;  %v540_v57 = vunpack.c.h.bf16 %v350_v47  ;;  %v1616_v55 = vpack.c.bf16 %v1493_v52, %v1490_v37  ;;  %v1527_v17 = vsel %vm1142_vm10, %v949_v18, %v1335_v45 }
 0x13a   : > { %v4257_v58 = vpop.f32.mrb[16].mxu0  ;;  %v4259_v4 = vpop.f32.mrb[16].mxu1  ;;  %v1530_v54 = vsel %vm1145_vm11, %v952_v31, %v1338_v32  ;;  %v914_v9 = vadd.f32 %v3318_v35, %v705_v40  ;;  %vm1104_vm12 = vcmp.ge.f32.partialorder %v911_v51, 0.0  ;;  %v1297_v49 = vmul.f32 %v3333_v44, %v911_v51 }
 0x13b   : > { %v1954_v25 = vpop.f32.mrb[17].mxu0  ;;  %v2146_v61 = vpop.f32.mrb[17].mxu1  ;;  %v1635_v41 = vpack.c.bf16 %v1530_v54, %v1527_v17  ;;  %v746_v0 = vmul.f32 %v3296_v23, %v537_v56  ;;  %2094 = vmatprep.mubr.bf16.mxu0 %v1616_v55  ;;  %v749_v5 = vmul.f32 %v3296_v23, %v540_v57  ;;  %v500_v8 = vunpack.c.h.bf16 %v4273_v19 }
 0x13c   : > { %v4265_v50 = vpop.f32.mrb[18].mxu0  ;;  %v4267_v33 = vpop.f32.mrb[18].mxu1  ;;  %vm1107_vm13 = vcmp.ge.f32.partialorder %v914_v9, 0.0  ;;  %v1300_v3 = vmul.f32 %v3333_v44, %v914_v9  ;;  %v1489_v13 = vsel %vm1104_vm12, %v911_v51, %v1297_v49  ;;  %v503_v11 = vunpack.c.h.bf16 %v327_v12 }
 0x13d   : > { %v1957_v36 = vpop.f32.mrb[19].mxu0  ;;  %v2149_v42 = vpop.f32.mrb[19].mxu1  ;;  %3124 = vmatprep.mubr.msk.bf16.mxu1 %vm1789_vm15, %v1635_v41  ;;  %v955_v6 = vadd.f32 %v3303_v26, %v746_v0  ;;  %v543_v14 = vunpack.c.l.bf16 %v354_v20  ;;  %v958_v31 = vadd.f32 %v3303_v26, %v749_v5  ;;  %v709_v38 = vmul.f32 %v3294_v22, %v500_v8  ;;  %v358_v0 = vld [vmem:[%s3271_s10 + $0x2f0] ss:$12 sps:$4 sm:$0xff]   ;;  %s2849_s10 = sshll.u32 %s4543_s4, 2 }
 0x13e   : > { %v1492_v18 = vsel %vm1107_vm13, %v914_v9, %v1300_v3  ;;  %v546_v46 = vunpack.c.h.bf16 %v354_v20  ;;  %v712_v25 = vmul.f32 %v3294_v22, %v503_v11  ;;  %v499_v36 = vunpack.c.l.bf16 %v4273_v19  ;;  %s4352_s22 = scalar_lea.vmem %s4541_s5, %s2849_s10 }
 0x13f   : > { %v1615_v7 = vpack.c.bf16 %v1492_v18, %v1489_v13  ;;  %vm1148_vm14 = vcmp.ge.f32.partialorder %v955_v6, 0.0  ;;  %v1341_v15 = vmul.f32 %v3333_v44, %v955_v6  ;;  %vm1151_vm0 = vcmp.ge.f32.partialorder %v958_v31, 0.0 }
 0x140   : > { %v1344_v45 = vmul.f32 %v3333_v44, %v958_v31  ;;  %v918_v32 = vadd.f32 %v3298_v24, %v709_v38  ;;  %v752_v40 = vmul.f32 %v3296_v23, %v543_v14  ;;  %v921_v57 = vadd.f32 %v3298_v24, %v712_v25 }
 0x141   : > { %2095 = vmatmul.mubr.bf16.gmra.mrb[88].mxu0 %v1615_v7  ;;  %v1533_v56 = vsel %vm1148_vm14, %v955_v6, %v1341_v15  ;;  %v755_v22 = vmul.f32 %v3296_v23, %v546_v46  ;;  %v502_v19 = vunpack.c.l.bf16 %v327_v12  ;;  %v708_v13 = vmul.f32 %v3316_v34, %v499_v36 }
 0x142   : > { %v4289_v43 = vpop.f32.mrb[20].mxu0  ;;  %v4291_v47 = vpop.f32.mrb[20].mxu1  ;;  %v1536_v17 = vsel %vm1151_vm0, %v958_v31, %v1344_v45  ;;  %vm1111_vm1 = vcmp.ge.f32.partialorder %v918_v32, 0.0  ;;  %v1304_v54 = vmul.f32 %v3333_v44, %v918_v32  ;;  %v961_v9 = vadd.f32 %v3303_v26, %v752_v40 }
 0x143   : > { %v1962_v61 = vpop.f32.mrb[21].mxu0  ;;  %v2154_v37 = vpop.f32.mrb[21].mxu1  ;;  %v1638_v20 = vpack.c.bf16 %v1536_v17, %v1533_v56  ;;  %vm1114_vm2 = vcmp.ge.f32.partialorder %v921_v57, 0.0  ;;  %v1307_v41 = vmul.f32 %v3333_v44, %v921_v57  ;;  %v964_v49 = vadd.f32 %v3303_v26, %v755_v22 }
 0x144   : > { %v4298_v52 = vpop.f32.mrb[22].mxu0  ;;  %v4300_v51 = vpop.f32.mrb[22].mxu1  ;;  %v1496_v24 = vsel %vm1111_vm1, %v918_v32, %v1304_v54  ;;  %vm1154_vm3 = vcmp.ge.f32.partialorder %v961_v9, 0.0  ;;  %v1347_v3 = vmul.f32 %v3333_v44, %v961_v9  ;;  %v711_v14 = vmul.f32 %v3316_v34, %v502_v19 }
 0x145   : > { %v1965_v42 = vpop.f32.mrb[23].mxu0  ;;  %v2157_v55 = vpop.f32.mrb[23].mxu1  ;;  %3125 = vmatmul.mubr.msk.bf16.gmra.mrb[88].mxu1 %vm1789_vm15, %v1638_v20  ;;  %v1499_v5 = vsel %vm1114_vm2, %v921_v57, %v1307_v41  ;;  %vm1157_vm4 = vcmp.ge.f32.partialorder %v964_v49, 0.0  ;;  %v1350_v8 = vmul.f32 %v3333_v44, %v964_v49  ;;  %v549_v18 = vunpack.c.l.bf16 %v358_v0 }
 0x146   : > { %v1619_v6 = vpack.c.bf16 %v1499_v5, %v1496_v24  ;;  %v1539_v11 = vsel %vm1154_vm3, %v961_v9, %v1347_v3  ;;  %v917_v46 = vadd.f32 %v3318_v35, %v708_v13  ;;  %v552_v7 = vunpack.c.h.bf16 %v358_v0 }
 0x147   : > { %v1542_v38 = vsel %vm1157_vm4, %v964_v49, %v1350_v8  ;;  %v920_v61 = vadd.f32 %v3318_v35, %v711_v14  ;;  %v758_v37 = vmul.f32 %v3296_v23, %v549_v18 }
 0x148   : > { %2102 = vmatprep.mubr.bf16.mxu0 %v1619_v6  ;;  %v1641_v25 = vpack.c.bf16 %v1542_v38, %v1539_v11  ;;  %vm1110_vm5 = vcmp.ge.f32.partialorder %v917_v46, 0.0  ;;  %v1303_v34 = vmul.f32 %v3333_v44, %v917_v46  ;;  %v761_v40 = vmul.f32 %v3296_v23, %v552_v7 }
 0x149   : > { %vm1113_vm6 = vcmp.ge.f32.partialorder %v920_v61, 0.0  ;;  %v1306_v22 = vmul.f32 %v3333_v44, %v920_v61  ;;  %v967_v35 = vadd.f32 %v3303_v26, %v758_v37 }
 0x14a   : > { %v4315_v31 = vpop.f32.mrb[24].mxu0  ;;  %v4318_v12 = vpop.f32.mrb[24].mxu1  ;;  %3128 = vmatprep.mubr.msk.bf16.mxu1 %vm1789_vm15, %v1641_v25  ;;  %v1495_v42 = vsel %vm1110_vm5, %v917_v46, %v1303_v34  ;;  %v970_v55 = vadd.f32 %v3303_v26, %v761_v40 }
 0x14b   : > { %v1970_v15 = vpop.f32.mrb[25].mxu0  ;;  %v2162_v45 = vpop.f32.mrb[25].mxu1  ;;  %v1498_v17 = vsel %vm1113_vm6, %v920_v61, %v1306_v22  ;;  %vm1160_vm7 = vcmp.ge.f32.partialorder %v967_v35, 0.0  ;;  %v1353_v54 = vmul.f32 %v3333_v44, %v967_v35 }
 0x14c   : > { %v4322_v32 = vpop.f32.mrb[26].mxu0  ;;  %v4326_v56 = vpop.f32.mrb[26].mxu1  ;;  %v1618_v9 = vpack.c.bf16 %v1498_v17, %v1495_v42  ;;  %vm1163_vm8 = vcmp.ge.f32.partialorder %v970_v55, 0.0  ;;  %v1356_v23 = vmul.f32 %v3333_v44, %v970_v55 }
 0x14d   : > { %v1973_v57 = vpop.f32.mrb[27].mxu0  ;;  %v2165_v36 = vpop.f32.mrb[27].mxu1  ;;  %v1545_v20 = vsel %vm1160_vm7, %v967_v35, %v1353_v54 }
 0x14e   : > { %2103 = vmatmul.mubr.bf16.gmra.mrb[92].mxu0 %v1618_v9  ;;  %v1548_v41 = vsel %vm1163_vm8, %v970_v55, %v1356_v23 }
 0x14f   : > { %v1644_v49 = vpack.c.bf16 %v1548_v41, %v1545_v20 }
 0x151   : > { %3129 = vmatmul.mubr.msk.bf16.gmra.mrb[92].mxu1 %vm1789_vm15, %v1644_v49  ;;  %vm2720_vm15 = vcmask 519168  }
 0x152   : > { %v4334_v0 = vpop.f32.mrb[28].mxu0 }
 0x153   : > { %v1978_v24 = vpop.f32.mrb[29].mxu0 }
 0x154   : > { %v4337_v3 = vpop.f32.mrb[30].mxu0  ;;  %v4339_v19 = vpop.f32.mrb[28].mxu1 }
 0x155   : > { %v1981_v26 = vpop.f32.mrb[31].mxu0  ;;  %v2170_v5 = vpop.f32.mrb[29].mxu1 }
 0x156   : > { %v4341_v8 = vpop.f32.mrb[30].mxu1 }
 0x157   : > { %v2173_v13 = vpop.f32.mrb[31].mxu1 }
 0x15e   : > { %v4343_v44 = vpop.f32.mrb[32].mxu0 }
 0x15f   : > { %v1986_v6 = vpop.f32.mrb[33].mxu0 }
 0x160   : > { %v4346_v11 = vpop.f32.mrb[34].mxu0 }
 0x161   : > { %v1989_v18 = vpop.f32.mrb[35].mxu0 }
 0x162   : > { %v3070_v14 = vpop.f32.mrb[32].mxu1 }
 0x163   : > { %v2218_v38 = vadd.f32 %v3070_v14, %v4177_v62  ;;  %v2209_v46 = vpop.f32.mrb[33].mxu1 }
 0x164   : > { %v2210_v7 = vadd.f32 %v2209_v46, %v4150_v2  ;;  %v3071_v15 = vpop.f32.mrb[34].mxu1 }
 0x165   : > { %v2968_v25 = vpack.c.bf16 %v2218_v38, %v2218_v38  ;;  %v2221_v61 = vadd.f32 %v3071_v15, %v4187_v28  ;;  %v2212_v37 = vpop.f32.mrb[35].mxu1 }
 0x166   : > { %v2966_v45 = vpack.c.bf16 %v2210_v7, %v2210_v7  ;;  %v2213_v62 = vadd.f32 %v2212_v37, %v4156_v16 }
 0x167   : > { %2723 = vst.msk [vmem:[%s4352_s22 + $0x8] sm:$0xf] %vm2720_vm15, %v2968_v25  ;;  %v2969_v34 = vpack.c.bf16 %v2221_v61, %v2221_v61 }
 0x168   : > { %2721 = vst.msk [vmem:[%s4352_s22] sm:$0xf] %vm2720_vm15, %v2966_v45  ;;  %v2967_v40 = vpack.c.bf16 %v2213_v62, %v2213_v62 }
 0x169   : > { %2724 = vst.msk [vmem:[%s4352_s22 + $0xc] sm:$0xf] %vm2720_vm15, %v2969_v34 }
 0x16a   : > { %2722 = vst.msk [vmem:[%s4352_s22 + $0x4] sm:$0xf] %vm2720_vm15, %v2967_v40 }
 0x16b   : > { %v4365_v2 = vpop.f32.mrb[36].mxu0 }
 0x16c   : > { %v1994_v57 = vpop.f32.mrb[37].mxu0 }
 0x16d   : > { %v4367_v28 = vpop.f32.mrb[38].mxu0 }
 0x16e   : > { %v3074_v22 = vpop.f32.mrb[36].mxu1  ;;  %v1997_v16 = vpop.f32.mrb[39].mxu0 }
 0x16f   : > { %v2234_v35 = vadd.f32 %v3074_v22, %v4231_v39  ;;  %v2225_v36 = vpop.f32.mrb[37].mxu1 }
 0x170   : > { %v2226_v42 = vadd.f32 %v2225_v36, %v4201_v21  ;;  %v3075_v55 = vpop.f32.mrb[38].mxu1 }
 0x171   : > { %v2972_v17 = vpack.c.bf16 %v2234_v35, %v2234_v35  ;;  %v2237_v54 = vadd.f32 %v3075_v55, %v4237_v59  ;;  %v2228_v9 = vpop.f32.mrb[39].mxu1 }
 0x172   : > { %v2970_v23 = vpack.c.bf16 %v2226_v42, %v2226_v42  ;;  %v2229_v20 = vadd.f32 %v2228_v9, %v4212_v1 }
 0x173   : > { %2727 = vst.msk [vmem:[%s4352_s22 + $0x18] sm:$0xf] %vm2720_vm15, %v2972_v17  ;;  %v2973_v41 = vpack.c.bf16 %v2237_v54, %v2237_v54 }
 0x174   : > { %2725 = vst.msk [vmem:[%s4352_s22 + $0x10] sm:$0xf] %vm2720_vm15, %v2970_v23  ;;  %v2971_v49 = vpack.c.bf16 %v2229_v20, %v2229_v20 }
 0x175   : > { %2728 = vst.msk [vmem:[%s4352_s22 + $0x1c] sm:$0xf] %vm2720_vm15, %v2973_v41 }
 0x176   : > { %2726 = vst.msk [vmem:[%s4352_s22 + $0x14] sm:$0xf] %vm2720_vm15, %v2971_v49 }
 0x177   : > { %v4381_v21 = vpop.f32.mrb[40].mxu0 }
 0x178   : > { %v2002_v39 = vpop.f32.mrb[41].mxu0 }
 0x179   : > { %v4383_v59 = vpop.f32.mrb[42].mxu0 }
 0x17a   : > { %v2005_v24 = vpop.f32.mrb[43].mxu0  ;;  %v3078_v1 = vpop.f32.mrb[40].mxu1 }
 0x17b   : > { %v2250_v26 = vadd.f32 %v3078_v1, %v4289_v43  ;;  %v2241_v5 = vpop.f32.mrb[41].mxu1 }
 0x17c   : > { %v2242_v13 = vadd.f32 %v2241_v5, %v4257_v58  ;;  %v3079_v6 = vpop.f32.mrb[42].mxu1 }
 0x17d   : > { %v2976_v14 = vpack.c.bf16 %v2250_v26, %v2250_v26  ;;  %v2253_v18 = vadd.f32 %v3079_v6, %v4298_v52  ;;  %v2244_v38 = vpop.f32.mrb[43].mxu1 }
 0x17e   : > { %v2974_v46 = vpack.c.bf16 %v2242_v13, %v2242_v13  ;;  %v2245_v7 = vadd.f32 %v2244_v38, %v4265_v50 }
 0x17f   : > { %2731 = vst.msk [vmem:[%s4352_s22 + $0x28] sm:$0xf] %vm2720_vm15, %v2976_v14  ;;  %v2977_v15 = vpack.c.bf16 %v2253_v18, %v2253_v18 }
 0x180   : > { %2729 = vst.msk [vmem:[%s4352_s22 + $0x20] sm:$0xf] %vm2720_vm15, %v2974_v46  ;;  %v2975_v25 = vpack.c.bf16 %v2245_v7, %v2245_v7 }
 0x181   : > { %2732 = vst.msk [vmem:[%s4352_s22 + $0x2c] sm:$0xf] %vm2720_vm15, %v2977_v15 }
 0x182   : > { %2730 = vst.msk [vmem:[%s4352_s22 + $0x24] sm:$0xf] %vm2720_vm15, %v2975_v25 }
 0x183   : > { %v2008_v58 = vpop.f32.mrb[44].mxu0 }
 0x184   : > { %v2010_v43 = vpop.f32.mrb[45].mxu0 }
 0x185   : > { %v2011_v61 = vpop.f32.mrb[46].mxu0 }
 0x186   : > { %v2013_v52 = vpop.f32.mrb[47].mxu0 }
 0x18a   : > { %v3082_v37 = vpop.f32.mrb[44].mxu1 }
 0x18b   : > { %v2266_v50 = vadd.f32 %v3082_v37, %v4334_v0  ;;  %v2257_v45 = vpop.f32.mrb[45].mxu1 }
 0x18c   : > { %v2258_v62 = vadd.f32 %v2257_v45, %v4315_v31  ;;  %v3083_v34 = vpop.f32.mrb[46].mxu1 }
 0x18d   : > { %v2980_v40 = vpack.c.bf16 %v2266_v50, %v2266_v50  ;;  %v2269_v57 = vadd.f32 %v3083_v34, %v4337_v3  ;;  %v2260_v22 = vpop.f32.mrb[47].mxu1 }
 0x18e   : > { %v2978_v16 = vpack.c.bf16 %v2258_v62, %v2258_v62  ;;  %v2261_v35 = vadd.f32 %v2260_v22, %v4322_v32 }
 0x18f   : > { %2735 = vst.msk [vmem:[%s4352_s22 + $0x38] sm:$0xf] %vm2720_vm15, %v2980_v40  ;;  %v2981_v36 = vpack.c.bf16 %v2269_v57, %v2269_v57 }
 0x190   : > { %2733 = vst.msk [vmem:[%s4352_s22 + $0x30] sm:$0xf] %vm2720_vm15, %v2978_v16  ;;  %v2979_v42 = vpack.c.bf16 %v2261_v35, %v2261_v35 }
 0x191   : > { %2736 = vst.msk [vmem:[%s4352_s22 + $0x3c] sm:$0xf] %vm2720_vm15, %v2981_v36 }
 0x192   : > { %2734 = vst.msk [vmem:[%s4352_s22 + $0x34] sm:$0xf] %vm2720_vm15, %v2979_v42  ;;  %v2016_v31 = vpop.f32.mrb[48].mxu0 }
 0x193   : > { %v2018_v0 = vpop.f32.mrb[49].mxu0 }
 0x194   : > { %v2019_v55 = vpop.f32.mrb[50].mxu0 }
 0x195   : > { %v2021_v3 = vpop.f32.mrb[51].mxu0 }
 0x196   : > { %v3086_v17 = vpop.f32.mrb[48].mxu1 }
 0x197   : > { %v2282_v32 = vadd.f32 %v3086_v17, %v4365_v2  ;;  %v2273_v54 = vpop.f32.mrb[49].mxu1 }
 0x198   : > { %v2274_v9 = vadd.f32 %v2273_v54, %v4343_v44  ;;  %v3087_v23 = vpop.f32.mrb[50].mxu1 }
 0x199   : > { %v2984_v20 = vpack.c.bf16 %v2282_v32, %v2282_v32  ;;  %v2285_v41 = vadd.f32 %v3087_v23, %v4367_v28  ;;  %v2276_v49 = vpop.f32.mrb[51].mxu1 }
 0x19a   : > { %v2982_v39 = vpack.c.bf16 %v2274_v9, %v2274_v9  ;;  %v2277_v24 = vadd.f32 %v2276_v49, %v4346_v11 }
 0x19b   : > { %2739 = vst.msk [vmem:[%s4352_s22 + $0x48] sm:$0xf] %vm2720_vm15, %v2984_v20  ;;  %v2985_v1 = vpack.c.bf16 %v2285_v41, %v2285_v41 }
 0x19c   : > { %2737 = vst.msk [vmem:[%s4352_s22 + $0x40] sm:$0xf] %vm2720_vm15, %v2982_v39  ;;  %v2983_v26 = vpack.c.bf16 %v2277_v24, %v2277_v24 }
 0x19d   : > { %2740 = vst.msk [vmem:[%s4352_s22 + $0x4c] sm:$0xf] %vm2720_vm15, %v2985_v1 }
 0x19e   : > { %2738 = vst.msk [vmem:[%s4352_s22 + $0x44] sm:$0xf] %vm2720_vm15, %v2983_v26 }
 0x19f   : > { %v2024_v44 = vpop.f32.mrb[52].mxu0 }
 0x1a0   : > { %v2026_v2 = vpop.f32.mrb[53].mxu0 }
 0x1a1   : > { %v2027_v5 = vpop.f32.mrb[54].mxu0 }
 0x1a2   : > { %v2029_v13 = vpop.f32.mrb[55].mxu0 }
 0x1a3   : > { %v3090_v28 = vpop.f32.mrb[52].mxu1 }
 0x1a4   : > { %v2298_v11 = vadd.f32 %v3090_v28, %v2008_v58  ;;  %v2289_v6 = vpop.f32.mrb[53].mxu1 }
 0x1a5   : > { %v2290_v14 = vadd.f32 %v2289_v6, %v4381_v21  ;;  %v3091_v18 = vpop.f32.mrb[54].mxu1 }
 0x1a6   : > { %v2988_v38 = vpack.c.bf16 %v2298_v11, %v2298_v11  ;;  %v2301_v46 = vadd.f32 %v3091_v18, %v2011_v61  ;;  %v2292_v7 = vpop.f32.mrb[55].mxu1 }
 0x1a7   : > { %v2986_v15 = vpack.c.bf16 %v2290_v14, %v2290_v14  ;;  %v2293_v25 = vadd.f32 %v2292_v7, %v4383_v59 }
 0x1a8   : > { %2743 = vst.msk [vmem:[%s4352_s22 + $0x58] sm:$0xf] %vm2720_vm15, %v2988_v38  ;;  %v2989_v43 = vpack.c.bf16 %v2301_v46, %v2301_v46 }
 0x1a9   : > { %2741 = vst.msk [vmem:[%s4352_s22 + $0x50] sm:$0xf] %vm2720_vm15, %v2986_v15  ;;  %v2987_v52 = vpack.c.bf16 %v2293_v25, %v2293_v25 }
 0x1aa   : > { %2744 = vst.msk [vmem:[%s4352_s22 + $0x5c] sm:$0xf] %vm2720_vm15, %v2989_v43 }
 0x1ab   : > { %2742 = vst.msk [vmem:[%s4352_s22 + $0x54] sm:$0xf] %vm2720_vm15, %v2987_v52 }
 0x1ac   : > { %v2032_v58 = vpop.f32.mrb[56].mxu0 }
 0x1ad   : > { %v2034_v21 = vpop.f32.mrb[57].mxu0 }
 0x1ae   : > { %v2035_v37 = vpop.f32.mrb[58].mxu0 }
 0x1af   : > { %v3094_v61 = vpop.f32.mrb[56].mxu1  ;;  %v2037_v50 = vpop.f32.mrb[59].mxu0 }
 0x1b0   : > { %v2314_v59 = vadd.f32 %v3094_v61, %v2024_v44  ;;  %v2305_v45 = vpop.f32.mrb[57].mxu1 }
 0x1b1   : > { %v2306_v62 = vadd.f32 %v2305_v45, %v2016_v31  ;;  %v3095_v34 = vpop.f32.mrb[58].mxu1 }
 0x1b2   : > { %v2992_v40 = vpack.c.bf16 %v2314_v59, %v2314_v59  ;;  %v2317_v57 = vadd.f32 %v3095_v34, %v2027_v5  ;;  %v2308_v22 = vpop.f32.mrb[59].mxu1 }
 0x1b3   : > { %v2990_v16 = vpack.c.bf16 %v2306_v62, %v2306_v62  ;;  %v2309_v35 = vadd.f32 %v2308_v22, %v2019_v55 }
 0x1b4   : > { %2747 = vst.msk [vmem:[%s4352_s22 + $0x68] sm:$0xf] %vm2720_vm15, %v2992_v40  ;;  %v2993_v36 = vpack.c.bf16 %v2317_v57, %v2317_v57 }
 0x1b5   : > { %2745 = vst.msk [vmem:[%s4352_s22 + $0x60] sm:$0xf] %vm2720_vm15, %v2990_v16  ;;  %v2991_v42 = vpack.c.bf16 %v2309_v35, %v2309_v35 }
 0x1b6   : > { %2748 = vst.msk [vmem:[%s4352_s22 + $0x6c] sm:$0xf] %vm2720_vm15, %v2993_v36 }
 0x1b7   : > { %2746 = vst.msk [vmem:[%s4352_s22 + $0x64] sm:$0xf] %vm2720_vm15, %v2991_v42 }
 0x1b8   : > { %v2040_v0 = vpop.f32.mrb[60].mxu0 }
 0x1b9   : > { %v2042_v31 = vpop.f32.mrb[61].mxu0 }
 0x1ba   : > { %v2043_v3 = vpop.f32.mrb[62].mxu0 }
 0x1bb   : > { %v2045_v17 = vpop.f32.mrb[63].mxu0  ;;  %v3098_v32 = vpop.f32.mrb[60].mxu1 }
 0x1bc   : > { %v2330_v55 = vadd.f32 %v3098_v32, %v2040_v0  ;;  %v2321_v54 = vpop.f32.mrb[61].mxu1 }
 0x1bd   : > { %v2322_v9 = vadd.f32 %v2321_v54, %v2032_v58  ;;  %v3099_v23 = vpop.f32.mrb[62].mxu1 }
 0x1be   : > { %v2996_v20 = vpack.c.bf16 %v2330_v55, %v2330_v55  ;;  %v2333_v41 = vadd.f32 %v3099_v23, %v2043_v3  ;;  %v2324_v49 = vpop.f32.mrb[63].mxu1 }
 0x1bf   : > { %v2994_v39 = vpack.c.bf16 %v2322_v9, %v2322_v9  ;;  %v2325_v24 = vadd.f32 %v2324_v49, %v2035_v37 }
 0x1c0   : > { %2751 = vst.msk [vmem:[%s4352_s22 + $0x78] sm:$0xf] %vm2720_vm15, %v2996_v20  ;;  %v2997_v1 = vpack.c.bf16 %v2333_v41, %v2333_v41 }
 0x1c1   : > { %2749 = vst.msk [vmem:[%s4352_s22 + $0x70] sm:$0xf] %vm2720_vm15, %v2994_v39  ;;  %v2995_v26 = vpack.c.bf16 %v2325_v24, %v2325_v24 }
 0x1c2   : > { %2752 = vst.msk [vmem:[%s4352_s22 + $0x7c] sm:$0xf] %vm2720_vm15, %v2997_v1 }
 0x1c3   : > { %2750 = vst.msk [vmem:[%s4352_s22 + $0x74] sm:$0xf] %vm2720_vm15, %v2995_v26 }
 0x1c4   : > { %v2048_v44 = vpop.f32.mrb[64].mxu0 }
 0x1c5   : > { %v2050_v2 = vpop.f32.mrb[65].mxu0 }
 0x1c6   : > { %v2051_v5 = vpop.f32.mrb[66].mxu0 }
 0x1c7   : > { %v2053_v28 = vpop.f32.mrb[67].mxu0 }
 0x1cb   : > { %v3102_v13 = vpop.f32.mrb[64].mxu1 }
 0x1cc   : > { %v2337_v11 = vpop.f32.mrb[65].mxu1 }
 0x1cd   : > { %v2338_v6 = vadd.f32 %v2337_v11, %v2048_v44  ;;  %v3103_v14 = vpop.f32.mrb[66].mxu1 }
 0x1ce   : > { %v2340_v18 = vpop.f32.mrb[67].mxu1 }
 0x1cf   : > { %v2998_v38 = vpack.c.bf16 %v2338_v6, %v2338_v6  ;;  %v2341_v46 = vadd.f32 %v2340_v18, %v2051_v5 }
 0x1d1   : > { %2753 = vst.msk [vmem:[%s4352_s22 + $0x80] sm:$0xf] %vm2720_vm15, %v2998_v38  ;;  %v2999_v7 = vpack.c.bf16 %v2341_v46, %v2341_v46 }
 0x1d3   : > { %2754 = vst.msk [vmem:[%s4352_s22 + $0x84] sm:$0xf] %vm2720_vm15, %v2999_v7  ;;  %v2056_v15 = vpop.f32.mrb[68].mxu0 }
 0x1d4   : > { %v2346_v25 = vadd.f32 %v3102_v13, %v2056_v15  ;;  %v2058_v43 = vpop.f32.mrb[69].mxu0 }
 0x1d5   : > { %v2059_v52 = vpop.f32.mrb[70].mxu0 }
 0x1d6   : > { %v3000_v58 = vpack.c.bf16 %v2346_v25, %v2346_v25  ;;  %v2349_v21 = vadd.f32 %v3103_v14, %v2059_v52  ;;  %v2061_v37 = vpop.f32.mrb[71].mxu0 }
 0x1d7   : > { %v3106_v61 = vpop.f32.mrb[68].mxu1 }
 0x1d8   : > { %2755 = vst.msk [vmem:[%s4352_s22 + $0x88] sm:$0xf] %vm2720_vm15, %v3000_v58  ;;  %v2353_v50 = vpop.f32.mrb[69].mxu1  ;;  %v3001_v59 = vpack.c.bf16 %v2349_v21, %v2349_v21 }
 0x1d9   : > { %v3107_v45 = vpop.f32.mrb[70].mxu1 }
 0x1da   : > { %2756 = vst.msk [vmem:[%s4352_s22 + $0x8c] sm:$0xf] %vm2720_vm15, %v3001_v59  ;;  %v2356_v62 = vpop.f32.mrb[71].mxu1 }
 0x1e0   : > { %v2064_v34 = vpop.f32.mrb[72].mxu0 }
 0x1e1   : > { %v2354_v40 = vadd.f32 %v2353_v50, %v2064_v34  ;;  %v2066_v57 = vpop.f32.mrb[73].mxu0 }
 0x1e2   : > { %v2067_v22 = vpop.f32.mrb[74].mxu0 }
 0x1e3   : > { %v3002_v16 = vpack.c.bf16 %v2354_v40, %v2354_v40  ;;  %v2357_v36 = vadd.f32 %v2356_v62, %v2067_v22  ;;  %v2069_v42 = vpop.f32.mrb[75].mxu0 }
 0x1e4   : > { %v3110_v35 = vpop.f32.mrb[72].mxu1 }
 0x1e5   : > { %v2369_v0 = vpop.f32.mrb[73].mxu1  ;;  %2757 = vst.msk [vmem:[%s4352_s22 + $0x90] sm:$0xf] %vm2720_vm15, %v3002_v16  ;;  %v3003_v31 = vpack.c.bf16 %v2357_v36, %v2357_v36 }
 0x1e6   : > { %v3111_v3 = vpop.f32.mrb[74].mxu1 }
 0x1e7   : > { %v2372_v17 = vpop.f32.mrb[75].mxu1  ;;  %2758 = vst.msk [vmem:[%s4352_s22 + $0x94] sm:$0xf] %vm2720_vm15, %v3003_v31 }
 0x1ed   : > { %v2072_v32 = vpop.f32.mrb[76].mxu0 }
 0x1ee   : > { %v2362_v55 = vadd.f32 %v3106_v61, %v2072_v32  ;;  %v2074_v54 = vpop.f32.mrb[77].mxu0 }
 0x1ef   : > { %v2075_v9 = vpop.f32.mrb[78].mxu0 }
 0x1f0   : > { %v3004_v23 = vpack.c.bf16 %v2362_v55, %v2362_v55  ;;  %v4459_v20 = vpop.f32.mrb[76].mxu1  ;;  %v2365_v41 = vadd.f32 %v3107_v45, %v2075_v9  ;;  %v2077_v49 = vpop.f32.mrb[79].mxu0 }
 0x1f1   : > { %v2385_v39 = vpop.f32.mrb[77].mxu1 }
 0x1f2   : > { %2759 = vst.msk [vmem:[%s4352_s22 + $0x98] sm:$0xf] %vm2720_vm15, %v3004_v23  ;;  %v3005_v24 = vpack.c.bf16 %v2365_v41, %v2365_v41  ;;  %v4463_v1 = vpop.f32.mrb[78].mxu1 }
 0x1f3   : > { %v2388_v26 = vpop.f32.mrb[79].mxu1 }
 0x1f4   : > { %2760 = vst.msk [vmem:[%s4352_s22 + $0x9c] sm:$0xf] %vm2720_vm15, %v3005_v24 }
 0x1f9   : > { %v2080_v44 = vpop.f32.mrb[80].mxu0 }
 0x1fa   : > { %v2370_v2 = vadd.f32 %v2369_v0, %v2080_v44  ;;  %v2082_v5 = vpop.f32.mrb[81].mxu0 }
 0x1fb   : > { %v2083_v28 = vpop.f32.mrb[82].mxu0 }
 0x1fc   : > { %v3006_v13 = vpack.c.bf16 %v2370_v2, %v2370_v2  ;;  %v2373_v11 = vadd.f32 %v2372_v17, %v2083_v28  ;;  %v2085_v6 = vpop.f32.mrb[83].mxu0  ;;  %v3118_v14 = vpop.f32.mrb[80].mxu1 }
 0x1fd   : > { %v2410_v18 = vadd.f32 %v3118_v14, %v4179_v27  ;;  %v2401_v38 = vpop.f32.mrb[81].mxu1 }
 0x1fe   : > { %2761 = vst.msk [vmem:[%s4352_s22 + $0xa0] sm:$0xf] %vm2720_vm15, %v3006_v13  ;;  %v3007_v46 = vpack.c.bf16 %v2373_v11, %v2373_v11  ;;  %v2402_v7 = vadd.f32 %v2401_v38, %v4152_v63  ;;  %v3119_v15 = vpop.f32.mrb[82].mxu1 }
 0x1ff   : > { %v3016_v25 = vpack.c.bf16 %v2410_v18, %v2410_v18  ;;  %v2413_v43 = vadd.f32 %v3119_v15, %v4189_v30  ;;  %v2404_v52 = vpop.f32.mrb[83].mxu1 }
 0x200   : > { %2762 = vst.msk [vmem:[%s4352_s22 + $0xa4] sm:$0xf] %vm2720_vm15, %v3007_v46  ;;  %v3014_v58 = vpack.c.bf16 %v2402_v7, %v2402_v7  ;;  %v2405_v21 = vadd.f32 %v2404_v52, %v4158_v29 }
 0x201   : > { %2771 = vst.msk [vmem:[%s4352_s22 + $0xc8] sm:$0xf] %vm2720_vm15, %v3016_v25  ;;  %v3017_v27 = vpack.c.bf16 %v2413_v43, %v2413_v43 }
 0x202   : > { %2769 = vst.msk [vmem:[%s4352_s22 + $0xc0] sm:$0xf] %vm2720_vm15, %v3014_v58  ;;  %v3015_v37 = vpack.c.bf16 %v2405_v21, %v2405_v21 }
 0x203   : > { %2772 = vst.msk [vmem:[%s4352_s22 + $0xcc] sm:$0xf] %vm2720_vm15, %v3017_v27 }
 0x204   : > { %2770 = vst.msk [vmem:[%s4352_s22 + $0xc4] sm:$0xf] %vm2720_vm15, %v3015_v37 }
 0x205   : > { %v2088_v63 = vpop.f32.mrb[84].mxu0 }
 0x206   : > { %v2378_v61 = vadd.f32 %v3110_v35, %v2088_v63  ;;  %v2090_v50 = vpop.f32.mrb[85].mxu0 }
 0x207   : > { %v2091_v30 = vpop.f32.mrb[86].mxu0 }
 0x208   : > { %v3008_v59 = vpack.c.bf16 %v2378_v61, %v2378_v61  ;;  %v2381_v45 = vadd.f32 %v3111_v3, %v2091_v30  ;;  %v2093_v62 = vpop.f32.mrb[87].mxu0 }
 0x20a   : > { %2763 = vst.msk [vmem:[%s4352_s22 + $0xa8] sm:$0xf] %vm2720_vm15, %v3008_v59  ;;  %v3009_v29 = vpack.c.bf16 %v2381_v45, %v2381_v45 }
 0x20c   : > { %v3122_v34 = vpop.f32.mrb[84].mxu1  ;;  %2764 = vst.msk [vmem:[%s4352_s22 + $0xac] sm:$0xf] %vm2720_vm15, %v3009_v29 }
 0x20d   : > { %v2426_v40 = vadd.f32 %v3122_v34, %v4233_v10  ;;  %v2417_v57 = vpop.f32.mrb[85].mxu1 }
 0x20e   : > { %v2418_v22 = vadd.f32 %v2417_v57, %v4203_v53  ;;  %v3123_v16 = vpop.f32.mrb[86].mxu1 }
 0x20f   : > { %v3020_v35 = vpack.c.bf16 %v2426_v40, %v2426_v40  ;;  %v2429_v36 = vadd.f32 %v3123_v16, %v4239_v48  ;;  %v2420_v42 = vpop.f32.mrb[87].mxu1 }
 0x210   : > { %v3018_v0 = vpack.c.bf16 %v2418_v22, %v2418_v22  ;;  %v2421_v31 = vadd.f32 %v2420_v42, %v4214_v60 }
 0x211   : > { %2775 = vst.msk [vmem:[%s4352_s22 + $0xd8] sm:$0xf] %vm2720_vm15, %v3020_v35  ;;  %v3021_v3 = vpack.c.bf16 %v2429_v36, %v2429_v36 }
 0x212   : > { %2773 = vst.msk [vmem:[%s4352_s22 + $0xd0] sm:$0xf] %vm2720_vm15, %v3018_v0  ;;  %v3019_v17 = vpack.c.bf16 %v2421_v31, %v2421_v31 }
 0x213   : > { %2776 = vst.msk [vmem:[%s4352_s22 + $0xdc] sm:$0xf] %vm2720_vm15, %v3021_v3 }
 0x214   : > { %2774 = vst.msk [vmem:[%s4352_s22 + $0xd4] sm:$0xf] %vm2720_vm15, %v3019_v17  ;;  %v2096_v53 = vpop.f32.mrb[88].mxu0 }
 0x215   : > { %v2386_v10 = vadd.f32 %v2385_v39, %v2096_v53  ;;  %v2098_v32 = vpop.f32.mrb[89].mxu0 }
 0x216   : > { %v2099_v48 = vpop.f32.mrb[90].mxu0 }
 0x217   : > { %v3010_v55 = vpack.c.bf16 %v2386_v10, %v2386_v10  ;;  %v2389_v54 = vadd.f32 %v2388_v26, %v2099_v48  ;;  %v2101_v9 = vpop.f32.mrb[91].mxu0 }
 0x218   : > { %v3126_v60 = vpop.f32.mrb[88].mxu1 }
 0x219   : > { %2765 = vst.msk [vmem:[%s4352_s22 + $0xb0] sm:$0xf] %vm2720_vm15, %v3010_v55  ;;  %v2442_v23 = vadd.f32 %v3126_v60, %v4291_v47  ;;  %v2433_v41 = vpop.f32.mrb[89].mxu1  ;;  %v3011_v49 = vpack.c.bf16 %v2389_v54, %v2389_v54 }
 0x21a   : > { %v2434_v24 = vadd.f32 %v2433_v41, %v4259_v4  ;;  %v3127_v44 = vpop.f32.mrb[90].mxu1 }
 0x21b   : > { %v3024_v39 = vpack.c.bf16 %v2442_v23, %v2442_v23  ;;  %2766 = vst.msk [vmem:[%s4352_s22 + $0xb4] sm:$0xf] %vm2720_vm15, %v3011_v49  ;;  %v2445_v2 = vadd.f32 %v3127_v44, %v4300_v51  ;;  %v2436_v26 = vpop.f32.mrb[91].mxu1 }
 0x21c   : > { %v3022_v5 = vpack.c.bf16 %v2434_v24, %v2434_v24  ;;  %v2437_v28 = vadd.f32 %v2436_v26, %v4267_v33 }
 0x21d   : > { %2779 = vst.msk [vmem:[%s4352_s22 + $0xe8] sm:$0xf] %vm2720_vm15, %v3024_v39  ;;  %v3025_v13 = vpack.c.bf16 %v2445_v2, %v2445_v2 }
 0x21e   : > { %2777 = vst.msk [vmem:[%s4352_s22 + $0xe0] sm:$0xf] %vm2720_vm15, %v3022_v5  ;;  %v3023_v47 = vpack.c.bf16 %v2437_v28, %v2437_v28 }
 0x21f   : > { %2780 = vst.msk [vmem:[%s4352_s22 + $0xec] sm:$0xf] %vm2720_vm15, %v3025_v13 }
 0x220   : > { %2778 = vst.msk [vmem:[%s4352_s22 + $0xe4] sm:$0xf] %vm2720_vm15, %v3023_v47 }
 0x221   : > { %v2104_v4 = vpop.f32.mrb[92].mxu0 }
 0x222   : > { %v2394_v11 = vadd.f32 %v4459_v20, %v2104_v4  ;;  %v2106_v6 = vpop.f32.mrb[93].mxu0 }
 0x223   : > { %v2107_v51 = vpop.f32.mrb[94].mxu0 }
 0x224   : > { %v3012_v14 = vpack.c.bf16 %v2394_v11, %v2394_v11  ;;  %v3130_v33 = vpop.f32.mrb[92].mxu1  ;;  %v2397_v18 = vadd.f32 %v4463_v1, %v2107_v51  ;;  %v2109_v38 = vpop.f32.mrb[95].mxu0 }
 0x225   : > { %v2458_v46 = vadd.f32 %v3130_v33, %v4339_v19  ;;  %v2449_v7 = vpop.f32.mrb[93].mxu1 }
 0x226   : > { %2767 = vst.msk [vmem:[%s4352_s22 + $0xb8] sm:$0xf] %vm2720_vm15, %v3012_v14  ;;  %v2450_v15 = vadd.f32 %v2449_v7, %v4318_v12  ;;  %v3013_v20 = vpack.c.bf16 %v2397_v18, %v2397_v18  ;;  %v3131_v25 = vpop.f32.mrb[94].mxu1 }
 0x227   : > { %v3028_v43 = vpack.c.bf16 %v2458_v46, %v2458_v46  ;;  %v2461_v52 = vadd.f32 %v3131_v25, %v4341_v8  ;;  %v2452_v58 = vpop.f32.mrb[95].mxu1 }
 0x228   : > { %v3026_v21 = vpack.c.bf16 %v2450_v15, %v2450_v15  ;;  %2768 = vst.msk [vmem:[%s4352_s22 + $0xbc] sm:$0xf] %vm2720_vm15, %v3013_v20  ;;  %v2453_v1 = vadd.f32 %v2452_v58, %v4326_v56 }
 0x229   : > { %2783 = vst.msk [vmem:[%s4352_s22 + $0xf8] sm:$0xf] %vm2720_vm15, %v3028_v43  ;;  %v3029_v19 = vpack.c.bf16 %v2461_v52, %v2461_v52 }
 0x22a   : > { %2781 = vst.msk [vmem:[%s4352_s22 + $0xf0] sm:$0xf] %vm2720_vm15, %v3026_v21  ;;  %v3027_v27 = vpack.c.bf16 %v2453_v1, %v2453_v1 }
 0x22b   : > { %2784 = vst.msk [vmem:[%s4352_s22 + $0xfc] sm:$0xf] %vm2720_vm15, %v3029_v19 }
 0x22c   : > { %2782 = vst.msk [vmem:[%s4352_s22 + $0xf4] sm:$0xf] %vm2720_vm15, %v3027_v27 }
 0x22d PF: > { %s16_s20 = sadd.s32 1, %s3198_s20  }
 0x22e   : > { %p13_p4 = scmp.ge.s32.totalorder %s16_s20, 4  }
 0x230   :  { %15 = sbr.rel (!%p13_p4) target bundleno = 2 (0x2), region = 70 }

// kernel: tile.53
= control target key start
LH: loop header
LB: loop body
LE: loop exit
PB: predicated region body
PF: predicated region fallthrough
CT: control target
= control target key end

     0   :  { %s28_s0 = inlined_call_operand.vmem [shape: f32[64], index: 0, kind: input, shape index: {}]   ;;  %s29_s1 = inlined_call_operand.vmem [shape: f32[9,64], index: 1, kind: output, shape index: {}]  }
   0x1   :  { %v4_v0 = vld [vmem:[%s28_s0] ss:$0 sm:$0xff] }
   0x2   :  { %5 = vst [vmem:[%s29_s1] sm:$0xff] %v4_v0  ;;  %8 = vst [vmem:[%s29_s1 + $0x8] sm:$0xff] %v4_v0 }

// kernel: tile.54
= control target key start
LH: loop header
LB: loop body
LE: loop exit
PB: predicated region body
PF: predicated region fallthrough
CT: control target
= control target key end

     0   :  { %vm3_vm0 = vcmask 523264   ;;  %s51_s8 = smov 64   ;;  %vm11_vm1 = vcmask 1048064   ;;  %s83_s0 = inlined_call_operand.vmem [shape: f32[9,64], index: 0, kind: input, shape index: {}]   ;;  %s84_s1 = inlined_call_operand.vmem [shape: f32[1,576], index: 1, kind: output, shape index: {}]  }
   0x1   :  { %v45_v0 = vld [vmem:[%s83_s0 + $0x1] ss:$2 sm:$0xf]   ;;  %v2_v1 = vld [vmem:[%s83_s0] ss:$2 sm:$0x1f]  }
   0x2   :  { %9 = vrot.lane.b32.xlu0 %v45_v0, %s51_s8  ;;  %4 = vst.msk [vmem:[#allocation0] ss:$8 sm:$0xf] %vm3_vm0, %v2_v1   ;;  %6 = vst.msk [vmem:[#allocation0 + $0x1c] sm:$0x10] %vm3_vm0, %v2_v1  }
   0x9   :  { %v37_v2 = vld [vmem:[#allocation0 + $0x20] sm:$0x1] }
   0xa   :  { %49 = vst [vmem:[%s84_s1 + $0x4] sm:$0x1] %v37_v2 }
  0x74   :  { %v10_v3 = vpop.permute.xlu0 %9  }
  0x75   :  { %12 = vst.msk [vmem:[#allocation0] ss:$8 sm:$0xf] %vm11_vm1, %v10_v3  }
  0x7c   :  { %v16_v4 = vld [vmem:[#allocation0] sm:$0x1]  ;;  %v20_v5 = vld [vmem:[#allocation0 + $0x8] sm:$0x1]  ;;  %v25_v6 = vld [vmem:[#allocation0 + $0x10] sm:$0x1] }
  0x7d   :  { %18 = vst [vmem:[%s84_s1] sm:$0x1] %v16_v4  ;;  %46 = vst [vmem:[%s84_s1 + $0x1] sm:$0x1] %v20_v5  ;;  %v31_v7 = vld [vmem:[#allocation0 + $0x18] sm:$0x1] }
  0x7e   :  { %47 = vst [vmem:[%s84_s1 + $0x2] sm:$0x1] %v25_v6  ;;  %48 = vst [vmem:[%s84_s1 + $0x3] sm:$0x1] %v31_v7 }

// kernel: onet_forward.6
= control target key start
LH: loop header
LB: loop body
LE: loop exit
PB: predicated region body
PF: predicated region fallthrough
CT: control target
= control target key end

     0   :  { %v152_v22 = vlaneseq  ;;  %s2297_s1 = inlined_call_operand.vmem [shape: bf16[576,64], index: 1, kind: input, shape index: {}]   ;;  %s2298_s0 = inlined_call_operand.vmem [shape: bf16[128,576], index: 0, kind: input, shape index: {}]   ;;  %s2299_s2 = inlined_call_operand.vmem [shape: f32[1,576], index: 2, kind: input, shape index: {}]   ;;  %s2300_s4 = inlined_call_operand.<no memory space> [shape: f32[1,1], index: 4, kind: input, shape index: {}]   ;;  %s2301_s3 = inlined_call_operand.vmem [shape: f32[1,576], index: 3, kind: input, shape index: {}]   ;;  %s2302_s5 = inlined_call_operand.vmem [shape: bf16[128,64], index: 5, kind: output, shape index: {}]  }
   0x1   :  { %v1583_v0 = vld [vmem:[%s2297_s1 + $0x40] sm:$0xff]   ;;  %v1587_v4 = vld [vmem:[%s2297_s1 + $0x48] sm:$0xff]   ;;  %v1591_v8 = vld [vmem:[%s2297_s1 + $0x50] sm:$0xff]   ;;  %v1763_v40 = vstv %s2300_s4 }
   0x2   :  { %v1584_v1 = vld [vmem:[%s2297_s1 + $0xc0] sm:$0xff]   ;;  %1411 = vmatprep.subr.bf16.mxu0 %v1583_v0  ;;  %v1588_v5 = vld [vmem:[%s2297_s1 + $0xc8] sm:$0xff]   ;;  %v1592_v9 = vld [vmem:[%s2297_s1 + $0xd0] sm:$0xff]   ;;  %v1728_v27 = vshrl.u32 %v152_v22, 7 }
   0x3   :  { %v1585_v2 = vld [vmem:[%s2297_s1] sm:$0xff]   ;;  %1475 = vmatprep.subr.bf16.mxu1 %v1584_v1  ;;  %v1589_v6 = vld [vmem:[%s2297_s1 + $0x8] sm:$0xff]   ;;  %v1593_v10 = vld [vmem:[%s2297_s1 + $0x10] sm:$0xff]  }
   0x4   :  { %v1586_v3 = vld [vmem:[%s2297_s1 + $0x80] sm:$0xff]   ;;  %1412 = vmatpush3.bf16.msra.mxu0 %v1585_v2  ;;  %v1590_v7 = vld [vmem:[%s2297_s1 + $0x88] sm:$0xff]   ;;  %v1594_v11 = vld [vmem:[%s2297_s1 + $0x90] sm:$0xff]   ;;  %v158_v32 = vsub.s32 1, %v1728_v27  ;;  %v166_v34 = vsub.s32 3, %v1728_v27  ;;  %v154_v36 = vsub.s32 0, %v1728_v27 }
   0x5   :  { %1476 = vmatpush3.bf16.msra.mxu1 %v1586_v3  ;;  %1413 = vmatprep.subr.bf16.mxu0 %v1587_v4  ;;  %v1595_v12 = vld [vmem:[%s2297_s1 + $0x58] sm:$0xff]   ;;  %v1599_v16 = vld [vmem:[%s2297_s1 + $0x60] sm:$0xff]   ;;  %v1603_v20 = vld [vmem:[%s2297_s1 + $0x68] sm:$0xff]   ;;  %v162_v41 = vsub.s32 2, %v1728_v27  ;;  %v170_v42 = vsub.s32 4, %v1728_v27 }
   0x6   :  { %1477 = vmatprep.subr.bf16.mxu1 %v1588_v5  ;;  %v1596_v13 = vld [vmem:[%s2297_s1 + $0xd8] sm:$0xff]   ;;  %v1600_v17 = vld [vmem:[%s2297_s1 + $0xe0] sm:$0xff]   ;;  %v1604_v21 = vld [vmem:[%s2297_s1 + $0xe8] sm:$0xff]  }
   0x7   :  { %v1597_v14 = vld [vmem:[%s2297_s1 + $0x18] sm:$0xff]   ;;  %v1601_v18 = vld [vmem:[%s2297_s1 + $0x20] sm:$0xff]   ;;  %v1605_v23 = vld [vmem:[%s2297_s1 + $0x28] sm:$0xff]  }
   0x8   :  { %1414 = vmatpush3.bf16.msra.mxu0 %v1589_v6  ;;  %v1598_v15 = vld [vmem:[%s2297_s1 + $0x98] sm:$0xff]   ;;  %v1602_v19 = vld [vmem:[%s2297_s1 + $0xa0] sm:$0xff]   ;;  %v1606_v24 = vld [vmem:[%s2297_s1 + $0xa8] sm:$0xff]  }
   0x9   :  { %1478 = vmatpush3.bf16.msra.mxu1 %v1590_v7  ;;  %1415 = vmatprep.subr.bf16.mxu0 %v1591_v8  ;;  %v1607_v25 = vld [vmem:[%s2297_s1 + $0x70] sm:$0xff]   ;;  %v1611_v30 = vld [vmem:[%s2297_s1 + $0x78] sm:$0xff]   ;;  %v22_v37 = vld [vmem:[%s2298_s0] sm:$0xff] }
   0xa   :  { %1479 = vmatprep.subr.bf16.mxu1 %v1592_v9  ;;  %v1608_v26 = vld [vmem:[%s2297_s1 + $0xf0] sm:$0xff]   ;;  %v1612_v31 = vld [vmem:[%s2297_s1 + $0xf8] sm:$0xff]   ;;  %v150_v39 = vld [vmem:[%s2299_s2] sm:$0x1f]  ;;  %v70_v43 = vunpack.c.l.bf16 %v22_v37  ;;  %v71_v44 = vunpack.c.h.bf16 %v22_v37 }
   0xb   :  { %v1609_v28 = vld [vmem:[%s2297_s1 + $0x30] sm:$0xff]   ;;  %v1613_v33 = vld [vmem:[%s2297_s1 + $0x38] sm:$0xff]   ;;  %v1770_v47 = vld [vmem:[%s2301_s3] sm:$0x1f]  ;;  %v1778_v50 = vrot.slane %v150_v39, %v158_v32  ;;  %v1788_v57 = vrot.slane %v150_v39, %v166_v34  ;;  %v1795_v61 = vrot.slane %v150_v39, %v154_v36  ;;  %v1803_v1 = vrot.slane %v150_v39, %v162_v41 }
   0xc   :  { %1416 = vmatpush3.bf16.msra.mxu0 %v1593_v10  ;;  %v1610_v29 = vld [vmem:[%s2297_s1 + $0xb0] sm:$0xff]   ;;  %v1614_v35 = vld [vmem:[%s2297_s1 + $0xb8] sm:$0xff]   ;;  %v23_v48 = vld [vmem:[%s2298_s0 + $0x8] sm:$0xff]  ;;  %v1781_v51 = vrot.slane %v1770_v47, %v158_v32  ;;  %v1791_v58 = vrot.slane %v1770_v47, %v166_v34  ;;  %v1798_v62 = vrot.slane %v1770_v47, %v154_v36  ;;  %v1806_v2 = vrot.slane %v1770_v47, %v162_v41 }
   0xd   :  { %1480 = vmatpush3.bf16.msra.mxu1 %v1594_v11  ;;  %1417 = vmatprep.subr.bf16.mxu0 %v1595_v12  ;;  %v25_v38 = vld [vmem:[%s2298_s0 + $0x14] sm:$0xff]  ;;  %v26_v49 = vld [vmem:[%s2298_s0 + $0x1c] sm:$0xff]  ;;  %v72_v52 = vunpack.c.l.bf16 %v23_v48  ;;  %v73_v53 = vunpack.c.h.bf16 %v23_v48  ;;  %v178_v59 = vmul.f32 %v1778_v50, %v71_v44  ;;  %v177_v5 = vmul.f32 %v1795_v61, %v70_v43  ;;  %v1842_v32 = vld [vmem:[%s2298_s0 + $0x44] sm:$0xff] }
   0xe   :  { %1481 = vmatprep.subr.bf16.mxu1 %v1596_v13  ;;  %v75_v45 = vunpack.c.l.bf16 %v25_v38  ;;  %v76_v46 = vunpack.c.h.bf16 %v25_v38  ;;  %v1786_v54 = vld [vmem:[%s2297_s1 + $0x100] sm:$0xff]   ;;  %v77_v55 = vunpack.c.l.bf16 %v26_v49  ;;  %v78_v56 = vunpack.c.h.bf16 %v26_v49 }
   0xf   :  { %v180_v63 = vmul.f32 %v1788_v57, %v73_v53  ;;  %v285_v3 = vadd.f32 %v1781_v51, %v178_v59  ;;  %v179_v9 = vmul.f32 %v1803_v1, %v72_v52 }
  0x10   :  { %1418 = vmatpush3.bf16.msra.mxu0 %v1597_v14  ;;  %v183_v60 = vmul.f32 %v1778_v50, %v76_v46  ;;  %v185_v0 = vmul.f32 %v1788_v57, %v78_v56  ;;  %v182_v6 = vmul.f32 %v1795_v61, %v75_v45  ;;  %v184_v10 = vmul.f32 %v1803_v1, %v77_v55  ;;  %v1616_v46 = vld [vmem:[%s2297_s1 + $0x108] sm:$0xff]  }
  0x11   :  { %1482 = vmatpush3.bf16.msra.mxu1 %v1598_v15  ;;  %1419 = vmatprep.subr.bf16.mxu0 %v1599_v16  ;;  %v287_v7 = vadd.f32 %v1791_v58, %v180_v63  ;;  %vm366_vm0 = vcmp.ge.f32.partialorder %v285_v3, 0.0  ;;  %v447_v11 = vmul.f32 %v1763_v40, %v285_v3  ;;  %v286_v22 = vadd.f32 %v1806_v2, %v179_v9 }
  0x12   :  { %1483 = vmatprep.subr.bf16.mxu1 %v1600_v17  ;;  %v290_v4 = vadd.f32 %v1781_v51, %v183_v60  ;;  %v292_v8 = vadd.f32 %v1791_v58, %v185_v0  ;;  %v284_v17 = vadd.f32 %v1798_v62, %v177_v5  ;;  %v88_v45 = vunpack.c.h.bf16 %v1842_v32 }
  0x13   :  { %vm368_vm2 = vcmp.ge.f32.partialorder %v287_v7, 0.0  ;;  %v449_v13 = vmul.f32 %v1763_v40, %v287_v7  ;;  %v527_v15 = vsel %vm366_vm0, %v285_v3, %v447_v11  ;;  %vm367_vm6 = vcmp.ge.f32.partialorder %v286_v22, 0.0 }
  0x14   :  { %1420 = vmatpush3.bf16.msra.mxu0 %v1601_v18  ;;  %vm371_vm1 = vcmp.ge.f32.partialorder %v290_v4, 0.0  ;;  %v452_v12 = vmul.f32 %v1763_v40, %v290_v4  ;;  %vm373_vm3 = vcmp.ge.f32.partialorder %v292_v8, 0.0  ;;  %v454_v14 = vmul.f32 %v1763_v40, %v292_v8 }
  0x15   :  { %1484 = vmatpush3.bf16.msra.mxu1 %v1602_v19  ;;  %1421 = vmatprep.subr.bf16.mxu0 %v1603_v20  ;;  %v289_v18 = vadd.f32 %v1798_v62, %v182_v6  ;;  %v529_v20 = vsel %vm368_vm2, %v287_v7, %v449_v13  ;;  %vm365_vm4 = vcmp.ge.f32.partialorder %v284_v17, 0.0  ;;  %v195_v60 = vmul.f32 %v1788_v57, %v88_v45  ;;  %v1617_v7 = vld [vmem:[%s2297_s1 + $0x110] sm:$0xff]  }
  0x16   :  { %1485 = vmatprep.subr.bf16.mxu1 %v1604_v21  ;;  %v532_v16 = vsel %vm371_vm1, %v290_v4, %v452_v12  ;;  %v534_v21 = vsel %vm373_vm3, %v292_v8, %v454_v14  ;;  %v87_v14 = vunpack.c.l.bf16 %v1842_v32 }
  0x17   :  { %v607_v19 = vpack.c.bf16 %v532_v16, %v527_v15  ;;  %vm370_vm5 = vcmp.ge.f32.partialorder %v289_v18, 0.0  ;;  %v302_v8 = vadd.f32 %v1791_v58, %v195_v60  ;;  %v34_v15 = vld [vmem:[%s2298_s0 + $0x50] sm:$0xff] }
  0x18   :  { %1422 = vmatpush3.bf16.msra.mxu0 %v1605_v23  ;;  %v28_v23 = vld [vmem:[%s2298_s0 + $0x28] sm:$0xff] }
  0x19   :  { %1486 = vmatpush3.bf16.msra.mxu1 %v1606_v24  ;;  %1423 = vmatprep.subr.bf16.mxu0 %v1607_v25  ;;  %v31_v24 = vld [vmem:[%s2298_s0 + $0x3c] sm:$0xff]  ;;  %v1833_v25 = vld [vmem:[%s2298_s0 + $0x30] sm:$0xff]  ;;  %v81_v34 = vunpack.c.h.bf16 %v28_v23  ;;  %v80_v52 = vunpack.c.l.bf16 %v28_v23  ;;  %vm383_vm11 = vcmp.ge.f32.partialorder %v302_v8, 0.0 }
  0x1a   :  { %1487 = vmatprep.subr.bf16.mxu1 %v1608_v26  ;;  %v609_v26 = vpack.c.bf16 %v534_v21, %v529_v20  ;;  %991 = vmatprep.mubr.bf16.mxu0 %v607_v19  ;;  %v83_v36 = vunpack.c.h.bf16 %v1833_v25  ;;  %v85_v53 = vunpack.c.l.bf16 %v31_v24  ;;  %v82_v4 = vunpack.c.l.bf16 %v1833_v25  ;;  %v1618_v21 = vld [vmem:[%s2297_s1 + $0x118] sm:$0xff]  }
  0x1b   :  { %v188_v43 = vmul.f32 %v1778_v50, %v81_v34  ;;  %v187_v0 = vmul.f32 %v1795_v61, %v80_v52  ;;  %v91_v25 = vunpack.c.h.bf16 %v34_v15 }
  0x1c   :  { %1424 = vmatpush3.bf16.msra.mxu0 %v1609_v28  ;;  %v446_v28 = vmul.f32 %v1763_v40, %v284_v17  ;;  %1088 = vmatprep.mubr.bf16.mxu1 %v609_v26  ;;  %v190_v49 = vmul.f32 %v1788_v57, %v83_v36  ;;  %v192_v3 = vmul.f32 %v1795_v61, %v85_v53  ;;  %v35_v26 = vld [vmem:[%s2298_s0 + $0x58] sm:$0xff] }
  0x1d   :  { %1488 = vmatpush3.bf16.msra.mxu1 %v1610_v29  ;;  %1425 = vmatprep.subr.bf16.mxu0 %v1611_v30  ;;  %v451_v29 = vmul.f32 %v1763_v40, %v289_v18  ;;  %v291_v30 = vadd.f32 %v1806_v2, %v184_v10  ;;  %v295_v56 = vadd.f32 %v1781_v51, %v188_v43 }
  0x1e   :  { %1489 = vmatprep.subr.bf16.mxu1 %v1612_v31  ;;  %v448_v31 = vmul.f32 %v1763_v40, %v286_v22  ;;  %v297_v63 = vadd.f32 %v1791_v58, %v190_v49  ;;  %v294_v10 = vadd.f32 %v1798_v62, %v187_v0  ;;  %v299_v13 = vadd.f32 %v1798_v62, %v192_v3 }
  0x1f   :  { %v531_v37 = vsel %vm370_vm5, %v289_v18, %v451_v29  ;;  %vm372_vm7 = vcmp.ge.f32.partialorder %v291_v30, 0.0  ;;  %v453_v38 = vmul.f32 %v1763_v40, %v291_v30  ;;  %vm376_vm8 = vcmp.ge.f32.partialorder %v295_v56, 0.0  ;;  %v37_v18 = vld [vmem:[%s2298_s0 + $0x64] sm:$0xff] }
  0x20   :  { %1426 = vmatpush3.bf16.msra.mxu0 %v1613_v33  ;;  %v526_v33 = vsel %vm365_vm4, %v284_v17, %v446_v28  ;;  %v528_v39 = vsel %vm367_vm6, %v286_v22, %v448_v31  ;;  %v457_v5 = vmul.f32 %v1763_v40, %v295_v56  ;;  %vm378_vm10 = vcmp.ge.f32.partialorder %v297_v63, 0.0  ;;  %v38_v28 = vld [vmem:[%s2298_s0 + $0x6c] sm:$0xff] }
  0x21   :  { %1490 = vmatpush3.bf16.msra.mxu1 %v1614_v35  ;;  %1551 = vmatprep.subr.bf16.mxu0 %v1786_v54  ;;  %v86_v35 = vunpack.c.h.bf16 %v31_v24  ;;  %v606_v41 = vpack.c.bf16 %v531_v37, %v526_v33  ;;  %v533_v48 = vsel %vm372_vm7, %v291_v30, %v453_v38  ;;  %v459_v9 = vmul.f32 %v1763_v40, %v297_v63 }
  0x22   :  { %1575 = vmatprep.subr.bf16.mxu1 %v1786_v54  ;;  %v608_v55 = vpack.c.bf16 %v533_v48, %v528_v39  ;;  %v537_v11 = vsel %vm376_vm8, %v295_v56, %v457_v5  ;;  %vm375_vm12 = vcmp.ge.f32.partialorder %v294_v10, 0.0  ;;  %vm380_vm13 = vcmp.ge.f32.partialorder %v299_v13, 0.0 }
  0x23   :  { %v193_v44 = vmul.f32 %v1778_v50, %v86_v35  ;;  %992 = vmatmul.mubr.bf16.vlgmr.msra.gmra.mrb[0].mxu0 %v606_v41  ;;  %v539_v17 = vsel %vm378_vm10, %v297_v63, %v459_v9  ;;  %v456_v19 = vmul.f32 %v1763_v40, %v294_v10  ;;  %v461_v20 = vmul.f32 %v1763_v40, %v299_v13 }
  0x24   :  { %1552 = vmatpush3.bf16.msra.mxu0 %v1786_v54  ;;  %1089 = vmatmul.mubr.bf16.vlgmr.msra.gmra.mrb[0].mxu1 %v608_v55  ;;  %v189_v23 = vmul.f32 %v1803_v1, %v82_v4  ;;  %v194_v24 = vmul.f32 %v1803_v1, %v87_v14  ;;  %v96_v32 = vunpack.c.h.bf16 %v37_v18  ;;  %v198_v36 = vmul.f32 %v1778_v50, %v91_v25 }
  0x25   :  { %v300_v59 = vadd.f32 %v1781_v51, %v193_v44  ;;  %1553 = vmatprep.subr.bf16.mxu0 %v1616_v46  ;;  %1579 = vmatpush3.bf16.msra.mxu1 %v1786_v54  ;;  %v464_v54 = vmul.f32 %v1763_v40, %v302_v8  ;;  %v536_v30 = vsel %vm375_vm12, %v294_v10, %v456_v19  ;;  %v93_v38 = vunpack.c.h.bf16 %v35_v26  ;;  %v1924_v19 = vld [vmem:[%s2298_s0 + $0x80] sm:$0xff] }
  0x26   :  { %1576 = vmatprep.subr.bf16.mxu1 %v1616_v46  ;;  %v541_v31 = vsel %vm380_vm13, %v299_v13, %v461_v20  ;;  %v296_v34 = vadd.f32 %v1806_v2, %v189_v23  ;;  %v301_v35 = vadd.f32 %v1806_v2, %v194_v24  ;;  %v203_v37 = vmul.f32 %v1778_v50, %v96_v32 }
  0x27   :  { %vm381_vm9 = vcmp.ge.f32.partialorder %v300_v59, 0.0  ;;  %v462_v6 = vmul.f32 %v1763_v40, %v300_v59  ;;  %v544_v22 = vsel %vm383_vm11, %v302_v8, %v464_v54  ;;  %v611_v33 = vpack.c.bf16 %v541_v31, %v536_v30 }
  0x28   :  { %1554 = vmatpush3.bf16.msra.mxu0 %v1616_v46  ;;  %v614_v29 = vpack.c.bf16 %v544_v22, %v539_v17  ;;  %v98_v39 = vunpack.c.h.bf16 %v38_v28  ;;  %v90_v41 = vunpack.c.l.bf16 %v34_v15  ;;  %vm377_vm14 = vcmp.ge.f32.partialorder %v296_v34, 0.0 }
  0x29   :  { %v542_v12 = vsel %vm381_vm9, %v300_v59, %v462_v6  ;;  %1555 = vmatprep.subr.bf16.mxu0 %v1617_v7  ;;  %1580 = vmatpush3.bf16.msra.mxu1 %v1616_v46  ;;  %vm382_vm15 = vcmp.ge.f32.partialorder %v301_v35, 0.0  ;;  %v458_v43 = vmul.f32 %v1763_v40, %v296_v34  ;;  %v463_v44 = vmul.f32 %v1763_v40, %v301_v35 }
  0x2a   :  { %v612_v16 = vpack.c.bf16 %v542_v12, %v537_v11  ;;  %1577 = vmatprep.subr.bf16.mxu1 %v1617_v7  ;;  %1096 = vmatprep.mubr.bf16.mxu1 %v614_v29  ;;  %v305_v45 = vadd.f32 %v1781_v51, %v198_v36  ;;  %v310_v46 = vadd.f32 %v1781_v51, %v203_v37  ;;  %v95_v55 = vunpack.c.l.bf16 %v37_v18  ;;  %v40_v11 = vld [vmem:[%s2298_s0 + $0x78] sm:$0xff]  ;;  %v43_v18 = vld [vmem:[%s2298_s0 + $0x8c] sm:$0xff] }
  0x2b   :  { %v200_v48 = vmul.f32 %v1788_v57, %v93_v38  ;;  %v205_v49 = vmul.f32 %v1788_v57, %v98_v39  ;;  %v538_v52 = vsel %vm377_vm14, %v296_v34, %v458_v43  ;;  %v543_v53 = vsel %vm382_vm15, %v301_v35, %v463_v44 }
  0x2c   :  { %999 = vmatprep.mubr.bf16.mxu0 %v612_v16  ;;  %1556 = vmatpush3.bf16.msra.mxu0 %v1617_v7  ;;  %v197_v56 = vmul.f32 %v1795_v61, %v90_v41  ;;  %v613_v59 = vpack.c.bf16 %v543_v53, %v538_v52  ;;  %vm386_vm0 = vcmp.ge.f32.partialorder %v305_v45, 0.0  ;;  %vm391_vm1 = vcmp.ge.f32.partialorder %v310_v46, 0.0 }
  0x2d   :  { %1557 = vmatprep.subr.bf16.mxu0 %v1618_v21  ;;  %1000 = vmatmul.mubr.bf16.gmra.mrb[4].mxu0 %v611_v33  ;;  %v467_v60 = vmul.f32 %v1763_v40, %v305_v45  ;;  %v472_v63 = vmul.f32 %v1763_v40, %v310_v46  ;;  %v307_v0 = vadd.f32 %v1791_v58, %v200_v48  ;;  %v97_v8 = vunpack.c.l.bf16 %v38_v28  ;;  %v44_v28 = vld [vmem:[%s2298_s0 + $0x94] sm:$0xff] }
  0x2e   :  { %1581 = vmatpush3.bf16.msra.mxu1 %v1617_v7  ;;  %v312_v3 = vadd.f32 %v1791_v58, %v205_v49  ;;  %v202_v4 = vmul.f32 %v1795_v61, %v95_v55  ;;  %v304_v6 = vadd.f32 %v1798_v62, %v197_v56  ;;  %v92_v7 = vunpack.c.l.bf16 %v35_v26 }
  0x2f   :  { %1578 = vmatprep.subr.bf16.mxu1 %v1618_v21  ;;  %1097 = vmatmul.mubr.bf16.gmra.mrb[4].mxu1 %v613_v59  ;;  %v547_v5 = vsel %vm386_vm0, %v305_v45, %v467_v60  ;;  %v552_v9 = vsel %vm391_vm1, %v310_v46, %v472_v63  ;;  %vm388_vm2 = vcmp.ge.f32.partialorder %v307_v0, 0.0  ;;  %v469_v10 = vmul.f32 %v1763_v40, %v307_v0 }
  0x30   :  { %1558 = vmatpush3.bf16.msra.mxu0 %v1618_v21  ;;  %vm393_vm3 = vcmp.ge.f32.partialorder %v312_v3, 0.0  ;;  %v617_v12 = vpack.c.bf16 %v552_v9, %v547_v5  ;;  %v474_v13 = vmul.f32 %v1763_v40, %v312_v3  ;;  %v309_v14 = vadd.f32 %v1798_v62, %v202_v4 }
  0x31   :  { %vm385_vm4 = vcmp.ge.f32.partialorder %v304_v6, 0.0  ;;  %v549_v15 = vsel %vm388_vm2, %v307_v0, %v469_v10  ;;  %v466_v16 = vmul.f32 %v1763_v40, %v304_v6  ;;  %v199_v54 = vmul.f32 %v1803_v1, %v92_v7 }
  0x32   :  { %1582 = vmatpush3.bf16.msra.mxu1 %v1618_v21  ;;  %v204_v17 = vmul.f32 %v1803_v1, %v97_v8  ;;  %1007 = vmatprep.mubr.bf16.mxu0 %v617_v12  ;;  %v554_v20 = vsel %vm393_vm3, %v312_v3, %v474_v13  ;;  %vm390_vm5 = vcmp.ge.f32.partialorder %v309_v14, 0.0  ;;  %v471_v21 = vmul.f32 %v1763_v40, %v309_v14  ;;  %v46_v8 = vld [vmem:[%s2298_s0 + $0xa0] sm:$0xff]  ;;  %v49_v12 = vld [vmem:[%s2298_s0 + $0xb4] sm:$0xff] }
  0x33   :  { %v101_v22 = vunpack.c.h.bf16 %v40_v11  ;;  %v619_v23 = vpack.c.bf16 %v554_v20, %v549_v15  ;;  %v546_v24 = vsel %vm385_vm4, %v304_v6, %v466_v16  ;;  %v306_v25 = vadd.f32 %v1806_v2, %v199_v54 }
  0x34   :  { %v311_v26 = vadd.f32 %v1806_v2, %v204_v17  ;;  %v551_v29 = vsel %vm390_vm5, %v309_v14, %v471_v21  ;;  %v106_v30 = vunpack.c.h.bf16 %v43_v18  ;;  %v103_v32 = vunpack.c.h.bf16 %v1924_v19 }
  0x35   :  { %v208_v31 = vmul.f32 %v1778_v50, %v101_v22  ;;  %1104 = vmatprep.mubr.bf16.mxu1 %v619_v23  ;;  %v616_v33 = vpack.c.bf16 %v551_v29, %v546_v24  ;;  %vm387_vm6 = vcmp.ge.f32.partialorder %v306_v25, 0.0  ;;  %v468_v34 = vmul.f32 %v1763_v40, %v306_v25 }
  0x36   :  { %vm392_vm7 = vcmp.ge.f32.partialorder %v311_v26, 0.0  ;;  %v473_v35 = vmul.f32 %v1763_v40, %v311_v26  ;;  %v213_v36 = vmul.f32 %v1778_v50, %v106_v30  ;;  %v108_v38 = vunpack.c.h.bf16 %v44_v28 }
  0x37   :  { %v315_v37 = vadd.f32 %v1781_v51, %v208_v31  ;;  %1008 = vmatmul.mubr.bf16.gmra.mrb[8].mxu0 %v616_v33  ;;  %v548_v39 = vsel %vm387_vm6, %v306_v25, %v468_v34  ;;  %v210_v41 = vmul.f32 %v1788_v57, %v103_v32  ;;  %v100_v43 = vunpack.c.l.bf16 %v40_v11 }
  0x38   :  { %v105_v44 = vunpack.c.l.bf16 %v43_v18  ;;  %v553_v45 = vsel %vm392_vm7, %v311_v26, %v473_v35  ;;  %v320_v46 = vadd.f32 %v1781_v51, %v213_v36  ;;  %v215_v52 = vmul.f32 %v1788_v57, %v108_v38  ;;  %v47_v18 = vld [vmem:[%s2298_s0 + $0xa8] sm:$0xff] }
  0x39   :  { %vm396_vm8 = vcmp.ge.f32.partialorder %v315_v37, 0.0  ;;  %v477_v48 = vmul.f32 %v1763_v40, %v315_v37  ;;  %v618_v49 = vpack.c.bf16 %v553_v45, %v548_v39  ;;  %v317_v53 = vadd.f32 %v1791_v58, %v210_v41 }
  0x3a   :  { %v207_v55 = vmul.f32 %v1795_v61, %v100_v43  ;;  %vm401_vm9 = vcmp.ge.f32.partialorder %v320_v46, 0.0  ;;  %v482_v56 = vmul.f32 %v1763_v40, %v320_v46  ;;  %v212_v60 = vmul.f32 %v1795_v61, %v105_v44 }
  0x3b   :  { %v557_v59 = vsel %vm396_vm8, %v315_v37, %v477_v48  ;;  %1105 = vmatmul.mubr.bf16.gmra.mrb[8].mxu1 %v618_v49  ;;  %v322_v63 = vadd.f32 %v1791_v58, %v215_v52  ;;  %vm398_vm10 = vcmp.ge.f32.partialorder %v317_v53, 0.0  ;;  %v479_v0 = vmul.f32 %v1763_v40, %v317_v53 }
  0x3c   :  { %v314_v3 = vadd.f32 %v1798_v62, %v207_v55  ;;  %v562_v4 = vsel %vm401_vm9, %v320_v46, %v482_v56  ;;  %v319_v5 = vadd.f32 %v1798_v62, %v212_v60  ;;  %v102_v6 = vunpack.c.l.bf16 %v1924_v19  ;;  %v50_v19 = vld [vmem:[%s2298_s0 + $0xbc] sm:$0xff] }
  0x3d   :  { %v107_v7 = vunpack.c.l.bf16 %v44_v28  ;;  %v622_v9 = vpack.c.bf16 %v562_v4, %v557_v59  ;;  %vm403_vm11 = vcmp.ge.f32.partialorder %v322_v63, 0.0  ;;  %v484_v10 = vmul.f32 %v1763_v40, %v322_v63 }
  0x3e   :  { %v559_v11 = vsel %vm398_vm10, %v317_v53, %v479_v0  ;;  %vm395_vm12 = vcmp.ge.f32.partialorder %v314_v3, 0.0  ;;  %vm400_vm13 = vcmp.ge.f32.partialorder %v319_v5, 0.0  ;;  %v476_v13 = vmul.f32 %v1763_v40, %v314_v3 }
  0x3f   :  { %v481_v14 = vmul.f32 %v1763_v40, %v319_v5  ;;  %1015 = vmatprep.mubr.bf16.mxu0 %v622_v9  ;;  %v564_v15 = vsel %vm403_vm11, %v322_v63, %v484_v10  ;;  %v209_v16 = vmul.f32 %v1803_v1, %v102_v6  ;;  %v214_v54 = vmul.f32 %v1803_v1, %v107_v7 }
  0x40   :  { %v111_v17 = vunpack.c.h.bf16 %v46_v8  ;;  %v624_v20 = vpack.c.bf16 %v564_v15, %v559_v11  ;;  %v556_v21 = vsel %vm395_vm12, %v314_v3, %v476_v13  ;;  %v116_v23 = vunpack.c.h.bf16 %v49_v12  ;;  %v52_v3 = vld [vmem:[%s2298_s0 + $0xc8] sm:$0xff]  ;;  %v55_v11 = vld [vmem:[%s2298_s0 + $0xdc] sm:$0xff] }
  0x41   :  { %v561_v22 = vsel %vm400_vm13, %v319_v5, %v481_v14  ;;  %v316_v25 = vadd.f32 %v1806_v2, %v209_v16  ;;  %v321_v26 = vadd.f32 %v1806_v2, %v214_v54  ;;  %v113_v30 = vunpack.c.h.bf16 %v47_v18 }
  0x42   :  { %v621_v24 = vpack.c.bf16 %v561_v22, %v556_v21  ;;  %v218_v28 = vmul.f32 %v1778_v50, %v111_v17  ;;  %1112 = vmatprep.mubr.bf16.mxu1 %v624_v20  ;;  %v223_v29 = vmul.f32 %v1778_v50, %v116_v23  ;;  %v118_v31 = vunpack.c.h.bf16 %v50_v19 }
  0x43   :  { %v110_v32 = vunpack.c.l.bf16 %v46_v8  ;;  %vm397_vm14 = vcmp.ge.f32.partialorder %v316_v25, 0.0  ;;  %vm402_vm15 = vcmp.ge.f32.partialorder %v321_v26, 0.0  ;;  %v478_v33 = vmul.f32 %v1763_v40, %v316_v25 }
  0x44   :  { %1016 = vmatmul.mubr.bf16.gmra.mrb[12].mxu0 %v621_v24  ;;  %v483_v34 = vmul.f32 %v1763_v40, %v321_v26  ;;  %v325_v35 = vadd.f32 %v1781_v51, %v218_v28  ;;  %v330_v36 = vadd.f32 %v1781_v51, %v223_v29  ;;  %v220_v37 = vmul.f32 %v1788_v57, %v113_v30 }
  0x45   :  { %v225_v38 = vmul.f32 %v1788_v57, %v118_v31  ;;  %v558_v39 = vsel %vm397_vm14, %v316_v25, %v478_v33  ;;  %v115_v43 = vunpack.c.l.bf16 %v49_v12  ;;  %v217_v44 = vmul.f32 %v1795_v61, %v110_v32  ;;  %v2000_v12 = vld [vmem:[%s2298_s0 + $0xd0] sm:$0xff] }
  0x46   :  { %v563_v41 = vsel %vm402_vm15, %v321_v26, %v483_v34  ;;  %vm406_vm0 = vcmp.ge.f32.partialorder %v325_v35, 0.0  ;;  %vm411_vm1 = vcmp.ge.f32.partialorder %v330_v36, 0.0  ;;  %v487_v46 = vmul.f32 %v1763_v40, %v325_v35 }
  0x47   :  { %v623_v45 = vpack.c.bf16 %v563_v41, %v558_v39  ;;  %v492_v48 = vmul.f32 %v1763_v40, %v330_v36  ;;  %v327_v49 = vadd.f32 %v1791_v58, %v220_v37  ;;  %v332_v52 = vadd.f32 %v1791_v58, %v225_v38 }
  0x48   :  { %v222_v53 = vmul.f32 %v1795_v61, %v115_v43  ;;  %v567_v55 = vsel %vm406_vm0, %v325_v35, %v487_v46  ;;  %v324_v56 = vadd.f32 %v1798_v62, %v217_v44  ;;  %v112_v59 = vunpack.c.l.bf16 %v47_v18 }
  0x49   :  { %1113 = vmatmul.mubr.bf16.gmra.mrb[12].mxu1 %v623_v45  ;;  %v117_v60 = vunpack.c.l.bf16 %v50_v19  ;;  %v572_v63 = vsel %vm411_vm1, %v330_v36, %v492_v48  ;;  %vm408_vm2 = vcmp.ge.f32.partialorder %v327_v49, 0.0  ;;  %vm413_vm3 = vcmp.ge.f32.partialorder %v332_v52, 0.0  ;;  %v56_v19 = vld [vmem:[%s2298_s0 + $0xe4] sm:$0xff] }
  0x4a   :  { %v489_v0 = vmul.f32 %v1763_v40, %v327_v49  ;;  %v627_v4 = vpack.c.bf16 %v572_v63, %v567_v55  ;;  %v494_v5 = vmul.f32 %v1763_v40, %v332_v52  ;;  %v329_v6 = vadd.f32 %v1798_v62, %v222_v53 }
  0x4b   :  { %vm405_vm4 = vcmp.ge.f32.partialorder %v324_v56, 0.0  ;;  %v486_v8 = vmul.f32 %v1763_v40, %v324_v56  ;;  %v219_v9 = vmul.f32 %v1803_v1, %v112_v59  ;;  %v224_v10 = vmul.f32 %v1803_v1, %v117_v60  ;;  %v58_v60 = vld [vmem:[%s2298_s0 + $0xf0] sm:$0xff] }
  0x4c   :  { %v569_v7 = vsel %vm408_vm2, %v327_v49, %v489_v0  ;;  %1023 = vmatprep.mubr.bf16.mxu0 %v627_v4  ;;  %v574_v13 = vsel %vm413_vm3, %v332_v52, %v494_v5  ;;  %vm410_vm5 = vcmp.ge.f32.partialorder %v329_v6, 0.0  ;;  %v491_v14 = vmul.f32 %v1763_v40, %v329_v6  ;;  %v61_v4 = vld [vmem:[%s2298_s0 + $0x104] sm:$0xff] }
  0x4d   :  { %v121_v15 = vunpack.c.h.bf16 %v52_v3  ;;  %v629_v16 = vpack.c.bf16 %v574_v13, %v569_v7  ;;  %v566_v54 = vsel %vm405_vm4, %v324_v56, %v486_v8  ;;  %v326_v17 = vadd.f32 %v1806_v2, %v219_v9 }
  0x4e   :  { %v331_v18 = vadd.f32 %v1806_v2, %v224_v10  ;;  %v571_v20 = vsel %vm410_vm5, %v329_v6, %v491_v14  ;;  %v126_v21 = vunpack.c.h.bf16 %v55_v11  ;;  %v123_v23 = vunpack.c.h.bf16 %v2000_v12 }
  0x4f   :  { %v228_v22 = vmul.f32 %v1778_v50, %v121_v15  ;;  %1120 = vmatprep.mubr.bf16.mxu1 %v629_v16  ;;  %v626_v24 = vpack.c.bf16 %v571_v20, %v566_v54  ;;  %vm407_vm6 = vcmp.ge.f32.partialorder %v326_v17, 0.0  ;;  %v488_v25 = vmul.f32 %v1763_v40, %v326_v17 }
  0x50   :  { %vm412_vm7 = vcmp.ge.f32.partialorder %v331_v18, 0.0  ;;  %v493_v26 = vmul.f32 %v1763_v40, %v331_v18  ;;  %v233_v28 = vmul.f32 %v1778_v50, %v126_v21  ;;  %v128_v30 = vunpack.c.h.bf16 %v56_v19 }
  0x51   :  { %v335_v29 = vadd.f32 %v1781_v51, %v228_v22  ;;  %1024 = vmatmul.mubr.bf16.gmra.mrb[16].mxu0 %v626_v24  ;;  %v568_v31 = vsel %vm407_vm6, %v326_v17, %v488_v25  ;;  %v230_v32 = vmul.f32 %v1788_v57, %v123_v23  ;;  %v120_v33 = vunpack.c.l.bf16 %v52_v3 }
  0x52   :  { %v125_v34 = vunpack.c.l.bf16 %v55_v11  ;;  %v573_v35 = vsel %vm412_vm7, %v331_v18, %v493_v26  ;;  %v340_v36 = vadd.f32 %v1781_v51, %v233_v28  ;;  %v235_v39 = vmul.f32 %v1788_v57, %v128_v30  ;;  %v59_v11 = vld [vmem:[%s2298_s0 + $0xf8] sm:$0xff] }
  0x53   :  { %vm416_vm8 = vcmp.ge.f32.partialorder %v335_v29, 0.0  ;;  %v497_v37 = vmul.f32 %v1763_v40, %v335_v29  ;;  %v628_v38 = vpack.c.bf16 %v573_v35, %v568_v31  ;;  %v337_v41 = vadd.f32 %v1791_v58, %v230_v32 }
  0x54   :  { %v227_v43 = vmul.f32 %v1795_v61, %v120_v33  ;;  %vm421_vm9 = vcmp.ge.f32.partialorder %v340_v36, 0.0  ;;  %v502_v44 = vmul.f32 %v1763_v40, %v340_v36  ;;  %v232_v46 = vmul.f32 %v1795_v61, %v125_v34 }
  0x55   :  { %v577_v45 = vsel %vm416_vm8, %v335_v29, %v497_v37  ;;  %1121 = vmatmul.mubr.bf16.gmra.mrb[16].mxu1 %v628_v38  ;;  %v342_v48 = vadd.f32 %v1791_v58, %v235_v39  ;;  %vm418_vm10 = vcmp.ge.f32.partialorder %v337_v41, 0.0  ;;  %v499_v49 = vmul.f32 %v1763_v40, %v337_v41 }
  0x56   :  { %v334_v52 = vadd.f32 %v1798_v62, %v227_v43  ;;  %v582_v53 = vsel %vm421_vm9, %v340_v36, %v502_v44  ;;  %v339_v55 = vadd.f32 %v1798_v62, %v232_v46  ;;  %v122_v56 = vunpack.c.l.bf16 %v2000_v12  ;;  %v62_v12 = vld [vmem:[%s2298_s0 + $0x10c] sm:$0xff] }
  0x57   :  { %v127_v59 = vunpack.c.l.bf16 %v56_v19  ;;  %v632_v63 = vpack.c.bf16 %v582_v53, %v577_v45  ;;  %vm423_vm11 = vcmp.ge.f32.partialorder %v342_v48, 0.0  ;;  %v504_v0 = vmul.f32 %v1763_v40, %v342_v48 }
  0x58   :  { %v579_v3 = vsel %vm418_vm10, %v337_v41, %v499_v49  ;;  %vm415_vm12 = vcmp.ge.f32.partialorder %v334_v52, 0.0  ;;  %vm420_vm13 = vcmp.ge.f32.partialorder %v339_v55, 0.0  ;;  %v496_v5 = vmul.f32 %v1763_v40, %v334_v52 }
  0x59   :  { %v501_v6 = vmul.f32 %v1763_v40, %v339_v55  ;;  %1031 = vmatprep.mubr.bf16.mxu0 %v632_v63  ;;  %v584_v7 = vsel %vm423_vm11, %v342_v48, %v504_v0  ;;  %v229_v8 = vmul.f32 %v1803_v1, %v122_v56  ;;  %v234_v9 = vmul.f32 %v1803_v1, %v127_v59 }
  0x5a   :  { %v131_v10 = vunpack.c.h.bf16 %v58_v60  ;;  %v634_v13 = vpack.c.bf16 %v584_v7, %v579_v3  ;;  %v576_v14 = vsel %vm415_vm12, %v334_v52, %v496_v5  ;;  %v136_v16 = vunpack.c.h.bf16 %v61_v4  ;;  %v64_v52 = vld [vmem:[%s2298_s0 + $0x118] sm:$0xff]  ;;  %v67_v3 = vld [vmem:[%s2298_s0 + $0x12c] sm:$0xff] }
  0x5b   :  { %v581_v15 = vsel %vm420_vm13, %v339_v55, %v501_v6  ;;  %v336_v17 = vadd.f32 %v1806_v2, %v229_v8  ;;  %v341_v18 = vadd.f32 %v1806_v2, %v234_v9  ;;  %v133_v21 = vunpack.c.h.bf16 %v59_v11 }
  0x5c   :  { %v631_v54 = vpack.c.bf16 %v581_v15, %v576_v14  ;;  %v238_v19 = vmul.f32 %v1778_v50, %v131_v10  ;;  %1128 = vmatprep.mubr.bf16.mxu1 %v634_v13  ;;  %v243_v20 = vmul.f32 %v1778_v50, %v136_v16  ;;  %v138_v22 = vunpack.c.h.bf16 %v62_v12 }
  0x5d   :  { %v130_v23 = vunpack.c.l.bf16 %v58_v60  ;;  %vm417_vm14 = vcmp.ge.f32.partialorder %v336_v17, 0.0  ;;  %vm422_vm15 = vcmp.ge.f32.partialorder %v341_v18, 0.0  ;;  %v498_v24 = vmul.f32 %v1763_v40, %v336_v17 }
  0x5e   :  { %1032 = vmatmul.mubr.bf16.gmra.mrb[20].mxu0 %v631_v54  ;;  %v503_v25 = vmul.f32 %v1763_v40, %v341_v18  ;;  %v345_v26 = vadd.f32 %v1781_v51, %v238_v19  ;;  %v350_v28 = vadd.f32 %v1781_v51, %v243_v20  ;;  %v240_v29 = vmul.f32 %v1788_v57, %v133_v21 }
  0x5f   :  { %v245_v30 = vmul.f32 %v1788_v57, %v138_v22  ;;  %v578_v31 = vsel %vm417_vm14, %v336_v17, %v498_v24  ;;  %v135_v33 = vunpack.c.l.bf16 %v61_v4  ;;  %v237_v34 = vmul.f32 %v1795_v61, %v130_v23  ;;  %v65_v4 = vld [vmem:[%s2298_s0 + $0x120] sm:$0xff] }
  0x60   :  { %v583_v32 = vsel %vm422_vm15, %v341_v18, %v503_v25  ;;  %vm426_vm0 = vcmp.ge.f32.partialorder %v345_v26, 0.0  ;;  %vm431_vm1 = vcmp.ge.f32.partialorder %v350_v28, 0.0  ;;  %v507_v36 = vmul.f32 %v1763_v40, %v345_v26 }
  0x61   :  { %v633_v35 = vpack.c.bf16 %v583_v32, %v578_v31  ;;  %v512_v37 = vmul.f32 %v1763_v40, %v350_v28  ;;  %v347_v38 = vadd.f32 %v1791_v58, %v240_v29  ;;  %v352_v39 = vadd.f32 %v1791_v58, %v245_v30 }
  0x62   :  { %v242_v41 = vmul.f32 %v1795_v61, %v135_v33  ;;  %v587_v43 = vsel %vm426_vm0, %v345_v26, %v507_v36  ;;  %v344_v44 = vadd.f32 %v1798_v62, %v237_v34  ;;  %v132_v45 = vunpack.c.l.bf16 %v59_v11 }
  0x63   :  { %1129 = vmatmul.mubr.bf16.gmra.mrb[20].mxu1 %v633_v35  ;;  %v137_v46 = vunpack.c.l.bf16 %v62_v12  ;;  %v592_v48 = vsel %vm431_vm1, %v350_v28, %v512_v37  ;;  %vm428_vm2 = vcmp.ge.f32.partialorder %v347_v38, 0.0  ;;  %vm433_vm3 = vcmp.ge.f32.partialorder %v352_v39, 0.0  ;;  %v68_v12 = vld [vmem:[%s2298_s0 + $0x134] sm:$0xff] }
  0x64   :  { %v509_v49 = vmul.f32 %v1763_v40, %v347_v38  ;;  %v637_v53 = vpack.c.bf16 %v592_v48, %v587_v43  ;;  %v514_v55 = vmul.f32 %v1763_v40, %v352_v39  ;;  %v349_v56 = vadd.f32 %v1798_v62, %v242_v41  ;;  %v24_v43 = vld [vmem:[%s2298_s0 + $0x10] ss:$20 sps:$4 sm:$0xff]  }
  0x65   :  { %vm425_vm4 = vcmp.ge.f32.partialorder %v344_v44, 0.0  ;;  %v506_v60 = vmul.f32 %v1763_v40, %v344_v44  ;;  %v239_v63 = vmul.f32 %v1803_v1, %v132_v45  ;;  %v244_v0 = vmul.f32 %v1803_v1, %v137_v46 }
  0x66   :  { %v589_v59 = vsel %vm428_vm2, %v347_v38, %v509_v49  ;;  %1039 = vmatprep.mubr.bf16.mxu0 %v637_v53  ;;  %v594_v5 = vsel %vm433_vm3, %v352_v39, %v514_v55  ;;  %vm430_vm5 = vcmp.ge.f32.partialorder %v349_v56, 0.0  ;;  %v511_v6 = vmul.f32 %v1763_v40, %v349_v56  ;;  %v48_v53 = vld [vmem:[%s2298_s0 + $0xb0] ss:$20 sps:$4 sm:$0xff]   ;;  %v30_v55 = vld [vmem:[%s2298_s0 + $0x38] ss:$20 sps:$4 sm:$0xff]  }
  0x67   :  { %v141_v7 = vunpack.c.h.bf16 %v64_v52  ;;  %v639_v8 = vpack.c.bf16 %v594_v5, %v589_v59  ;;  %v586_v9 = vsel %vm425_vm4, %v344_v44, %v506_v60  ;;  %v346_v10 = vadd.f32 %v1806_v2, %v239_v63 }
  0x68   :  { %v351_v11 = vadd.f32 %v1806_v2, %v244_v0  ;;  %v591_v13 = vsel %vm430_vm5, %v349_v56, %v511_v6  ;;  %v146_v14 = vunpack.c.h.bf16 %v67_v3  ;;  %v143_v16 = vunpack.c.h.bf16 %v65_v4 }
  0x69   :  { %v248_v15 = vmul.f32 %v1778_v50, %v141_v7  ;;  %1136 = vmatprep.mubr.bf16.mxu1 %v639_v8  ;;  %v636_v54 = vpack.c.bf16 %v591_v13, %v586_v9  ;;  %vm427_vm6 = vcmp.ge.f32.partialorder %v346_v10, 0.0  ;;  %v508_v17 = vmul.f32 %v1763_v40, %v346_v10 }
  0x6a   :  { %vm432_vm7 = vcmp.ge.f32.partialorder %v351_v11, 0.0  ;;  %v513_v18 = vmul.f32 %v1763_v40, %v351_v11  ;;  %v253_v19 = vmul.f32 %v1778_v50, %v146_v14  ;;  %v148_v21 = vunpack.c.h.bf16 %v68_v12 }
  0x6b   :  { %v355_v20 = vadd.f32 %v1781_v51, %v248_v15  ;;  %1040 = vmatmul.mubr.bf16.gmra.mrb[24].mxu0 %v636_v54  ;;  %v588_v22 = vsel %vm427_vm6, %v346_v10, %v508_v17  ;;  %v250_v23 = vmul.f32 %v1788_v57, %v143_v16  ;;  %v140_v24 = vunpack.c.l.bf16 %v64_v52 }
  0x6c   :  { %v145_v25 = vunpack.c.l.bf16 %v67_v3  ;;  %v593_v26 = vsel %vm432_vm7, %v351_v11, %v513_v18  ;;  %v360_v28 = vadd.f32 %v1781_v51, %v253_v19  ;;  %v255_v31 = vmul.f32 %v1788_v57, %v148_v21 }
  0x6d   :  { %vm436_vm8 = vcmp.ge.f32.partialorder %v355_v20, 0.0  ;;  %v517_v29 = vmul.f32 %v1763_v40, %v355_v20  ;;  %v638_v30 = vpack.c.bf16 %v593_v26, %v588_v22  ;;  %v357_v50 = vadd.f32 %v1791_v58, %v250_v23 }
  0x6e   :  { %v247_v32 = vmul.f32 %v1795_v61, %v140_v24  ;;  %vm441_vm9 = vcmp.ge.f32.partialorder %v360_v28, 0.0  ;;  %v522_v33 = vmul.f32 %v1763_v40, %v360_v28  ;;  %v252_v35 = vmul.f32 %v1795_v61, %v145_v25 }
  0x6f   :  { %v597_v34 = vsel %vm436_vm8, %v355_v20, %v517_v29  ;;  %1137 = vmatmul.mubr.bf16.gmra.mrb[24].mxu1 %v638_v30  ;;  %v362_v36 = vadd.f32 %v1791_v58, %v255_v31  ;;  %vm438_vm10 = vcmp.ge.f32.partialorder %v357_v50, 0.0  ;;  %v519_v51 = vmul.f32 %v1763_v40, %v357_v50 }
  0x70   :  { %v354_v37 = vadd.f32 %v1798_v62, %v247_v32  ;;  %v602_v38 = vsel %vm441_vm9, %v360_v28, %v522_v33  ;;  %v359_v57 = vadd.f32 %v1798_v62, %v252_v35  ;;  %v142_v39 = vunpack.c.l.bf16 %v65_v4 }
  0x71   :  { %v147_v41 = vunpack.c.l.bf16 %v68_v12  ;;  %v642_v44 = vpack.c.bf16 %v602_v38, %v597_v34  ;;  %vm443_vm11 = vcmp.ge.f32.partialorder %v362_v36, 0.0  ;;  %v524_v61 = vmul.f32 %v1763_v40, %v362_v36 }
  0x72   :  { %v599_v45 = vsel %vm438_vm10, %v357_v50, %v519_v51  ;;  %vm435_vm12 = vcmp.ge.f32.partialorder %v354_v37, 0.0  ;;  %vm440_vm13 = vcmp.ge.f32.partialorder %v359_v57, 0.0  ;;  %v516_v58 = vmul.f32 %v1763_v40, %v354_v37  ;;  %v36_v50 = vld [vmem:[%s2298_s0 + $0x60] ss:$20 sps:$4 sm:$0xff]  }
  0x73   :  { %v521_v46 = vmul.f32 %v1763_v40, %v359_v57  ;;  %1047 = vmatprep.mubr.bf16.mxu0 %v642_v44  ;;  %v604_v48 = vsel %vm443_vm11, %v362_v36, %v524_v61  ;;  %v249_v62 = vmul.f32 %v1803_v1, %v142_v39  ;;  %v254_v49 = vmul.f32 %v1803_v1, %v147_v41  ;;  %v1619_v1 = vld [vmem:[%s2299_s2] sm:$0x1f]  ;;  %v42_v44 = vld [vmem:[%s2298_s0 + $0x88] ss:$20 sps:$4 sm:$0xff]  }
  0x74   :  { %v74_v52 = vunpack.c.l.bf16 %v24_v43  ;;  %v644_v56 = vpack.c.bf16 %v604_v48, %v599_v45  ;;  %v596_v59 = vsel %vm435_vm12, %v354_v37, %v516_v58  ;;  %v79_v63 = vunpack.c.h.bf16 %v24_v43  ;;  %v60_v36 = vld [vmem:[%s2298_s0 + $0x100] ss:$20 sps:$4 sm:$0xff]  }
  0x75   :  { %v601_v60 = vsel %vm440_vm13, %v359_v57, %v521_v46  ;;  %v356_v3 = vadd.f32 %v1806_v2, %v249_v62  ;;  %v361_v4 = vadd.f32 %v1806_v2, %v254_v49  ;;  %v2120_v5 = vrot.slane %v1619_v1, %v170_v42 }
  0x76   :  { %v641_v0 = vpack.c.bf16 %v601_v60, %v596_v59  ;;  %1144 = vmatprep.mubr.bf16.mxu1 %v644_v56  ;;  %v2125_v6 = vrot.slane %v1770_v47, %v170_v42  ;;  %vm934_vm14 = vcmask 523264   ;;  %v114_v7 = vunpack.c.l.bf16 %v48_v53  ;;  %v54_v47 = vld [vmem:[%s2298_s0 + $0xd8] ss:$20 sps:$4 sm:$0xff]  }
  0x77   :  { %v119_v8 = vunpack.c.h.bf16 %v48_v53  ;;  %v84_v9 = vunpack.c.l.bf16 %v30_v55  ;;  %vm437_vm15 = vcmp.ge.f32.partialorder %v356_v3, 0.0  ;;  %vm442_vm0 = vcmp.ge.f32.partialorder %v361_v4, 0.0 }
  0x78   :  { %1048 = vmatmul.mubr.bf16.gmra.mrb[28].mxu0 %v641_v0  ;;  %v518_v2 = vmul.f32 %v1763_v40, %v356_v3  ;;  %v523_v10 = vmul.f32 %v1763_v40, %v361_v4  ;;  %v181_v11 = vmul.f32 %v2120_v5, %v74_v52  ;;  %v186_v12 = vmul.f32 %v2120_v5, %v79_v63 }
  0x79   :  { %v221_v27 = vmul.f32 %v2120_v5, %v114_v7  ;;  %v226_v42 = vmul.f32 %v2120_v5, %v119_v8  ;;  %v89_v15 = vunpack.c.h.bf16 %v30_v55  ;;  %v191_v16 = vmul.f32 %v2120_v5, %v84_v9  ;;  %v66_v9 = vld [vmem:[%s2298_s0 + $0x128] ss:$20 sps:$4 sm:$0xff]  }
  0x7a   :  { %v598_v13 = vsel %vm437_vm15, %v356_v3, %v518_v2  ;;  %v603_v14 = vsel %vm442_vm0, %v361_v4, %v523_v10  ;;  %v288_v17 = vadd.f32 %v2125_v6, %v181_v11  ;;  %v293_v18 = vadd.f32 %v2125_v6, %v186_v12 }
  0x7b   :  { %v643_v54 = vpack.c.bf16 %v603_v14, %v598_v13  ;;  %v328_v19 = vadd.f32 %v2125_v6, %v221_v27  ;;  %v333_v20 = vadd.f32 %v2125_v6, %v226_v42  ;;  %v196_v21 = vmul.f32 %v2120_v5, %v89_v15 }
  0x7c   :  { %v298_v22 = vadd.f32 %v2125_v6, %v191_v16  ;;  %v124_v23 = vunpack.c.l.bf16 %v54_v47  ;;  %vm369_vm1 = vcmp.ge.f32.partialorder %v288_v17, 0.0  ;;  %vm374_vm2 = vcmp.ge.f32.partialorder %v293_v18, 0.0 }
  0x7d   :  { %1145 = vmatmul.mubr.bf16.gmra.mrb[28].mxu1 %v643_v54  ;;  %v450_v24 = vmul.f32 %v1763_v40, %v288_v17  ;;  %v455_v25 = vmul.f32 %v1763_v40, %v293_v18  ;;  %vm409_vm3 = vcmp.ge.f32.partialorder %v328_v19, 0.0  ;;  %vm414_vm4 = vcmp.ge.f32.partialorder %v333_v20, 0.0 }
  0x7e   :  { %v490_v26 = vmul.f32 %v1763_v40, %v328_v19  ;;  %v495_v28 = vmul.f32 %v1763_v40, %v333_v20  ;;  %v303_v31 = vadd.f32 %v2125_v6, %v196_v21  ;;  %vm379_vm5 = vcmp.ge.f32.partialorder %v298_v22, 0.0 }
  0x7f   :  { %v530_v29 = vsel %vm369_vm1, %v288_v17, %v450_v24  ;;  %v535_v30 = vsel %vm374_vm2, %v293_v18, %v455_v25  ;;  %v460_v35 = vmul.f32 %v1763_v40, %v298_v22  ;;  %v129_v38 = vunpack.c.h.bf16 %v54_v47 }
  0x80   :  { %v610_v32 = vpack.c.bf16 %v535_v30, %v530_v29  ;;  %v570_v33 = vsel %vm409_vm3, %v328_v19, %v490_v26  ;;  %v575_v34 = vsel %vm414_vm4, %v333_v20, %v495_v28  ;;  %vm384_vm6 = vcmp.ge.f32.partialorder %v303_v31, 0.0 }
  0x81   :  { %v630_v51 = vpack.c.bf16 %v575_v34, %v570_v33  ;;  %v465_v37 = vmul.f32 %v1763_v40, %v303_v31  ;;  %v540_v57 = vsel %vm379_vm5, %v298_v22, %v460_v35  ;;  %v231_v39 = vmul.f32 %v2120_v5, %v124_v23 }
  0x82   :  { %1559 = vmatprep.mubr.msk.bf16.mxu0 %vm934_vm14, %v610_v32  ;;  %v94_v41 = vunpack.c.l.bf16 %v36_v50  ;;  %v99_v43 = vunpack.c.h.bf16 %v36_v50  ;;  %v236_v45 = vmul.f32 %v2120_v5, %v129_v38  ;;  %v134_v58 = vunpack.c.l.bf16 %v60_v36 }
  0x83   :  { %1567 = vmatprep.mubr.msk.bf16.mxu1 %vm934_vm14, %v630_v51  ;;  %v545_v61 = vsel %vm384_vm6, %v303_v31, %v465_v37  ;;  %v139_v46 = vunpack.c.h.bf16 %v60_v36  ;;  %v338_v62 = vadd.f32 %v2125_v6, %v231_v39  ;;  %v104_v59 = vunpack.c.l.bf16 %v42_v44 }
  0x84   :  { %v615_v48 = vpack.c.bf16 %v545_v61, %v540_v57  ;;  %v201_v49 = vmul.f32 %v2120_v5, %v94_v41  ;;  %v206_v52 = vmul.f32 %v2120_v5, %v99_v43  ;;  %v343_v53 = vadd.f32 %v2125_v6, %v236_v45 }
  0x85   :  { %v241_v55 = vmul.f32 %v2120_v5, %v134_v58  ;;  %v246_v56 = vmul.f32 %v2120_v5, %v139_v46  ;;  %vm419_vm7 = vcmp.ge.f32.partialorder %v338_v62, 0.0  ;;  %v500_v60 = vmul.f32 %v1763_v40, %v338_v62 }
  0x86   :  { %1560 = vmatmul.mubr.msk.bf16.vlgmr.msra.gmra.mrb[32].mxu0 %vm934_vm14, %v615_v48  ;;  %v308_v63 = vadd.f32 %v2125_v6, %v201_v49  ;;  %v313_v0 = vadd.f32 %v2125_v6, %v206_v52  ;;  %vm424_vm8 = vcmp.ge.f32.partialorder %v343_v53, 0.0  ;;  %v505_v3 = vmul.f32 %v1763_v40, %v343_v53 }
  0x87   :  { %v348_v4 = vadd.f32 %v2125_v6, %v241_v55  ;;  %v353_v1 = vadd.f32 %v2125_v6, %v246_v56  ;;  %v580_v7 = vsel %vm419_vm7, %v338_v62, %v500_v60  ;;  %v109_v13 = vunpack.c.h.bf16 %v42_v44 }
  0x88   :  { %vm389_vm9 = vcmp.ge.f32.partialorder %v308_v63, 0.0  ;;  %vm394_vm10 = vcmp.ge.f32.partialorder %v313_v0, 0.0  ;;  %v470_v8 = vmul.f32 %v1763_v40, %v308_v63  ;;  %v585_v2 = vsel %vm424_vm8, %v343_v53, %v505_v3 }
  0x89   :  { %v475_v10 = vmul.f32 %v1763_v40, %v313_v0  ;;  %vm429_vm11 = vcmp.ge.f32.partialorder %v348_v4, 0.0  ;;  %vm434_vm12 = vcmp.ge.f32.partialorder %v353_v1, 0.0  ;;  %v635_v11 = vpack.c.bf16 %v585_v2, %v580_v7 }
  0x8a   :  { %v550_v12 = vsel %vm389_vm9, %v308_v63, %v470_v8  ;;  %v510_v27 = vmul.f32 %v1763_v40, %v348_v4  ;;  %v515_v42 = vmul.f32 %v1763_v40, %v353_v1  ;;  %v211_v14 = vmul.f32 %v2120_v5, %v104_v59 }
  0x8b   :  { %v555_v47 = vsel %vm394_vm10, %v313_v0, %v475_v10  ;;  %v144_v15 = vunpack.c.l.bf16 %v66_v9  ;;  %1568 = vmatmul.mubr.msk.bf16.vlgmr.msra.gmra.mrb[32].mxu1 %vm934_vm14, %v635_v11  ;;  %v149_v18 = vunpack.c.h.bf16 %v66_v9  ;;  %v216_v20 = vmul.f32 %v2120_v5, %v109_v13 }
  0x8c   :  { %v620_v16 = vpack.c.bf16 %v555_v47, %v550_v12  ;;  %v590_v54 = vsel %vm429_vm11, %v348_v4, %v510_v27  ;;  %v595_v17 = vsel %vm434_vm12, %v353_v1, %v515_v42  ;;  %v318_v21 = vadd.f32 %v2125_v6, %v211_v14 }
  0x8d   :  { %v640_v19 = vpack.c.bf16 %v595_v17, %v590_v54  ;;  %v251_v22 = vmul.f32 %v2120_v5, %v144_v15  ;;  %v256_v23 = vmul.f32 %v2120_v5, %v149_v18  ;;  %v323_v24 = vadd.f32 %v2125_v6, %v216_v20 }
  0x8e   :  { %1563 = vmatprep.mubr.msk.bf16.mxu0 %vm934_vm14, %v620_v16  ;;  %vm399_vm13 = vcmp.ge.f32.partialorder %v318_v21, 0.0  ;;  %v480_v25 = vmul.f32 %v1763_v40, %v318_v21 }
  0x8f   :  { %1571 = vmatprep.mubr.msk.bf16.mxu1 %vm934_vm14, %v640_v19  ;;  %v358_v26 = vadd.f32 %v2125_v6, %v251_v22  ;;  %v363_v28 = vadd.f32 %v2125_v6, %v256_v23  ;;  %vm404_vm15 = vcmp.ge.f32.partialorder %v323_v24, 0.0  ;;  %v485_v29 = vmul.f32 %v1763_v40, %v323_v24 }
  0x90   :  { %v560_v30 = vsel %vm399_vm13, %v318_v21, %v480_v25 }
  0x91   :  { %vm439_vm0 = vcmp.ge.f32.partialorder %v358_v26, 0.0  ;;  %vm444_vm1 = vcmp.ge.f32.partialorder %v363_v28, 0.0  ;;  %v520_v31 = vmul.f32 %v1763_v40, %v358_v26  ;;  %v525_v5 = vmul.f32 %v1763_v40, %v363_v28 }
  0x92   :  { %v565_v50 = vsel %vm404_vm15, %v323_v24, %v485_v29 }
  0x93   :  { %v625_v32 = vpack.c.bf16 %v565_v50, %v560_v30  ;;  %v600_v33 = vsel %vm439_vm0, %v358_v26, %v520_v31  ;;  %v605_v34 = vsel %vm444_vm1, %v363_v28, %v525_v5 }
  0x94   :  { %v645_v35 = vpack.c.bf16 %v605_v34, %v600_v33 }
  0x95   :  { %1564 = vmatmul.mubr.msk.bf16.gmra.mrb[36].mxu0 %vm934_vm14, %v625_v32 }
  0x96   :  { %1572 = vmatmul.mubr.msk.bf16.gmra.mrb[36].mxu1 %vm934_vm14, %v645_v35  ;;  %vm1314_vm14 = vcmask 519168  }
  0xf6   :  { %v1427_v6 = vpop.f32.mrb[0].mxu0 }
  0xf7   :  { %v1428_v36 = vpop.f32.mrb[1].mxu0  ;;  %v1491_v51 = vpop.f32.mrb[0].mxu1 }
  0xf8   :  { %v1429_v37 = vadd.f32 %v1428_v36, %v1427_v6  ;;  %v1430_v38 = vpop.f32.mrb[2].mxu0  ;;  %v1492_v57 = vpop.f32.mrb[1].mxu1 }
  0xf9   :  { %v1431_v39 = vpop.f32.mrb[3].mxu0  ;;  %v1493_v41 = vadd.f32 %v1492_v57, %v1491_v51  ;;  %v1494_v43 = vpop.f32.mrb[2].mxu1 }
  0xfa   :  { %v1432_v44 = vadd.f32 %v1431_v39, %v1430_v38  ;;  %v1495_v40 = vpop.f32.mrb[3].mxu1 }
  0xfb   :  { %v1496_v61 = vadd.f32 %v1495_v40, %v1494_v43  ;;  %v2200_v45 = vadd.f32 %v1493_v41, %v1429_v37 }
  0xfd   :  { %v2202_v58 = vadd.f32 %v1496_v61, %v1432_v44 }
 0x100   :  { %v1433_v46 = vpop.f32.mrb[4].mxu0 }
 0x101   :  { %v1434_v48 = vpop.f32.mrb[5].mxu0 }
 0x102   :  { %v1435_v62 = vadd.f32 %v1434_v48, %v1433_v46  ;;  %v1436_v49 = vpop.f32.mrb[6].mxu0  ;;  %v1497_v55 = vpop.f32.mrb[4].mxu1 }
 0x103   :  { %v1437_v52 = vpop.f32.mrb[7].mxu0  ;;  %v1498_v56 = vpop.f32.mrb[5].mxu1 }
 0x104   :  { %v1438_v53 = vadd.f32 %v1437_v52, %v1436_v49  ;;  %v1499_v59 = vadd.f32 %v1498_v56, %v1497_v55  ;;  %v1500_v60 = vpop.f32.mrb[6].mxu1 }
 0x105   :  { %v1501_v63 = vpop.f32.mrb[7].mxu1 }
 0x106   :  { %v1502_v0 = vadd.f32 %v1501_v63, %v1500_v60  ;;  %v2204_v3 = vadd.f32 %v1499_v59, %v1435_v62 }
 0x108   :  { %v2206_v4 = vadd.f32 %v1502_v0, %v1438_v53 }
 0x10a   :  { %v1439_v1 = vpop.f32.mrb[8].mxu0 }
 0x10b   :  { %v1440_v7 = vpop.f32.mrb[9].mxu0 }
 0x10c   :  { %v1441_v8 = vadd.f32 %v1440_v7, %v1439_v1  ;;  %v1442_v9 = vpop.f32.mrb[10].mxu0 }
 0x10d   :  { %v1443_v2 = vpop.f32.mrb[11].mxu0 }
 0x10e   :  { %v1503_v10 = vpop.f32.mrb[8].mxu1  ;;  %v1444_v11 = vadd.f32 %v1443_v2, %v1442_v9 }
 0x10f   :  { %v1504_v12 = vpop.f32.mrb[9].mxu1 }
 0x110   :  { %v1505_v27 = vadd.f32 %v1504_v12, %v1503_v10  ;;  %v1506_v42 = vpop.f32.mrb[10].mxu1 }
 0x111   :  { %v1507_v47 = vpop.f32.mrb[11].mxu1 }
 0x112   :  { %v1508_v13 = vadd.f32 %v1507_v47, %v1506_v42  ;;  %v2208_v14 = vadd.f32 %v1505_v27, %v1441_v8 }
 0x114   :  { %v2210_v15 = vadd.f32 %v1508_v13, %v1444_v11 }
 0x117   :  { %v1445_v16 = vpop.f32.mrb[12].mxu0 }
 0x118   :  { %v1446_v54 = vpop.f32.mrb[13].mxu0 }
 0x119   :  { %v1447_v17 = vadd.f32 %v1446_v54, %v1445_v16  ;;  %v1448_v18 = vpop.f32.mrb[14].mxu0 }
 0x11a   :  { %v1449_v19 = vpop.f32.mrb[15].mxu0 }
 0x11b   :  { %v1450_v20 = vadd.f32 %v1449_v19, %v1448_v18 }
 0x11c   :  { %v1509_v21 = vpop.f32.mrb[12].mxu1 }
 0x11d   :  { %v1510_v22 = vpop.f32.mrb[13].mxu1 }
 0x11e   :  { %v1511_v23 = vadd.f32 %v1510_v22, %v1509_v21  ;;  %v1512_v24 = vpop.f32.mrb[14].mxu1 }
 0x11f   :  { %v1513_v25 = vpop.f32.mrb[15].mxu1 }
 0x120   :  { %v1514_v26 = vadd.f32 %v1513_v25, %v1512_v24  ;;  %v2212_v28 = vadd.f32 %v1511_v23, %v1447_v17 }
 0x122   :  { %v2214_v29 = vadd.f32 %v1514_v26, %v1450_v20 }
 0x124   :  { %v1451_v30 = vpop.f32.mrb[16].mxu0 }
 0x125   :  { %v1452_v31 = vpop.f32.mrb[17].mxu0 }
 0x126   :  { %v1453_v5 = vadd.f32 %v1452_v31, %v1451_v30  ;;  %v1454_v50 = vpop.f32.mrb[18].mxu0 }
 0x127   :  { %v1455_v32 = vpop.f32.mrb[19].mxu0 }
 0x128   :  { %v1515_v33 = vpop.f32.mrb[16].mxu1  ;;  %v1456_v34 = vadd.f32 %v1455_v32, %v1454_v50 }
 0x129   :  { %v1516_v35 = vpop.f32.mrb[17].mxu1 }
 0x12a   :  { %v1517_v6 = vadd.f32 %v1516_v35, %v1515_v33  ;;  %v1518_v36 = vpop.f32.mrb[18].mxu1 }
 0x12b   :  { %v1519_v51 = vpop.f32.mrb[19].mxu1 }
 0x12c   :  { %v1520_v37 = vadd.f32 %v1519_v51, %v1518_v36  ;;  %v2216_v38 = vadd.f32 %v1517_v6, %v1453_v5 }
 0x12e   :  { %v2218_v57 = vadd.f32 %v1520_v37, %v1456_v34 }
 0x131   :  { %v1457_v39 = vpop.f32.mrb[20].mxu0 }
 0x132   :  { %v1458_v41 = vpop.f32.mrb[21].mxu0 }
 0x133   :  { %v1459_v43 = vadd.f32 %v1458_v41, %v1457_v39  ;;  %v1460_v44 = vpop.f32.mrb[22].mxu0 }
 0x134   :  { %v1461_v40 = vpop.f32.mrb[23].mxu0 }
 0x135   :  { %v1462_v61 = vadd.f32 %v1461_v40, %v1460_v44 }
 0x136   :  { %v1521_v46 = vpop.f32.mrb[20].mxu1 }
 0x137   :  { %v1522_v48 = vpop.f32.mrb[21].mxu1 }
 0x138   :  { %v1523_v62 = vadd.f32 %v1522_v48, %v1521_v46  ;;  %v1524_v49 = vpop.f32.mrb[22].mxu1 }
 0x139   :  { %v1525_v52 = vpop.f32.mrb[23].mxu1 }
 0x13a   :  { %v1526_v53 = vadd.f32 %v1525_v52, %v1524_v49  ;;  %v1131_v55 = vadd.f32 %v1523_v62, %v1459_v43 }
 0x13c   :  { %v1134_v56 = vadd.f32 %v1526_v53, %v1462_v61 }
 0x13e   :  { %v1463_v59 = vpop.f32.mrb[24].mxu0 }
 0x13f   :  { %v1464_v60 = vpop.f32.mrb[25].mxu0 }
 0x140   :  { %v1465_v63 = vadd.f32 %v1464_v60, %v1463_v59  ;;  %v1466_v0 = vpop.f32.mrb[26].mxu0 }
 0x141   :  { %v1467_v1 = vpop.f32.mrb[27].mxu0 }
 0x142   :  { %v1527_v7 = vpop.f32.mrb[24].mxu1  ;;  %v1468_v8 = vadd.f32 %v1467_v1, %v1466_v0 }
 0x143   :  { %v1528_v9 = vpop.f32.mrb[25].mxu1 }
 0x144   :  { %v1529_v2 = vadd.f32 %v1528_v9, %v1527_v7  ;;  %v1530_v10 = vpop.f32.mrb[26].mxu1 }
 0x145   :  { %v1531_v11 = vpop.f32.mrb[27].mxu1 }
 0x146   :  { %v1532_v12 = vadd.f32 %v1531_v11, %v1530_v10  ;;  %v1139_v27 = vadd.f32 %v1529_v2, %v1465_v63 }
 0x148   :  { %v2220_v42 = vadd.f32 %v1532_v12, %v1468_v8 }
 0x14b   :  { %v1469_v47 = vpop.f32.mrb[28].mxu0 }
 0x14c   :  { %v1470_v13 = vpop.f32.mrb[29].mxu0 }
 0x14d   :  { %v1471_v16 = vadd.f32 %v1470_v13, %v1469_v47  ;;  %v1472_v54 = vpop.f32.mrb[30].mxu0 }
 0x14e   :  { %v1473_v17 = vpop.f32.mrb[31].mxu0 }
 0x14f   :  { %v1474_v18 = vadd.f32 %v1473_v17, %v1472_v54 }
 0x150   :  { %v1533_v19 = vpop.f32.mrb[28].mxu1 }
 0x151   :  { %v1534_v20 = vpop.f32.mrb[29].mxu1 }
 0x152   :  { %v1535_v21 = vadd.f32 %v1534_v20, %v1533_v19  ;;  %v1536_v22 = vpop.f32.mrb[30].mxu1 }
 0x153   :  { %v1537_v23 = vpop.f32.mrb[31].mxu1 }
 0x154   :  { %v1538_v24 = vadd.f32 %v1537_v23, %v1536_v22  ;;  %v1147_v25 = vadd.f32 %v1535_v21, %v1471_v16 }
 0x156   :  { %v1150_v26 = vadd.f32 %v1538_v24, %v1474_v18 }
 0x159   :  { %v1561_v30 = vpop.f32.mrb[32].mxu0 }
 0x15a   :  { %v1196_v31 = vadd.f32 %v1561_v30, %v2204_v3  ;;  %v1187_v5 = vpop.f32.mrb[33].mxu0 }
 0x15b   :  { %v1188_v50 = vadd.f32 %v1187_v5, %v2200_v45  ;;  %v1562_v32 = vpop.f32.mrb[34].mxu0 }
 0x15c   :  { %v1397_v33 = vpack.c.bf16 %v1196_v31, %v1196_v31  ;;  %v1199_v34 = vadd.f32 %v1562_v32, %v2206_v4  ;;  %v1190_v35 = vpop.f32.mrb[35].mxu0 }
 0x15d   :  { %v1395_v6 = vpack.c.bf16 %v1188_v50, %v1188_v50  ;;  %v1191_v36 = vadd.f32 %v1190_v35, %v2202_v58 }
 0x15e   :  { %1317 = vst.msk [vmem:[%s2302_s5 + $0x8] sm:$0xf] %vm1314_vm14, %v1397_v33  ;;  %v1398_v51 = vpack.c.bf16 %v1199_v34, %v1199_v34  ;;  %v1569_v37 = vpop.f32.mrb[32].mxu1 }
 0x15f   :  { %1315 = vst.msk [vmem:[%s2302_s5] sm:$0xf] %vm1314_vm14, %v1395_v6  ;;  %v1396_v45 = vpack.c.bf16 %v1191_v36, %v1191_v36  ;;  %v1228_v3 = vadd.f32 %v1569_v37, %v1131_v55  ;;  %v1219_v39 = vpop.f32.mrb[33].mxu1 }
 0x160   :  { %1318 = vst.msk [vmem:[%s2302_s5 + $0xc] sm:$0xf] %vm1314_vm14, %v1398_v51  ;;  %v1220_v58 = vadd.f32 %v1219_v39, %v2216_v38  ;;  %v1570_v4 = vpop.f32.mrb[34].mxu1 }
 0x161   :  { %1316 = vst.msk [vmem:[%s2302_s5 + $0x4] sm:$0xf] %vm1314_vm14, %v1396_v45  ;;  %v1405_v41 = vpack.c.bf16 %v1228_v3, %v1228_v3  ;;  %v1231_v43 = vadd.f32 %v1570_v4, %v1134_v56  ;;  %v1222_v44 = vpop.f32.mrb[35].mxu1 }
 0x162   :  { %v1403_v40 = vpack.c.bf16 %v1220_v58, %v1220_v58  ;;  %v1223_v61 = vadd.f32 %v1222_v44, %v2218_v57 }
 0x163   :  { %1325 = vst.msk [vmem:[%s2302_s5 + $0x28] sm:$0xf] %vm1314_vm14, %v1405_v41  ;;  %v1406_v46 = vpack.c.bf16 %v1231_v43, %v1231_v43 }
 0x164   :  { %1323 = vst.msk [vmem:[%s2302_s5 + $0x20] sm:$0xf] %vm1314_vm14, %v1403_v40  ;;  %v1404_v38 = vpack.c.bf16 %v1223_v61, %v1223_v61 }
 0x165   :  { %1326 = vst.msk [vmem:[%s2302_s5 + $0x2c] sm:$0xf] %vm1314_vm14, %v1406_v46 }
 0x166   :  { %1324 = vst.msk [vmem:[%s2302_s5 + $0x24] sm:$0xf] %vm1314_vm14, %v1404_v38 }
 0x168   :  { %v1565_v57 = vpop.f32.mrb[36].mxu0 }
 0x169   :  { %v1212_v48 = vadd.f32 %v1565_v57, %v2212_v28  ;;  %v1573_v62 = vpop.f32.mrb[36].mxu1  ;;  %v1203_v49 = vpop.f32.mrb[37].mxu0 }
 0x16a   :  { %v1244_v52 = vadd.f32 %v1573_v62, %v1147_v25  ;;  %v1204_v53 = vadd.f32 %v1203_v49, %v2208_v14  ;;  %v1235_v55 = vpop.f32.mrb[37].mxu1  ;;  %v1566_v56 = vpop.f32.mrb[38].mxu0 }
 0x16b   :  { %v1401_v59 = vpack.c.bf16 %v1212_v48, %v1212_v48  ;;  %v1236_v60 = vadd.f32 %v1235_v55, %v1139_v27  ;;  %v1215_v63 = vadd.f32 %v1566_v56, %v2214_v29  ;;  %v1574_v0 = vpop.f32.mrb[38].mxu1  ;;  %v1206_v1 = vpop.f32.mrb[39].mxu0 }
 0x16c   :  { %v1409_v7 = vpack.c.bf16 %v1244_v52, %v1244_v52  ;;  %v1399_v8 = vpack.c.bf16 %v1204_v53, %v1204_v53  ;;  %v1247_v9 = vadd.f32 %v1574_v0, %v1150_v26  ;;  %v1207_v2 = vadd.f32 %v1206_v1, %v2210_v15  ;;  %v1238_v10 = vpop.f32.mrb[39].mxu1 }
 0x16d   :  { %1321 = vst.msk [vmem:[%s2302_s5 + $0x18] sm:$0xf] %vm1314_vm14, %v1401_v59  ;;  %v1407_v14 = vpack.c.bf16 %v1236_v60, %v1236_v60  ;;  %v1402_v28 = vpack.c.bf16 %v1215_v63, %v1215_v63  ;;  %v1239_v11 = vadd.f32 %v1238_v10, %v2220_v42 }
 0x16e   :  { %1329 = vst.msk [vmem:[%s2302_s5 + $0x38] sm:$0xf] %vm1314_vm14, %v1409_v7  ;;  %1319 = vst.msk [vmem:[%s2302_s5 + $0x10] sm:$0xf] %vm1314_vm14, %v1399_v8  ;;  %v1410_v15 = vpack.c.bf16 %v1247_v9, %v1247_v9  ;;  %v1400_v29 = vpack.c.bf16 %v1207_v2, %v1207_v2 }
 0x16f   :  { %1327 = vst.msk [vmem:[%s2302_s5 + $0x30] sm:$0xf] %vm1314_vm14, %v1407_v14  ;;  %1322 = vst.msk [vmem:[%s2302_s5 + $0x1c] sm:$0xf] %vm1314_vm14, %v1402_v28  ;;  %v1408_v12 = vpack.c.bf16 %v1239_v11, %v1239_v11 }
 0x170   :  { %1330 = vst.msk [vmem:[%s2302_s5 + $0x3c] sm:$0xf] %vm1314_vm14, %v1410_v15  ;;  %1320 = vst.msk [vmem:[%s2302_s5 + $0x14] sm:$0xf] %vm1314_vm14, %v1400_v29 }
 0x171   :  { %1328 = vst.msk [vmem:[%s2302_s5 + $0x34] sm:$0xf] %vm1314_vm14, %v1408_v12 }

// kernel: tile.63
= control target key start
LH: loop header
LB: loop body
LE: loop exit
PB: predicated region body
PF: predicated region fallthrough
CT: control target
= control target key end

     0   :  { %s28_s0 = inlined_call_operand.vmem [shape: f32[64], index: 0, kind: input, shape index: {}]   ;;  %s29_s1 = inlined_call_operand.vmem [shape: f32[16,64], index: 1, kind: output, shape index: {}]  }
   0x1   :  { %v4_v0 = vld [vmem:[%s28_s0] ss:$0 sm:$0xff] }
   0x2   :  { %5 = vst [vmem:[%s29_s1] sm:$0xff] %v4_v0  ;;  %8 = vst [vmem:[%s29_s1 + $0x8] sm:$0xff] %v4_v0 }

// kernel: tile.64
= control target key start
LH: loop header
LB: loop body
LE: loop exit
PB: predicated region body
PF: predicated region fallthrough
CT: control target
= control target key end

     0   :  { %vm3_vm0 = vcmask 523264   ;;  %vm10_vm1 = vcmask 1048064   ;;  %s116_s0 = inlined_call_operand.vmem [shape: f32[16,64], index: 0, kind: input, shape index: {}]   ;;  %s117_s1 = inlined_call_operand.vmem [shape: f32[1,1024], index: 1, kind: output, shape index: {}]  }
   0x1   :  { %v66_v0 = vld [vmem:[%s116_s0 + $0x1] ss:$2 sm:$0xff]   ;;  %v2_v1 = vld [vmem:[%s116_s0] ss:$2 sm:$0xff]   ;;  %s75_s0 = smov 64  }
   0x2   :  { %8 = vrot.lane.b32.xlu0 %v66_v0, %s75_s0  ;;  %4 = vst.msk [vmem:[#allocation0] ss:$8 sm:$0xf] %vm3_vm0, %v2_v1   ;;  %5 = vst.msk [vmem:[#allocation0] ss:$8 sm:$0xf0] %vm3_vm0, %v2_v1  }
  0x74   :  { %v9_v2 = vpop.permute.xlu0 %8  }
  0x75   :  { %11 = vst.msk [vmem:[#allocation0] ss:$8 sm:$0xf] %vm10_vm1, %v9_v2   ;;  %12 = vst.msk [vmem:[#allocation0] ss:$8 sm:$0xf0] %vm10_vm1, %v9_v2  }
  0x7c   :  { %v16_v3 = vld [vmem:[#allocation0] sm:$0x1]  ;;  %v20_v4 = vld [vmem:[#allocation0 + $0x8] sm:$0x1]  ;;  %v25_v5 = vld [vmem:[#allocation0 + $0x10] sm:$0x1] }
  0x7d   :  { %18 = vst [vmem:[%s117_s1] sm:$0x1] %v16_v3  ;;  %67 = vst [vmem:[%s117_s1 + $0x1] sm:$0x1] %v20_v4  ;;  %v31_v6 = vld [vmem:[#allocation0 + $0x18] sm:$0x1] }
  0x7e   :  { %68 = vst [vmem:[%s117_s1 + $0x2] sm:$0x1] %v25_v5  ;;  %v37_v7 = vld [vmem:[#allocation0 + $0x20] sm:$0x1]  ;;  %v43_v8 = vld [vmem:[#allocation0 + $0x28] sm:$0x1] }
  0x7f   :  { %69 = vst [vmem:[%s117_s1 + $0x3] sm:$0x1] %v31_v6  ;;  %70 = vst [vmem:[%s117_s1 + $0x4] sm:$0x1] %v37_v7  ;;  %v49_v9 = vld [vmem:[#allocation0 + $0x30] sm:$0x1] }
  0x80   :  { %71 = vst [vmem:[%s117_s1 + $0x5] sm:$0x1] %v43_v8  ;;  %v55_v10 = vld [vmem:[#allocation0 + $0x38] sm:$0x1]  ;;  %72 = vst [vmem:[%s117_s1 + $0x6] sm:$0x1] %v49_v9 }
  0x81   :  { %73 = vst [vmem:[%s117_s1 + $0x7] sm:$0x1] %v55_v10 }

// kernel: onet_forward.7
= control target key start
LH: loop header
LB: loop body
LE: loop exit
PB: predicated region body
PF: predicated region fallthrough
CT: control target
= control target key end

     0   :  { %v59_v37 = vlaneseq  ;;  %s10452_s4 = inlined_call_operand.vmem [shape: bf16[1024,1152], index: 4, kind: input, shape index: {}]   ;;  %s10453_s0 = inlined_call_operand.vmem [shape: bf16[8,1024], index: 0, kind: input, shape index: {}]   ;;  %s10454_s1 = inlined_call_operand.vmem [shape: f32[1,1024], index: 1, kind: input, shape index: {}]   ;;  %s10455_s2 = inlined_call_operand.vmem [shape: f32[1,1024], index: 2, kind: input, shape index: {}]   ;;  %s10456_s3 = inlined_call_operand.<no memory space> [shape: f32[1,1], index: 3, kind: input, shape index: {}]   ;;  %s10457_s7 = inlined_call_operand.vmem [shape: bf16[1152,256], index: 7, kind: input, shape index: {}]   ;;  %s10458_s5 = inlined_call_operand.vmem [shape: f32[1,1152], index: 5, kind: input, shape index: {}]   ;;  %s10459_s6 = inlined_call_operand.<no memory space> [shape: f32[1,1], index: 6, kind: input, shape index: {}]   ;;  %s10460_s10 = inlined_call_operand.vmem [shape: bf16[256,16], index: 10, kind: input, shape index: {}]   ;;  %s10461_s8 = inlined_call_operand.vmem [shape: f32[1,256], index: 8, kind: input, shape index: {}]   ;;  %s10462_s9 = inlined_call_operand.<no memory space> [shape: f32[1,1], index: 9, kind: input, shape index: {}]   ;;  %s10463_s11 = inlined_call_operand.vmem [shape: f32[1,16], index: 11, kind: input, shape index: {}]   ;;  %s10464_s12 = inlined_call_operand.vmem [shape: f32[8,16], index: 12, kind: output, shape index: {}]  }
   0x1   :  { %v6882_v0 = vld [vmem:[%s10452_s4 + $0x4] ss:$36 sps:$4 sm:$0xff]   ;;  %v6888_v4 = vld [vmem:[%s10452_s4 + $0x4c] ss:$36 sps:$4 sm:$0xff]   ;;  %v6894_v8 = vld [vmem:[%s10452_s4 + $0x94] ss:$36 sps:$4 sm:$0xff]  }
   0x2   :  { %v6884_v1 = vld [vmem:[%s10452_s4 + $0x904] ss:$36 sps:$4 sm:$0xff]   ;;  %3824 = vmatprep.subr.bf16.mxu1 %v6882_v0  ;;  %v6890_v5 = vld [vmem:[%s10452_s4 + $0x94c] ss:$36 sps:$4 sm:$0xff]   ;;  %v6896_v9 = vld [vmem:[%s10452_s4 + $0x994] ss:$36 sps:$4 sm:$0xff]  }
   0x3   :  { %v6886_v2 = vld [vmem:[%s10452_s4] ss:$36 sps:$4 sm:$0xff]   ;;  %3906 = vmatprep.subr.bf16.mxu0 %v6884_v1  ;;  %v6892_v6 = vld [vmem:[%s10452_s4 + $0x48] ss:$36 sps:$4 sm:$0xff]   ;;  %v6898_v10 = vld [vmem:[%s10452_s4 + $0x90] ss:$36 sps:$4 sm:$0xff]  }
   0x4   :  { %v6887_v3 = vld [vmem:[%s10452_s4 + $0x900] ss:$36 sps:$4 sm:$0xff]   ;;  %3825 = vmatpush1.bf16.msra.mxu1 %v6886_v2  ;;  %v6893_v7 = vld [vmem:[%s10452_s4 + $0x948] ss:$36 sps:$4 sm:$0xff]   ;;  %v6899_v11 = vld [vmem:[%s10452_s4 + $0x990] ss:$36 sps:$4 sm:$0xff]  }
   0x5   :  { %3907 = vmatpush1.bf16.msra.mxu0 %v6887_v3  ;;  %3826 = vmatprep.subr.bf16.mxu1 %v6888_v4  ;;  %v6900_v12 = vld [vmem:[%s10452_s4 + $0xdc] ss:$36 sps:$4 sm:$0xff]   ;;  %v6906_v16 = vld [vmem:[%s10452_s4 + $0x124] ss:$36 sps:$4 sm:$0xff]   ;;  %v6912_v20 = vld [vmem:[%s10452_s4 + $0x16c] ss:$36 sps:$4 sm:$0xff]  }
   0x6   :  { %3908 = vmatprep.subr.bf16.mxu0 %v6890_v5  ;;  %v6902_v13 = vld [vmem:[%s10452_s4 + $0x9dc] ss:$36 sps:$4 sm:$0xff]   ;;  %v6908_v17 = vld [vmem:[%s10452_s4 + $0xa24] ss:$36 sps:$4 sm:$0xff]   ;;  %v6914_v21 = vld [vmem:[%s10452_s4 + $0xa6c] ss:$36 sps:$4 sm:$0xff]  }
   0x7   :  { %v6904_v14 = vld [vmem:[%s10452_s4 + $0xd8] ss:$36 sps:$4 sm:$0xff]   ;;  %v6910_v18 = vld [vmem:[%s10452_s4 + $0x120] ss:$36 sps:$4 sm:$0xff]   ;;  %v6916_v22 = vld [vmem:[%s10452_s4 + $0x168] ss:$36 sps:$4 sm:$0xff]  }
   0x8   :  { %3827 = vmatpush1.bf16.msra.mxu1 %v6892_v6  ;;  %v6905_v15 = vld [vmem:[%s10452_s4 + $0x9d8] ss:$36 sps:$4 sm:$0xff]   ;;  %v6911_v19 = vld [vmem:[%s10452_s4 + $0xa20] ss:$36 sps:$4 sm:$0xff]   ;;  %v6917_v23 = vld [vmem:[%s10452_s4 + $0xa68] ss:$36 sps:$4 sm:$0xff]  }
   0x9   :  { %3909 = vmatpush1.bf16.msra.mxu0 %v6893_v7  ;;  %3828 = vmatprep.subr.bf16.mxu1 %v6894_v8  ;;  %v6918_v24 = vld [vmem:[%s10452_s4 + $0x1b4] ss:$36 sps:$4 sm:$0xff]   ;;  %v6924_v28 = vld [vmem:[%s10452_s4 + $0x1fc] ss:$36 sps:$4 sm:$0xff]   ;;  %v6930_v32 = vld [vmem:[%s10452_s4 + $0x244] ss:$36 sps:$4 sm:$0xff]  }
   0xa   :  { %3910 = vmatprep.subr.bf16.mxu0 %v6896_v9  ;;  %v6920_v25 = vld [vmem:[%s10452_s4 + $0xab4] ss:$36 sps:$4 sm:$0xff]   ;;  %v6926_v29 = vld [vmem:[%s10452_s4 + $0xafc] ss:$36 sps:$4 sm:$0xff]   ;;  %v6932_v33 = vld [vmem:[%s10452_s4 + $0xb44] ss:$36 sps:$4 sm:$0xff]   ;;  %v8219_v9 = vstv %s10456_s3 }
   0xb   :  { %v6922_v26 = vld [vmem:[%s10452_s4 + $0x1b0] ss:$36 sps:$4 sm:$0xff]   ;;  %v6928_v30 = vld [vmem:[%s10452_s4 + $0x1f8] ss:$36 sps:$4 sm:$0xff]   ;;  %v6934_v34 = vld [vmem:[%s10452_s4 + $0x240] ss:$36 sps:$4 sm:$0xff]  }
   0xc   :  { %3829 = vmatpush1.bf16.msra.mxu1 %v6898_v10  ;;  %v6923_v27 = vld [vmem:[%s10452_s4 + $0xab0] ss:$36 sps:$4 sm:$0xff]   ;;  %v6929_v31 = vld [vmem:[%s10452_s4 + $0xaf8] ss:$36 sps:$4 sm:$0xff]   ;;  %v6935_v35 = vld [vmem:[%s10452_s4 + $0xb40] ss:$36 sps:$4 sm:$0xff]  }
   0xd   :  { %3911 = vmatpush1.bf16.msra.mxu0 %v6899_v11  ;;  %3830 = vmatprep.subr.bf16.mxu1 %v6900_v12  ;;  %v6936_v36 = vld [vmem:[%s10452_s4 + $0x28c] ss:$36 sps:$4 sm:$0xff]   ;;  %v6942_v41 = vld [vmem:[%s10452_s4 + $0x2d4] ss:$36 sps:$4 sm:$0xff]   ;;  %v8141_v42 = vshrl.u32 %v59_v37, 7  ;;  %v45_v53 = vld [vmem:[%s10453_s0] sm:$0xff] }
   0xe   :  { %3912 = vmatprep.subr.bf16.mxu0 %v6902_v13  ;;  %v6938_v38 = vld [vmem:[%s10452_s4 + $0xb8c] ss:$36 sps:$4 sm:$0xff]   ;;  %v6944_v43 = vld [vmem:[%s10452_s4 + $0xbd4] ss:$36 sps:$4 sm:$0xff]   ;;  %v6948_v46 = vld [vmem:[%s10452_s4 + $0x31c] ss:$36 sps:$4 sm:$0xff]   ;;  %v50_v55 = vunpack.c.h.bf16 %v45_v53  ;;  %v49_v58 = vunpack.c.l.bf16 %v45_v53 }
   0xf   :  { %v6940_v39 = vld [vmem:[%s10452_s4 + $0x288] ss:$36 sps:$4 sm:$0xff]   ;;  %v6946_v44 = vld [vmem:[%s10452_s4 + $0x2d0] ss:$36 sps:$4 sm:$0xff]   ;;  %v8156_v47 = vsub.s32 1, %v8141_v42  ;;  %v8159_v48 = vsub.s32 5, %v8141_v42 }
  0x10   :  { %3831 = vmatpush1.bf16.msra.mxu1 %v6904_v14  ;;  %v6941_v40 = vld [vmem:[%s10452_s4 + $0xb88] ss:$36 sps:$4 sm:$0xff]   ;;  %v6947_v45 = vld [vmem:[%s10452_s4 + $0xbd0] ss:$36 sps:$4 sm:$0xff]   ;;  %v6950_v49 = vld [vmem:[%s10452_s4 + $0xc1c] ss:$36 sps:$4 sm:$0xff]  }
  0x11   :  { %3913 = vmatpush1.bf16.msra.mxu0 %v6905_v15  ;;  %3832 = vmatprep.subr.bf16.mxu1 %v6906_v16  ;;  %v8165_v50 = vsub.s32 0, %v8141_v42  ;;  %v6952_v51 = vld [vmem:[%s10452_s4 + $0x318] ss:$36 sps:$4 sm:$0xff]   ;;  %v8177_v54 = vsub.s32 4, %v8141_v42  ;;  %v8182_v56 = vld [vmem:[%s10454_s1] sm:$0xff]  ;;  %v47_v0 = vld [vmem:[%s10453_s0 + $0x10] sm:$0xff] }
  0x12   :  { %3914 = vmatprep.subr.bf16.mxu0 %v6908_v17  ;;  %v6953_v52 = vld [vmem:[%s10452_s4 + $0xc18] ss:$36 sps:$4 sm:$0xff]   ;;  %v8187_v57 = vld [vmem:[%s10455_s2] sm:$0xff]  ;;  %v66_v61 = vrot.slane %v8182_v56, %v8156_v47  ;;  %v82_v63 = vrot.slane %v8182_v56, %v8159_v48  ;;  %v54_v4 = vunpack.c.h.bf16 %v47_v0  ;;  %v53_v5 = vunpack.c.l.bf16 %v47_v0  ;;  %v6960_v13 = vld [vmem:[%s10452_s4 + $0x3ac] ss:$36 sps:$4 sm:$0xff]  }
  0x13   :  { %v6954_v59 = vld [vmem:[%s10452_s4 + $0x364] ss:$36 sps:$4 sm:$0xff]   ;;  %v116_v62 = vrot.slane %v8187_v57, %v8156_v47  ;;  %v132_v1 = vrot.slane %v8187_v57, %v8159_v48  ;;  %v62_v2 = vrot.slane %v8182_v56, %v8165_v50  ;;  %v78_v6 = vrot.slane %v8182_v56, %v8177_v54  ;;  %v6962_v17 = vld [vmem:[%s10452_s4 + $0xcac] ss:$36 sps:$4 sm:$0xff]   ;;  %v7001_v0 = vld [vmem:[%s10452_s4 + $0xe5c] ss:$36 sps:$4 sm:$0xff]  }
  0x14   :  { %3833 = vmatpush1.bf16.msra.mxu1 %v6910_v18  ;;  %v6956_v60 = vld [vmem:[%s10452_s4 + $0xc64] ss:$36 sps:$4 sm:$0xff]   ;;  %v100_v3 = vmul.f32 %v66_v61, %v50_v55  ;;  %v112_v11 = vrot.slane %v8187_v57, %v8165_v50  ;;  %v128_v12 = vrot.slane %v8187_v57, %v8177_v54  ;;  %v104_v15 = vmul.f32 %v82_v63, %v54_v4  ;;  %v6989_v53 = vld [vmem:[%s10452_s4 + $0xdcc] ss:$36 sps:$4 sm:$0xff]   ;;  %v6998_v63 = vld [vmem:[%s10452_s4 + $0x55c] ss:$36 sps:$4 sm:$0xff]  }
  0x15   :  { %3915 = vmatpush1.bf16.msra.mxu0 %v6911_v19  ;;  %3834 = vmatprep.subr.bf16.mxu1 %v6912_v20  ;;  %v6958_v7 = vld [vmem:[%s10452_s4 + $0x360] ss:$36 sps:$4 sm:$0xff]   ;;  %v99_v10 = vmul.f32 %v62_v2, %v49_v58  ;;  %v103_v16 = vmul.f32 %v78_v6, %v53_v5  ;;  %v6964_v20 = vld [vmem:[%s10452_s4 + $0x3a8] ss:$36 sps:$4 sm:$0xff]   ;;  %v6990_v61 = vld [vmem:[%s10452_s4 + $0x510] ss:$36 sps:$4 sm:$0xff]  }
  0x16   :  { %3916 = vmatprep.subr.bf16.mxu0 %v6914_v21  ;;  %v6959_v8 = vld [vmem:[%s10452_s4 + $0xc60] ss:$36 sps:$4 sm:$0xff]   ;;  %v150_v14 = vadd.f32 %v116_v62, %v100_v3  ;;  %v154_v19 = vadd.f32 %v132_v1, %v104_v15  ;;  %v6965_v21 = vld [vmem:[%s10452_s4 + $0xca8] ss:$36 sps:$4 sm:$0xff]   ;;  %v6993_v62 = vld [vmem:[%s10452_s4 + $0xe10] ss:$36 sps:$4 sm:$0xff]  }
  0x17   :  { %v6984_v55 = vld [vmem:[%s10452_s4 + $0x4c8] ss:$36 sps:$4 sm:$0xff]   ;;  %v6996_v1 = vld [vmem:[%s10452_s4 + $0x558] ss:$36 sps:$4 sm:$0xff]   ;;  %v7002_v5 = vld [vmem:[%s10452_s4 + $0x5a0] ss:$36 sps:$4 sm:$0xff]  }
  0x18   :  { %3835 = vmatpush1.bf16.msra.mxu1 %v6916_v22  ;;  %vm158_vm0 = vcmp.ge.f32.partialorder %v150_v14, 0.0  ;;  %v168_v18 = vmul.f32 %v8219_v9, %v150_v14  ;;  %v149_v22 = vadd.f32 %v112_v11, %v99_v10  ;;  %vm162_vm1 = vcmp.ge.f32.partialorder %v154_v19, 0.0  ;;  %v6987_v58 = vld [vmem:[%s10452_s4 + $0xdc8] ss:$36 sps:$4 sm:$0xff]   ;;  %v6999_v2 = vld [vmem:[%s10452_s4 + $0xe58] ss:$36 sps:$4 sm:$0xff]  }
  0x19   :  { %3917 = vmatpush1.bf16.msra.mxu0 %v6917_v23  ;;  %3836 = vmatprep.subr.bf16.mxu1 %v6918_v24  ;;  %v6966_v23 = vld [vmem:[%s10452_s4 + $0x3f4] ss:$36 sps:$4 sm:$0xff]   ;;  %v7004_v3 = vld [vmem:[%s10452_s4 + $0x5a4] ss:$36 sps:$4 sm:$0xff]   ;;  %v8344_v10 = vsub.s32 3, %v8141_v42  ;;  %v8347_v11 = vsub.s32 2, %v8141_v42 }
  0x1a   :  { %3918 = vmatprep.subr.bf16.mxu0 %v6920_v25  ;;  %v176_v24 = vsel %vm158_vm0, %v150_v14, %v168_v18  ;;  %v172_v25 = vmul.f32 %v8219_v9, %v154_v19  ;;  %vm157_vm2 = vcmp.ge.f32.partialorder %v149_v22, 0.0  ;;  %v7007_v4 = vld [vmem:[%s10452_s4 + $0xea4] ss:$36 sps:$4 sm:$0xff]  }
  0x1b   :  { %v7005_v6 = vld [vmem:[%s10452_s4 + $0xea0] ss:$36 sps:$4 sm:$0xff]   ;;  %v7008_v14 = vld [vmem:[%s10452_s4 + $0x5e8] ss:$36 sps:$4 sm:$0xff]   ;;  %v70_v18 = vrot.slane %v8182_v56, %v8347_v11 }
  0x1c   :  { %3837 = vmatpush1.bf16.msra.mxu1 %v6922_v26  ;;  %v153_v26 = vadd.f32 %v128_v12, %v103_v16  ;;  %v8350_v12 = vsub.s32 7, %v8141_v42  ;;  %v7011_v15 = vld [vmem:[%s10452_s4 + $0xee8] ss:$36 sps:$4 sm:$0xff]   ;;  %v7016_v16 = vld [vmem:[%s10452_s4 + $0x634] ss:$36 sps:$4 sm:$0xff]  }
  0x1d   :  { %3919 = vmatpush1.bf16.msra.mxu0 %v6923_v27  ;;  %3838 = vmatprep.subr.bf16.mxu1 %v6924_v28  ;;  %v6968_v27 = vld [vmem:[%s10452_s4 + $0xcf4] ss:$36 sps:$4 sm:$0xff]   ;;  %v8245_v28 = vpack.c.bf16 %v176_v24, %v176_v24 }
  0x1e   :  { %3920 = vmatprep.subr.bf16.mxu0 %v6926_v29  ;;  %v180_v29 = vsel %vm162_vm1, %v154_v19, %v172_v25  ;;  %vm161_vm3 = vcmp.ge.f32.partialorder %v153_v26, 0.0  ;;  %v46_v19 = vld [vmem:[%s10453_s0 + $0x8] sm:$0xff]  ;;  %v120_v25 = vrot.slane %v8187_v57, %v8347_v11 }
  0x1f   :  { %3856 = vmatprep.mubr.bf16.mxu1 %v8245_v28  ;;  %v51_v24 = vunpack.c.l.bf16 %v46_v19 }
  0x20   :  { %3839 = vmatpush1.bf16.msra.mxu1 %v6928_v30  ;;  %v6970_v30 = vld [vmem:[%s10452_s4 + $0x3f0] ss:$36 sps:$4 sm:$0xff]  }
  0x21   :  { %3921 = vmatpush1.bf16.msra.mxu0 %v6929_v31  ;;  %3840 = vmatprep.subr.bf16.mxu1 %v6930_v32  ;;  %v6971_v31 = vld [vmem:[%s10452_s4 + $0xcf0] ss:$36 sps:$4 sm:$0xff]   ;;  %v8254_v32 = vpack.c.bf16 %v180_v29, %v180_v29 }
  0x22   :  { %3922 = vmatprep.subr.bf16.mxu0 %v6932_v33  ;;  %v6972_v33 = vld [vmem:[%s10452_s4 + $0x43c] ss:$36 sps:$4 sm:$0xff]  }
  0x23   :  { %3938 = vmatprep.mubr.bf16.mxu0 %v8254_v32 }
  0x24   :  { %3841 = vmatpush1.bf16.msra.mxu1 %v6934_v34  ;;  %v167_v34 = vmul.f32 %v8219_v9, %v149_v22 }
  0x25   :  { %3923 = vmatpush1.bf16.msra.mxu0 %v6935_v35  ;;  %3842 = vmatprep.subr.bf16.mxu1 %v6936_v36  ;;  %v171_v35 = vmul.f32 %v8219_v9, %v153_v26  ;;  %v6974_v36 = vld [vmem:[%s10452_s4 + $0xd3c] ss:$36 sps:$4 sm:$0xff]  }
  0x26   :  { %3924 = vmatprep.subr.bf16.mxu0 %v6938_v38  ;;  %v6976_v38 = vld [vmem:[%s10452_s4 + $0x438] ss:$36 sps:$4 sm:$0xff]  }
  0x28   :  { %3843 = vmatpush1.bf16.msra.mxu1 %v6940_v39  ;;  %v6977_v39 = vld [vmem:[%s10452_s4 + $0xd38] ss:$36 sps:$4 sm:$0xff]  }
  0x29   :  { %3925 = vmatpush1.bf16.msra.mxu0 %v6941_v40  ;;  %3844 = vmatprep.subr.bf16.mxu1 %v6942_v41  ;;  %v6980_v40 = vld [vmem:[%s10452_s4 + $0x484] ss:$36 sps:$4 sm:$0xff]   ;;  %v175_v41 = vsel %vm157_vm2, %v149_v22, %v167_v34  ;;  %v52_v22 = vunpack.c.h.bf16 %v46_v19  ;;  %v7022_v34 = vld [vmem:[%s10452_s4 + $0x67c] ss:$36 sps:$4 sm:$0xff]  }
  0x2a   :  { %3926 = vmatprep.subr.bf16.mxu0 %v6944_v43  ;;  %v179_v43 = vsel %vm161_vm3, %v153_v26, %v171_v35  ;;  %v48_v26 = vld [vmem:[%s10453_s0 + $0x18] sm:$0xff] }
  0x2b   :  { %v56_v29 = vunpack.c.h.bf16 %v48_v26  ;;  %v7025_v35 = vld [vmem:[%s10452_s4 + $0xf7c] ss:$36 sps:$4 sm:$0xff]  }
  0x2c   :  { %3845 = vmatpush1.bf16.msra.mxu1 %v6946_v44  ;;  %v6983_v44 = vld [vmem:[%s10452_s4 + $0xd84] ss:$36 sps:$4 sm:$0xff]   ;;  %v7047_v19 = vld [vmem:[%s10452_s4 + $0x1098] ss:$36 sps:$4 sm:$0xff]  }
  0x2d   :  { %3927 = vmatpush1.bf16.msra.mxu0 %v6947_v45  ;;  %3846 = vmatprep.subr.bf16.mxu1 %v6948_v46  ;;  %v6978_v45 = vld [vmem:[%s10452_s4 + $0x480] ss:$36 sps:$4 sm:$0xff]  }
  0x2e   :  { %3928 = vmatprep.subr.bf16.mxu0 %v6950_v49  ;;  %v6981_v46 = vld [vmem:[%s10452_s4 + $0xd80] ss:$36 sps:$4 sm:$0xff]   ;;  %v8283_v49 = vpack.c.bf16 %v175_v41, %v175_v41  ;;  %v7020_v41 = vld [vmem:[%s10452_s4 + $0x678] ss:$36 sps:$4 sm:$0xff]  }
  0x30   :  { %3847 = vmatpush1.bf16.msra.mxu1 %v6952_v51  ;;  %v8285_v51 = vpack.c.bf16 %v179_v43, %v179_v43 }
  0x31   :  { %3929 = vmatpush1.bf16.msra.mxu0 %v6953_v52  ;;  %3848 = vmatprep.subr.bf16.mxu1 %v6954_v59  ;;  %v6986_v52 = vld [vmem:[%s10452_s4 + $0x4cc] ss:$36 sps:$4 sm:$0xff]   ;;  %v6992_v59 = vld [vmem:[%s10452_s4 + $0x514] ss:$36 sps:$4 sm:$0xff]  }
  0x32   :  { %3930 = vmatprep.subr.bf16.mxu0 %v6956_v60  ;;  %v6995_v60 = vld [vmem:[%s10452_s4 + $0xe14] ss:$36 sps:$4 sm:$0xff]  }
  0x34   :  { %3849 = vmatpush1.bf16.msra.mxu1 %v6958_v7  ;;  %v7010_v7 = vld [vmem:[%s10452_s4 + $0x5ec] ss:$36 sps:$4 sm:$0xff]  }
  0x35   :  { %3931 = vmatpush1.bf16.msra.mxu0 %v6959_v8  ;;  %3850 = vmatprep.subr.bf16.mxu1 %v6960_v13  ;;  %v7013_v8 = vld [vmem:[%s10452_s4 + $0xeec] ss:$36 sps:$4 sm:$0xff]   ;;  %v8353_v13 = vsub.s32 6, %v8141_v42  ;;  %v7019_v42 = vld [vmem:[%s10452_s4 + $0xf34] ss:$36 sps:$4 sm:$0xff]  }
  0x36   :  { %3932 = vmatprep.subr.bf16.mxu0 %v6962_v17  ;;  %v74_v17 = vrot.slane %v8182_v56, %v8344_v10 }
  0x38   :  { %3851 = vmatpush1.bf16.msra.mxu1 %v6964_v20  ;;  %v90_v20 = vrot.slane %v8182_v56, %v8350_v12 }
  0x39   :  { %3933 = vmatpush1.bf16.msra.mxu0 %v6965_v21  ;;  %3852 = vmatprep.subr.bf16.mxu1 %v6966_v23  ;;  %v86_v21 = vrot.slane %v8182_v56, %v8353_v13  ;;  %v124_v23 = vrot.slane %v8187_v57, %v8344_v10  ;;  %v7017_v56 = vld [vmem:[%s10452_s4 + $0xf30] ss:$36 sps:$4 sm:$0xff]  }
  0x3a   :  { %3934 = vmatprep.subr.bf16.mxu0 %v6968_v27  ;;  %v7014_v27 = vld [vmem:[%s10452_s4 + $0x630] ss:$36 sps:$4 sm:$0xff]  }
  0x3c   :  { %3853 = vmatpush1.bf16.msra.mxu1 %v6970_v30  ;;  %v140_v30 = vrot.slane %v8187_v57, %v8350_v12 }
  0x3d   :  { %3935 = vmatpush1.bf16.msra.mxu0 %v6971_v31  ;;  %3854 = vmatprep.subr.bf16.mxu1 %v6972_v33  ;;  %v55_v31 = vunpack.c.l.bf16 %v48_v26  ;;  %v136_v33 = vrot.slane %v8187_v57, %v8353_v13  ;;  %v7056_v26 = vld [vmem:[%s10452_s4 + $0x828] ss:$36 sps:$4 sm:$0xff]  }
  0x3e   :  { %3936 = vmatprep.subr.bf16.mxu0 %v6974_v36  ;;  %v102_v36 = vmul.f32 %v74_v17, %v52_v22  ;;  %v7049_v17 = vld [vmem:[%s10452_s4 + $0x109c] ss:$36 sps:$4 sm:$0xff]  }
  0x3f   :  { %v7050_v22 = vld [vmem:[%s10452_s4 + $0x7e0] ss:$36 sps:$4 sm:$0xff]  }
  0x40   :  { %3855 = vmatpush1.bf16.msra.mxu1 %v6976_v38  ;;  %v101_v38 = vmul.f32 %v70_v18, %v51_v24  ;;  %v152_v43 = vadd.f32 %v124_v23, %v102_v36  ;;  %v7044_v18 = vld [vmem:[%s10452_s4 + $0x798] ss:$36 sps:$4 sm:$0xff]   ;;  %v7053_v23 = vld [vmem:[%s10452_s4 + $0x10e0] ss:$36 sps:$4 sm:$0xff]   ;;  %v7058_v24 = vld [vmem:[%s10452_s4 + $0x82c] ss:$36 sps:$4 sm:$0xff]  }
  0x41   :  { %3937 = vmatpush1.bf16.msra.mxu0 %v6977_v39  ;;  %3865 = vmatprep.subr.bf16.mxu1 %v6980_v40  ;;  %v106_v39 = vmul.f32 %v90_v20, %v56_v29  ;;  %v105_v40 = vmul.f32 %v86_v21, %v55_v31  ;;  %v7052_v20 = vld [vmem:[%s10452_s4 + $0x7e4] ss:$36 sps:$4 sm:$0xff]   ;;  %v7067_v29 = vld [vmem:[%s10452_s4 + $0x1174] ss:$36 sps:$4 sm:$0xff]  }
  0x42   :  { %3947 = vmatprep.subr.bf16.mxu0 %v6983_v44  ;;  %v151_v57 = vadd.f32 %v120_v25, %v101_v38  ;;  %v7023_v44 = vld [vmem:[%s10452_s4 + $0xf78] ss:$36 sps:$4 sm:$0xff]   ;;  %vm160_vm4 = vcmp.ge.f32.partialorder %v152_v43, 0.0  ;;  %v7055_v21 = vld [vmem:[%s10452_s4 + $0x10e4] ss:$36 sps:$4 sm:$0xff]  }
  0x43   :  { %3857 = vmatmul.mubr.bf16.vlgmr.msra.gmra.mrb[0].mxu1 %v8283_v49  ;;  %v7061_v25 = vld [vmem:[%s10452_s4 + $0x112c] ss:$36 sps:$4 sm:$0xff]   ;;  %v7071_v36 = vld [vmem:[%s10452_s4 + $0x11b8] ss:$36 sps:$4 sm:$0xff]  }
  0x44   :  { %3939 = vmatmul.mubr.bf16.vlgmr.msra.gmra.mrb[0].mxu0 %v8285_v51  ;;  %3866 = vmatpush1.bf16.msra.mxu1 %v6978_v45  ;;  %v7028_v45 = vld [vmem:[%s10452_s4 + $0x6c4] ss:$36 sps:$4 sm:$0xff]   ;;  %vm159_vm5 = vcmp.ge.f32.partialorder %v151_v57, 0.0  ;;  %v7065_v31 = vld [vmem:[%s10452_s4 + $0x1170] ss:$36 sps:$4 sm:$0xff]  }
  0x45   :  { %3948 = vmatpush1.bf16.msra.mxu0 %v6981_v46  ;;  %3867 = vmatprep.subr.bf16.mxu1 %v6986_v52  ;;  %v156_v46 = vadd.f32 %v140_v30, %v106_v39  ;;  %v155_v52 = vadd.f32 %v136_v33, %v105_v40  ;;  %v7062_v30 = vld [vmem:[%s10452_s4 + $0x870] ss:$36 sps:$4 sm:$0xff]   ;;  %v7070_v33 = vld [vmem:[%s10452_s4 + $0x8bc] ss:$36 sps:$4 sm:$0xff]  }
  0x46   :  { %3949 = vmatprep.subr.bf16.mxu0 %v6989_v53  ;;  %v7031_v53 = vld [vmem:[%s10452_s4 + $0xfc4] ss:$36 sps:$4 sm:$0xff]   ;;  %v7076_v38 = vld [vmem:[%s10452_s4 + $0xc] ss:$36 sps:$4 sm:$0xff]   ;;  %v7079_v39 = vld [vmem:[%s10452_s4 + $0x14] ss:$36 sps:$4 sm:$0xff]  }
  0x47   :  { %vm164_vm6 = vcmp.ge.f32.partialorder %v156_v46, 0.0  ;;  %vm163_vm7 = vcmp.ge.f32.partialorder %v155_v52, 0.0 }
  0x48   :  { %3868 = vmatpush1.bf16.msra.mxu1 %v6984_v55  ;;  %v170_v55 = vmul.f32 %v8219_v9, %v152_v43 }
  0x49   :  { %3950 = vmatpush1.bf16.msra.mxu0 %v6987_v58  ;;  %3869 = vmatprep.subr.bf16.mxu1 %v6992_v59  ;;  %v169_v58 = vmul.f32 %v8219_v9, %v151_v57  ;;  %v174_v59 = vmul.f32 %v8219_v9, %v156_v46 }
  0x4a   :  { %3951 = vmatprep.subr.bf16.mxu0 %v6995_v60  ;;  %v173_v60 = vmul.f32 %v8219_v9, %v155_v52  ;;  %v7034_v9 = vld [vmem:[%s10452_s4 + $0x70c] ss:$36 sps:$4 sm:$0xff]  }
  0x4c   :  { %3870 = vmatpush1.bf16.msra.mxu1 %v6990_v61  ;;  %v178_v61 = vsel %vm160_vm4, %v152_v43, %v170_v55  ;;  %v7074_v43 = vld [vmem:[%s10452_s4 + $0x8] ss:$36 sps:$4 sm:$0xff]   ;;  %vm5954_vm4 = vcmask 130048  }
  0x4d   :  { %3952 = vmatpush1.bf16.msra.mxu0 %v6993_v62  ;;  %3871 = vmatprep.subr.bf16.mxu1 %v6998_v63  ;;  %v8417_v62 = vsel %vm159_vm5, %v151_v57, %v169_v58  ;;  %v7026_v63 = vld [vmem:[%s10452_s4 + $0x6c0] ss:$36 sps:$4 sm:$0xff]   ;;  %v7077_v57 = vld [vmem:[%s10452_s4 + $0x10] ss:$36 sps:$4 sm:$0xff]   ;;  %v7086_v58 = vld [vmem:[%s10452_s4 + $0x98] ss:$36 sps:$4 sm:$0xff]  }
  0x4e   :  { %3953 = vmatprep.subr.bf16.mxu0 %v7001_v0  ;;  %v7029_v0 = vld [vmem:[%s10452_s4 + $0xfc0] ss:$36 sps:$4 sm:$0xff]   ;;  %v8523_v40 = vpack.c.bf16 %v8417_v62, %v8417_v62 }
  0x4f   :  { %v7091_v55 = vld [vmem:[%s10452_s4 + $0xa4] ss:$36 sps:$4 sm:$0xff]  }
  0x50   :  { %3872 = vmatpush1.bf16.msra.mxu1 %v6996_v1  ;;  %v8425_v1 = vpack.c.bf16 %v178_v61, %v178_v61  ;;  %v7097_v61 = vld [vmem:[%s10452_s4 + $0xec] ss:$36 sps:$4 sm:$0xff]   ;;  %v7092_v62 = vld [vmem:[%s10452_s4 + $0xe0] ss:$36 sps:$4 sm:$0xff]  }
  0x51   :  { %3954 = vmatpush1.bf16.msra.mxu0 %v6999_v2  ;;  %3873 = vmatprep.subr.bf16.mxu1 %v7004_v3  ;;  %v182_v2 = vsel %vm164_vm6, %v156_v46, %v174_v59  ;;  %v7037_v3 = vld [vmem:[%s10452_s4 + $0x100c] ss:$36 sps:$4 sm:$0xff]   ;;  %v7089_v59 = vld [vmem:[%s10452_s4 + $0xa0] ss:$36 sps:$4 sm:$0xff]  }
  0x52   :  { %3955 = vmatprep.subr.bf16.mxu0 %v7007_v4  ;;  %v8433_v4 = vpack.c.bf16 %v182_v2, %v182_v2  ;;  %3897 = vmatprep.mubr.bf16.mxu1 %v8425_v1  ;;  %v7080_v46 = vld [vmem:[%s10452_s4 + $0x50] ss:$36 sps:$4 sm:$0xff]  }
  0x53   :  { %v7103_v2 = vld [vmem:[%s10452_s4 + $0x134] ss:$36 sps:$4 sm:$0xff]  }
  0x54   :  { %3874 = vmatpush1.bf16.msra.mxu1 %v7002_v5  ;;  %v181_v5 = vsel %vm163_vm7, %v155_v52, %v173_v60  ;;  %3979 = vmatprep.mubr.bf16.mxu0 %v8433_v4  ;;  %v7083_v52 = vld [vmem:[%s10452_s4 + $0x58] ss:$36 sps:$4 sm:$0xff]   ;;  %v7094_v60 = vld [vmem:[%s10452_s4 + $0xe4] ss:$36 sps:$4 sm:$0xff]  }
  0x55   :  { %3956 = vmatpush1.bf16.msra.mxu0 %v7005_v6  ;;  %3875 = vmatprep.subr.bf16.mxu1 %v7010_v7  ;;  %v7032_v6 = vld [vmem:[%s10452_s4 + $0x708] ss:$36 sps:$4 sm:$0xff]  }
  0x56   :  { %3957 = vmatprep.subr.bf16.mxu0 %v7013_v8  ;;  %v7035_v7 = vld [vmem:[%s10452_s4 + $0x1008] ss:$36 sps:$4 sm:$0xff]   ;;  %v7040_v8 = vld [vmem:[%s10452_s4 + $0x754] ss:$36 sps:$4 sm:$0xff]  }
  0x58   :  { %3876 = vmatpush1.bf16.msra.mxu1 %v7008_v14  ;;  %v7043_v14 = vld [vmem:[%s10452_s4 + $0x1054] ss:$36 sps:$4 sm:$0xff]  }
  0x59   :  { %3958 = vmatpush1.bf16.msra.mxu0 %v7011_v15  ;;  %3877 = vmatprep.subr.bf16.mxu1 %v7016_v16  ;;  %v7038_v15 = vld [vmem:[%s10452_s4 + $0x750] ss:$36 sps:$4 sm:$0xff]  }
  0x5a   :  { %3959 = vmatprep.subr.bf16.mxu0 %v7019_v42  ;;  %v7041_v16 = vld [vmem:[%s10452_s4 + $0x1050] ss:$36 sps:$4 sm:$0xff]   ;;  %v7046_v42 = vld [vmem:[%s10452_s4 + $0x79c] ss:$36 sps:$4 sm:$0xff]  }
  0x5c   :  { %3878 = vmatpush1.bf16.msra.mxu1 %v7014_v27  ;;  %v7059_v27 = vld [vmem:[%s10452_s4 + $0x1128] ss:$36 sps:$4 sm:$0xff]  }
  0x5d   :  { %3960 = vmatpush1.bf16.msra.mxu0 %v7017_v56  ;;  %3879 = vmatprep.subr.bf16.mxu1 %v7022_v34  ;;  %v7064_v56 = vld [vmem:[%s10452_s4 + $0x874] ss:$36 sps:$4 sm:$0xff]   ;;  %v7073_v34 = vld [vmem:[%s10452_s4 + $0x11bc] ss:$36 sps:$4 sm:$0xff]  }
  0x5e   :  { %3961 = vmatprep.subr.bf16.mxu0 %v7025_v35  ;;  %v7068_v35 = vld [vmem:[%s10452_s4 + $0x8b8] ss:$36 sps:$4 sm:$0xff]  }
  0x60   :  { %3880 = vmatpush1.bf16.msra.mxu1 %v7020_v41  ;;  %v8525_v41 = vpack.c.bf16 %v181_v5, %v181_v5  ;;  %v7106_v5 = vld [vmem:[%s10452_s4 + $0x174] ss:$36 sps:$4 sm:$0xff]  }
  0x61   :  { %3962 = vmatpush1.bf16.msra.mxu0 %v7023_v44  ;;  %3881 = vmatprep.subr.bf16.mxu1 %v7028_v45  ;;  %v7082_v44 = vld [vmem:[%s10452_s4 + $0x54] ss:$36 sps:$4 sm:$0xff]   ;;  %v7085_v45 = vld [vmem:[%s10452_s4 + $0x5c] ss:$36 sps:$4 sm:$0xff]  }
  0x62   :  { %3963 = vmatprep.subr.bf16.mxu0 %v7031_v53  ;;  %v7088_v53 = vld [vmem:[%s10452_s4 + $0x9c] ss:$36 sps:$4 sm:$0xff]  }
  0x64   :  { %3882 = vmatpush1.bf16.msra.mxu1 %v7026_v63  ;;  %v7095_v63 = vld [vmem:[%s10452_s4 + $0xe8] ss:$36 sps:$4 sm:$0xff]  }
  0x65   :  { %3964 = vmatpush1.bf16.msra.mxu0 %v7029_v0  ;;  %3883 = vmatprep.subr.bf16.mxu1 %v7034_v9  ;;  %v7100_v0 = vld [vmem:[%s10452_s4 + $0x12c] ss:$36 sps:$4 sm:$0xff]  }
  0x66   :  { %3965 = vmatprep.subr.bf16.mxu0 %v7037_v3  ;;  %v7098_v9 = vld [vmem:[%s10452_s4 + $0x128] ss:$36 sps:$4 sm:$0xff]   ;;  %v7101_v3 = vld [vmem:[%s10452_s4 + $0x130] ss:$36 sps:$4 sm:$0xff]  }
  0x68   :  { %3884 = vmatpush1.bf16.msra.mxu1 %v7032_v6  ;;  %v7109_v6 = vld [vmem:[%s10452_s4 + $0x17c] ss:$36 sps:$4 sm:$0xff]  }
  0x69   :  { %3966 = vmatpush1.bf16.msra.mxu0 %v7035_v7  ;;  %3885 = vmatprep.subr.bf16.mxu1 %v7040_v8  ;;  %v7104_v7 = vld [vmem:[%s10452_s4 + $0x170] ss:$36 sps:$4 sm:$0xff]   ;;  %v7107_v8 = vld [vmem:[%s10452_s4 + $0x178] ss:$36 sps:$4 sm:$0xff]  }
  0x6a   :  { %3967 = vmatprep.subr.bf16.mxu0 %v7043_v14  ;;  %v7112_v14 = vld [vmem:[%s10452_s4 + $0x1bc] ss:$36 sps:$4 sm:$0xff]  }
  0x6c   :  { %3886 = vmatpush1.bf16.msra.mxu1 %v7038_v15  ;;  %v7115_v15 = vld [vmem:[%s10452_s4 + $0x1c4] ss:$36 sps:$4 sm:$0xff]  }
  0x6d   :  { %3968 = vmatpush1.bf16.msra.mxu0 %v7041_v16  ;;  %3887 = vmatprep.subr.bf16.mxu1 %v7046_v42  ;;  %v7110_v16 = vld [vmem:[%s10452_s4 + $0x1b8] ss:$36 sps:$4 sm:$0xff]   ;;  %v7113_v42 = vld [vmem:[%s10452_s4 + $0x1c0] ss:$36 sps:$4 sm:$0xff]  }
  0x6e   :  { %3969 = vmatprep.subr.bf16.mxu0 %v7049_v17  ;;  %v7118_v17 = vld [vmem:[%s10452_s4 + $0x204] ss:$36 sps:$4 sm:$0xff]  }
  0x70   :  { %3888 = vmatpush1.bf16.msra.mxu1 %v7044_v18  ;;  %v7121_v18 = vld [vmem:[%s10452_s4 + $0x20c] ss:$36 sps:$4 sm:$0xff]  }
  0x71   :  { %3970 = vmatpush1.bf16.msra.mxu0 %v7047_v19  ;;  %3889 = vmatprep.subr.bf16.mxu1 %v7052_v20  ;;  %v7116_v19 = vld [vmem:[%s10452_s4 + $0x200] ss:$36 sps:$4 sm:$0xff]   ;;  %v7119_v20 = vld [vmem:[%s10452_s4 + $0x208] ss:$36 sps:$4 sm:$0xff]  }
  0x72   :  { %3971 = vmatprep.subr.bf16.mxu0 %v7055_v21  ;;  %v7124_v21 = vld [vmem:[%s10452_s4 + $0x24c] ss:$36 sps:$4 sm:$0xff]  }
  0x74   :  { %3890 = vmatpush1.bf16.msra.mxu1 %v7050_v22  ;;  %v7127_v22 = vld [vmem:[%s10452_s4 + $0x254] ss:$36 sps:$4 sm:$0xff]  }
  0x75   :  { %3972 = vmatpush1.bf16.msra.mxu0 %v7053_v23  ;;  %3891 = vmatprep.subr.bf16.mxu1 %v7058_v24  ;;  %v7122_v23 = vld [vmem:[%s10452_s4 + $0x248] ss:$36 sps:$4 sm:$0xff]   ;;  %v7125_v24 = vld [vmem:[%s10452_s4 + $0x250] ss:$36 sps:$4 sm:$0xff]  }
  0x76   :  { %3973 = vmatprep.subr.bf16.mxu0 %v7061_v25  ;;  %v7130_v25 = vld [vmem:[%s10452_s4 + $0x294] ss:$36 sps:$4 sm:$0xff]  }
  0x78   :  { %3892 = vmatpush1.bf16.msra.mxu1 %v7056_v26  ;;  %v7133_v26 = vld [vmem:[%s10452_s4 + $0x29c] ss:$36 sps:$4 sm:$0xff]  }
  0x79   :  { %3974 = vmatpush1.bf16.msra.mxu0 %v7059_v27  ;;  %3893 = vmatprep.subr.bf16.mxu1 %v7064_v56  ;;  %v7128_v27 = vld [vmem:[%s10452_s4 + $0x290] ss:$36 sps:$4 sm:$0xff]   ;;  %v7131_v56 = vld [vmem:[%s10452_s4 + $0x298] ss:$36 sps:$4 sm:$0xff]  }
  0x7a   :  { %3975 = vmatprep.subr.bf16.mxu0 %v7067_v29  ;;  %v7136_v29 = vld [vmem:[%s10452_s4 + $0x2dc] ss:$36 sps:$4 sm:$0xff]  }
  0x7c   :  { %3894 = vmatpush1.bf16.msra.mxu1 %v7062_v30  ;;  %v7139_v30 = vld [vmem:[%s10452_s4 + $0x2e4] ss:$36 sps:$4 sm:$0xff]  }
  0x7d   :  { %3976 = vmatpush1.bf16.msra.mxu0 %v7065_v31  ;;  %3895 = vmatprep.subr.bf16.mxu1 %v7070_v33  ;;  %v7134_v31 = vld [vmem:[%s10452_s4 + $0x2d8] ss:$36 sps:$4 sm:$0xff]   ;;  %v7137_v33 = vld [vmem:[%s10452_s4 + $0x2e0] ss:$36 sps:$4 sm:$0xff]  }
  0x7e   :  { %3977 = vmatprep.subr.bf16.mxu0 %v7073_v34  ;;  %v7142_v34 = vld [vmem:[%s10452_s4 + $0x324] ss:$36 sps:$4 sm:$0xff]  }
  0x80   :  { %3896 = vmatpush1.bf16.msra.mxu1 %v7068_v35  ;;  %v7145_v35 = vld [vmem:[%s10452_s4 + $0x32c] ss:$36 sps:$4 sm:$0xff]  }
  0x81   :  { %3978 = vmatpush1.bf16.msra.mxu0 %v7071_v36  ;;  %3988 = vmatprep.subr.bf16.mxu1 %v7076_v38  ;;  %v7140_v36 = vld [vmem:[%s10452_s4 + $0x320] ss:$36 sps:$4 sm:$0xff]   ;;  %v7143_v38 = vld [vmem:[%s10452_s4 + $0x328] ss:$36 sps:$4 sm:$0xff]  }
  0x82   :  { %4152 = vmatprep.subr.bf16.mxu0 %v7079_v39  ;;  %v7148_v39 = vld [vmem:[%s10452_s4 + $0x36c] ss:$36 sps:$4 sm:$0xff]  }
  0x83   :  { %3898 = vmatmul.mubr.bf16.vlgmr.msra.gmra.mrb[0].mxu1 %v8523_v40 }
  0x84   :  { %3980 = vmatmul.mubr.bf16.vlgmr.msra.gmra.mrb[0].mxu0 %v8525_v41  ;;  %3989 = vmatpush1.bf16.msra.mxu1 %v7074_v43  ;;  %v7151_v43 = vld [vmem:[%s10452_s4 + $0x374] ss:$36 sps:$4 sm:$0xff]  }
  0x85   :  { %4153 = vmatpush1.bf16.msra.mxu0 %v7077_v57  ;;  %3990 = vmatprep.subr.bf16.mxu1 %v7082_v44  ;;  %v7146_v57 = vld [vmem:[%s10452_s4 + $0x368] ss:$36 sps:$4 sm:$0xff]   ;;  %v7149_v44 = vld [vmem:[%s10452_s4 + $0x370] ss:$36 sps:$4 sm:$0xff]  }
  0x86   :  { %4154 = vmatprep.subr.bf16.mxu0 %v7085_v45  ;;  %4020 = vmatprep.mubr.bf16.mxu1 %v8245_v28  ;;  %v7154_v45 = vld [vmem:[%s10452_s4 + $0x3b4] ss:$36 sps:$4 sm:$0xff]  }
  0x87   :  { %4184 = vmatprep.mubr.bf16.mxu0 %v8245_v28 }
  0x88   :  { %3991 = vmatpush1.bf16.msra.mxu1 %v7080_v46  ;;  %v7157_v46 = vld [vmem:[%s10452_s4 + $0x3bc] ss:$36 sps:$4 sm:$0xff]  }
  0x89   :  { %4155 = vmatpush1.bf16.msra.mxu0 %v7083_v52  ;;  %3992 = vmatprep.subr.bf16.mxu1 %v7088_v53  ;;  %v7152_v52 = vld [vmem:[%s10452_s4 + $0x3b0] ss:$36 sps:$4 sm:$0xff]   ;;  %v7155_v53 = vld [vmem:[%s10452_s4 + $0x3b8] ss:$36 sps:$4 sm:$0xff]  }
  0x8a   :  { %4156 = vmatprep.subr.bf16.mxu0 %v7091_v55  ;;  %v7160_v55 = vld [vmem:[%s10452_s4 + $0x3fc] ss:$36 sps:$4 sm:$0xff]  }
  0x8c   :  { %3993 = vmatpush1.bf16.msra.mxu1 %v7086_v58  ;;  %v7163_v58 = vld [vmem:[%s10452_s4 + $0x404] ss:$36 sps:$4 sm:$0xff]  }
  0x8d   :  { %4157 = vmatpush1.bf16.msra.mxu0 %v7089_v59  ;;  %3994 = vmatprep.subr.bf16.mxu1 %v7094_v60  ;;  %v7158_v59 = vld [vmem:[%s10452_s4 + $0x3f8] ss:$36 sps:$4 sm:$0xff]   ;;  %v7161_v60 = vld [vmem:[%s10452_s4 + $0x400] ss:$36 sps:$4 sm:$0xff]  }
  0x8e   :  { %4158 = vmatprep.subr.bf16.mxu0 %v7097_v61  ;;  %v7166_v61 = vld [vmem:[%s10452_s4 + $0x444] ss:$36 sps:$4 sm:$0xff]  }
  0x90   :  { %3995 = vmatpush1.bf16.msra.mxu1 %v7092_v62  ;;  %v7169_v62 = vld [vmem:[%s10452_s4 + $0x44c] ss:$36 sps:$4 sm:$0xff]  }
  0x91   :  { %4159 = vmatpush1.bf16.msra.mxu0 %v7095_v63  ;;  %3996 = vmatprep.subr.bf16.mxu1 %v7100_v0  ;;  %v7164_v63 = vld [vmem:[%s10452_s4 + $0x440] ss:$36 sps:$4 sm:$0xff]   ;;  %v7167_v0 = vld [vmem:[%s10452_s4 + $0x448] ss:$36 sps:$4 sm:$0xff]  }
  0x92   :  { %4160 = vmatprep.subr.bf16.mxu0 %v7103_v2  ;;  %v7172_v2 = vld [vmem:[%s10452_s4 + $0x48c] ss:$36 sps:$4 sm:$0xff]  }
  0x94   :  { %3997 = vmatpush1.bf16.msra.mxu1 %v7098_v9  ;;  %v7175_v9 = vld [vmem:[%s10452_s4 + $0x494] ss:$36 sps:$4 sm:$0xff]  }
  0x95   :  { %4161 = vmatpush1.bf16.msra.mxu0 %v7101_v3  ;;  %3998 = vmatprep.subr.bf16.mxu1 %v7106_v5  ;;  %v7170_v3 = vld [vmem:[%s10452_s4 + $0x488] ss:$36 sps:$4 sm:$0xff]   ;;  %v7173_v5 = vld [vmem:[%s10452_s4 + $0x490] ss:$36 sps:$4 sm:$0xff]  }
  0x96   :  { %4162 = vmatprep.subr.bf16.mxu0 %v7109_v6  ;;  %v7178_v6 = vld [vmem:[%s10452_s4 + $0x4d4] ss:$36 sps:$4 sm:$0xff]  }
  0x98   :  { %3999 = vmatpush1.bf16.msra.mxu1 %v7104_v7  ;;  %v7181_v7 = vld [vmem:[%s10452_s4 + $0x4dc] ss:$36 sps:$4 sm:$0xff]  }
  0x99   :  { %4163 = vmatpush1.bf16.msra.mxu0 %v7107_v8  ;;  %4000 = vmatprep.subr.bf16.mxu1 %v7112_v14  ;;  %v7176_v8 = vld [vmem:[%s10452_s4 + $0x4d0] ss:$36 sps:$4 sm:$0xff]   ;;  %v7179_v14 = vld [vmem:[%s10452_s4 + $0x4d8] ss:$36 sps:$4 sm:$0xff]  }
  0x9a   :  { %4164 = vmatprep.subr.bf16.mxu0 %v7115_v15  ;;  %v7184_v15 = vld [vmem:[%s10452_s4 + $0x51c] ss:$36 sps:$4 sm:$0xff]  }
  0x9c   :  { %4001 = vmatpush1.bf16.msra.mxu1 %v7110_v16  ;;  %v7187_v16 = vld [vmem:[%s10452_s4 + $0x524] ss:$36 sps:$4 sm:$0xff]  }
  0x9d   :  { %4165 = vmatpush1.bf16.msra.mxu0 %v7113_v42  ;;  %4002 = vmatprep.subr.bf16.mxu1 %v7118_v17  ;;  %v7182_v42 = vld [vmem:[%s10452_s4 + $0x518] ss:$36 sps:$4 sm:$0xff]   ;;  %v7185_v17 = vld [vmem:[%s10452_s4 + $0x520] ss:$36 sps:$4 sm:$0xff]  }
  0x9e   :  { %4166 = vmatprep.subr.bf16.mxu0 %v7121_v18  ;;  %v7190_v18 = vld [vmem:[%s10452_s4 + $0x564] ss:$36 sps:$4 sm:$0xff]  }
  0xa0   :  { %4003 = vmatpush1.bf16.msra.mxu1 %v7116_v19  ;;  %v7193_v19 = vld [vmem:[%s10452_s4 + $0x56c] ss:$36 sps:$4 sm:$0xff]  }
  0xa1   :  { %4167 = vmatpush1.bf16.msra.mxu0 %v7119_v20  ;;  %4004 = vmatprep.subr.bf16.mxu1 %v7124_v21  ;;  %v7188_v20 = vld [vmem:[%s10452_s4 + $0x560] ss:$36 sps:$4 sm:$0xff]   ;;  %v7191_v21 = vld [vmem:[%s10452_s4 + $0x568] ss:$36 sps:$4 sm:$0xff]  }
  0xa2   :  { %4168 = vmatprep.subr.bf16.mxu0 %v7127_v22  ;;  %v7196_v22 = vld [vmem:[%s10452_s4 + $0x5ac] ss:$36 sps:$4 sm:$0xff]  }
  0xa4   :  { %4005 = vmatpush1.bf16.msra.mxu1 %v7122_v23  ;;  %v7199_v23 = vld [vmem:[%s10452_s4 + $0x5b4] ss:$36 sps:$4 sm:$0xff]  }
  0xa5   :  { %4169 = vmatpush1.bf16.msra.mxu0 %v7125_v24  ;;  %4006 = vmatprep.subr.bf16.mxu1 %v7130_v25  ;;  %v7194_v24 = vld [vmem:[%s10452_s4 + $0x5a8] ss:$36 sps:$4 sm:$0xff]   ;;  %v7197_v25 = vld [vmem:[%s10452_s4 + $0x5b0] ss:$36 sps:$4 sm:$0xff]  }
  0xa6   :  { %4170 = vmatprep.subr.bf16.mxu0 %v7133_v26  ;;  %v7202_v26 = vld [vmem:[%s10452_s4 + $0x5f4] ss:$36 sps:$4 sm:$0xff]  }
  0xa8   :  { %4007 = vmatpush1.bf16.msra.mxu1 %v7128_v27  ;;  %v7205_v27 = vld [vmem:[%s10452_s4 + $0x5fc] ss:$36 sps:$4 sm:$0xff]  }
  0xa9   :  { %4171 = vmatpush1.bf16.msra.mxu0 %v7131_v56  ;;  %4008 = vmatprep.subr.bf16.mxu1 %v7136_v29  ;;  %v7200_v56 = vld [vmem:[%s10452_s4 + $0x5f0] ss:$36 sps:$4 sm:$0xff]   ;;  %v7203_v29 = vld [vmem:[%s10452_s4 + $0x5f8] ss:$36 sps:$4 sm:$0xff]  }
  0xaa   :  { %4172 = vmatprep.subr.bf16.mxu0 %v7139_v30  ;;  %v7208_v30 = vld [vmem:[%s10452_s4 + $0x63c] ss:$36 sps:$4 sm:$0xff]  }
  0xac   :  { %4009 = vmatpush1.bf16.msra.mxu1 %v7134_v31  ;;  %v7211_v31 = vld [vmem:[%s10452_s4 + $0x644] ss:$36 sps:$4 sm:$0xff]  }
  0xad   :  { %4173 = vmatpush1.bf16.msra.mxu0 %v7137_v33  ;;  %4010 = vmatprep.subr.bf16.mxu1 %v7142_v34  ;;  %v7206_v33 = vld [vmem:[%s10452_s4 + $0x638] ss:$36 sps:$4 sm:$0xff]   ;;  %v7209_v34 = vld [vmem:[%s10452_s4 + $0x640] ss:$36 sps:$4 sm:$0xff]  }
  0xae   :  { %4174 = vmatprep.subr.bf16.mxu0 %v7145_v35  ;;  %v7214_v35 = vld [vmem:[%s10452_s4 + $0x684] ss:$36 sps:$4 sm:$0xff]  }
  0xb0   :  { %4011 = vmatpush1.bf16.msra.mxu1 %v7140_v36  ;;  %v7217_v36 = vld [vmem:[%s10452_s4 + $0x68c] ss:$36 sps:$4 sm:$0xff]  }
  0xb1   :  { %4175 = vmatpush1.bf16.msra.mxu0 %v7143_v38  ;;  %4012 = vmatprep.subr.bf16.mxu1 %v7148_v39  ;;  %v7212_v38 = vld [vmem:[%s10452_s4 + $0x680] ss:$36 sps:$4 sm:$0xff]   ;;  %v7215_v39 = vld [vmem:[%s10452_s4 + $0x688] ss:$36 sps:$4 sm:$0xff]  }
  0xb2   :  { %4176 = vmatprep.subr.bf16.mxu0 %v7151_v43  ;;  %v7220_v43 = vld [vmem:[%s10452_s4 + $0x6cc] ss:$36 sps:$4 sm:$0xff]  }
  0xb4   :  { %4013 = vmatpush1.bf16.msra.mxu1 %v7146_v57  ;;  %v7223_v57 = vld [vmem:[%s10452_s4 + $0x6d4] ss:$36 sps:$4 sm:$0xff]  }
  0xb5   :  { %4177 = vmatpush1.bf16.msra.mxu0 %v7149_v44  ;;  %4014 = vmatprep.subr.bf16.mxu1 %v7154_v45  ;;  %v7218_v44 = vld [vmem:[%s10452_s4 + $0x6c8] ss:$36 sps:$4 sm:$0xff]   ;;  %v7221_v45 = vld [vmem:[%s10452_s4 + $0x6d0] ss:$36 sps:$4 sm:$0xff]  }
  0xb6   :  { %4178 = vmatprep.subr.bf16.mxu0 %v7157_v46  ;;  %v7226_v46 = vld [vmem:[%s10452_s4 + $0x714] ss:$36 sps:$4 sm:$0xff]  }
  0xb8   :  { %4015 = vmatpush1.bf16.msra.mxu1 %v7152_v52  ;;  %v7229_v52 = vld [vmem:[%s10452_s4 + $0x71c] ss:$36 sps:$4 sm:$0xff]  }
  0xb9   :  { %4179 = vmatpush1.bf16.msra.mxu0 %v7155_v53  ;;  %4016 = vmatprep.subr.bf16.mxu1 %v7160_v55  ;;  %v7224_v53 = vld [vmem:[%s10452_s4 + $0x710] ss:$36 sps:$4 sm:$0xff]   ;;  %v7227_v55 = vld [vmem:[%s10452_s4 + $0x718] ss:$36 sps:$4 sm:$0xff]  }
  0xba   :  { %4180 = vmatprep.subr.bf16.mxu0 %v7163_v58  ;;  %v7232_v58 = vld [vmem:[%s10452_s4 + $0x75c] ss:$36 sps:$4 sm:$0xff]  }
  0xbc   :  { %4017 = vmatpush1.bf16.msra.mxu1 %v7158_v59  ;;  %v7235_v59 = vld [vmem:[%s10452_s4 + $0x764] ss:$36 sps:$4 sm:$0xff]  }
  0xbd   :  { %4181 = vmatpush1.bf16.msra.mxu0 %v7161_v60  ;;  %4018 = vmatprep.subr.bf16.mxu1 %v7166_v61  ;;  %v7230_v60 = vld [vmem:[%s10452_s4 + $0x758] ss:$36 sps:$4 sm:$0xff]   ;;  %v7233_v61 = vld [vmem:[%s10452_s4 + $0x760] ss:$36 sps:$4 sm:$0xff]  }
  0xbe   :  { %4182 = vmatprep.subr.bf16.mxu0 %v7169_v62  ;;  %v7238_v62 = vld [vmem:[%s10452_s4 + $0x7a4] ss:$36 sps:$4 sm:$0xff]  }
  0xc0   :  { %4019 = vmatpush1.bf16.msra.mxu1 %v7164_v63  ;;  %v7241_v63 = vld [vmem:[%s10452_s4 + $0x7ac] ss:$36 sps:$4 sm:$0xff]  }
  0xc1   :  { %4183 = vmatpush1.bf16.msra.mxu0 %v7167_v0  ;;  %4029 = vmatprep.subr.bf16.mxu1 %v7172_v2  ;;  %v7236_v0 = vld [vmem:[%s10452_s4 + $0x7a0] ss:$36 sps:$4 sm:$0xff]   ;;  %v7239_v2 = vld [vmem:[%s10452_s4 + $0x7a8] ss:$36 sps:$4 sm:$0xff]  }
  0xc2   :  { %4193 = vmatprep.subr.bf16.mxu0 %v7175_v9  ;;  %v7244_v9 = vld [vmem:[%s10452_s4 + $0x7ec] ss:$36 sps:$4 sm:$0xff]  }
  0xc3   :  { %4021 = vmatmul.mubr.bf16.vlgmr.msra.gmra.mrb[4].mxu1 %v8283_v49 }
  0xc4   :  { %4185 = vmatmul.mubr.bf16.vlgmr.msra.gmra.mrb[4].mxu0 %v8283_v49  ;;  %4030 = vmatpush1.bf16.msra.mxu1 %v7170_v3  ;;  %v7247_v3 = vld [vmem:[%s10452_s4 + $0x7f4] ss:$36 sps:$4 sm:$0xff]  }
  0xc5   :  { %4194 = vmatpush1.bf16.msra.mxu0 %v7173_v5  ;;  %4031 = vmatprep.subr.bf16.mxu1 %v7178_v6  ;;  %v7242_v5 = vld [vmem:[%s10452_s4 + $0x7e8] ss:$36 sps:$4 sm:$0xff]   ;;  %v7245_v6 = vld [vmem:[%s10452_s4 + $0x7f0] ss:$36 sps:$4 sm:$0xff]  }
  0xc6   :  { %4195 = vmatprep.subr.bf16.mxu0 %v7181_v7  ;;  %4061 = vmatprep.mubr.bf16.mxu1 %v8425_v1  ;;  %v7250_v7 = vld [vmem:[%s10452_s4 + $0x834] ss:$36 sps:$4 sm:$0xff]  }
  0xc7   :  { %4225 = vmatprep.mubr.bf16.mxu0 %v8425_v1 }
  0xc8   :  { %4032 = vmatpush1.bf16.msra.mxu1 %v7176_v8  ;;  %v7253_v8 = vld [vmem:[%s10452_s4 + $0x83c] ss:$36 sps:$4 sm:$0xff]  }
  0xc9   :  { %4196 = vmatpush1.bf16.msra.mxu0 %v7179_v14  ;;  %4033 = vmatprep.subr.bf16.mxu1 %v7184_v15  ;;  %v7248_v14 = vld [vmem:[%s10452_s4 + $0x830] ss:$36 sps:$4 sm:$0xff]   ;;  %v7251_v15 = vld [vmem:[%s10452_s4 + $0x838] ss:$36 sps:$4 sm:$0xff]  }
  0xca   :  { %4197 = vmatprep.subr.bf16.mxu0 %v7187_v16  ;;  %v7256_v16 = vld [vmem:[%s10452_s4 + $0x87c] ss:$36 sps:$4 sm:$0xff]  }
  0xcc   :  { %4034 = vmatpush1.bf16.msra.mxu1 %v7182_v42  ;;  %v7259_v42 = vld [vmem:[%s10452_s4 + $0x884] ss:$36 sps:$4 sm:$0xff]  }
  0xcd   :  { %4198 = vmatpush1.bf16.msra.mxu0 %v7185_v17  ;;  %4035 = vmatprep.subr.bf16.mxu1 %v7190_v18  ;;  %v7254_v17 = vld [vmem:[%s10452_s4 + $0x878] ss:$36 sps:$4 sm:$0xff]   ;;  %v7257_v18 = vld [vmem:[%s10452_s4 + $0x880] ss:$36 sps:$4 sm:$0xff]  }
  0xce   :  { %4199 = vmatprep.subr.bf16.mxu0 %v7193_v19  ;;  %v7262_v19 = vld [vmem:[%s10452_s4 + $0x8c4] ss:$36 sps:$4 sm:$0xff]  }
  0xd0   :  { %4036 = vmatpush1.bf16.msra.mxu1 %v7188_v20  ;;  %v7265_v20 = vld [vmem:[%s10452_s4 + $0x8cc] ss:$36 sps:$4 sm:$0xff]  }
  0xd1   :  { %4200 = vmatpush1.bf16.msra.mxu0 %v7191_v21  ;;  %4037 = vmatprep.subr.bf16.mxu1 %v7196_v22  ;;  %v7260_v21 = vld [vmem:[%s10452_s4 + $0x8c0] ss:$36 sps:$4 sm:$0xff]   ;;  %v7263_v22 = vld [vmem:[%s10452_s4 + $0x8c8] ss:$36 sps:$4 sm:$0xff]  }
  0xd2   :  { %4201 = vmatprep.subr.bf16.mxu0 %v7199_v23  ;;  %v7268_v23 = vld [vmem:[%s10452_s4 + $0x90c] ss:$36 sps:$4 sm:$0xff]  }
  0xd4   :  { %4038 = vmatpush1.bf16.msra.mxu1 %v7194_v24  ;;  %v7271_v24 = vld [vmem:[%s10452_s4 + $0x914] ss:$36 sps:$4 sm:$0xff]  }
  0xd5   :  { %4202 = vmatpush1.bf16.msra.mxu0 %v7197_v25  ;;  %4039 = vmatprep.subr.bf16.mxu1 %v7202_v26  ;;  %v7266_v25 = vld [vmem:[%s10452_s4 + $0x908] ss:$36 sps:$4 sm:$0xff]   ;;  %v7269_v26 = vld [vmem:[%s10452_s4 + $0x910] ss:$36 sps:$4 sm:$0xff]  }
  0xd6   :  { %4203 = vmatprep.subr.bf16.mxu0 %v7205_v27  ;;  %v7274_v27 = vld [vmem:[%s10452_s4 + $0x954] ss:$36 sps:$4 sm:$0xff]  }
  0xd8   :  { %4040 = vmatpush1.bf16.msra.mxu1 %v7200_v56  ;;  %v7277_v56 = vld [vmem:[%s10452_s4 + $0x95c] ss:$36 sps:$4 sm:$0xff]  }
  0xd9   :  { %4204 = vmatpush1.bf16.msra.mxu0 %v7203_v29  ;;  %4041 = vmatprep.subr.bf16.mxu1 %v7208_v30  ;;  %v7272_v29 = vld [vmem:[%s10452_s4 + $0x950] ss:$36 sps:$4 sm:$0xff]   ;;  %v7275_v30 = vld [vmem:[%s10452_s4 + $0x958] ss:$36 sps:$4 sm:$0xff]  }
  0xda   :  { %4205 = vmatprep.subr.bf16.mxu0 %v7211_v31  ;;  %v7280_v31 = vld [vmem:[%s10452_s4 + $0x99c] ss:$36 sps:$4 sm:$0xff]  }
  0xdc   :  { %4042 = vmatpush1.bf16.msra.mxu1 %v7206_v33  ;;  %v7283_v33 = vld [vmem:[%s10452_s4 + $0x9a4] ss:$36 sps:$4 sm:$0xff]  }
  0xdd   :  { %4206 = vmatpush1.bf16.msra.mxu0 %v7209_v34  ;;  %4043 = vmatprep.subr.bf16.mxu1 %v7214_v35  ;;  %v7278_v34 = vld [vmem:[%s10452_s4 + $0x998] ss:$36 sps:$4 sm:$0xff]   ;;  %v7281_v35 = vld [vmem:[%s10452_s4 + $0x9a0] ss:$36 sps:$4 sm:$0xff]  }
  0xde   :  { %4207 = vmatprep.subr.bf16.mxu0 %v7217_v36  ;;  %v7286_v36 = vld [vmem:[%s10452_s4 + $0x9e4] ss:$36 sps:$4 sm:$0xff]  }
  0xe0   :  { %4044 = vmatpush1.bf16.msra.mxu1 %v7212_v38  ;;  %v7289_v38 = vld [vmem:[%s10452_s4 + $0x9ec] ss:$36 sps:$4 sm:$0xff]  }
  0xe1   :  { %4208 = vmatpush1.bf16.msra.mxu0 %v7215_v39  ;;  %4045 = vmatprep.subr.bf16.mxu1 %v7220_v43  ;;  %v7284_v39 = vld [vmem:[%s10452_s4 + $0x9e0] ss:$36 sps:$4 sm:$0xff]   ;;  %v7287_v43 = vld [vmem:[%s10452_s4 + $0x9e8] ss:$36 sps:$4 sm:$0xff]  }
  0xe2   :  { %4209 = vmatprep.subr.bf16.mxu0 %v7223_v57  ;;  %v7292_v57 = vld [vmem:[%s10452_s4 + $0xa2c] ss:$36 sps:$4 sm:$0xff]  }
  0xe4   :  { %4046 = vmatpush1.bf16.msra.mxu1 %v7218_v44  ;;  %v7295_v44 = vld [vmem:[%s10452_s4 + $0xa34] ss:$36 sps:$4 sm:$0xff]  }
  0xe5   :  { %4210 = vmatpush1.bf16.msra.mxu0 %v7221_v45  ;;  %4047 = vmatprep.subr.bf16.mxu1 %v7226_v46  ;;  %v7290_v45 = vld [vmem:[%s10452_s4 + $0xa28] ss:$36 sps:$4 sm:$0xff]   ;;  %v7293_v46 = vld [vmem:[%s10452_s4 + $0xa30] ss:$36 sps:$4 sm:$0xff]  }
  0xe6   :  { %4211 = vmatprep.subr.bf16.mxu0 %v7229_v52  ;;  %v7298_v52 = vld [vmem:[%s10452_s4 + $0xa74] ss:$36 sps:$4 sm:$0xff]  }
  0xe8   :  { %4048 = vmatpush1.bf16.msra.mxu1 %v7224_v53  ;;  %v7301_v53 = vld [vmem:[%s10452_s4 + $0xa7c] ss:$36 sps:$4 sm:$0xff]  }
  0xe9   :  { %4212 = vmatpush1.bf16.msra.mxu0 %v7227_v55  ;;  %4049 = vmatprep.subr.bf16.mxu1 %v7232_v58  ;;  %v7296_v55 = vld [vmem:[%s10452_s4 + $0xa70] ss:$36 sps:$4 sm:$0xff]   ;;  %v7299_v58 = vld [vmem:[%s10452_s4 + $0xa78] ss:$36 sps:$4 sm:$0xff]  }
  0xea   :  { %4213 = vmatprep.subr.bf16.mxu0 %v7235_v59  ;;  %v7304_v59 = vld [vmem:[%s10452_s4 + $0xabc] ss:$36 sps:$4 sm:$0xff]  }
  0xec   :  { %4050 = vmatpush1.bf16.msra.mxu1 %v7230_v60  ;;  %v7307_v60 = vld [vmem:[%s10452_s4 + $0xac4] ss:$36 sps:$4 sm:$0xff]  }
  0xed   :  { %4214 = vmatpush1.bf16.msra.mxu0 %v7233_v61  ;;  %4051 = vmatprep.subr.bf16.mxu1 %v7238_v62  ;;  %v7302_v61 = vld [vmem:[%s10452_s4 + $0xab8] ss:$36 sps:$4 sm:$0xff]   ;;  %v7305_v62 = vld [vmem:[%s10452_s4 + $0xac0] ss:$36 sps:$4 sm:$0xff]  }
  0xee   :  { %4215 = vmatprep.subr.bf16.mxu0 %v7241_v63  ;;  %v7310_v63 = vld [vmem:[%s10452_s4 + $0xb04] ss:$36 sps:$4 sm:$0xff]  }
  0xf0   :  { %4052 = vmatpush1.bf16.msra.mxu1 %v7236_v0  ;;  %v7313_v0 = vld [vmem:[%s10452_s4 + $0xb0c] ss:$36 sps:$4 sm:$0xff]  }
  0xf1   :  { %4216 = vmatpush1.bf16.msra.mxu0 %v7239_v2  ;;  %4053 = vmatprep.subr.bf16.mxu1 %v7244_v9  ;;  %v7308_v2 = vld [vmem:[%s10452_s4 + $0xb00] ss:$36 sps:$4 sm:$0xff]   ;;  %v7311_v9 = vld [vmem:[%s10452_s4 + $0xb08] ss:$36 sps:$4 sm:$0xff]  }
  0xf2   :  { %4217 = vmatprep.subr.bf16.mxu0 %v7247_v3  ;;  %v7316_v3 = vld [vmem:[%s10452_s4 + $0xb4c] ss:$36 sps:$4 sm:$0xff]  }
  0xf4   :  { %4054 = vmatpush1.bf16.msra.mxu1 %v7242_v5  ;;  %v7319_v5 = vld [vmem:[%s10452_s4 + $0xb54] ss:$36 sps:$4 sm:$0xff]  }
  0xf5   :  { %4218 = vmatpush1.bf16.msra.mxu0 %v7245_v6  ;;  %4055 = vmatprep.subr.bf16.mxu1 %v7250_v7  ;;  %v7314_v6 = vld [vmem:[%s10452_s4 + $0xb48] ss:$36 sps:$4 sm:$0xff]   ;;  %v7317_v7 = vld [vmem:[%s10452_s4 + $0xb50] ss:$36 sps:$4 sm:$0xff]  }
  0xf6   :  { %4219 = vmatprep.subr.bf16.mxu0 %v7253_v8  ;;  %v7322_v8 = vld [vmem:[%s10452_s4 + $0xb94] ss:$36 sps:$4 sm:$0xff]  }
  0xf8   :  { %4056 = vmatpush1.bf16.msra.mxu1 %v7248_v14  ;;  %v7325_v14 = vld [vmem:[%s10452_s4 + $0xb9c] ss:$36 sps:$4 sm:$0xff]  }
  0xf9   :  { %4220 = vmatpush1.bf16.msra.mxu0 %v7251_v15  ;;  %4057 = vmatprep.subr.bf16.mxu1 %v7256_v16  ;;  %v7320_v15 = vld [vmem:[%s10452_s4 + $0xb90] ss:$36 sps:$4 sm:$0xff]   ;;  %v7323_v16 = vld [vmem:[%s10452_s4 + $0xb98] ss:$36 sps:$4 sm:$0xff]  }
  0xfa   :  { %4221 = vmatprep.subr.bf16.mxu0 %v7259_v42  ;;  %v7328_v42 = vld [vmem:[%s10452_s4 + $0xbdc] ss:$36 sps:$4 sm:$0xff]  }
  0xfc   :  { %4058 = vmatpush1.bf16.msra.mxu1 %v7254_v17  ;;  %v7331_v17 = vld [vmem:[%s10452_s4 + $0xbe4] ss:$36 sps:$4 sm:$0xff]  }
  0xfd   :  { %4222 = vmatpush1.bf16.msra.mxu0 %v7257_v18  ;;  %4059 = vmatprep.subr.bf16.mxu1 %v7262_v19  ;;  %v7326_v18 = vld [vmem:[%s10452_s4 + $0xbd8] ss:$36 sps:$4 sm:$0xff]   ;;  %v7329_v19 = vld [vmem:[%s10452_s4 + $0xbe0] ss:$36 sps:$4 sm:$0xff]  }
  0xfe   :  { %4223 = vmatprep.subr.bf16.mxu0 %v7265_v20  ;;  %v7334_v20 = vld [vmem:[%s10452_s4 + $0xc24] ss:$36 sps:$4 sm:$0xff]  }
 0x100   :  { %4060 = vmatpush1.bf16.msra.mxu1 %v7260_v21  ;;  %v7337_v21 = vld [vmem:[%s10452_s4 + $0xc2c] ss:$36 sps:$4 sm:$0xff]  }
 0x101   :  { %4224 = vmatpush1.bf16.msra.mxu0 %v7263_v22  ;;  %4070 = vmatprep.subr.bf16.mxu1 %v7268_v23  ;;  %v7332_v22 = vld [vmem:[%s10452_s4 + $0xc20] ss:$36 sps:$4 sm:$0xff]   ;;  %v7335_v23 = vld [vmem:[%s10452_s4 + $0xc28] ss:$36 sps:$4 sm:$0xff]  }
 0x102   :  { %4234 = vmatprep.subr.bf16.mxu0 %v7271_v24  ;;  %v7340_v24 = vld [vmem:[%s10452_s4 + $0xc6c] ss:$36 sps:$4 sm:$0xff]  }
 0x103   :  { %4062 = vmatmul.mubr.bf16.vlgmr.msra.gmra.mrb[4].mxu1 %v8523_v40 }
 0x104   :  { %4226 = vmatmul.mubr.bf16.vlgmr.msra.gmra.mrb[4].mxu0 %v8523_v40  ;;  %4071 = vmatpush1.bf16.msra.mxu1 %v7266_v25  ;;  %v7343_v25 = vld [vmem:[%s10452_s4 + $0xc74] ss:$36 sps:$4 sm:$0xff]  }
 0x105   :  { %4235 = vmatpush1.bf16.msra.mxu0 %v7269_v26  ;;  %4072 = vmatprep.subr.bf16.mxu1 %v7274_v27  ;;  %v7338_v26 = vld [vmem:[%s10452_s4 + $0xc68] ss:$36 sps:$4 sm:$0xff]   ;;  %v7341_v27 = vld [vmem:[%s10452_s4 + $0xc70] ss:$36 sps:$4 sm:$0xff]  }
 0x106   :  { %4236 = vmatprep.subr.bf16.mxu0 %v7277_v56  ;;  %4102 = vmatprep.mubr.bf16.mxu1 %v8254_v32  ;;  %v7346_v56 = vld [vmem:[%s10452_s4 + $0xcb4] ss:$36 sps:$4 sm:$0xff]  }
 0x107   :  { %4266 = vmatprep.mubr.bf16.mxu0 %v8254_v32 }
 0x108   :  { %4073 = vmatpush1.bf16.msra.mxu1 %v7272_v29  ;;  %v7349_v29 = vld [vmem:[%s10452_s4 + $0xcbc] ss:$36 sps:$4 sm:$0xff]  }
 0x109   :  { %4237 = vmatpush1.bf16.msra.mxu0 %v7275_v30  ;;  %4074 = vmatprep.subr.bf16.mxu1 %v7280_v31  ;;  %v7344_v30 = vld [vmem:[%s10452_s4 + $0xcb0] ss:$36 sps:$4 sm:$0xff]   ;;  %v7347_v31 = vld [vmem:[%s10452_s4 + $0xcb8] ss:$36 sps:$4 sm:$0xff]  }
 0x10a   :  { %4238 = vmatprep.subr.bf16.mxu0 %v7283_v33  ;;  %v7352_v33 = vld [vmem:[%s10452_s4 + $0xcfc] ss:$36 sps:$4 sm:$0xff]  }
 0x10c   :  { %4075 = vmatpush1.bf16.msra.mxu1 %v7278_v34  ;;  %v7355_v34 = vld [vmem:[%s10452_s4 + $0xd04] ss:$36 sps:$4 sm:$0xff]  }
 0x10d   :  { %4239 = vmatpush1.bf16.msra.mxu0 %v7281_v35  ;;  %4076 = vmatprep.subr.bf16.mxu1 %v7286_v36  ;;  %v7350_v35 = vld [vmem:[%s10452_s4 + $0xcf8] ss:$36 sps:$4 sm:$0xff]   ;;  %v7353_v36 = vld [vmem:[%s10452_s4 + $0xd00] ss:$36 sps:$4 sm:$0xff]  }
 0x10e   :  { %4240 = vmatprep.subr.bf16.mxu0 %v7289_v38  ;;  %v7358_v38 = vld [vmem:[%s10452_s4 + $0xd44] ss:$36 sps:$4 sm:$0xff]  }
 0x110   :  { %4077 = vmatpush1.bf16.msra.mxu1 %v7284_v39  ;;  %v7361_v39 = vld [vmem:[%s10452_s4 + $0xd4c] ss:$36 sps:$4 sm:$0xff]  }
 0x111   :  { %4241 = vmatpush1.bf16.msra.mxu0 %v7287_v43  ;;  %4078 = vmatprep.subr.bf16.mxu1 %v7292_v57  ;;  %v7356_v43 = vld [vmem:[%s10452_s4 + $0xd40] ss:$36 sps:$4 sm:$0xff]   ;;  %v7359_v57 = vld [vmem:[%s10452_s4 + $0xd48] ss:$36 sps:$4 sm:$0xff]  }
 0x112   :  { %4242 = vmatprep.subr.bf16.mxu0 %v7295_v44  ;;  %v7364_v44 = vld [vmem:[%s10452_s4 + $0xd8c] ss:$36 sps:$4 sm:$0xff]  }
 0x114   :  { %4079 = vmatpush1.bf16.msra.mxu1 %v7290_v45  ;;  %v7367_v45 = vld [vmem:[%s10452_s4 + $0xd94] ss:$36 sps:$4 sm:$0xff]  }
 0x115   :  { %4243 = vmatpush1.bf16.msra.mxu0 %v7293_v46  ;;  %4080 = vmatprep.subr.bf16.mxu1 %v7298_v52  ;;  %v7362_v46 = vld [vmem:[%s10452_s4 + $0xd88] ss:$36 sps:$4 sm:$0xff]   ;;  %v7365_v52 = vld [vmem:[%s10452_s4 + $0xd90] ss:$36 sps:$4 sm:$0xff]  }
 0x116   :  { %4244 = vmatprep.subr.bf16.mxu0 %v7301_v53  ;;  %v7370_v53 = vld [vmem:[%s10452_s4 + $0xdd4] ss:$36 sps:$4 sm:$0xff]  }
 0x118   :  { %4081 = vmatpush1.bf16.msra.mxu1 %v7296_v55  ;;  %v7373_v55 = vld [vmem:[%s10452_s4 + $0xddc] ss:$36 sps:$4 sm:$0xff]  }
 0x119   :  { %4245 = vmatpush1.bf16.msra.mxu0 %v7299_v58  ;;  %4082 = vmatprep.subr.bf16.mxu1 %v7304_v59  ;;  %v7368_v58 = vld [vmem:[%s10452_s4 + $0xdd0] ss:$36 sps:$4 sm:$0xff]   ;;  %v7371_v59 = vld [vmem:[%s10452_s4 + $0xdd8] ss:$36 sps:$4 sm:$0xff]  }
 0x11a   :  { %4246 = vmatprep.subr.bf16.mxu0 %v7307_v60  ;;  %v7376_v60 = vld [vmem:[%s10452_s4 + $0xe1c] ss:$36 sps:$4 sm:$0xff]  }
 0x11c   :  { %4083 = vmatpush1.bf16.msra.mxu1 %v7302_v61  ;;  %v7379_v61 = vld [vmem:[%s10452_s4 + $0xe24] ss:$36 sps:$4 sm:$0xff]  }
 0x11d   :  { %4247 = vmatpush1.bf16.msra.mxu0 %v7305_v62  ;;  %4084 = vmatprep.subr.bf16.mxu1 %v7310_v63  ;;  %v7374_v62 = vld [vmem:[%s10452_s4 + $0xe18] ss:$36 sps:$4 sm:$0xff]   ;;  %v7377_v63 = vld [vmem:[%s10452_s4 + $0xe20] ss:$36 sps:$4 sm:$0xff]  }
 0x11e   :  { %4248 = vmatprep.subr.bf16.mxu0 %v7313_v0  ;;  %v7382_v0 = vld [vmem:[%s10452_s4 + $0xe64] ss:$36 sps:$4 sm:$0xff]  }
 0x120   :  { %4085 = vmatpush1.bf16.msra.mxu1 %v7308_v2  ;;  %v7385_v2 = vld [vmem:[%s10452_s4 + $0xe6c] ss:$36 sps:$4 sm:$0xff]  }
 0x121   :  { %4249 = vmatpush1.bf16.msra.mxu0 %v7311_v9  ;;  %4086 = vmatprep.subr.bf16.mxu1 %v7316_v3  ;;  %v7380_v9 = vld [vmem:[%s10452_s4 + $0xe60] ss:$36 sps:$4 sm:$0xff]   ;;  %v7383_v3 = vld [vmem:[%s10452_s4 + $0xe68] ss:$36 sps:$4 sm:$0xff]  }
 0x122   :  { %4250 = vmatprep.subr.bf16.mxu0 %v7319_v5  ;;  %v7388_v5 = vld [vmem:[%s10452_s4 + $0xeac] ss:$36 sps:$4 sm:$0xff]  }
 0x124   :  { %4087 = vmatpush1.bf16.msra.mxu1 %v7314_v6  ;;  %v7391_v6 = vld [vmem:[%s10452_s4 + $0xeb4] ss:$36 sps:$4 sm:$0xff]  }
 0x125   :  { %4251 = vmatpush1.bf16.msra.mxu0 %v7317_v7  ;;  %4088 = vmatprep.subr.bf16.mxu1 %v7322_v8  ;;  %v7386_v7 = vld [vmem:[%s10452_s4 + $0xea8] ss:$36 sps:$4 sm:$0xff]   ;;  %v7389_v8 = vld [vmem:[%s10452_s4 + $0xeb0] ss:$36 sps:$4 sm:$0xff]  }
 0x126   :  { %4252 = vmatprep.subr.bf16.mxu0 %v7325_v14  ;;  %v831_v14 = vld [vmem:[%s10458_s5] sm:$0xff] }
 0x128   :  { %4089 = vmatpush1.bf16.msra.mxu1 %v7320_v15  ;;  %v7394_v15 = vld [vmem:[%s10452_s4 + $0xef4] ss:$36 sps:$4 sm:$0xff]  }
 0x129   :  { %4253 = vmatpush1.bf16.msra.mxu0 %v7323_v16  ;;  %4090 = vmatprep.subr.bf16.mxu1 %v7328_v42  ;;  %v7397_v16 = vld [vmem:[%s10452_s4 + $0xefc] ss:$36 sps:$4 sm:$0xff]   ;;  %v838_v42 = vrot.slane %v831_v14, %v8165_v50 }
 0x12a   :  { %4254 = vmatprep.subr.bf16.mxu0 %v7331_v17  ;;  %v842_v17 = vrot.slane %v831_v14, %v8156_v47  ;;  %v7442_v14 = vld [vmem:[%s10452_s4 + $0x1134] ss:$36 sps:$4 sm:$0xff]  }
 0x12c   :  { %4091 = vmatpush1.bf16.msra.mxu1 %v7326_v18  ;;  %v7392_v18 = vld [vmem:[%s10452_s4 + $0xef0] ss:$36 sps:$4 sm:$0xff]  }
 0x12d   :  { %4255 = vmatpush1.bf16.msra.mxu0 %v7329_v19  ;;  %4092 = vmatprep.subr.bf16.mxu1 %v7334_v20  ;;  %v7395_v19 = vld [vmem:[%s10452_s4 + $0xef8] ss:$36 sps:$4 sm:$0xff]  }
 0x12e   :  { %4256 = vmatprep.subr.bf16.mxu0 %v7337_v21  ;;  %v7400_v20 = vld [vmem:[%s10452_s4 + $0xf3c] ss:$36 sps:$4 sm:$0xff]   ;;  %v7403_v21 = vld [vmem:[%s10452_s4 + $0xf44] ss:$36 sps:$4 sm:$0xff]  }
 0x130   :  { %4093 = vmatpush1.bf16.msra.mxu1 %v7332_v22 }
 0x131   :  { %4257 = vmatpush1.bf16.msra.mxu0 %v7335_v23  ;;  %4094 = vmatprep.subr.bf16.mxu1 %v7340_v24 }
 0x132   :  { %4258 = vmatprep.subr.bf16.mxu0 %v7343_v25 }
 0x134   :  { %4095 = vmatpush1.bf16.msra.mxu1 %v7338_v26 }
 0x135   :  { %4259 = vmatpush1.bf16.msra.mxu0 %v7341_v27  ;;  %4096 = vmatprep.subr.bf16.mxu1 %v7346_v56 }
 0x136   :  { %4260 = vmatprep.subr.bf16.mxu0 %v7349_v29  ;;  %v7398_v29 = vld [vmem:[%s10452_s4 + $0xf38] ss:$36 sps:$4 sm:$0xff]  }
 0x138   :  { %4097 = vmatpush1.bf16.msra.mxu1 %v7344_v30  ;;  %v7401_v30 = vld [vmem:[%s10452_s4 + $0xf40] ss:$36 sps:$4 sm:$0xff]  }
 0x139   :  { %4261 = vmatpush1.bf16.msra.mxu0 %v7347_v31  ;;  %4098 = vmatprep.subr.bf16.mxu1 %v7352_v33 }
 0x13a   :  { %4262 = vmatprep.subr.bf16.mxu0 %v7355_v34 }
 0x13c   :  { %4099 = vmatpush1.bf16.msra.mxu1 %v7350_v35  ;;  %v7406_v35 = vld [vmem:[%s10452_s4 + $0xf84] ss:$36 sps:$4 sm:$0xff]  }
 0x13d   :  { %4263 = vmatpush1.bf16.msra.mxu0 %v7353_v36  ;;  %4100 = vmatprep.subr.bf16.mxu1 %v7358_v38  ;;  %v7409_v36 = vld [vmem:[%s10452_s4 + $0xf8c] ss:$36 sps:$4 sm:$0xff]  }
 0x13e   :  { %4264 = vmatprep.subr.bf16.mxu0 %v7361_v39 }
 0x140   :  { %4101 = vmatpush1.bf16.msra.mxu1 %v7356_v43  ;;  %v7404_v43 = vld [vmem:[%s10452_s4 + $0xf80] ss:$36 sps:$4 sm:$0xff]  }
 0x141   :  { %4265 = vmatpush1.bf16.msra.mxu0 %v7359_v57  ;;  %4111 = vmatprep.subr.bf16.mxu1 %v7364_v44  ;;  %v7407_v57 = vld [vmem:[%s10452_s4 + $0xf88] ss:$36 sps:$4 sm:$0xff]  }
 0x142   :  { %4275 = vmatprep.subr.bf16.mxu0 %v7367_v45  ;;  %v7412_v44 = vld [vmem:[%s10452_s4 + $0xfcc] ss:$36 sps:$4 sm:$0xff]   ;;  %v7415_v45 = vld [vmem:[%s10452_s4 + $0xfd4] ss:$36 sps:$4 sm:$0xff]  }
 0x143   :  { %4103 = vmatmul.mubr.bf16.vlgmr.msra.gmra.mrb[4].mxu1 %v8285_v51 }
 0x144   :  { %4267 = vmatmul.mubr.bf16.vlgmr.msra.gmra.mrb[4].mxu0 %v8285_v51  ;;  %4112 = vmatpush1.bf16.msra.mxu1 %v7362_v46  ;;  %v7410_v46 = vld [vmem:[%s10452_s4 + $0xfc8] ss:$36 sps:$4 sm:$0xff]  }
 0x145   :  { %4276 = vmatpush1.bf16.msra.mxu0 %v7365_v52  ;;  %4113 = vmatprep.subr.bf16.mxu1 %v7370_v53  ;;  %v7413_v52 = vld [vmem:[%s10452_s4 + $0xfd0] ss:$36 sps:$4 sm:$0xff]  }
 0x146   :  { %4277 = vmatprep.subr.bf16.mxu0 %v7373_v55  ;;  %4143 = vmatprep.mubr.bf16.mxu1 %v8433_v4  ;;  %v7418_v53 = vld [vmem:[%s10452_s4 + $0x1014] ss:$36 sps:$4 sm:$0xff]   ;;  %v7421_v55 = vld [vmem:[%s10452_s4 + $0x101c] ss:$36 sps:$4 sm:$0xff]  }
 0x147   :  { %4307 = vmatprep.mubr.bf16.mxu0 %v8433_v4 }
 0x148   :  { %4114 = vmatpush1.bf16.msra.mxu1 %v7368_v58  ;;  %v7416_v58 = vld [vmem:[%s10452_s4 + $0x1010] ss:$36 sps:$4 sm:$0xff]  }
 0x149   :  { %4278 = vmatpush1.bf16.msra.mxu0 %v7371_v59  ;;  %4115 = vmatprep.subr.bf16.mxu1 %v7376_v60  ;;  %v7419_v59 = vld [vmem:[%s10452_s4 + $0x1018] ss:$36 sps:$4 sm:$0xff]  }
 0x14a   :  { %4279 = vmatprep.subr.bf16.mxu0 %v7379_v61  ;;  %v7424_v60 = vld [vmem:[%s10452_s4 + $0x105c] ss:$36 sps:$4 sm:$0xff]   ;;  %v7427_v61 = vld [vmem:[%s10452_s4 + $0x1064] ss:$36 sps:$4 sm:$0xff]  }
 0x14c   :  { %4116 = vmatpush1.bf16.msra.mxu1 %v7374_v62  ;;  %v7422_v62 = vld [vmem:[%s10452_s4 + $0x1058] ss:$36 sps:$4 sm:$0xff]  }
 0x14d   :  { %4280 = vmatpush1.bf16.msra.mxu0 %v7377_v63  ;;  %4117 = vmatprep.subr.bf16.mxu1 %v7382_v0  ;;  %v7425_v63 = vld [vmem:[%s10452_s4 + $0x1060] ss:$36 sps:$4 sm:$0xff]  }
 0x14e   :  { %4281 = vmatprep.subr.bf16.mxu0 %v7385_v2  ;;  %v7430_v0 = vld [vmem:[%s10452_s4 + $0x10a4] ss:$36 sps:$4 sm:$0xff]   ;;  %v7433_v2 = vld [vmem:[%s10452_s4 + $0x10ac] ss:$36 sps:$4 sm:$0xff]  }
 0x150   :  { %4118 = vmatpush1.bf16.msra.mxu1 %v7380_v9  ;;  %v7428_v9 = vld [vmem:[%s10452_s4 + $0x10a0] ss:$36 sps:$4 sm:$0xff]  }
 0x151   :  { %4282 = vmatpush1.bf16.msra.mxu0 %v7383_v3  ;;  %4119 = vmatprep.subr.bf16.mxu1 %v7388_v5  ;;  %v7431_v3 = vld [vmem:[%s10452_s4 + $0x10a8] ss:$36 sps:$4 sm:$0xff]  }
 0x152   :  { %4283 = vmatprep.subr.bf16.mxu0 %v7391_v6  ;;  %v7436_v5 = vld [vmem:[%s10452_s4 + $0x10ec] ss:$36 sps:$4 sm:$0xff]   ;;  %v7439_v6 = vld [vmem:[%s10452_s4 + $0x10f4] ss:$36 sps:$4 sm:$0xff]  }
 0x154   :  { %4120 = vmatpush1.bf16.msra.mxu1 %v7386_v7  ;;  %v7434_v7 = vld [vmem:[%s10452_s4 + $0x10e8] ss:$36 sps:$4 sm:$0xff]  }
 0x155   :  { %4284 = vmatpush1.bf16.msra.mxu0 %v7389_v8  ;;  %4121 = vmatprep.subr.bf16.mxu1 %v7394_v15  ;;  %v7437_v8 = vld [vmem:[%s10452_s4 + $0x10f0] ss:$36 sps:$4 sm:$0xff]   ;;  %v7445_v15 = vld [vmem:[%s10452_s4 + $0x113c] ss:$36 sps:$4 sm:$0xff]  }
 0x156   :  { %4285 = vmatprep.subr.bf16.mxu0 %v7397_v16  ;;  %v3899_v22 = vpop.f32.mrb[0].mxu1  ;;  %v7440_v16 = vld [vmem:[%s10452_s4 + $0x1130] ss:$36 sps:$4 sm:$0xff]  }
 0x157   :  { %v3981_v23 = vpop.f32.mrb[0].mxu0  ;;  %v6809_v24 = vadd.f32 %v3899_v22, %v838_v42  ;;  %v3901_v25 = vpop.f32.mrb[1].mxu1  ;;  %v7443_v42 = vld [vmem:[%s10452_s4 + $0x1138] ss:$36 sps:$4 sm:$0xff]   ;;  %v7457_v22 = vld [vmem:[%s10452_s4 + $0x11cc] ss:$36 sps:$4 sm:$0xff]  }
 0x158   :  { %v3983_v26 = vpop.f32.mrb[1].mxu0  ;;  %v6811_v27 = vadd.f32 %v3901_v25, %v842_v17  ;;  %v3903_v56 = vpop.f32.mrb[2].mxu1  ;;  %4122 = vmatpush1.bf16.msra.mxu1 %v7392_v18  ;;  %v7448_v17 = vld [vmem:[%s10452_s4 + $0x117c] ss:$36 sps:$4 sm:$0xff]   ;;  %v7451_v18 = vld [vmem:[%s10452_s4 + $0x1184] ss:$36 sps:$4 sm:$0xff]  }
 0x159   :  { %4286 = vmatpush1.bf16.msra.mxu0 %v7395_v19  ;;  %v3985_v31 = vpop.f32.mrb[2].mxu0  ;;  %v9202_v33 = vadd.f32 %v6809_v24, %v3981_v23  ;;  %v3904_v34 = vpop.f32.mrb[3].mxu1  ;;  %4123 = vmatprep.subr.bf16.mxu1 %v7400_v20  ;;  %v7446_v19 = vld [vmem:[%s10452_s4 + $0x1178] ss:$36 sps:$4 sm:$0xff]   ;;  %v7449_v20 = vld [vmem:[%s10452_s4 + $0x1180] ss:$36 sps:$4 sm:$0xff]  }
 0x15a   :  { %4287 = vmatprep.subr.bf16.mxu0 %v7403_v21  ;;  %v3986_v38 = vpop.f32.mrb[3].mxu0  ;;  %v9210_v39 = vadd.f32 %v6811_v27, %v3983_v26  ;;  %v7454_v21 = vld [vmem:[%s10452_s4 + $0x11c4] ss:$36 sps:$4 sm:$0xff]   ;;  %v7460_v25 = vld [vmem:[%s10452_s4 + $0x1c] ss:$36 sps:$4 sm:$0xff]  }
 0x15b   :  { %v7452_v23 = vld [vmem:[%s10452_s4 + $0x11c0] ss:$36 sps:$4 sm:$0xff]   ;;  %v7455_v24 = vld [vmem:[%s10452_s4 + $0x11c8] ss:$36 sps:$4 sm:$0xff]   ;;  %v7458_v27 = vld [vmem:[%s10452_s4 + $0x18] ss:$36 sps:$4 sm:$0xff]  }
 0x15c   :  { %4124 = vmatpush1.bf16.msra.mxu1 %v7398_v29  ;;  %v7461_v26 = vld [vmem:[%s10452_s4 + $0x260] ss:$36 sps:$4 sm:$0xff]   ;;  %v7467_v34 = vld [vmem:[%s10452_s4 + $0x68] ss:$36 sps:$4 sm:$0xff]   ;;  %vm4641_vm8 = vcmp.ge.f32.partialorder %v9210_v39, 0.0  ;;  %vm4640_vm9 = vcmp.ge.f32.partialorder %v9202_v33, 0.0 }
 0x15d   :  { %4288 = vmatpush1.bf16.msra.mxu0 %v7401_v30  ;;  %4125 = vmatprep.subr.bf16.mxu1 %v7406_v35  ;;  %v7462_v56 = vld [vmem:[%s10452_s4 + $0x20] ss:$36 sps:$4 sm:$0xff]   ;;  %v7466_v30 = vld [vmem:[%s10452_s4 + $0x2a8] ss:$36 sps:$4 sm:$0xff]  }
 0x15e   :  { %4289 = vmatprep.subr.bf16.mxu0 %v7409_v36  ;;  %v7465_v29 = vld [vmem:[%s10452_s4 + $0x64] ss:$36 sps:$4 sm:$0xff]   ;;  %v7470_v35 = vld [vmem:[%s10452_s4 + $0xac] ss:$36 sps:$4 sm:$0xff]  }
 0x15f   :  { %v7463_v31 = vld [vmem:[%s10452_s4 + $0x60] ss:$36 sps:$4 sm:$0xff]   ;;  %v7471_v36 = vld [vmem:[%s10452_s4 + $0x2f0] ss:$36 sps:$4 sm:$0xff]   ;;  %v7468_v38 = vld [vmem:[%s10452_s4 + $0xa8] ss:$36 sps:$4 sm:$0xff]  }
 0x160   :  { %4126 = vmatpush1.bf16.msra.mxu1 %v7404_v43  ;;  %v7472_v43 = vld [vmem:[%s10452_s4 + $0xb0] ss:$36 sps:$4 sm:$0xff]  }
 0x161   :  { %4290 = vmatpush1.bf16.msra.mxu0 %v7407_v57  ;;  %4127 = vmatprep.subr.bf16.mxu1 %v7412_v44  ;;  %v7475_v57 = vld [vmem:[%s10452_s4 + $0xf4] ss:$36 sps:$4 sm:$0xff]  }
 0x162   :  { %4291 = vmatprep.subr.bf16.mxu0 %v7415_v45  ;;  %v7476_v44 = vld [vmem:[%s10452_s4 + $0x338] ss:$36 sps:$4 sm:$0xff]   ;;  %v7473_v45 = vld [vmem:[%s10452_s4 + $0xf0] ss:$36 sps:$4 sm:$0xff]  }
 0x164   :  { %4128 = vmatpush1.bf16.msra.mxu1 %v7410_v46  ;;  %v7480_v46 = vld [vmem:[%s10452_s4 + $0x13c] ss:$36 sps:$4 sm:$0xff]  }
 0x165   :  { %4292 = vmatpush1.bf16.msra.mxu0 %v7413_v52  ;;  %4129 = vmatprep.subr.bf16.mxu1 %v7418_v53  ;;  %v7481_v52 = vld [vmem:[%s10452_s4 + $0x380] ss:$36 sps:$4 sm:$0xff]   ;;  %v7478_v53 = vld [vmem:[%s10452_s4 + $0x138] ss:$36 sps:$4 sm:$0xff]  }
 0x166   :  { %4293 = vmatprep.subr.bf16.mxu0 %v7421_v55  ;;  %v7482_v55 = vld [vmem:[%s10452_s4 + $0x140] ss:$36 sps:$4 sm:$0xff]  }
 0x168   :  { %4130 = vmatpush1.bf16.msra.mxu1 %v7416_v58  ;;  %v7485_v58 = vld [vmem:[%s10452_s4 + $0x184] ss:$36 sps:$4 sm:$0xff]  }
 0x169   :  { %4294 = vmatpush1.bf16.msra.mxu0 %v7419_v59  ;;  %4131 = vmatprep.subr.bf16.mxu1 %v7424_v60  ;;  %v7486_v59 = vld [vmem:[%s10452_s4 + $0x3c8] ss:$36 sps:$4 sm:$0xff]   ;;  %v7483_v60 = vld [vmem:[%s10452_s4 + $0x180] ss:$36 sps:$4 sm:$0xff]  }
 0x16a   :  { %4295 = vmatprep.subr.bf16.mxu0 %v7427_v61  ;;  %v7487_v61 = vld [vmem:[%s10452_s4 + $0x188] ss:$36 sps:$4 sm:$0xff]  }
 0x16c   :  { %4132 = vmatpush1.bf16.msra.mxu1 %v7422_v62  ;;  %v7490_v62 = vld [vmem:[%s10452_s4 + $0x1cc] ss:$36 sps:$4 sm:$0xff]  }
 0x16d   :  { %4296 = vmatpush1.bf16.msra.mxu0 %v7425_v63  ;;  %4133 = vmatprep.subr.bf16.mxu1 %v7430_v0  ;;  %v7491_v63 = vld [vmem:[%s10452_s4 + $0x410] ss:$36 sps:$4 sm:$0xff]   ;;  %v7488_v0 = vld [vmem:[%s10452_s4 + $0x1c8] ss:$36 sps:$4 sm:$0xff]  }
 0x16e   :  { %4297 = vmatprep.subr.bf16.mxu0 %v7433_v2  ;;  %v7492_v2 = vld [vmem:[%s10452_s4 + $0x1d0] ss:$36 sps:$4 sm:$0xff]  }
 0x170   :  { %4134 = vmatpush1.bf16.msra.mxu1 %v7428_v9  ;;  %v7495_v9 = vld [vmem:[%s10452_s4 + $0x214] ss:$36 sps:$4 sm:$0xff]  }
 0x171   :  { %4298 = vmatpush1.bf16.msra.mxu0 %v7431_v3  ;;  %4135 = vmatprep.subr.bf16.mxu1 %v7436_v5  ;;  %v7496_v3 = vld [vmem:[%s10452_s4 + $0x458] ss:$36 sps:$4 sm:$0xff]   ;;  %v7493_v5 = vld [vmem:[%s10452_s4 + $0x210] ss:$36 sps:$4 sm:$0xff]  }
 0x172   :  { %4299 = vmatprep.subr.bf16.mxu0 %v7439_v6  ;;  %v7497_v6 = vld [vmem:[%s10452_s4 + $0x218] ss:$36 sps:$4 sm:$0xff]  }
 0x174   :  { %4136 = vmatpush1.bf16.msra.mxu1 %v7434_v7  ;;  %v7500_v7 = vld [vmem:[%s10452_s4 + $0x25c] ss:$36 sps:$4 sm:$0xff]  }
 0x175   :  { %4300 = vmatpush1.bf16.msra.mxu0 %v7437_v8  ;;  %4137 = vmatprep.subr.bf16.mxu1 %v7442_v14  ;;  %v7501_v8 = vld [vmem:[%s10452_s4 + $0xb60] ss:$36 sps:$4 sm:$0xff]   ;;  %v7498_v14 = vld [vmem:[%s10452_s4 + $0x258] ss:$36 sps:$4 sm:$0xff]  }
 0x176   :  { %4301 = vmatprep.subr.bf16.mxu0 %v7445_v15  ;;  %v7502_v15 = vld [vmem:[%s10452_s4 + $0x920] ss:$36 sps:$4 sm:$0xff]  }
 0x178   :  { %4138 = vmatpush1.bf16.msra.mxu1 %v7440_v16  ;;  %v7505_v16 = vld [vmem:[%s10452_s4 + $0x2a4] ss:$36 sps:$4 sm:$0xff]  }
 0x179   :  { %4302 = vmatpush1.bf16.msra.mxu0 %v7443_v42  ;;  %4139 = vmatprep.subr.bf16.mxu1 %v7448_v17  ;;  %v7506_v42 = vld [vmem:[%s10452_s4 + $0xba8] ss:$36 sps:$4 sm:$0xff]   ;;  %v7503_v17 = vld [vmem:[%s10452_s4 + $0x2a0] ss:$36 sps:$4 sm:$0xff]  }
 0x17a   :  { %4303 = vmatprep.subr.bf16.mxu0 %v7451_v18  ;;  %v7507_v18 = vld [vmem:[%s10452_s4 + $0x968] ss:$36 sps:$4 sm:$0xff]  }
 0x17c   :  { %4140 = vmatpush1.bf16.msra.mxu1 %v7446_v19  ;;  %v7510_v19 = vld [vmem:[%s10452_s4 + $0x2ec] ss:$36 sps:$4 sm:$0xff]  }
 0x17d   :  { %4304 = vmatpush1.bf16.msra.mxu0 %v7449_v20  ;;  %4141 = vmatprep.subr.bf16.mxu1 %v7454_v21  ;;  %v7511_v20 = vld [vmem:[%s10452_s4 + $0xbf0] ss:$36 sps:$4 sm:$0xff]   ;;  %v7508_v21 = vld [vmem:[%s10452_s4 + $0x2e8] ss:$36 sps:$4 sm:$0xff]  }
 0x17e   :  { %4305 = vmatprep.subr.bf16.mxu0 %v7457_v22  ;;  %v7512_v22 = vld [vmem:[%s10452_s4 + $0x9b0] ss:$36 sps:$4 sm:$0xff]  }
 0x180   :  { %4142 = vmatpush1.bf16.msra.mxu1 %v7452_v23  ;;  %v7515_v23 = vld [vmem:[%s10452_s4 + $0x334] ss:$36 sps:$4 sm:$0xff]  }
 0x181   :  { %4306 = vmatpush1.bf16.msra.mxu0 %v7455_v24  ;;  %4316 = vmatprep.subr.bf16.mxu1 %v7460_v25  ;;  %v7516_v24 = vld [vmem:[%s10452_s4 + $0xc38] ss:$36 sps:$4 sm:$0xff]   ;;  %v7513_v25 = vld [vmem:[%s10452_s4 + $0x330] ss:$36 sps:$4 sm:$0xff]  }
 0x182   :  { %6699 = vmatprep.subr.bf16.mxu0 %v7461_v26  ;;  %v7517_v26 = vld [vmem:[%s10452_s4 + $0x9f8] ss:$36 sps:$4 sm:$0xff]  }
 0x183   :  { %4144 = vmatmul.mubr.bf16.vlgmr.msra.gmra.mrb[4].mxu1 %v8525_v41 }
 0x184   :  { %4308 = vmatmul.mubr.bf16.vlgmr.msra.gmra.mrb[4].mxu0 %v8525_v41  ;;  %4317 = vmatpush1.bf16.msra.mxu1 %v7458_v27  ;;  %v7520_v27 = vld [vmem:[%s10452_s4 + $0x37c] ss:$36 sps:$4 sm:$0xff]  }
 0x185   :  { %6700 = vmatpush3.bf16.msra.mxu0 %v7462_v56  ;;  %4318 = vmatprep.subr.bf16.mxu1 %v7465_v29  ;;  %v7521_v56 = vld [vmem:[%s10452_s4 + $0xc80] ss:$36 sps:$4 sm:$0xff]   ;;  %v7518_v29 = vld [vmem:[%s10452_s4 + $0x378] ss:$36 sps:$4 sm:$0xff]  }
 0x186   :  { %6701 = vmatprep.subr.bf16.mxu0 %v7466_v30  ;;  %4512 = vmatprep.mubr.bf16.mxu0 %v8245_v28  ;;  %v7522_v30 = vld [vmem:[%s10452_s4 + $0xa40] ss:$36 sps:$4 sm:$0xff]  }
 0x187   :  { %4348 = vmatprep.mubr.bf16.mxu1 %v8245_v28  ;;  %v7477_v28 = vld [vmem:[%s10452_s4 + $0xf8] ss:$36 sps:$4 sm:$0xff]  }
 0x188   :  { %4319 = vmatpush1.bf16.msra.mxu1 %v7463_v31  ;;  %v7525_v31 = vld [vmem:[%s10452_s4 + $0x3c4] ss:$36 sps:$4 sm:$0xff]  }
 0x189   :  { %6702 = vmatpush3.bf16.msra.mxu0 %v7467_v34  ;;  %4320 = vmatprep.subr.bf16.mxu1 %v7470_v35  ;;  %v7526_v34 = vld [vmem:[%s10452_s4 + $0xcc8] ss:$36 sps:$4 sm:$0xff]   ;;  %v7523_v35 = vld [vmem:[%s10452_s4 + $0x3c0] ss:$36 sps:$4 sm:$0xff]  }
 0x18a   :  { %6703 = vmatprep.subr.bf16.mxu0 %v7471_v36  ;;  %v7527_v36 = vld [vmem:[%s10452_s4 + $0xa88] ss:$36 sps:$4 sm:$0xff]  }
 0x18c   :  { %4321 = vmatpush1.bf16.msra.mxu1 %v7468_v38  ;;  %v7530_v38 = vld [vmem:[%s10452_s4 + $0x40c] ss:$36 sps:$4 sm:$0xff]  }
 0x18d   :  { %6704 = vmatpush3.bf16.msra.mxu0 %v7472_v43  ;;  %4322 = vmatprep.subr.bf16.mxu1 %v7475_v57  ;;  %v7531_v43 = vld [vmem:[%s10452_s4 + $0xd10] ss:$36 sps:$4 sm:$0xff]   ;;  %v7528_v57 = vld [vmem:[%s10452_s4 + $0x408] ss:$36 sps:$4 sm:$0xff]  }
 0x18e   :  { %6705 = vmatprep.subr.bf16.mxu0 %v7476_v44  ;;  %v7532_v44 = vld [vmem:[%s10452_s4 + $0xad0] ss:$36 sps:$4 sm:$0xff]  }
 0x190   :  { %4323 = vmatpush1.bf16.msra.mxu1 %v7473_v45  ;;  %v9503_v45 = vstv %s10459_s6 }
 0x191   :  { %6706 = vmatpush3.bf16.msra.mxu0 %v7477_v28  ;;  %4324 = vmatprep.subr.bf16.mxu1 %v7480_v46  ;;  %v7535_v28 = vld [vmem:[%s10452_s4 + $0x454] ss:$36 sps:$4 sm:$0xff]  }
 0x192   :  { %6707 = vmatprep.subr.bf16.mxu0 %v7481_v52  ;;  %v7536_v46 = vld [vmem:[%s10452_s4 + $0xd58] ss:$36 sps:$4 sm:$0xff]   ;;  %v4652_v52 = vmul.f32 %v9210_v39, %v9503_v45 }
 0x194   :  { %4325 = vmatpush1.bf16.msra.mxu1 %v7478_v53  ;;  %v7533_v53 = vld [vmem:[%s10452_s4 + $0x450] ss:$36 sps:$4 sm:$0xff]  }
 0x195   :  { %6708 = vmatpush3.bf16.msra.mxu0 %v7482_v55  ;;  %4326 = vmatprep.subr.bf16.mxu1 %v7485_v58  ;;  %v7537_v55 = vld [vmem:[%s10452_s4 + $0xb18] ss:$36 sps:$4 sm:$0xff]  }
 0x196   :  { %6709 = vmatprep.subr.bf16.mxu0 %v7486_v59  ;;  %v7540_v58 = vld [vmem:[%s10452_s4 + $0x49c] ss:$36 sps:$4 sm:$0xff]   ;;  %v7543_v59 = vld [vmem:[%s10457_s7 + $0x4] ss:$8 sps:$4 sm:$0xff]  }
 0x198   :  { %4327 = vmatpush1.bf16.msra.mxu1 %v7483_v60  ;;  %v7538_v60 = vld [vmem:[%s10452_s4 + $0x498] ss:$36 sps:$4 sm:$0xff]  }
 0x199   :  { %6710 = vmatpush3.bf16.msra.mxu0 %v7487_v61  ;;  %4328 = vmatprep.subr.bf16.mxu1 %v7490_v62  ;;  %v7541_v61 = vld [vmem:[%s10457_s7] ss:$8 sps:$4 sm:$0xff]   ;;  %v4661_v62 = vsel %vm4641_vm8, %v9210_v39, %v4652_v52 }
 0x19a   :  { %6711 = vmatprep.subr.bf16.mxu0 %v7491_v63  ;;  %v7546_v63 = vld [vmem:[%s10452_s4 + $0x4e4] ss:$36 sps:$4 sm:$0xff]  }
 0x19b   :  { %v7544_v39 = vld [vmem:[%s10452_s4 + $0x4e0] ss:$36 sps:$4 sm:$0xff]   ;;  %v7598_v52 = vld [vmem:[%s10452_s4 + $0x768] ss:$36 sps:$4 sm:$0xff]  }
 0x19c   :  { %4329 = vmatpush1.bf16.msra.mxu1 %v7488_v0  ;;  %v7549_v0 = vld [vmem:[%s10457_s7 + $0x14] ss:$8 sps:$4 sm:$0xff]  }
 0x19d   :  { %6712 = vmatpush3.bf16.msra.mxu0 %v7492_v2  ;;  %4330 = vmatprep.subr.bf16.mxu1 %v7495_v9  ;;  %v4670_v2 = vpack.c.bf16 %v4661_v62, %v4661_v62  ;;  %v7547_v9 = vld [vmem:[%s10457_s7 + $0x10] ss:$8 sps:$4 sm:$0xff]   ;;  %v7615_v62 = vld [vmem:[%s10457_s7 + $0xc4] ss:$8 sps:$4 sm:$0xff]  }
 0x19e   :  { %6713 = vmatprep.subr.bf16.mxu0 %v7496_v3  ;;  %v7552_v3 = vld [vmem:[%s10452_s4 + $0x52c] ss:$36 sps:$4 sm:$0xff]  }
 0x1a0   :  { %4331 = vmatpush1.bf16.msra.mxu1 %v7493_v5  ;;  %v7550_v5 = vld [vmem:[%s10452_s4 + $0x528] ss:$36 sps:$4 sm:$0xff]  }
 0x1a1   :  { %6714 = vmatpush3.bf16.msra.mxu0 %v7497_v6  ;;  %4332 = vmatprep.subr.bf16.mxu1 %v7500_v7  ;;  %v7553_v6 = vld [vmem:[%s10457_s7 + $0x20] ss:$8 sps:$4 sm:$0xff]   ;;  %v7558_v7 = vld [vmem:[%s10452_s4 + $0x574] ss:$36 sps:$4 sm:$0xff]  }
 0x1a2   :  { %6743 = vmatprep.subr.bf16.mxu0 %v7501_v8  ;;  %v7561_v8 = vld [vmem:[%s10457_s7 + $0x34] ss:$8 sps:$4 sm:$0xff]  }
 0x1a4   :  { %4513 = vmatmul.mubr.bf16.vlgmr.msra.gmra.mrb[8].mxu0 %v8283_v49  ;;  %4333 = vmatpush1.bf16.msra.mxu1 %v7498_v14  ;;  %v7556_v14 = vld [vmem:[%s10452_s4 + $0x570] ss:$36 sps:$4 sm:$0xff]  }
 0x1a5   :  { %6744 = vmatpush3.bf16.msra.mxu0 %v7502_v15  ;;  %4334 = vmatprep.subr.bf16.mxu1 %v7505_v16  ;;  %v7559_v15 = vld [vmem:[%s10457_s7 + $0x30] ss:$8 sps:$4 sm:$0xff]   ;;  %v7564_v16 = vld [vmem:[%s10452_s4 + $0x5bc] ss:$36 sps:$4 sm:$0xff]  }
 0x1a6   :  { %6745 = vmatprep.subr.bf16.mxu0 %v7506_v42  ;;  %4592 = vmatprep.mubr.bf16.mxu0 %v8254_v32  ;;  %v7567_v42 = vld [vmem:[%s10457_s7 + $0x44] ss:$8 sps:$4 sm:$0xff]  }
 0x1a8   :  { %4335 = vmatpush1.bf16.msra.mxu1 %v7503_v17  ;;  %v7562_v17 = vld [vmem:[%s10452_s4 + $0x5b8] ss:$36 sps:$4 sm:$0xff]  }
 0x1a9   :  { %6746 = vmatpush3.bf16.msra.mxu0 %v7507_v18  ;;  %4336 = vmatprep.subr.bf16.mxu1 %v7510_v19  ;;  %v7565_v18 = vld [vmem:[%s10457_s7 + $0x40] ss:$8 sps:$4 sm:$0xff]  }
 0x1aa   :  { %6747 = vmatprep.subr.bf16.mxu0 %v7511_v20  ;;  %v7570_v19 = vld [vmem:[%s10452_s4 + $0x604] ss:$36 sps:$4 sm:$0xff]   ;;  %v7573_v20 = vld [vmem:[%s10457_s7 + $0x54] ss:$8 sps:$4 sm:$0xff]  }
 0x1ac   :  { %4337 = vmatpush1.bf16.msra.mxu1 %v7508_v21  ;;  %v7568_v21 = vld [vmem:[%s10452_s4 + $0x600] ss:$36 sps:$4 sm:$0xff]  }
 0x1ad   :  { %6748 = vmatpush3.bf16.msra.mxu0 %v7512_v22  ;;  %4338 = vmatprep.subr.bf16.mxu1 %v7515_v23  ;;  %v7571_v22 = vld [vmem:[%s10457_s7 + $0x50] ss:$8 sps:$4 sm:$0xff]  }
 0x1ae   :  { %6749 = vmatprep.subr.bf16.mxu0 %v7516_v24  ;;  %v7576_v23 = vld [vmem:[%s10452_s4 + $0x64c] ss:$36 sps:$4 sm:$0xff]  }
 0x1af   :  { %v7579_v24 = vld [vmem:[%s10457_s7 + $0x64] ss:$8 sps:$4 sm:$0xff]  }
 0x1b0   :  { %4339 = vmatpush1.bf16.msra.mxu1 %v7513_v25  ;;  %v7574_v25 = vld [vmem:[%s10452_s4 + $0x648] ss:$36 sps:$4 sm:$0xff]  }
 0x1b1   :  { %6750 = vmatpush3.bf16.msra.mxu0 %v7517_v26  ;;  %4340 = vmatprep.subr.bf16.mxu1 %v7520_v27  ;;  %v7577_v26 = vld [vmem:[%s10457_s7 + $0x60] ss:$8 sps:$4 sm:$0xff]   ;;  %v7582_v27 = vld [vmem:[%s10452_s4 + $0x694] ss:$36 sps:$4 sm:$0xff]  }
 0x1b2   :  { %6751 = vmatprep.subr.bf16.mxu0 %v7521_v56  ;;  %v7585_v56 = vld [vmem:[%s10457_s7 + $0x74] ss:$8 sps:$4 sm:$0xff]  }
 0x1b4   :  { %4341 = vmatpush1.bf16.msra.mxu1 %v7518_v29  ;;  %v7580_v29 = vld [vmem:[%s10452_s4 + $0x690] ss:$36 sps:$4 sm:$0xff]  }
 0x1b5   :  { %6752 = vmatpush3.bf16.msra.mxu0 %v7522_v30  ;;  %4342 = vmatprep.subr.bf16.mxu1 %v7525_v31  ;;  %v7583_v30 = vld [vmem:[%s10457_s7 + $0x70] ss:$8 sps:$4 sm:$0xff]   ;;  %v7588_v31 = vld [vmem:[%s10452_s4 + $0x6dc] ss:$36 sps:$4 sm:$0xff]  }
 0x1b6   :  { %6753 = vmatprep.subr.bf16.mxu0 %v7526_v34  ;;  %v7591_v34 = vld [vmem:[%s10457_s7 + $0x84] ss:$8 sps:$4 sm:$0xff]  }
 0x1b8   :  { %4343 = vmatpush1.bf16.msra.mxu1 %v7523_v35  ;;  %v7586_v35 = vld [vmem:[%s10452_s4 + $0x6d8] ss:$36 sps:$4 sm:$0xff]  }
 0x1b9   :  { %6754 = vmatpush3.bf16.msra.mxu0 %v7527_v36  ;;  %4344 = vmatprep.subr.bf16.mxu1 %v7530_v38  ;;  %v7589_v36 = vld [vmem:[%s10457_s7 + $0x80] ss:$8 sps:$4 sm:$0xff]  }
 0x1ba   :  { %6755 = vmatprep.subr.bf16.mxu0 %v7531_v43  ;;  %v7594_v38 = vld [vmem:[%s10452_s4 + $0x724] ss:$36 sps:$4 sm:$0xff]   ;;  %v7597_v43 = vld [vmem:[%s10457_s7 + $0x94] ss:$8 sps:$4 sm:$0xff]  }
 0x1bc   :  { %4345 = vmatpush1.bf16.msra.mxu1 %v7528_v57  ;;  %v7592_v57 = vld [vmem:[%s10452_s4 + $0x720] ss:$36 sps:$4 sm:$0xff]  }
 0x1bd   :  { %6756 = vmatpush3.bf16.msra.mxu0 %v7532_v44  ;;  %4346 = vmatprep.subr.bf16.mxu1 %v7535_v28  ;;  %v7595_v44 = vld [vmem:[%s10457_s7 + $0x90] ss:$8 sps:$4 sm:$0xff]  }
 0x1be   :  { %6757 = vmatprep.subr.bf16.mxu0 %v7536_v46  ;;  %v7600_v28 = vld [vmem:[%s10452_s4 + $0x76c] ss:$36 sps:$4 sm:$0xff]  }
 0x1bf   :  { %v7603_v46 = vld [vmem:[%s10457_s7 + $0xa4] ss:$8 sps:$4 sm:$0xff]  }
 0x1c0   :  { %4347 = vmatpush1.bf16.msra.mxu1 %v7533_v53  ;;  %v7601_v53 = vld [vmem:[%s10457_s7 + $0xa0] ss:$8 sps:$4 sm:$0xff]  }
 0x1c1   :  { %6758 = vmatpush3.bf16.msra.mxu0 %v7537_v55  ;;  %4357 = vmatprep.subr.bf16.mxu1 %v7540_v58  ;;  %v7606_v55 = vld [vmem:[%s10452_s4 + $0x7b4] ss:$36 sps:$4 sm:$0xff]  }
 0x1c2   :  { %5554 = vmatprep.subr.bf16.mxu0 %v7543_v59  ;;  %v7609_v58 = vld [vmem:[%s10457_s7 + $0xb4] ss:$8 sps:$4 sm:$0xff]  }
 0x1c3   :  { %4349 = vmatmul.mubr.bf16.vlgmr.msra.gmra.mrb[8].mxu1 %v8283_v49  ;;  %v7555_v49 = vld [vmem:[%s10457_s7 + $0x24] ss:$8 sps:$4 sm:$0xff]   ;;  %v7604_v59 = vld [vmem:[%s10452_s4 + $0x7b0] ss:$36 sps:$4 sm:$0xff]  }
 0x1c4   :  { %4593 = vmatmul.mubr.bf16.vlgmr.msra.gmra.mrb[12].mxu0 %v8285_v51  ;;  %4358 = vmatpush1.bf16.msra.mxu1 %v7538_v60  ;;  %v7607_v60 = vld [vmem:[%s10457_s7 + $0xb0] ss:$8 sps:$4 sm:$0xff]  }
 0x1c5   :  { %5555 = vmatpush1.bf16.msra.mxu0 %v7541_v61  ;;  %5586 = vmatprep.mubr.bf16.mxu0 %v4670_v2  ;;  %v7612_v61 = vld [vmem:[%s10452_s4 + $0x7fc] ss:$36 sps:$4 sm:$0xff]   ;;  %v7618_v2 = vld [vmem:[%s10452_s4 + $0x844] ss:$36 sps:$4 sm:$0xff]  }
 0x1c6   :  { %4359 = vmatprep.subr.bf16.mxu1 %v7546_v63  ;;  %5556 = vmatprep.subr.bf16.mxu0 %v7549_v0  ;;  %v7610_v63 = vld [vmem:[%s10452_s4 + $0x7f8] ss:$36 sps:$4 sm:$0xff]   ;;  %v7613_v0 = vld [vmem:[%s10457_s7 + $0xc0] ss:$8 sps:$4 sm:$0xff]  }
 0x1c7   :  { %4389 = vmatprep.mubr.bf16.mxu1 %v8425_v1 }
 0x1c8   :  { %4360 = vmatpush1.bf16.msra.mxu1 %v7544_v39  ;;  %v7621_v39 = vld [vmem:[%s10457_s7 + $0xd4] ss:$8 sps:$4 sm:$0xff]  }
 0x1c9   :  { %5557 = vmatpush1.bf16.msra.mxu0 %v7547_v9  ;;  %4361 = vmatprep.subr.bf16.mxu1 %v7552_v3  ;;  %v7616_v9 = vld [vmem:[%s10452_s4 + $0x840] ss:$36 sps:$4 sm:$0xff]   ;;  %v7619_v3 = vld [vmem:[%s10457_s7 + $0xd0] ss:$8 sps:$4 sm:$0xff]  }
 0x1ca   :  { %5558 = vmatprep.subr.bf16.mxu0 %v7555_v49  ;;  %v7624_v49 = vld [vmem:[%s10452_s4 + $0x88c] ss:$36 sps:$4 sm:$0xff]  }
 0x1cc   :  { %4362 = vmatpush1.bf16.msra.mxu1 %v7550_v5  ;;  %v7627_v5 = vld [vmem:[%s10457_s7 + $0xe4] ss:$8 sps:$4 sm:$0xff]  }
 0x1cd   :  { %5559 = vmatpush1.bf16.msra.mxu0 %v7553_v6  ;;  %4363 = vmatprep.subr.bf16.mxu1 %v7558_v7  ;;  %v7622_v6 = vld [vmem:[%s10452_s4 + $0x888] ss:$36 sps:$4 sm:$0xff]  }
 0x1ce   :  { %5560 = vmatprep.subr.bf16.mxu0 %v7561_v8  ;;  %v7625_v7 = vld [vmem:[%s10457_s7 + $0xe0] ss:$8 sps:$4 sm:$0xff]   ;;  %v7630_v8 = vld [vmem:[%s10452_s4 + $0x8d4] ss:$36 sps:$4 sm:$0xff]  }
 0x1d0   :  { %4364 = vmatpush1.bf16.msra.mxu1 %v7556_v14  ;;  %v7633_v14 = vld [vmem:[%s10457_s7 + $0xf4] ss:$8 sps:$4 sm:$0xff]  }
 0x1d1   :  { %5561 = vmatpush1.bf16.msra.mxu0 %v7559_v15  ;;  %4365 = vmatprep.subr.bf16.mxu1 %v7564_v16  ;;  %v4651_v15 = vmul.f32 %v9202_v33, %v9503_v45  ;;  %v7628_v16 = vld [vmem:[%s10452_s4 + $0x8d0] ss:$36 sps:$4 sm:$0xff]  }
 0x1d2   :  { %5562 = vmatprep.subr.bf16.mxu0 %v7567_v42  ;;  %v7631_v42 = vld [vmem:[%s10457_s7 + $0xf0] ss:$8 sps:$4 sm:$0xff]  }
 0x1d4   :  { %4366 = vmatpush1.bf16.msra.mxu1 %v7562_v17  ;;  %v7636_v17 = vld [vmem:[%s10452_s4 + $0x91c] ss:$36 sps:$4 sm:$0xff]  }
 0x1d5   :  { %5563 = vmatpush1.bf16.msra.mxu0 %v7565_v18  ;;  %4367 = vmatprep.subr.bf16.mxu1 %v7570_v19  ;;  %v7660_v18 = vld [vmem:[%s10457_s7 + $0x104] ss:$8 sps:$4 sm:$0xff]   ;;  %v4660_v19 = vsel %vm4640_vm9, %v9202_v33, %v4651_v15  ;;  %v7666_v33 = vld [vmem:[%s10457_s7 + $0x114] ss:$8 sps:$4 sm:$0xff]  }
 0x1d6   :  { %5564 = vmatprep.subr.bf16.mxu0 %v7573_v20  ;;  %v7634_v20 = vld [vmem:[%s10452_s4 + $0x918] ss:$36 sps:$4 sm:$0xff]  }
 0x1d7   :  { %v7681_v15 = vld [vmem:[%s10452_s4 + $0xc34] ss:$36 sps:$4 sm:$0xff]  }
 0x1d8   :  { %4368 = vmatpush1.bf16.msra.mxu1 %v7568_v21  ;;  %v7658_v21 = vld [vmem:[%s10457_s7 + $0x100] ss:$8 sps:$4 sm:$0xff]  }
 0x1d9   :  { %5565 = vmatpush1.bf16.msra.mxu0 %v7571_v22  ;;  %4369 = vmatprep.subr.bf16.mxu1 %v7576_v23  ;;  %v4669_v22 = vpack.c.bf16 %v4660_v19, %v4660_v19  ;;  %v7639_v23 = vld [vmem:[%s10452_s4 + $0x964] ss:$36 sps:$4 sm:$0xff]  }
 0x1da   :  { %5566 = vmatprep.subr.bf16.mxu0 %v7579_v24  ;;  %v7637_v24 = vld [vmem:[%s10452_s4 + $0x960] ss:$36 sps:$4 sm:$0xff]  }
 0x1db   :  { %v7732_v19 = vld [vmem:[%s10457_s7 + $0x1c4] ss:$8 sps:$4 sm:$0xff]  }
 0x1dc   :  { %4370 = vmatpush1.bf16.msra.mxu1 %v7574_v25  ;;  %v7664_v25 = vld [vmem:[%s10457_s7 + $0x110] ss:$8 sps:$4 sm:$0xff]  }
 0x1dd   :  { %5567 = vmatpush1.bf16.msra.mxu0 %v7577_v26  ;;  %4371 = vmatprep.subr.bf16.mxu1 %v7582_v27  ;;  %v7642_v26 = vld [vmem:[%s10452_s4 + $0x9ac] ss:$36 sps:$4 sm:$0xff]  }
 0x1de   :  { %5568 = vmatprep.subr.bf16.mxu0 %v7585_v56  ;;  %v7672_v27 = vld [vmem:[%s10457_s7 + $0x124] ss:$8 sps:$4 sm:$0xff]  }
 0x1df   :  { %v7640_v56 = vld [vmem:[%s10452_s4 + $0x9a8] ss:$36 sps:$4 sm:$0xff]  }
 0x1e0   :  { %4372 = vmatpush1.bf16.msra.mxu1 %v7580_v29  ;;  %v7670_v29 = vld [vmem:[%s10457_s7 + $0x120] ss:$8 sps:$4 sm:$0xff]  }
 0x1e1   :  { %5569 = vmatpush1.bf16.msra.mxu0 %v7583_v30  ;;  %4373 = vmatprep.subr.bf16.mxu1 %v7588_v31  ;;  %v7645_v30 = vld [vmem:[%s10452_s4 + $0x9f4] ss:$36 sps:$4 sm:$0xff]  }
 0x1e2   :  { %5570 = vmatprep.subr.bf16.mxu0 %v7591_v34  ;;  %v7643_v31 = vld [vmem:[%s10452_s4 + $0x9f0] ss:$36 sps:$4 sm:$0xff]  }
 0x1e3   :  { %v7676_v34 = vld [vmem:[%s10457_s7 + $0x130] ss:$8 sps:$4 sm:$0xff]  }
 0x1e4   :  { %4374 = vmatpush1.bf16.msra.mxu1 %v7586_v35  ;;  %v7648_v35 = vld [vmem:[%s10452_s4 + $0xa3c] ss:$36 sps:$4 sm:$0xff]  }
 0x1e5   :  { %5571 = vmatpush1.bf16.msra.mxu0 %v7589_v36  ;;  %4375 = vmatprep.subr.bf16.mxu1 %v7594_v38  ;;  %v7684_v36 = vld [vmem:[%s10457_s7 + $0x144] ss:$8 sps:$4 sm:$0xff]   ;;  %v7646_v38 = vld [vmem:[%s10452_s4 + $0xa38] ss:$36 sps:$4 sm:$0xff]  }
 0x1e6   :  { %5572 = vmatprep.subr.bf16.mxu0 %v7597_v43  ;;  %v7682_v43 = vld [vmem:[%s10457_s7 + $0x140] ss:$8 sps:$4 sm:$0xff]  }
 0x1e8   :  { %4376 = vmatpush1.bf16.msra.mxu1 %v7592_v57  ;;  %v7651_v57 = vld [vmem:[%s10452_s4 + $0xa84] ss:$36 sps:$4 sm:$0xff]  }
 0x1e9   :  { %5573 = vmatpush1.bf16.msra.mxu0 %v7595_v44  ;;  %4377 = vmatprep.subr.bf16.mxu1 %v7600_v28  ;;  %v7690_v44 = vld [vmem:[%s10457_s7 + $0x154] ss:$8 sps:$4 sm:$0xff]   ;;  %v7649_v28 = vld [vmem:[%s10452_s4 + $0xa80] ss:$36 sps:$4 sm:$0xff]  }
 0x1ea   :  { %5574 = vmatprep.subr.bf16.mxu0 %v7603_v46  ;;  %v7688_v46 = vld [vmem:[%s10457_s7 + $0x150] ss:$8 sps:$4 sm:$0xff]  }
 0x1ec   :  { %4378 = vmatpush1.bf16.msra.mxu1 %v7598_v52  ;;  %v7654_v52 = vld [vmem:[%s10452_s4 + $0xacc] ss:$36 sps:$4 sm:$0xff]  }
 0x1ed   :  { %5575 = vmatpush1.bf16.msra.mxu0 %v7601_v53  ;;  %4379 = vmatprep.subr.bf16.mxu1 %v7606_v55  ;;  %v7696_v53 = vld [vmem:[%s10457_s7 + $0x164] ss:$8 sps:$4 sm:$0xff]  }
 0x1ee   :  { %5576 = vmatprep.subr.bf16.mxu0 %v7609_v58  ;;  %v7652_v55 = vld [vmem:[%s10452_s4 + $0xac8] ss:$36 sps:$4 sm:$0xff]  }
 0x1ef   :  { %v7694_v58 = vld [vmem:[%s10457_s7 + $0x160] ss:$8 sps:$4 sm:$0xff]  }
 0x1f0   :  { %4380 = vmatpush1.bf16.msra.mxu1 %v7604_v59  ;;  %v7657_v59 = vld [vmem:[%s10452_s4 + $0xb14] ss:$36 sps:$4 sm:$0xff]  }
 0x1f1   :  { %5577 = vmatpush1.bf16.msra.mxu0 %v7607_v60  ;;  %4381 = vmatprep.subr.bf16.mxu1 %v7612_v61  ;;  %v7702_v60 = vld [vmem:[%s10457_s7 + $0x174] ss:$8 sps:$4 sm:$0xff]  }
 0x1f2   :  { %5578 = vmatprep.subr.bf16.mxu0 %v7615_v62  ;;  %v7655_v61 = vld [vmem:[%s10452_s4 + $0xb10] ss:$36 sps:$4 sm:$0xff]  }
 0x1f3   :  { %v7700_v62 = vld [vmem:[%s10457_s7 + $0x170] ss:$8 sps:$4 sm:$0xff]  }
 0x1f4   :  { %4382 = vmatpush1.bf16.msra.mxu1 %v7610_v63  ;;  %v7663_v63 = vld [vmem:[%s10452_s4 + $0xb5c] ss:$36 sps:$4 sm:$0xff]  }
 0x1f5   :  { %5579 = vmatpush1.bf16.msra.mxu0 %v7613_v0  ;;  %4383 = vmatprep.subr.bf16.mxu1 %v7618_v2  ;;  %v7708_v0 = vld [vmem:[%s10457_s7 + $0x184] ss:$8 sps:$4 sm:$0xff]   ;;  %v7661_v2 = vld [vmem:[%s10452_s4 + $0xb58] ss:$36 sps:$4 sm:$0xff]  }
 0x1f6   :  { %5580 = vmatprep.subr.bf16.mxu0 %v7621_v39  ;;  %v7706_v39 = vld [vmem:[%s10457_s7 + $0x180] ss:$8 sps:$4 sm:$0xff]  }
 0x1f8   :  { %4384 = vmatpush1.bf16.msra.mxu1 %v7616_v9  ;;  %v7669_v9 = vld [vmem:[%s10452_s4 + $0xba4] ss:$36 sps:$4 sm:$0xff]  }
 0x1f9   :  { %5581 = vmatpush1.bf16.msra.mxu0 %v7619_v3  ;;  %4385 = vmatprep.subr.bf16.mxu1 %v7624_v49  ;;  %v7714_v3 = vld [vmem:[%s10457_s7 + $0x194] ss:$8 sps:$4 sm:$0xff]   ;;  %v7667_v49 = vld [vmem:[%s10452_s4 + $0xba0] ss:$36 sps:$4 sm:$0xff]  }
 0x1fa   :  { %5582 = vmatprep.subr.bf16.mxu0 %v7627_v5  ;;  %v7712_v5 = vld [vmem:[%s10457_s7 + $0x190] ss:$8 sps:$4 sm:$0xff]  }
 0x1fc   :  { %4386 = vmatpush1.bf16.msra.mxu1 %v7622_v6  ;;  %v7675_v6 = vld [vmem:[%s10452_s4 + $0xbec] ss:$36 sps:$4 sm:$0xff]  }
 0x1fd   :  { %5583 = vmatpush1.bf16.msra.mxu0 %v7625_v7  ;;  %4387 = vmatprep.subr.bf16.mxu1 %v7630_v8  ;;  %v7720_v7 = vld [vmem:[%s10457_s7 + $0x1a4] ss:$8 sps:$4 sm:$0xff]  }
 0x1fe   :  { %5584 = vmatprep.subr.bf16.mxu0 %v7633_v14  ;;  %v7673_v8 = vld [vmem:[%s10452_s4 + $0xbe8] ss:$36 sps:$4 sm:$0xff]  }
 0x1ff   :  { %v7718_v14 = vld [vmem:[%s10457_s7 + $0x1a0] ss:$8 sps:$4 sm:$0xff]  }
 0x200   :  { %4388 = vmatpush1.bf16.msra.mxu1 %v7628_v16  ;;  %v7726_v16 = vld [vmem:[%s10457_s7 + $0x1b4] ss:$8 sps:$4 sm:$0xff]  }
 0x201   :  { %5585 = vmatpush1.bf16.msra.mxu0 %v7631_v42  ;;  %4398 = vmatprep.subr.bf16.mxu1 %v7636_v17  ;;  %v7679_v42 = vld [vmem:[%s10452_s4 + $0xc30] ss:$36 sps:$4 sm:$0xff]  }
 0x202   :  { %5595 = vmatprep.subr.bf16.mxu0 %v7660_v18  ;;  %v7724_v17 = vld [vmem:[%s10457_s7 + $0x1b0] ss:$8 sps:$4 sm:$0xff]   ;;  %v7687_v18 = vld [vmem:[%s10452_s4 + $0xc7c] ss:$36 sps:$4 sm:$0xff]  }
 0x203   :  { %4390 = vmatmul.mubr.bf16.vlgmr.msra.gmra.mrb[8].mxu1 %v8523_v40 }
 0x204   :  { %5587 = vmatmul.mubr.bf16.vlgmr.msra.gmra.mrb[16].mxu0 %v4669_v22  ;;  %4399 = vmatpush1.bf16.msra.mxu1 %v7634_v20  ;;  %v7685_v20 = vld [vmem:[%s10452_s4 + $0xc78] ss:$36 sps:$4 sm:$0xff]   ;;  %v7693_v22 = vld [vmem:[%s10452_s4 + $0xcc4] ss:$36 sps:$4 sm:$0xff]  }
 0x205   :  { %5596 = vmatpush1.bf16.msra.mxu0 %v7658_v21  ;;  %4400 = vmatprep.subr.bf16.mxu1 %v7639_v23  ;;  %v7730_v21 = vld [vmem:[%s10457_s7 + $0x1c0] ss:$8 sps:$4 sm:$0xff]   ;;  %v7738_v23 = vld [vmem:[%s10457_s7 + $0x1d4] ss:$8 sps:$4 sm:$0xff]  }
 0x206   :  { %5597 = vmatprep.subr.bf16.mxu0 %v7666_v33  ;;  %4430 = vmatprep.mubr.bf16.mxu1 %v8254_v32  ;;  %v7678_v32 = vld [vmem:[%s10457_s7 + $0x134] ss:$8 sps:$4 sm:$0xff]   ;;  %v7691_v33 = vld [vmem:[%s10452_s4 + $0xcc0] ss:$36 sps:$4 sm:$0xff]  }
 0x208   :  { %4401 = vmatpush1.bf16.msra.mxu1 %v7637_v24  ;;  %v7736_v24 = vld [vmem:[%s10457_s7 + $0x1d0] ss:$8 sps:$4 sm:$0xff]  }
 0x209   :  { %5598 = vmatpush1.bf16.msra.mxu0 %v7664_v25  ;;  %4402 = vmatprep.subr.bf16.mxu1 %v7642_v26  ;;  %v7699_v25 = vld [vmem:[%s10452_s4 + $0xd0c] ss:$36 sps:$4 sm:$0xff]  }
 0x20a   :  { %5599 = vmatprep.subr.bf16.mxu0 %v7672_v27  ;;  %v7744_v26 = vld [vmem:[%s10457_s7 + $0x1e4] ss:$8 sps:$4 sm:$0xff]  }
 0x20b   :  { %v7697_v27 = vld [vmem:[%s10452_s4 + $0xd08] ss:$36 sps:$4 sm:$0xff]  }
 0x20c   :  { %4403 = vmatpush1.bf16.msra.mxu1 %v7640_v56  ;;  %v7742_v56 = vld [vmem:[%s10457_s7 + $0x1e0] ss:$8 sps:$4 sm:$0xff]  }
 0x20d   :  { %5600 = vmatpush1.bf16.msra.mxu0 %v7670_v29  ;;  %4404 = vmatprep.subr.bf16.mxu1 %v7645_v30  ;;  %v7705_v29 = vld [vmem:[%s10452_s4 + $0xd54] ss:$36 sps:$4 sm:$0xff]  }
 0x20e   :  { %5601 = vmatprep.subr.bf16.mxu0 %v7678_v32  ;;  %v7750_v30 = vld [vmem:[%s10457_s7 + $0x1f4] ss:$8 sps:$4 sm:$0xff]  }
 0x20f   :  { %v7703_v32 = vld [vmem:[%s10452_s4 + $0xd50] ss:$36 sps:$4 sm:$0xff]  }
 0x210   :  { %4405 = vmatpush1.bf16.msra.mxu1 %v7643_v31  ;;  %v7748_v31 = vld [vmem:[%s10457_s7 + $0x1f0] ss:$8 sps:$4 sm:$0xff]  }
 0x211   :  { %5602 = vmatpush1.bf16.msra.mxu0 %v7676_v34  ;;  %4406 = vmatprep.subr.bf16.mxu1 %v7648_v35  ;;  %v7711_v34 = vld [vmem:[%s10452_s4 + $0xd9c] ss:$36 sps:$4 sm:$0xff]   ;;  %v7756_v35 = vld [vmem:[%s10457_s7 + $0x204] ss:$8 sps:$4 sm:$0xff]  }
 0x212   :  { %5603 = vmatprep.subr.bf16.mxu0 %v7684_v36  ;;  %v7709_v36 = vld [vmem:[%s10452_s4 + $0xd98] ss:$36 sps:$4 sm:$0xff]  }
 0x214   :  { %4407 = vmatpush1.bf16.msra.mxu1 %v7646_v38  ;;  %v7717_v38 = vld [vmem:[%s10452_s4 + $0xde4] ss:$36 sps:$4 sm:$0xff]  }
 0x215   :  { %5604 = vmatpush1.bf16.msra.mxu0 %v7682_v43  ;;  %4408 = vmatprep.subr.bf16.mxu1 %v7651_v57  ;;  %v7715_v43 = vld [vmem:[%s10452_s4 + $0xde0] ss:$36 sps:$4 sm:$0xff]   ;;  %v7723_v57 = vld [vmem:[%s10452_s4 + $0xe2c] ss:$36 sps:$4 sm:$0xff]  }
 0x216   :  { %5605 = vmatprep.subr.bf16.mxu0 %v7690_v44  ;;  %v7721_v44 = vld [vmem:[%s10452_s4 + $0xe28] ss:$36 sps:$4 sm:$0xff]  }
 0x218   :  { %4409 = vmatpush1.bf16.msra.mxu1 %v7649_v28  ;;  %v7727_v28 = vld [vmem:[%s10452_s4 + $0xe70] ss:$36 sps:$4 sm:$0xff]  }
 0x219   :  { %5606 = vmatpush1.bf16.msra.mxu0 %v7688_v46  ;;  %4410 = vmatprep.subr.bf16.mxu1 %v7654_v52  ;;  %v7735_v46 = vld [vmem:[%s10452_s4 + $0xebc] ss:$36 sps:$4 sm:$0xff]  }
 0x21a   :  { %5607 = vmatprep.subr.bf16.mxu0 %v7696_v53  ;;  %v7733_v52 = vld [vmem:[%s10452_s4 + $0xeb8] ss:$36 sps:$4 sm:$0xff]   ;;  %v7741_v53 = vld [vmem:[%s10452_s4 + $0xf04] ss:$36 sps:$4 sm:$0xff]  }
 0x21c   :  { %4411 = vmatpush1.bf16.msra.mxu1 %v7652_v55  ;;  %v9955_v55 = vld [vmem:[%s10458_s5] sm:$0xff] }
 0x21d   :  { %5608 = vmatpush1.bf16.msra.mxu0 %v7694_v58  ;;  %4412 = vmatprep.subr.bf16.mxu1 %v7657_v59  ;;  %v846_v58 = vrot.slane %v9955_v55, %v8347_v11  ;;  %v850_v59 = vrot.slane %v9955_v55, %v8344_v10 }
 0x21e   :  { %5609 = vmatprep.subr.bf16.mxu0 %v7702_v60  ;;  %v858_v60 = vrot.slane %v9955_v55, %v8159_v48  ;;  %v7745_v48 = vld [vmem:[%s10452_s4 + $0xf48] ss:$36 sps:$4 sm:$0xff]  }
 0x220   :  { %4413 = vmatpush1.bf16.msra.mxu1 %v7655_v61  ;;  %v7739_v61 = vld [vmem:[%s10452_s4 + $0xf00] ss:$36 sps:$4 sm:$0xff]  }
 0x221   :  { %5610 = vmatpush1.bf16.msra.mxu0 %v7700_v62  ;;  %4414 = vmatprep.subr.bf16.mxu1 %v7663_v63  ;;  %v7747_v62 = vld [vmem:[%s10452_s4 + $0xf4c] ss:$36 sps:$4 sm:$0xff]  }
 0x222   :  { %5611 = vmatprep.subr.bf16.mxu0 %v7708_v0 }
 0x224   :  { %4415 = vmatpush1.bf16.msra.mxu1 %v7661_v2 }
 0x225   :  { %5612 = vmatpush1.bf16.msra.mxu0 %v7706_v39  ;;  %4416 = vmatprep.subr.bf16.mxu1 %v7669_v9 }
 0x226   :  { %5613 = vmatprep.subr.bf16.mxu0 %v7714_v3 }
 0x228   :  { %4417 = vmatpush1.bf16.msra.mxu1 %v7667_v49 }
 0x229   :  { %5614 = vmatpush1.bf16.msra.mxu0 %v7712_v5  ;;  %4418 = vmatprep.subr.bf16.mxu1 %v7675_v6 }
 0x22a   :  { %5615 = vmatprep.subr.bf16.mxu0 %v7720_v7 }
 0x22c   :  { %4419 = vmatpush1.bf16.msra.mxu1 %v7673_v8  ;;  %v7753_v8 = vld [vmem:[%s10452_s4 + $0xf94] ss:$36 sps:$4 sm:$0xff]  }
 0x22d   :  { %5616 = vmatpush1.bf16.msra.mxu0 %v7718_v14  ;;  %4420 = vmatprep.subr.bf16.mxu1 %v7681_v15 }
 0x22e   :  { %5617 = vmatprep.subr.bf16.mxu0 %v7726_v16 }
 0x230   :  { %4421 = vmatpush1.bf16.msra.mxu1 %v7679_v42  ;;  %v7751_v42 = vld [vmem:[%s10452_s4 + $0xf90] ss:$36 sps:$4 sm:$0xff]  }
 0x231   :  { %5618 = vmatpush1.bf16.msra.mxu0 %v7724_v17  ;;  %4422 = vmatprep.subr.bf16.mxu1 %v7687_v18 }
 0x232   :  { %5619 = vmatprep.subr.bf16.mxu0 %v7732_v19 }
 0x234   :  { %4423 = vmatpush1.bf16.msra.mxu1 %v7685_v20  ;;  %v7754_v20 = vld [vmem:[%s10457_s7 + $0x200] ss:$8 sps:$4 sm:$0xff]  }
 0x235   :  { %5620 = vmatpush1.bf16.msra.mxu0 %v7730_v21  ;;  %4424 = vmatprep.subr.bf16.mxu1 %v7693_v22  ;;  %v7759_v22 = vld [vmem:[%s10452_s4 + $0xfdc] ss:$36 sps:$4 sm:$0xff]  }
 0x236   :  { %5621 = vmatprep.subr.bf16.mxu0 %v7738_v23  ;;  %v7762_v23 = vld [vmem:[%s10457_s7 + $0x214] ss:$8 sps:$4 sm:$0xff]  }
 0x238   :  { %4425 = vmatpush1.bf16.msra.mxu1 %v7691_v33 }
 0x239   :  { %5622 = vmatpush1.bf16.msra.mxu0 %v7736_v24  ;;  %4426 = vmatprep.subr.bf16.mxu1 %v7699_v25  ;;  %v7757_v24 = vld [vmem:[%s10452_s4 + $0xfd8] ss:$36 sps:$4 sm:$0xff]  }
 0x23a   :  { %5623 = vmatprep.subr.bf16.mxu0 %v7744_v26  ;;  %v7760_v25 = vld [vmem:[%s10457_s7 + $0x210] ss:$8 sps:$4 sm:$0xff]   ;;  %v7765_v26 = vld [vmem:[%s10452_s4 + $0x1024] ss:$36 sps:$4 sm:$0xff]  }
 0x23c   :  { %4427 = vmatpush1.bf16.msra.mxu1 %v7697_v27  ;;  %v7768_v27 = vld [vmem:[%s10457_s7 + $0x224] ss:$8 sps:$4 sm:$0xff]  }
 0x23d   :  { %5624 = vmatpush1.bf16.msra.mxu0 %v7742_v56  ;;  %4428 = vmatprep.subr.bf16.mxu1 %v7705_v29  ;;  %v7763_v56 = vld [vmem:[%s10452_s4 + $0x1020] ss:$36 sps:$4 sm:$0xff]  }
 0x23e   :  { %5625 = vmatprep.subr.bf16.mxu0 %v7750_v30  ;;  %v7766_v29 = vld [vmem:[%s10457_s7 + $0x220] ss:$8 sps:$4 sm:$0xff]   ;;  %v7771_v30 = vld [vmem:[%s10452_s4 + $0x106c] ss:$36 sps:$4 sm:$0xff]  }
 0x240   :  { %4429 = vmatpush1.bf16.msra.mxu1 %v7703_v32  ;;  %v7774_v32 = vld [vmem:[%s10457_s7 + $0x234] ss:$8 sps:$4 sm:$0xff]  }
 0x241   :  { %5626 = vmatpush1.bf16.msra.mxu0 %v7748_v31  ;;  %4439 = vmatprep.subr.bf16.mxu1 %v7711_v34  ;;  %v7769_v31 = vld [vmem:[%s10452_s4 + $0x1068] ss:$36 sps:$4 sm:$0xff]   ;;  %v7772_v34 = vld [vmem:[%s10457_s7 + $0x230] ss:$8 sps:$4 sm:$0xff]  }
 0x242   :  { %5636 = vmatprep.subr.bf16.mxu0 %v7756_v35  ;;  %v7777_v35 = vld [vmem:[%s10452_s4 + $0x10b4] ss:$36 sps:$4 sm:$0xff]  }
 0x243   :  { %4431 = vmatmul.mubr.bf16.vlgmr.msra.gmra.mrb[8].mxu1 %v8285_v51  ;;  %v7729_v51 = vld [vmem:[%s10452_s4 + $0xe74] ss:$36 sps:$4 sm:$0xff]  }
 0x244   :  { %4440 = vmatpush1.bf16.msra.mxu1 %v7709_v36  ;;  %4471 = vmatprep.mubr.bf16.mxu1 %v8433_v4  ;;  %v7780_v36 = vld [vmem:[%s10457_s7 + $0x244] ss:$8 sps:$4 sm:$0xff]  }
 0x245   :  { %4441 = vmatprep.subr.bf16.mxu1 %v7717_v38  ;;  %v7775_v38 = vld [vmem:[%s10452_s4 + $0x10b0] ss:$36 sps:$4 sm:$0xff]  }
 0x248   :  { %4442 = vmatpush1.bf16.msra.mxu1 %v7715_v43  ;;  %v7778_v43 = vld [vmem:[%s10457_s7 + $0x240] ss:$8 sps:$4 sm:$0xff]  }
 0x249   :  { %4443 = vmatprep.subr.bf16.mxu1 %v7723_v57  ;;  %v7783_v57 = vld [vmem:[%s10452_s4 + $0x10fc] ss:$36 sps:$4 sm:$0xff]  }
 0x24c   :  { %4444 = vmatpush1.bf16.msra.mxu1 %v7721_v44  ;;  %v7786_v44 = vld [vmem:[%s10457_s7 + $0x254] ss:$8 sps:$4 sm:$0xff]  }
 0x24d   :  { %4445 = vmatprep.subr.bf16.mxu1 %v7729_v51  ;;  %v7781_v51 = vld [vmem:[%s10452_s4 + $0x10f8] ss:$36 sps:$4 sm:$0xff]  }
 0x250   :  { %4446 = vmatpush1.bf16.msra.mxu1 %v7727_v28  ;;  %v7784_v28 = vld [vmem:[%s10457_s7 + $0x250] ss:$8 sps:$4 sm:$0xff]  }
 0x251   :  { %4447 = vmatprep.subr.bf16.mxu1 %v7735_v46  ;;  %v7789_v46 = vld [vmem:[%s10452_s4 + $0x1144] ss:$36 sps:$4 sm:$0xff]  }
 0x254   :  { %4448 = vmatpush1.bf16.msra.mxu1 %v7733_v52  ;;  %v7792_v52 = vld [vmem:[%s10457_s7 + $0x264] ss:$8 sps:$4 sm:$0xff]  }
 0x255   :  { %4449 = vmatprep.subr.bf16.mxu1 %v7741_v53  ;;  %v7787_v53 = vld [vmem:[%s10452_s4 + $0x1140] ss:$36 sps:$4 sm:$0xff]  }
 0x256   :  { %v4145_v63 = vpop.f32.mrb[4].mxu1 }
 0x257   :  { %v9969_v0 = vpop.f32.mrb[4].mxu0  ;;  %v6813_v11 = vadd.f32 %v4145_v63, %v846_v58  ;;  %v4147_v2 = vpop.f32.mrb[5].mxu1  ;;  %v7790_v58 = vld [vmem:[%s10457_s7 + $0x260] ss:$8 sps:$4 sm:$0xff]  }
 0x258   :  { %v4311_v39 = vpop.f32.mrb[5].mxu0  ;;  %v6814_v9 = vadd.f32 %v4147_v2, %v850_v59  ;;  %v4149_v3 = vpop.f32.mrb[6].mxu1  ;;  %4450 = vmatpush1.bf16.msra.mxu1 %v7739_v61  ;;  %v7795_v59 = vld [vmem:[%s10452_s4 + $0x118c] ss:$36 sps:$4 sm:$0xff]  }
 0x259   :  { %v6816_v10 = vadd.f32 %v4311_v39, %v858_v60  ;;  %v4313_v49 = vpop.f32.mrb[6].mxu0  ;;  %vm4642_vm10 = vcmp.ge.f32.partialorder %v6813_v11, 0.0  ;;  %v4653_v5 = vmul.f32 %v6813_v11, %v9503_v45  ;;  %v4150_v6 = vpop.f32.mrb[7].mxu1  ;;  %4451 = vmatprep.subr.bf16.mxu1 %v7747_v62  ;;  %v7798_v60 = vld [vmem:[%s10457_s7 + $0x274] ss:$8 sps:$4 sm:$0xff]  }
 0x25a   :  { %v4314_v7 = vpop.f32.mrb[7].mxu0  ;;  %vm4643_vm11 = vcmp.ge.f32.partialorder %v6814_v9, 0.0  ;;  %v4654_v14 = vmul.f32 %v6814_v9, %v9503_v45  ;;  %v7793_v63 = vld [vmem:[%s10452_s4 + $0x1188] ss:$36 sps:$4 sm:$0xff]   ;;  %v7796_v39 = vld [vmem:[%s10457_s7 + $0x270] ss:$8 sps:$4 sm:$0xff]  }
 0x25b   :  { %vm4645_vm12 = vcmp.ge.f32.partialorder %v6816_v10, 0.0  ;;  %v4656_v15 = vmul.f32 %v6816_v10, %v9503_v45  ;;  %v4662_v16 = vsel %vm4642_vm10, %v6813_v11, %v4653_v5  ;;  %v7804_v3 = vld [vmem:[%s10457_s7 + $0x284] ss:$8 sps:$4 sm:$0xff]   ;;  %v7799_v49 = vld [vmem:[%s10452_s4 + $0x11d0] ss:$36 sps:$4 sm:$0xff]  }
 0x25c   :  { %4452 = vmatpush1.bf16.msra.mxu1 %v7745_v48  ;;  %v4663_v17 = vsel %vm4643_vm11, %v6814_v9, %v4654_v14  ;;  %v4671_v21 = vpack.c.bf16 %v4662_v16, %v4662_v16  ;;  %v7801_v9 = vld [vmem:[%s10452_s4 + $0x11d4] ss:$36 sps:$4 sm:$0xff]   ;;  %v7802_v48 = vld [vmem:[%s10457_s7 + $0x280] ss:$8 sps:$4 sm:$0xff]  }
 0x25d   :  { %v4665_v18 = vsel %vm4645_vm12, %v6816_v10, %v4656_v15  ;;  %4453 = vmatprep.subr.bf16.mxu1 %v7753_v8  ;;  %v4672_v19 = vpack.c.bf16 %v4663_v17, %v4663_v17  ;;  %v7805_v5 = vld [vmem:[%s10452_s4 + $0x6e0] ss:$36 sps:$4 sm:$0xff]   ;;  %v7808_v6 = vld [vmem:[%s10457_s7 + $0x294] ss:$8 sps:$4 sm:$0xff]   ;;  %v7806_v8 = vld [vmem:[%s10457_s7 + $0x290] ss:$8 sps:$4 sm:$0xff]  }
 0x25e   :  { %v4674_v33 = vpack.c.bf16 %v4665_v18, %v4665_v18  ;;  %v7809_v7 = vld [vmem:[%s10452_s4 + $0x4a0] ss:$36 sps:$4 sm:$0xff]   ;;  %v7810_v14 = vld [vmem:[%s10452_s4 + $0x728] ss:$36 sps:$4 sm:$0xff]   ;;  %v7815_v17 = vld [vmem:[%s10452_s4 + $0x770] ss:$36 sps:$4 sm:$0xff]  }
 0x25f   :  { %5627 = vmatprep.mubr.bf16.mxu0 %v4672_v19  ;;  %v7813_v15 = vld [vmem:[%s10457_s7 + $0x2a4] ss:$8 sps:$4 sm:$0xff]   ;;  %v7818_v18 = vld [vmem:[%s10457_s7 + $0x2b4] ss:$8 sps:$4 sm:$0xff]   ;;  %v7816_v19 = vld [vmem:[%s10457_s7 + $0x2b0] ss:$8 sps:$4 sm:$0xff]  }
 0x260   :  { %4454 = vmatpush1.bf16.msra.mxu1 %v7751_v42  ;;  %5628 = vmatmul.mubr.bf16.vlgmr.msra.gmra.mrb[16].mxu0 %v4671_v21  ;;  %v7814_v16 = vld [vmem:[%s10452_s4 + $0x4e8] ss:$36 sps:$4 sm:$0xff]  }
 0x261   :  { %5637 = vmatpush1.bf16.msra.mxu0 %v7754_v20  ;;  %5668 = vmatprep.mubr.bf16.mxu0 %v4674_v33  ;;  %v7811_v42 = vld [vmem:[%s10457_s7 + $0x2a0] ss:$8 sps:$4 sm:$0xff]   ;;  %v7820_v20 = vld [vmem:[%s10452_s4 + $0x7b8] ss:$36 sps:$4 sm:$0xff]   ;;  %v7823_v21 = vld [vmem:[%s10457_s7 + $0x2c4] ss:$8 sps:$4 sm:$0xff]  }
 0x262   :  { %4455 = vmatprep.subr.bf16.mxu1 %v7759_v22  ;;  %5638 = vmatprep.subr.bf16.mxu0 %v7762_v23  ;;  %v7824_v22 = vld [vmem:[%s10452_s4 + $0x578] ss:$36 sps:$4 sm:$0xff]   ;;  %v7821_v23 = vld [vmem:[%s10457_s7 + $0x2c0] ss:$8 sps:$4 sm:$0xff]  }
 0x263   :  { %v7825_v33 = vld [vmem:[%s10452_s4 + $0x800] ss:$36 sps:$4 sm:$0xff]  }
 0x264   :  { %4456 = vmatpush1.bf16.msra.mxu1 %v7757_v24  ;;  %v7828_v24 = vld [vmem:[%s10457_s7 + $0x2d4] ss:$8 sps:$4 sm:$0xff]  }
 0x265   :  { %5639 = vmatpush1.bf16.msra.mxu0 %v7760_v25  ;;  %4457 = vmatprep.subr.bf16.mxu1 %v7765_v26  ;;  %v854_v25 = vrot.slane %v9955_v55, %v8177_v54  ;;  %v7829_v26 = vld [vmem:[%s10452_s4 + $0x5c0] ss:$36 sps:$4 sm:$0xff]  }
 0x266   :  { %5640 = vmatprep.subr.bf16.mxu0 %v7768_v27  ;;  %v7826_v27 = vld [vmem:[%s10457_s7 + $0x2d0] ss:$8 sps:$4 sm:$0xff]   ;;  %v7833_v54 = vld [vmem:[%s10457_s7 + $0x2e4] ss:$8 sps:$4 sm:$0xff]  }
 0x268   :  { %4458 = vmatpush1.bf16.msra.mxu1 %v7763_v56  ;;  %v7830_v56 = vld [vmem:[%s10452_s4 + $0x848] ss:$36 sps:$4 sm:$0xff]  }
 0x269   :  { %5641 = vmatpush1.bf16.msra.mxu0 %v7766_v29  ;;  %4459 = vmatprep.subr.bf16.mxu1 %v7771_v30  ;;  %v6815_v29 = vadd.f32 %v9969_v0, %v854_v25  ;;  %v7834_v30 = vld [vmem:[%s10452_s4 + $0x608] ss:$36 sps:$4 sm:$0xff]   ;;  %v7838_v0 = vld [vmem:[%s10457_s7 + $0x2f4] ss:$8 sps:$4 sm:$0xff]  }
 0x26a   :  { %5642 = vmatprep.subr.bf16.mxu0 %v7774_v32  ;;  %v7831_v32 = vld [vmem:[%s10457_s7 + $0x2e0] ss:$8 sps:$4 sm:$0xff]  }
 0x26b   :  { %vm4644_vm13 = vcmp.ge.f32.partialorder %v6815_v29, 0.0  ;;  %v7882_v25 = vld [vmem:[%s10457_s7 + $0x380] ss:$8 sps:$4 sm:$0xff]  }
 0x26c   :  { %4460 = vmatpush1.bf16.msra.mxu1 %v7769_v31  ;;  %v7835_v31 = vld [vmem:[%s10452_s4 + $0x890] ss:$36 sps:$4 sm:$0xff]  }
 0x26d   :  { %5643 = vmatpush1.bf16.msra.mxu0 %v7772_v34  ;;  %4461 = vmatprep.subr.bf16.mxu1 %v7777_v35  ;;  %v4655_v35 = vmul.f32 %v6815_v29, %v9503_v45 }
 0x26e   :  { %5644 = vmatprep.subr.bf16.mxu0 %v7780_v36 }
 0x270   :  { %4462 = vmatpush1.bf16.msra.mxu1 %v7775_v38  ;;  %v7839_v38 = vld [vmem:[%s10452_s4 + $0x650] ss:$36 sps:$4 sm:$0xff]  }
 0x271   :  { %5645 = vmatpush1.bf16.msra.mxu0 %v7778_v43  ;;  %4463 = vmatprep.subr.bf16.mxu1 %v7783_v57 }
 0x272   :  { %5646 = vmatprep.subr.bf16.mxu0 %v7786_v44  ;;  %v7836_v44 = vld [vmem:[%s10457_s7 + $0x2f0] ss:$8 sps:$4 sm:$0xff]  }
 0x274   :  { %4464 = vmatpush1.bf16.msra.mxu1 %v7781_v51  ;;  %v7840_v51 = vld [vmem:[%s10452_s4 + $0x8d8] ss:$36 sps:$4 sm:$0xff]  }
 0x275   :  { %5647 = vmatpush1.bf16.msra.mxu0 %v7784_v28  ;;  %4465 = vmatprep.subr.bf16.mxu1 %v7789_v46  ;;  %v7860_v46 = vld [vmem:[%s10457_s7 + $0x304] ss:$8 sps:$4 sm:$0xff]  }
 0x276   :  { %5648 = vmatprep.subr.bf16.mxu0 %v7792_v52  ;;  %v4664_v52 = vsel %vm4644_vm13, %v6815_v29, %v4655_v35  ;;  %v7893_v29 = vld [vmem:[%s10457_s7 + $0x3b4] ss:$8 sps:$4 sm:$0xff]   ;;  %v7900_v35 = vld [vmem:[%s10457_s7 + $0x3e0] ss:$8 sps:$4 sm:$0xff]  }
 0x277   :  { %v6715_v61 = vpop.f32.mrb[8].mxu0 }
 0x278   :  { %v6716_v62 = vpop.f32.mrb[9].mxu0  ;;  %4466 = vmatpush1.bf16.msra.mxu1 %v7787_v53  ;;  %v7841_v53 = vld [vmem:[%s10452_s4 + $0x698] ss:$36 sps:$4 sm:$0xff]  }
 0x279   :  { %v10067_v11 = vadd.f32 %v6716_v62, %v6715_v61  ;;  %v6718_v2 = vpop.f32.mrb[10].mxu0  ;;  %5649 = vmatpush1.bf16.msra.mxu0 %v7790_v58  ;;  %4467 = vmatprep.subr.bf16.mxu1 %v7795_v59  ;;  %v7842_v58 = vld [vmem:[%s10452_s4 + $0xfe0] ss:$36 sps:$4 sm:$0xff]   ;;  %v7863_v61 = vld [vmem:[%s10457_s7 + $0x314] ss:$8 sps:$4 sm:$0xff]  }
 0x27a   :  { %v6719_v10 = vpop.f32.mrb[11].mxu0  ;;  %5650 = vmatprep.subr.bf16.mxu0 %v7798_v60  ;;  %v7858_v59 = vld [vmem:[%s10457_s7 + $0x300] ss:$8 sps:$4 sm:$0xff]   ;;  %v4673_v60 = vpack.c.bf16 %v4664_v52, %v4664_v52  ;;  %v7861_v2 = vld [vmem:[%s10457_s7 + $0x310] ss:$8 sps:$4 sm:$0xff]  }
 0x27b   :  { %v7843_v62 = vld [vmem:[%s10452_s4 + $0xda0] ss:$36 sps:$4 sm:$0xff]   ;;  %v7846_v10 = vld [vmem:[%s10452_s4 + $0x1070] ss:$36 sps:$4 sm:$0xff]  }
 0x27c   :  { %4468 = vmatpush1.bf16.msra.mxu1 %v7793_v63  ;;  %v7844_v63 = vld [vmem:[%s10452_s4 + $0x1028] ss:$36 sps:$4 sm:$0xff]   ;;  %v7934_v52 = vld [vmem:[%s10460_s10 + $0x50] sm:$0xff]  }
 0x27d   :  { %5651 = vmatpush1.bf16.msra.mxu0 %v7796_v39  ;;  %4469 = vmatprep.subr.bf16.mxu1 %v7801_v9  ;;  %v7866_v39 = vld [vmem:[%s10457_s7 + $0x324] ss:$8 sps:$4 sm:$0xff]  }
 0x27e   :  { %5652 = vmatprep.subr.bf16.mxu0 %v7804_v3  ;;  %v7845_v9 = vld [vmem:[%s10452_s4 + $0xde8] ss:$36 sps:$4 sm:$0xff]  }
 0x27f   :  { %v7864_v3 = vld [vmem:[%s10457_s7 + $0x320] ss:$8 sps:$4 sm:$0xff]  }
 0x280   :  { %4470 = vmatpush1.bf16.msra.mxu1 %v7799_v49  ;;  %v7848_v49 = vld [vmem:[%s10452_s4 + $0x10b8] ss:$36 sps:$4 sm:$0xff]  }
 0x281   :  { %5653 = vmatpush1.bf16.msra.mxu0 %v7802_v48  ;;  %6721 = vmatprep.subr.bf16.mxu1 %v7805_v5  ;;  %v7867_v48 = vld [vmem:[%s10457_s7 + $0x330] ss:$8 sps:$4 sm:$0xff]   ;;  %v7872_v5 = vld [vmem:[%s10457_s7 + $0x344] ss:$8 sps:$4 sm:$0xff]  }
 0x282   :  { %5654 = vmatprep.subr.bf16.mxu0 %v7808_v6  ;;  %v7849_v6 = vld [vmem:[%s10452_s4 + $0xe78] ss:$36 sps:$4 sm:$0xff]  }
 0x283   :  { %4472 = vmatmul.mubr.bf16.vlgmr.msra.gmra.mrb[8].mxu1 %v8525_v41 }
 0x284   :  { %6722 = vmatpush3.bf16.msra.mxu1 %v7809_v7  ;;  %4552 = vmatprep.mubr.bf16.mxu1 %v8425_v1  ;;  %v7819_v1 = vld [vmem:[%s10452_s4 + $0x530] ss:$36 sps:$4 sm:$0xff]   ;;  %v7850_v7 = vld [vmem:[%s10452_s4 + $0x1100] ss:$36 sps:$4 sm:$0xff]  }
 0x285   :  { %5655 = vmatpush1.bf16.msra.mxu0 %v7806_v8  ;;  %6723 = vmatprep.subr.bf16.mxu1 %v7810_v14  ;;  %v7870_v8 = vld [vmem:[%s10457_s7 + $0x340] ss:$8 sps:$4 sm:$0xff]   ;;  %v7875_v14 = vld [vmem:[%s10457_s7 + $0x354] ss:$8 sps:$4 sm:$0xff]  }
 0x286   :  { %5656 = vmatprep.subr.bf16.mxu0 %v7813_v15  ;;  %v7851_v15 = vld [vmem:[%s10452_s4 + $0xec0] ss:$36 sps:$4 sm:$0xff]  }
 0x288   :  { %6724 = vmatpush3.bf16.msra.mxu1 %v7814_v16  ;;  %v7852_v16 = vld [vmem:[%s10452_s4 + $0x1148] ss:$36 sps:$4 sm:$0xff]  }
 0x289   :  { %5657 = vmatpush1.bf16.msra.mxu0 %v7811_v42  ;;  %6725 = vmatprep.subr.bf16.mxu1 %v7815_v17  ;;  %v7873_v42 = vld [vmem:[%s10457_s7 + $0x350] ss:$8 sps:$4 sm:$0xff]   ;;  %v7878_v17 = vld [vmem:[%s10457_s7 + $0x364] ss:$8 sps:$4 sm:$0xff]  }
 0x28a   :  { %5658 = vmatprep.subr.bf16.mxu0 %v7818_v18  ;;  %v7853_v18 = vld [vmem:[%s10452_s4 + $0xf08] ss:$36 sps:$4 sm:$0xff]  }
 0x28c   :  { %6726 = vmatpush3.bf16.msra.mxu1 %v7819_v1  ;;  %v7854_v1 = vld [vmem:[%s10452_s4 + $0x1190] ss:$36 sps:$4 sm:$0xff]  }
 0x28d   :  { %5659 = vmatpush1.bf16.msra.mxu0 %v7816_v19  ;;  %6727 = vmatprep.subr.bf16.mxu1 %v7820_v20  ;;  %v7876_v19 = vld [vmem:[%s10457_s7 + $0x360] ss:$8 sps:$4 sm:$0xff]   ;;  %v7881_v20 = vld [vmem:[%s10457_s7 + $0x374] ss:$8 sps:$4 sm:$0xff]  }
 0x28e   :  { %5660 = vmatprep.subr.bf16.mxu0 %v7823_v21  ;;  %v7855_v21 = vld [vmem:[%s10452_s4 + $0xf50] ss:$36 sps:$4 sm:$0xff]  }
 0x290   :  { %6728 = vmatpush3.bf16.msra.mxu1 %v7824_v22  ;;  %v7856_v22 = vld [vmem:[%s10452_s4 + $0x11d8] ss:$36 sps:$4 sm:$0xff]  }
 0x291   :  { %5661 = vmatpush1.bf16.msra.mxu0 %v7821_v23  ;;  %6729 = vmatprep.subr.bf16.mxu1 %v7825_v33  ;;  %v7879_v23 = vld [vmem:[%s10457_s7 + $0x370] ss:$8 sps:$4 sm:$0xff]   ;;  %v7884_v33 = vld [vmem:[%s10457_s7 + $0x384] ss:$8 sps:$4 sm:$0xff]  }
 0x292   :  { %5662 = vmatprep.subr.bf16.mxu0 %v7828_v24  ;;  %v7857_v24 = vld [vmem:[%s10452_s4 + $0xf98] ss:$36 sps:$4 sm:$0xff]  }
 0x294   :  { %6730 = vmatpush3.bf16.msra.mxu1 %v7829_v26  ;;  %v7887_v26 = vld [vmem:[%s10457_s7 + $0x394] ss:$8 sps:$4 sm:$0xff]  }
 0x295   :  { %5663 = vmatpush1.bf16.msra.mxu0 %v7826_v27  ;;  %6731 = vmatprep.subr.bf16.mxu1 %v7830_v56  ;;  %v7885_v27 = vld [vmem:[%s10457_s7 + $0x390] ss:$8 sps:$4 sm:$0xff]   ;;  %v7890_v56 = vld [vmem:[%s10457_s7 + $0x3a4] ss:$8 sps:$4 sm:$0xff]  }
 0x296   :  { %5664 = vmatprep.subr.bf16.mxu0 %v7833_v54  ;;  %v7888_v54 = vld [vmem:[%s10457_s7 + $0x3a0] ss:$8 sps:$4 sm:$0xff]  }
 0x297   :  { %v6759_v34 = vpop.f32.mrb[12].mxu0 }
 0x298   :  { %v6760_v36 = vpop.f32.mrb[13].mxu0  ;;  %6732 = vmatpush3.bf16.msra.mxu1 %v7834_v30  ;;  %v7891_v30 = vld [vmem:[%s10457_s7 + $0x3b0] ss:$8 sps:$4 sm:$0xff]  }
 0x299   :  { %v10171_v43 = vadd.f32 %v6760_v36, %v6759_v34  ;;  %v6762_v57 = vpop.f32.mrb[14].mxu0  ;;  %5665 = vmatpush1.bf16.msra.mxu0 %v7831_v32  ;;  %6733 = vmatprep.subr.bf16.mxu1 %v7835_v31  ;;  %v7894_v32 = vld [vmem:[%s10457_s7 + $0x3c0] ss:$8 sps:$4 sm:$0xff]   ;;  %v7899_v31 = vld [vmem:[%s10457_s7 + $0x3d4] ss:$8 sps:$4 sm:$0xff]  }
 0x29a   :  { %v6763_v28 = vpop.f32.mrb[15].mxu0  ;;  %5666 = vmatprep.subr.bf16.mxu0 %v7838_v0  ;;  %v7897_v0 = vld [vmem:[%s10457_s7 + $0x3d0] ss:$8 sps:$4 sm:$0xff]   ;;  %v7902_v34 = vld [vmem:[%s10457_s7 + $0x3e4] ss:$8 sps:$4 sm:$0xff]  }
 0x29b   :  { %v7905_v36 = vld [vmem:[%s10457_s7 + $0x3f4] ss:$8 sps:$4 sm:$0xff]   ;;  %v7908_v57 = vld [vmem:[%s10457_s7 + $0x404] ss:$8 sps:$4 sm:$0xff]  }
 0x29c   :  { %6734 = vmatpush3.bf16.msra.mxu1 %v7839_v38  ;;  %v7903_v38 = vld [vmem:[%s10457_s7 + $0x3f0] ss:$8 sps:$4 sm:$0xff]   ;;  %v7932_v28 = vld [vmem:[%s10460_s10 + $0x48] sm:$0xff]  }
 0x29d   :  { %5667 = vmatpush1.bf16.msra.mxu0 %v7836_v44  ;;  %6735 = vmatprep.subr.bf16.mxu1 %v7840_v51  ;;  %v7930_v44 = vld [vmem:[%s10460_s10 + $0x40] sm:$0xff]  }
 0x29e   :  { %5677 = vmatprep.subr.bf16.mxu0 %v7860_v46  ;;  %v7931_v51 = vld [vmem:[%s10460_s10] sm:$0xff]   ;;  %v7933_v46 = vld [vmem:[%s10460_s10 + $0x8] sm:$0xff]  }
 0x2a0   :  { %5669 = vmatmul.mubr.bf16.vlgmr.msra.gmra.mrb[16].mxu0 %v4673_v60  ;;  %6736 = vmatpush3.bf16.msra.mxu1 %v7841_v53  ;;  %v7935_v53 = vld [vmem:[%s10460_s10 + $0x10] sm:$0xff]   ;;  %v7938_v60 = vld [vmem:[%s10460_s10 + $0x60] sm:$0xff]  }
 0x2a1   :  { %6765 = vmatprep.subr.bf16.mxu1 %v7842_v58  ;;  %5678 = vmatpush1.bf16.msra.mxu0 %v7858_v59  ;;  %v7936_v58 = vld [vmem:[%s10460_s10 + $0x58] sm:$0xff]  }
 0x2a2   :  { %5679 = vmatprep.subr.bf16.mxu0 %v7863_v61  ;;  %v7937_v59 = vld [vmem:[%s10460_s10 + $0x18] sm:$0xff]   ;;  %v7939_v61 = vld [vmem:[%s10460_s10 + $0x20] sm:$0xff]  }
 0x2a3   :  { %4553 = vmatmul.mubr.bf16.vlgmr.msra.gmra.mrb[12].mxu1 %v8523_v40  ;;  %v7869_v40 = vld [vmem:[%s10457_s7 + $0x334] ss:$8 sps:$4 sm:$0xff]  }
 0x2a4   :  { %6766 = vmatpush3.bf16.msra.mxu1 %v7843_v62  ;;  %4632 = vmatprep.mubr.bf16.mxu1 %v8433_v4  ;;  %v7847_v4 = vld [vmem:[%s10452_s4 + $0xe30] ss:$36 sps:$4 sm:$0xff]   ;;  %v7940_v62 = vld [vmem:[%s10460_s10 + $0x68] sm:$0xff]  }
 0x2a5   :  { %6767 = vmatprep.subr.bf16.mxu1 %v7844_v63  ;;  %5680 = vmatpush1.bf16.msra.mxu0 %v7861_v2  ;;  %v7941_v63 = vld [vmem:[%s10460_s10 + $0x28] sm:$0xff]   ;;  %v862_v2 = vrot.slane %v9955_v55, %v8353_v13 }
 0x2a6   :  { %5681 = vmatprep.subr.bf16.mxu0 %v7866_v39  ;;  %v866_v39 = vrot.slane %v9955_v55, %v8350_v12  ;;  %v7906_v13 = vld [vmem:[%s10457_s7 + $0x400] ss:$8 sps:$4 sm:$0xff]   ;;  %v7911_v55 = vld [vmem:[%s10457_s7 + $0x414] ss:$8 sps:$4 sm:$0xff]  }
 0x2a8   :  { %6768 = vmatpush3.bf16.msra.mxu1 %v7845_v9 }
 0x2a9   :  { %6769 = vmatprep.subr.bf16.mxu1 %v7846_v10  ;;  %5682 = vmatpush1.bf16.msra.mxu0 %v7864_v3 }
 0x2aa   :  { %5683 = vmatprep.subr.bf16.mxu0 %v7869_v40 }
 0x2ac   :  { %6770 = vmatpush3.bf16.msra.mxu1 %v7847_v4 }
 0x2ad   :  { %6771 = vmatprep.subr.bf16.mxu1 %v7848_v49  ;;  %5684 = vmatpush1.bf16.msra.mxu0 %v7867_v48 }
 0x2ae   :  { %5685 = vmatprep.subr.bf16.mxu0 %v7872_v5 }
 0x2b0   :  { %6772 = vmatpush3.bf16.msra.mxu1 %v7849_v6 }
 0x2b1   :  { %6773 = vmatprep.subr.bf16.mxu1 %v7850_v7  ;;  %5686 = vmatpush1.bf16.msra.mxu0 %v7870_v8 }
 0x2b2   :  { %5687 = vmatprep.subr.bf16.mxu0 %v7875_v14  ;;  %v7909_v14 = vld [vmem:[%s10457_s7 + $0x410] ss:$8 sps:$4 sm:$0xff]  }
 0x2b4   :  { %6774 = vmatpush3.bf16.msra.mxu1 %v7851_v15  ;;  %v7951_v15 = vmov 0  }
 0x2b5   :  { %6775 = vmatprep.subr.bf16.mxu1 %v7852_v16  ;;  %5688 = vmatpush1.bf16.msra.mxu0 %v7873_v42  ;;  %v7914_v16 = vld [vmem:[%s10457_s7 + $0x424] ss:$8 sps:$4 sm:$0xff]   ;;  %v7912_v42 = vld [vmem:[%s10457_s7 + $0x420] ss:$8 sps:$4 sm:$0xff]  }
 0x2b6   :  { %5689 = vmatprep.subr.bf16.mxu0 %v7878_v17  ;;  %v7917_v17 = vld [vmem:[%s10457_s7 + $0x434] ss:$8 sps:$4 sm:$0xff]  }
 0x2b8   :  { %6776 = vmatpush3.bf16.msra.mxu1 %v7853_v18  ;;  %v7915_v18 = vld [vmem:[%s10457_s7 + $0x430] ss:$8 sps:$4 sm:$0xff]  }
 0x2b9   :  { %6777 = vmatprep.subr.bf16.mxu1 %v7854_v1  ;;  %5690 = vmatpush1.bf16.msra.mxu0 %v7876_v19  ;;  %v7920_v1 = vld [vmem:[%s10457_s7 + $0x444] ss:$8 sps:$4 sm:$0xff]   ;;  %v7918_v19 = vld [vmem:[%s10457_s7 + $0x440] ss:$8 sps:$4 sm:$0xff]  }
 0x2ba   :  { %5691 = vmatprep.subr.bf16.mxu0 %v7881_v20  ;;  %v7923_v20 = vld [vmem:[%s10457_s7 + $0x454] ss:$8 sps:$4 sm:$0xff]  }
 0x2bc   :  { %6778 = vmatpush3.bf16.msra.mxu1 %v7855_v21  ;;  %v7921_v21 = vld [vmem:[%s10457_s7 + $0x450] ss:$8 sps:$4 sm:$0xff]  }
 0x2bd   :  { %6779 = vmatprep.subr.bf16.mxu1 %v7856_v22  ;;  %5692 = vmatpush1.bf16.msra.mxu0 %v7879_v23  ;;  %v7926_v22 = vld [vmem:[%s10457_s7 + $0x464] ss:$8 sps:$4 sm:$0xff]   ;;  %v5960_v23 = vld [vmem:[%s10458_s5 + $0x8] ss:$0 sm:$0xff] }
 0x2be   :  { %5693 = vmatprep.subr.bf16.mxu0 %v7884_v33  ;;  %v7924_v33 = vld [vmem:[%s10457_s7 + $0x460] ss:$8 sps:$4 sm:$0xff]  }
 0x2c0   :  { %6780 = vmatpush3.bf16.msra.mxu1 %v7857_v24 }
 0x2c1   :  { %5694 = vmatpush1.bf16.msra.mxu0 %v7882_v25  ;;  %6787 = vmatprep.subr.bf16.mxu1 %v7930_v44  ;;  %v7929_v25 = vld [vmem:[%s10457_s7 + $0x474] ss:$8 sps:$4 sm:$0xff]  }
 0x2c2   :  { %5695 = vmatprep.subr.bf16.mxu0 %v7887_v26 }
 0x2c3   :  { %4633 = vmatmul.mubr.bf16.vlgmr.msra.gmra.mrb[16].mxu1 %v8525_v41  ;;  %v7896_v41 = vld [vmem:[%s10457_s7 + $0x3c4] ss:$8 sps:$4 sm:$0xff]  }
 0x2c4   :  { %6788 = vmatpush3.bf16.msra.mxu1 %v7931_v51  ;;  %v7942_v51 = vld [vmem:[%s10460_s10 + $0x70] sm:$0xff]  }
 0x2c5   :  { %5696 = vmatpush1.bf16.msra.mxu0 %v7885_v27  ;;  %6789 = vmatprep.subr.bf16.mxu1 %v7932_v28  ;;  %v4515_v27 = vadd.f32 %v10067_v11, %v5960_v23  ;;  %v7944_v28 = vld [vmem:[%s10460_s10 + $0x78] sm:$0xff]  }
 0x2c6   :  { %5697 = vmatprep.subr.bf16.mxu0 %v7890_v56 }
 0x2c8   :  { %6790 = vmatpush3.bf16.msra.mxu1 %v7933_v46  ;;  %v4822_v46 = vld [vmem:[%s10461_s8] sm:$0x3] }
 0x2c9   :  { %5698 = vmatpush1.bf16.msra.mxu0 %v7888_v54  ;;  %6791 = vmatprep.subr.bf16.mxu1 %v7934_v52  ;;  %v4827_v52 = vrot.slane %v4822_v46, %v8165_v50 }
 0x2ca   :  { %5699 = vmatprep.subr.bf16.mxu0 %v7893_v29 }
 0x2cc   :  { %6792 = vmatpush3.bf16.msra.mxu1 %v7935_v53  ;;  %v4831_v53 = vrot.slane %v4822_v46, %v8156_v47 }
 0x2cd   :  { %5700 = vmatpush1.bf16.msra.mxu0 %v7891_v30  ;;  %6793 = vmatprep.subr.bf16.mxu1 %v7936_v58  ;;  %v7927_v30 = vld [vmem:[%s10457_s7 + $0x470] ss:$8 sps:$4 sm:$0xff]  }
 0x2ce   :  { %5701 = vmatprep.subr.bf16.mxu0 %v7896_v41 }
 0x2d0   :  { %6794 = vmatpush3.bf16.msra.mxu1 %v7937_v59  ;;  %v5762_v59 = vstv %s10462_s9 }
 0x2d1   :  { %5702 = vmatpush1.bf16.msra.mxu0 %v7894_v32  ;;  %6795 = vmatprep.subr.bf16.mxu1 %v7938_v60 }
 0x2d2   :  { %5703 = vmatprep.subr.bf16.mxu0 %v7899_v31 }
 0x2d4   :  { %6796 = vmatpush3.bf16.msra.mxu1 %v7939_v61 }
 0x2d5   :  { %5704 = vmatpush1.bf16.msra.mxu0 %v7897_v0  ;;  %6797 = vmatprep.subr.bf16.mxu1 %v7940_v62 }
 0x2d6   :  { %5705 = vmatprep.subr.bf16.mxu0 %v7902_v34 }
 0x2d8   :  { %6798 = vmatpush3.bf16.msra.mxu1 %v7941_v63 }
 0x2d9   :  { %5706 = vmatpush1.bf16.msra.mxu0 %v7900_v35  ;;  %6799 = vmatprep.subr.bf16.mxu1 %v7942_v51 }
 0x2da   :  { %5707 = vmatprep.subr.bf16.mxu0 %v7905_v36 }
 0x2dd   :  { %5708 = vmatpush1.bf16.msra.mxu0 %v7903_v38 }
 0x2de   :  { %5718 = vmatprep.subr.bf16.mxu0 %v7908_v57 }
 0x356   :  { %v4473_v9 = vpop.f32.mrb[8].mxu1 }
 0x357   :  { %v6817_v10 = vadd.f32 %v4473_v9, %v862_v2  ;;  %v4475_v3 = vpop.f32.mrb[9].mxu1 }
 0x358   :  { %v6818_v40 = vadd.f32 %v4475_v3, %v866_v39  ;;  %v4477_v4 = vpop.f32.mrb[10].mxu1 }
 0x359   :  { %vm4646_vm14 = vcmp.ge.f32.partialorder %v6817_v10, 0.0  ;;  %v4657_v49 = vmul.f32 %v6817_v10, %v9503_v45  ;;  %v4478_v48 = vpop.f32.mrb[11].mxu1  ;;  %v6681_v4 = vld [vmem:[%s10463_s11] ss:$0 sm:$0xff] }
 0x35a   :  { %vm4647_vm15 = vcmp.ge.f32.partialorder %v6818_v40, 0.0  ;;  %v4658_v5 = vmul.f32 %v6818_v40, %v9503_v45 }
 0x35b   :  { %v4666_v6 = vsel %vm4646_vm14, %v6817_v10, %v4657_v49 }
 0x35c   :  { %v4667_v7 = vsel %vm4647_vm15, %v6818_v40, %v4658_v5  ;;  %v4675_v12 = vpack.c.bf16 %v4666_v6, %v4666_v6 }
 0x35d   :  { %v4676_v8 = vpack.c.bf16 %v4667_v7, %v4667_v7 }
 0x35f   :  { %5709 = vmatprep.mubr.bf16.mxu0 %v4676_v8 }
 0x360   :  { %5710 = vmatmul.mubr.bf16.vlgmr.msra.gmra.mrb[16].mxu0 %v4675_v12 }
 0x361   :  { %5719 = vmatpush1.bf16.msra.mxu0 %v7906_v13  ;;  %5750 = vmatprep.mubr.bf16.mxu0 %v7951_v15 }
 0x362   :  { %5720 = vmatprep.subr.bf16.mxu0 %v7911_v55  ;;  %v5945_v55 = vand.u32 127, %v59_v37 }
 0x364   :  { %vm5946_vm3 = vcmp.eq.s32.totalorder %v5945_v55, 0 }
 0x365   :  { %5721 = vmatpush1.bf16.msra.mxu0 %v7909_v14 }
 0x366   :  { %5722 = vmatprep.subr.bf16.mxu0 %v7914_v16 }
 0x369   :  { %5723 = vmatpush1.bf16.msra.mxu0 %v7912_v42 }
 0x36a   :  { %5724 = vmatprep.subr.bf16.mxu0 %v7917_v17 }
 0x36d   :  { %5725 = vmatpush1.bf16.msra.mxu0 %v7915_v18 }
 0x36e   :  { %5726 = vmatprep.subr.bf16.mxu0 %v7920_v1 }
 0x371   :  { %5727 = vmatpush1.bf16.msra.mxu0 %v7918_v19 }
 0x372   :  { %5728 = vmatprep.subr.bf16.mxu0 %v7923_v20 }
 0x375   :  { %5729 = vmatpush1.bf16.msra.mxu0 %v7921_v21 }
 0x376   :  { %v6737_v24 = vpop.f32.mrb[12].mxu1  ;;  %5730 = vmatprep.subr.bf16.mxu0 %v7926_v22 }
 0x377   :  { %v6738_v26 = vpop.f32.mrb[13].mxu1 }
 0x378   :  { %v6739_v56 = vadd.f32 %v6738_v26, %v6737_v24  ;;  %v6740_v54 = vpop.f32.mrb[14].mxu1 }
 0x379   :  { %v6741_v29 = vpop.f32.mrb[15].mxu1  ;;  %5731 = vmatpush1.bf16.msra.mxu0 %v7924_v33 }
 0x37a   :  { %v4555_v41 = vadd.f32 %v6739_v56, %v4515_v27  ;;  %5732 = vmatprep.subr.bf16.mxu0 %v7929_v25 }
 0x37c   :  { %v4595_v32 = vadd.f32 %v10171_v43, %v4555_v41  ;;  %v7943_v43 = vld [vmem:[%s10460_s10 + $0x30] sm:$0xff]  }
 0x37d   :  { %5733 = vmatpush1.bf16.msra.mxu0 %v7927_v30  ;;  %6800 = vmatpush3.bf16.msra.mxu1 %v7943_v43 }
 0x37e   :  { %6801 = vmatprep.subr.bf16.mxu1 %v7944_v28 }
 0x396   :  { %v6781_v31 = vpop.f32.mrb[16].mxu1 }
 0x397   :  { %v6782_v0 = vpop.f32.mrb[17].mxu1 }
 0x398   :  { %v6783_v34 = vadd.f32 %v6782_v0, %v6781_v31  ;;  %v6784_v35 = vpop.f32.mrb[18].mxu1 }
 0x399   :  { %v6785_v36 = vpop.f32.mrb[19].mxu1 }
 0x39a   :  { %v4635_v38 = vadd.f32 %v6783_v34, %v4595_v32 }
 0x39c   :  { %vm4648_vm0 = vcmp.ge.f32.partialorder %v4635_v38, 0.0  ;;  %v4659_v11 = vmul.f32 %v9503_v45, %v4635_v38  ;;  %v7945_v45 = vld [vmem:[%s10460_s10 + $0x38] sm:$0xff]  }
 0x39d   :  { %6802 = vmatpush3.bf16.msra.mxu1 %v7945_v45 }
 0x39e   :  { %v4668_v57 = vsel %vm4648_vm0, %v4635_v38, %v4659_v11 }
 0x39f   :  { %v4677_v44 = vpack.c.bf16 %v4668_v57, %v4668_v57 }
 0x3a1   :  { %5751 = vmatmul.mubr.bf16.vlgmr.msra.gmra.mrb[16].mxu0 %v4677_v44 }
 0x474   :  { %v5752_v58 = vpop.f32.mrb[16].mxu0 }
 0x475   :  { %v6819_v60 = vadd.f32 %v5752_v58, %v4827_v52  ;;  %v5754_v61 = vpop.f32.mrb[17].mxu0 }
 0x476   :  { %v6820_v62 = vadd.f32 %v5754_v61, %v4831_v53  ;;  %v5756_v63 = vpop.f32.mrb[18].mxu0 }
 0x477   :  { %vm5759_vm1 = vcmp.ge.f32.partialorder %v6819_v60, 0.0  ;;  %v5763_v2 = vmul.f32 %v6819_v60, %v5762_v59  ;;  %v5757_v39 = vpop.f32.mrb[19].mxu0 }
 0x478   :  { %vm5760_vm2 = vcmp.ge.f32.partialorder %v6820_v62, 0.0  ;;  %v5764_v9 = vmul.f32 %v6820_v62, %v5762_v59 }
 0x479   :  { %v5765_v10 = vsel %vm5759_vm1, %v6819_v60, %v5763_v2 }
 0x47a   :  { %v5766_v3 = vsel %vm5760_vm2, %v6820_v62, %v5764_v9  ;;  %v5767_v50 = vpack.c.bf16 %v5765_v10, %v5765_v10 }
 0x47b   :  { %v5768_v40 = vpack.c.bf16 %v5766_v3, %v5766_v3 }
 0x47d   :  { %5936 = vmatprep.mubr.bf16.mxu1 %v5768_v40 }
 0x47e   :  { %5937 = vmatmul.mubr.bf16.vlgmr.msra.gmra.mrb[20].mxu1 %v5767_v50 }
 0x551   :  { %v6803_v47 = vpop.f32.mrb[20].mxu1 }
 0x552   :  { %v6804_v49 = vpop.f32.mrb[21].mxu1 }
 0x553   :  { %v6805_v48 = vadd.f32 %v6804_v49, %v6803_v47  ;;  %v6806_v5 = vpop.f32.mrb[22].mxu1 }
 0x554   :  { %v6807_v6 = vpop.f32.mrb[23].mxu1 }
 0x555   :  { %v5939_v7 = vadd.f32 %v6805_v48, %v6681_v4 }
 0x557   :  { %v6698_v8 = vmul.f32 -1.442695, %v5939_v7 }
 0x559   :  { %7946 = vpow2.f32 %v6698_v8 }
 0x563   :  { %v7947_v13 = vpop.eup %7946 }
 0x564   :  { %v5950_v12 = vadd.f32 1.0, %v7947_v13 }
 0x566   :  { %7948 = vrcp.f32 %v5950_v12 }
 0x570   :  { %v7949_v14 = vpop.eup %7948 }
 0x571   :  { %v5953_v15 = vsel %vm5946_vm3, %v7949_v14, %v5939_v7 }
 0x572   :  { %5955 = vst.msk [vmem:[%s10464_s12] sm:$0xff] %vm5954_vm4, %v5953_v15 }

</bundles_post_ra>
